<compile_context>
chip_gen: v7x
topology: tpu7x:2x2x1
jax: 0.10.0
libtpu: 0.0.40
codegen_flags: <defaults>
</compile_context>

<pallas_src>
import functools

import jax
import jax.numpy as jnp
from jax.experimental import pallas as pl
from jax.experimental.pallas import tpu as pltpu


# Layer sizes from predictor.__init__.
LAYER_SIZES = [31, 256, 512, 1024, 512, 256, 1]
_PADDED_IN = 32     # first-layer K padded 31 -> 32 with zeros (exact semantics)
_PADDED_OUT = 128   # last-layer N padded 1 -> 128 with zeros (lane-dense output)


def _round_up(n, m):
    return (n + m - 1) // m * m


def _cdiv(a, b):
    return (a + b - 1) // b


def _tpu_config():
    """(vmem_limit_bytes, max batch tile) chosen per TPU generation."""
    vmem_bytes = None
    try:
        vmem_bytes = pltpu.get_tpu_info().vmem_capacity_bytes
    except Exception:
        pass
    if vmem_bytes is not None and vmem_bytes >= (100 << 20):
        # v5e / v6e: 128 MiB physical VMEM -> bigger tiles, higher scoped limit.
        return 64 << 20, 2048
    # v7x (64 MiB physical VMEM) or unknown: stay conservative.
    return 40 << 20, 1024


_VMEM_LIMIT, _TB_CAP = _tpu_config()


def mlp_kernel(x_ref,
               w1_ref, b1_ref, w2_ref, b2_ref, w3_ref, b3_ref,
               w4_ref, b4_ref, w5_ref, b5_ref, w6_ref, b6_ref,
               o_ref):
    """Forward pass for one (tb, 32) bf16 batch tile; weights are VMEM-resident."""
    hidden = ((w1_ref, b1_ref), (w2_ref, b2_ref), (w3_ref, b3_ref),
              (w4_ref, b4_ref), (w5_ref, b5_ref))

    def dense_relu_bf16(h, w_ref, b_ref):
        # bf16 x bf16 -> f32 accumulate on the MXU; bias + ReLU in f32 on VPU;
        # hand the next layer a bf16 tile (half the activation VMEM / ld-st).
        y = jnp.dot(h, w_ref[...], preferred_element_type=jnp.float32) + b_ref[...]
        return jnp.maximum(y, 0.0).astype(jnp.bfloat16)

    def final(h, w_ref, b_ref):
        # Last layer: no activation; result stays f32 (pad columns are zero).
        return jnp.dot(h, w_ref[...], preferred_element_type=jnp.float32) + b_ref[...]

    tb = x_ref.shape[0]
    if tb >= 256:
        # Two interleaved sub-tiles: half A's bias/ReLU/cast epilogue overlaps
        # half B's matmul, keeping the MXU fed between layers.
        half = tb // 2
        ha = x_ref[:half, :]
        hb = x_ref[half:, :]
        for w_ref, b_ref in hidden:
            ha = dense_relu_bf16(ha, w_ref, b_ref)
            hb = dense_relu_bf16(hb, w_ref, b_ref)
        o_ref[:half, :] = final(ha, w6_ref, b6_ref).astype(o_ref.dtype)
        o_ref[half:, :] = final(hb, w6_ref, b6_ref).astype(o_ref.dtype)
    else:
        h = x_ref[...]
        for w_ref, b_ref in hidden:
            h = dense_relu_bf16(h, w_ref, b_ref)
        o_ref[...] = final(h, w6_ref, b6_ref).astype(o_ref.dtype)


def init_params(key):
    """Deterministic PyTorch-Linear-style init: U(-1/sqrt(fan_in), 1/sqrt(fan_in)).

    Weights are stored as (in, out) -- transposed vs torch's (out, in) -- and
    biases as (1, out) so everything maps to lane-major VMEM tiles.
    """
    params = []
    for fan_in, fan_out in zip(LAYER_SIZES[:-1], LAYER_SIZES[1:]):
        key, kw, kb = jax.random.split(key, 3)
        bound = 1.0 / jnp.sqrt(jnp.float32(fan_in))
        w = jax.random.uniform(kw, (fan_in, fan_out), jnp.float32, -bound, bound)
        b = jax.random.uniform(kb, (1, fan_out), jnp.float32, -bound, bound)
        params.append((w, b))
    return params


@functools.partial(jax.jit, static_argnames=("single_buffer",))
def _forward_impl(x, params, single_buffer=True):
    """x: (batch, 31) float32 -> (batch, 1) float32."""
    batch = x.shape[0]

    # Batch tile: multiple of 8. For large batches guarantee >= 2 grid steps
    # (so v7x's two TensorCores both get work) with a per-generation cap.
    if batch <= 256:
        tb = _round_up(batch, 8)
    else:
        tb = min(_TB_CAP, _round_up(_cdiv(batch, 2), 256))
    b_pad = _round_up(batch, tb)

    # Pad features 31 -> 32 and batch -> b_pad; cast x to bf16 once here.
    x_p = jnp.pad(x, ((0, b_pad - batch), (0, _PADDED_IN - LAYER_SIZES[0])))
    x_p = x_p.astype(jnp.bfloat16)

    # Constant-index-map blocks never refill -> single-buffer them (saves VMEM).
    resident = {"pipeline_mode": pl.Buffered(1)} if single_buffer else {}

    flat_args = [x_p]
    in_specs = [pl.BlockSpec((tb, _PADDED_IN), lambda i: (i, 0))]
    n_layers = len(params)
    for li, (w, b) in enumerate(params):
        if li == 0:
            # Zero-pad the first weight's K dim to match the padded input.
            w = jnp.pad(w, ((0, _PADDED_IN - LAYER_SIZES[0]), (0, 0)))
        if li == n_layers - 1:
            # Lane-dense output: zero-pad the last layer's N dim 1 -> 128 so the
            # final matmul is non-degenerate and output stores are unmasked.
            w = jnp.pad(w, ((0, 0), (0, _PADDED_OUT - LAYER_SIZES[-1])))
            b = jnp.pad(b, ((0, 0), (0, _PADDED_OUT - LAYER_SIZES[-1])))
        w_bf16 = w.astype(jnp.bfloat16)  # bf16 weights: native MXU, half the DMA
        flat_args.extend([w_bf16, b])
        # Full-array blocks + constant index_map => weights stay VMEM-resident.
        in_specs.append(pl.BlockSpec(w_bf16.shape, lambda i: (0, 0), **resident))
        in_specs.append(pl.BlockSpec(b.shape, lambda i: (0, 0), **resident))

    out = pl.pallas_call(
        mlp_kernel,
        out_shape=jax.ShapeDtypeStruct((b_pad, _PADDED_OUT), jnp.float32),
        grid=(b_pad // tb,),
        in_specs=in_specs,
        out_specs=pl.BlockSpec((tb, _PADDED_OUT), lambda i: (i, 0)),
        compiler_params=pltpu.CompilerParams(
            dimension_semantics=("parallel",),   # shard batch tiles over TCs
            vmem_limit_bytes=_VMEM_LIMIT,
        ),
    )(*flat_args)

    # Only column 0 is real; pad columns are exactly zero (zero weights + bias).
    return out[:batch, :LAYER_SIZES[-1]]


def predictor_forward(x, params):
    try:
        return _forward_impl(x, params, single_buffer=True)
    except Exception:
        # Fallback if this JAX build rejects pl.Buffered(1) block specs.
        return _forward_impl(x, params, single_buffer=False)


def predictor_reference(x, params):
    """Pure-JAX reference using the same bf16-operand / f32-accumulate math."""
    h = x
    for i, (w, b) in enumerate(params):
        h = jnp.dot(h.astype(jnp.bfloat16), w.astype(jnp.bfloat16),
                    preferred_element_type=jnp.float32) + b
        if i < len(params) - 1:
            h = jnp.maximum(h, 0.0)
    return h


if __name__ == "__main__":
    key = jax.random.PRNGKey(0)
    key, kx1, kx2 = jax.random.split(key, 3)
    params = init_params(key)

    # Small batch: single grid step, non-interleaved kernel path.
    x1 = jax.random.normal(kx1, (8, LAYER_SIZES[0]), jnp.float32)
    out1 = jax.block_until_ready(predictor_forward(x1, params))
    ref1 = predictor_reference(x1, params)
    assert out1.shape == (8, 1), out1.shape
    assert jnp.allclose(out1, ref1, atol=1e-3, rtol=1e-3), "mismatch (batch=8)"

    # Larger batch: multi-step grid, padded rows, interleaved two-half path.
    x2 = jax.random.normal(kx2, (300, LAYER_SIZES[0]), jnp.float32)
    out2 = jax.block_until_ready(predictor_forward(x2, params))
    ref2 = predictor_reference(x2, params)
    assert out2.shape == (300, 1), out2.shape
    assert jnp.allclose(out2, ref2, atol=1e-3, rtol=1e-3), "mismatch (batch=300)"

    print("KERNEL_OK")
</pallas_src>

<mosaic_0001>
module attributes {stable_mosaic.version = 11 : i64} {
  func.func @mlp_kernel(%arg0: i32, %arg1: memref<8x32xbf16, #tpu.memory_space<vmem>>, %arg2: memref<32x256xbf16, #tpu.memory_space<vmem>>, %arg3: memref<1x256xf32, #tpu.memory_space<vmem>>, %arg4: memref<256x512xbf16, #tpu.memory_space<vmem>>, %arg5: memref<1x512xf32, #tpu.memory_space<vmem>>, %arg6: memref<512x1024xbf16, #tpu.memory_space<vmem>>, %arg7: memref<1x1024xf32, #tpu.memory_space<vmem>>, %arg8: memref<1024x512xbf16, #tpu.memory_space<vmem>>, %arg9: memref<1x512xf32, #tpu.memory_space<vmem>>, %arg10: memref<512x256xbf16, #tpu.memory_space<vmem>>, %arg11: memref<1x256xf32, #tpu.memory_space<vmem>>, %arg12: memref<256x128xbf16, #tpu.memory_space<vmem>>, %arg13: memref<1x128xf32, #tpu.memory_space<vmem>>, %arg14: memref<8x128xf32, #tpu.memory_space<vmem>>) attributes {dimension_semantics = [#tpu.dimension_semantics<parallel>], iteration_bounds = array<i64: 1>, scalar_prefetch = 0 : i64, scratch_operands = 0 : i64, tpu.core_type = #tpu.core_type<tc>, window_params = [{transform_indices = @transform_0, window_bounds = array<i64: 8, 32>}, {pipeline_mode = #tpu.pipeline_mode<synchronous>, transform_indices = @transform_1, window_bounds = array<i64: 32, 256>}, {pipeline_mode = #tpu.pipeline_mode<synchronous>, transform_indices = @transform_2, window_bounds = array<i64: 1, 256>}, {pipeline_mode = #tpu.pipeline_mode<synchronous>, transform_indices = @transform_3, window_bounds = array<i64: 256, 512>}, {pipeline_mode = #tpu.pipeline_mode<synchronous>, transform_indices = @transform_4, window_bounds = array<i64: 1, 512>}, {pipeline_mode = #tpu.pipeline_mode<synchronous>, transform_indices = @transform_5, window_bounds = array<i64: 512, 1024>}, {pipeline_mode = #tpu.pipeline_mode<synchronous>, transform_indices = @transform_6, window_bounds = array<i64: 1, 1024>}, {pipeline_mode = #tpu.pipeline_mode<synchronous>, transform_indices = @transform_7, window_bounds = array<i64: 1024, 512>}, {pipeline_mode = #tpu.pipeline_mode<synchronous>, transform_indices = @transform_8, window_bounds = array<i64: 1, 512>}, {pipeline_mode = #tpu.pipeline_mode<synchronous>, transform_indices = @transform_9, window_bounds = array<i64: 512, 256>}, {pipeline_mode = #tpu.pipeline_mode<synchronous>, transform_indices = @transform_10, window_bounds = array<i64: 1, 256>}, {pipeline_mode = #tpu.pipeline_mode<synchronous>, transform_indices = @transform_11, window_bounds = array<i64: 256, 128>}, {pipeline_mode = #tpu.pipeline_mode<synchronous>, transform_indices = @transform_12, window_bounds = array<i64: 1, 128>}, {transform_indices = @transform_13, window_bounds = array<i64: 8, 128>}]} {
    %c0 = arith.constant 0 : index
    %c0_0 = arith.constant 0 : index
    %0 = vector.load %arg1[%c0, %c0_0] : memref<8x32xbf16, #tpu.memory_space<vmem>>, vector<8x32xbf16>
    %c0_1 = arith.constant 0 : index
    %c0_2 = arith.constant 0 : index
    %1 = vector.load %arg2[%c0_1, %c0_2] : memref<32x256xbf16, #tpu.memory_space<vmem>>, vector<32x256xbf16>
    %cst = arith.constant dense<0.000000e+00> : vector<8x256xf32>
    %2 = tpu.matmul %0, %1, %cst {dimension_numbers = #tpu.dot_dimension_numbers<[1], [0], [0], [1], [0, 0, 1, 1], [], []>} : vector<8x32xbf16>, vector<32x256xbf16>, vector<8x256xf32> -> vector<8x256xf32>
    %c0_3 = arith.constant 0 : index
    %c0_4 = arith.constant 0 : index
    %3 = vector.load %arg3[%c0_3, %c0_4] : memref<1x256xf32, #tpu.memory_space<vmem>>, vector<1x256xf32>
    %4 = vector.broadcast %3 : vector<1x256xf32> to vector<8x256xf32>
    %5 = arith.addf %2, %4 : vector<8x256xf32>
    %cst_5 = arith.constant 0.000000e+00 : f32
    %6 = vector.broadcast %cst_5 : f32 to vector<8x256xf32>
    %7 = arith.maximumf %5, %6 : vector<8x256xf32>
    %8 = arith.truncf %7 : vector<8x256xf32> to vector<8x256xbf16>
    %c0_6 = arith.constant 0 : index
    %c0_7 = arith.constant 0 : index
    %9 = vector.load %arg4[%c0_6, %c0_7] : memref<256x512xbf16, #tpu.memory_space<vmem>>, vector<256x512xbf16>
    %cst_8 = arith.constant dense<0.000000e+00> : vector<8x512xf32>
    %10 = tpu.matmul %8, %9, %cst_8 {dimension_numbers = #tpu.dot_dimension_numbers<[1], [0], [0], [1], [0, 0, 1, 1], [], []>} : vector<8x256xbf16>, vector<256x512xbf16>, vector<8x512xf32> -> vector<8x512xf32>
    %c0_9 = arith.constant 0 : index
    %c0_10 = arith.constant 0 : index
    %11 = vector.load %arg5[%c0_9, %c0_10] : memref<1x512xf32, #tpu.memory_space<vmem>>, vector<1x512xf32>
    %12 = vector.broadcast %11 : vector<1x512xf32> to vector<8x512xf32>
    %13 = arith.addf %10, %12 : vector<8x512xf32>
    %cst_11 = arith.constant 0.000000e+00 : f32
    %14 = vector.broadcast %cst_11 : f32 to vector<8x512xf32>
    %15 = arith.maximumf %13, %14 : vector<8x512xf32>
    %16 = arith.truncf %15 : vector<8x512xf32> to vector<8x512xbf16>
    %c0_12 = arith.constant 0 : index
    %c0_13 = arith.constant 0 : index
    %17 = vector.load %arg6[%c0_12, %c0_13] : memref<512x1024xbf16, #tpu.memory_space<vmem>>, vector<512x1024xbf16>
    %cst_14 = arith.constant dense<0.000000e+00> : vector<8x1024xf32>
    %18 = tpu.matmul %16, %17, %cst_14 {dimension_numbers = #tpu.dot_dimension_numbers<[1], [0], [0], [1], [0, 0, 1, 1], [], []>} : vector<8x512xbf16>, vector<512x1024xbf16>, vector<8x1024xf32> -> vector<8x1024xf32>
    %c0_15 = arith.constant 0 : index
    %c0_16 = arith.constant 0 : index
    %19 = vector.load %arg7[%c0_15, %c0_16] : memref<1x1024xf32, #tpu.memory_space<vmem>>, vector<1x1024xf32>
    %20 = vector.broadcast %19 : vector<1x1024xf32> to vector<8x1024xf32>
    %21 = arith.addf %18, %20 : vector<8x1024xf32>
    %cst_17 = arith.constant 0.000000e+00 : f32
    %22 = vector.broadcast %cst_17 : f32 to vector<8x1024xf32>
    %23 = arith.maximumf %21, %22 : vector<8x1024xf32>
    %24 = arith.truncf %23 : vector<8x1024xf32> to vector<8x1024xbf16>
    %c0_18 = arith.constant 0 : index
    %c0_19 = arith.constant 0 : index
    %25 = vector.load %arg8[%c0_18, %c0_19] : memref<1024x512xbf16, #tpu.memory_space<vmem>>, vector<1024x512xbf16>
    %cst_20 = arith.constant dense<0.000000e+00> : vector<8x512xf32>
    %26 = tpu.matmul %24, %25, %cst_20 {dimension_numbers = #tpu.dot_dimension_numbers<[1], [0], [0], [1], [0, 0, 1, 1], [], []>} : vector<8x1024xbf16>, vector<1024x512xbf16>, vector<8x512xf32> -> vector<8x512xf32>
    %c0_21 = arith.constant 0 : index
    %c0_22 = arith.constant 0 : index
    %27 = vector.load %arg9[%c0_21, %c0_22] : memref<1x512xf32, #tpu.memory_space<vmem>>, vector<1x512xf32>
    %28 = vector.broadcast %27 : vector<1x512xf32> to vector<8x512xf32>
    %29 = arith.addf %26, %28 : vector<8x512xf32>
    %cst_23 = arith.constant 0.000000e+00 : f32
    %30 = vector.broadcast %cst_23 : f32 to vector<8x512xf32>
    %31 = arith.maximumf %29, %30 : vector<8x512xf32>
    %32 = arith.truncf %31 : vector<8x512xf32> to vector<8x512xbf16>
    %c0_24 = arith.constant 0 : index
    %c0_25 = arith.constant 0 : index
    %33 = vector.load %arg10[%c0_24, %c0_25] : memref<512x256xbf16, #tpu.memory_space<vmem>>, vector<512x256xbf16>
    %cst_26 = arith.constant dense<0.000000e+00> : vector<8x256xf32>
    %34 = tpu.matmul %32, %33, %cst_26 {dimension_numbers = #tpu.dot_dimension_numbers<[1], [0], [0], [1], [0, 0, 1, 1], [], []>} : vector<8x512xbf16>, vector<512x256xbf16>, vector<8x256xf32> -> vector<8x256xf32>
    %c0_27 = arith.constant 0 : index
    %c0_28 = arith.constant 0 : index
    %35 = vector.load %arg11[%c0_27, %c0_28] : memref<1x256xf32, #tpu.memory_space<vmem>>, vector<1x256xf32>
    %36 = vector.broadcast %35 : vector<1x256xf32> to vector<8x256xf32>
    %37 = arith.addf %34, %36 : vector<8x256xf32>
    %cst_29 = arith.constant 0.000000e+00 : f32
    %38 = vector.broadcast %cst_29 : f32 to vector<8x256xf32>
    %39 = arith.maximumf %37, %38 : vector<8x256xf32>
    %40 = arith.truncf %39 : vector<8x256xf32> to vector<8x256xbf16>
    %c0_30 = arith.constant 0 : index
    %c0_31 = arith.constant 0 : index
    %41 = vector.load %arg12[%c0_30, %c0_31] : memref<256x128xbf16, #tpu.memory_space<vmem>>, vector<256x128xbf16>
    %cst_32 = arith.constant dense<0.000000e+00> : vector<8x128xf32>
    %42 = tpu.matmul %40, %41, %cst_32 {dimension_numbers = #tpu.dot_dimension_numbers<[1], [0], [0], [1], [0, 0, 1, 1], [], []>} : vector<8x256xbf16>, vector<256x128xbf16>, vector<8x128xf32> -> vector<8x128xf32>
    %c0_33 = arith.constant 0 : index
    %c0_34 = arith.constant 0 : index
    %43 = vector.load %arg13[%c0_33, %c0_34] : memref<1x128xf32, #tpu.memory_space<vmem>>, vector<1x128xf32>
    %44 = vector.broadcast %43 : vector<1x128xf32> to vector<8x128xf32>
    %45 = arith.addf %42, %44 : vector<8x128xf32>
    %c0_35 = arith.constant 0 : index
    %c0_36 = arith.constant 0 : index
    %46 = vector.load %arg14[%c0_35, %c0_36] : memref<8x128xf32, #tpu.memory_space<vmem>>, vector<8x128xf32>
    tpu.vector_store %arg14[%c0_35, %c0_36], %45 {strides = array<i32>} : memref<8x128xf32, #tpu.memory_space<vmem>>, vector<8x128xf32>,
    return
  }
  func.func @transform_0(%arg0: i32) -> (i32, i32) {
    %c0_i32 = arith.constant 0 : i32
    %c0_i32_0 = arith.constant 0 : i32
    return %arg0, %c0_i32 : i32, i32
  }
  func.func @transform_1(%arg0: i32) -> (i32, i32) {
    %c0_i32 = arith.constant 0 : i32
    %c0_i32_0 = arith.constant 0 : i32
    %c0_i32_1 = arith.constant 0 : i32
    return %c0_i32, %c0_i32_0 : i32, i32
  }
  func.func @transform_2(%arg0: i32) -> (i32, i32) {
    %c0_i32 = arith.constant 0 : i32
    %c0_i32_0 = arith.constant 0 : i32
    %c0_i32_1 = arith.constant 0 : i32
    return %c0_i32, %c0_i32_0 : i32, i32
  }
  func.func @transform_3(%arg0: i32) -> (i32, i32) {
    %c0_i32 = arith.constant 0 : i32
    %c0_i32_0 = arith.constant 0 : i32
    %c0_i32_1 = arith.constant 0 : i32
    return %c0_i32, %c0_i32_0 : i32, i32
  }
  func.func @transform_4(%arg0: i32) -> (i32, i32) {
    %c0_i32 = arith.constant 0 : i32
    %c0_i32_0 = arith.constant 0 : i32
    %c0_i32_1 = arith.constant 0 : i32
    return %c0_i32, %c0_i32_0 : i32, i32
  }
  func.func @transform_5(%arg0: i32) -> (i32, i32) {
    %c0_i32 = arith.constant 0 : i32
    %c0_i32_0 = arith.constant 0 : i32
    %c0_i32_1 = arith.constant 0 : i32
    return %c0_i32, %c0_i32_0 : i32, i32
  }
  func.func @transform_6(%arg0: i32) -> (i32, i32) {
    %c0_i32 = arith.constant 0 : i32
    %c0_i32_0 = arith.constant 0 : i32
    %c0_i32_1 = arith.constant 0 : i32
    return %c0_i32, %c0_i32_0 : i32, i32
  }
  func.func @transform_7(%arg0: i32) -> (i32, i32) {
    %c0_i32 = arith.constant 0 : i32
    %c0_i32_0 = arith.constant 0 : i32
    %c0_i32_1 = arith.constant 0 : i32
    return %c0_i32, %c0_i32_0 : i32, i32
  }
  func.func @transform_8(%arg0: i32) -> (i32, i32) {
    %c0_i32 = arith.constant 0 : i32
    %c0_i32_0 = arith.constant 0 : i32
    %c0_i32_1 = arith.constant 0 : i32
    return %c0_i32, %c0_i32_0 : i32, i32
  }
  func.func @transform_9(%arg0: i32) -> (i32, i32) {
    %c0_i32 = arith.constant 0 : i32
    %c0_i32_0 = arith.constant 0 : i32
    %c0_i32_1 = arith.constant 0 : i32
    return %c0_i32, %c0_i32_0 : i32, i32
  }
  func.func @transform_10(%arg0: i32) -> (i32, i32) {
    %c0_i32 = arith.constant 0 : i32
    %c0_i32_0 = arith.constant 0 : i32
    %c0_i32_1 = arith.constant 0 : i32
    return %c0_i32, %c0_i32_0 : i32, i32
  }
  func.func @transform_11(%arg0: i32) -> (i32, i32) {
    %c0_i32 = arith.constant 0 : i32
    %c0_i32_0 = arith.constant 0 : i32
    %c0_i32_1 = arith.constant 0 : i32
    return %c0_i32, %c0_i32_0 : i32, i32
  }
  func.func @transform_12(%arg0: i32) -> (i32, i32) {
    %c0_i32 = arith.constant 0 : i32
    %c0_i32_0 = arith.constant 0 : i32
    %c0_i32_1 = arith.constant 0 : i32
    return %c0_i32, %c0_i32_0 : i32, i32
  }
  func.func @transform_13(%arg0: i32) -> (i32, i32) {
    %c0_i32 = arith.constant 0 : i32
    %c0_i32_0 = arith.constant 0 : i32
    return %arg0, %c0_i32 : i32, i32
  }
}

module attributes {stable_mosaic.version = 11 : i64} {
  func.func @mlp_kernel(%arg0: i32, %arg1: memref<8x32xbf16, #tpu.memory_space<vmem>>, %arg2: memref<32x256xbf16, #tpu.memory_space<vmem>>, %arg3: memref<1x256xf32, #tpu.memory_space<vmem>>, %arg4: memref<256x512xbf16, #tpu.memory_space<vmem>>, %arg5: memref<1x512xf32, #tpu.memory_space<vmem>>, %arg6: memref<512x1024xbf16, #tpu.memory_space<vmem>>, %arg7: memref<1x1024xf32, #tpu.memory_space<vmem>>, %arg8: memref<1024x512xbf16, #tpu.memory_space<vmem>>, %arg9: memref<1x512xf32, #tpu.memory_space<vmem>>, %arg10: memref<512x256xbf16, #tpu.memory_space<vmem>>, %arg11: memref<1x256xf32, #tpu.memory_space<vmem>>, %arg12: memref<256x128xbf16, #tpu.memory_space<vmem>>, %arg13: memref<1x128xf32, #tpu.memory_space<vmem>>, %arg14: memref<8x128xf32, #tpu.memory_space<vmem>>) attributes {dimension_semantics = [#tpu.dimension_semantics<parallel>], iteration_bounds = array<i64: 1>, scalar_prefetch = 0 : i64, scratch_operands = 0 : i64, tpu.core_type = #tpu.core_type<tc>, window_params = [{transform_indices = @transform_0, window_bounds = array<i64: 8, 32>}, {pipeline_mode = #tpu.pipeline_mode<synchronous>, transform_indices = @transform_1, window_bounds = array<i64: 32, 256>}, {pipeline_mode = #tpu.pipeline_mode<synchronous>, transform_indices = @transform_2, window_bounds = array<i64: 1, 256>}, {pipeline_mode = #tpu.pipeline_mode<synchronous>, transform_indices = @transform_3, window_bounds = array<i64: 256, 512>}, {pipeline_mode = #tpu.pipeline_mode<synchronous>, transform_indices = @transform_4, window_bounds = array<i64: 1, 512>}, {pipeline_mode = #tpu.pipeline_mode<synchronous>, transform_indices = @transform_5, window_bounds = array<i64: 512, 1024>}, {pipeline_mode = #tpu.pipeline_mode<synchronous>, transform_indices = @transform_6, window_bounds = array<i64: 1, 1024>}, {pipeline_mode = #tpu.pipeline_mode<synchronous>, transform_indices = @transform_7, window_bounds = array<i64: 1024, 512>}, {pipeline_mode = #tpu.pipeline_mode<synchronous>, transform_indices = @transform_8, window_bounds = array<i64: 1, 512>}, {pipeline_mode = #tpu.pipeline_mode<synchronous>, transform_indices = @transform_9, window_bounds = array<i64: 512, 256>}, {pipeline_mode = #tpu.pipeline_mode<synchronous>, transform_indices = @transform_10, window_bounds = array<i64: 1, 256>}, {pipeline_mode = #tpu.pipeline_mode<synchronous>, transform_indices = @transform_11, window_bounds = array<i64: 256, 128>}, {pipeline_mode = #tpu.pipeline_mode<synchronous>, transform_indices = @transform_12, window_bounds = array<i64: 1, 128>}, {transform_indices = @transform_13, window_bounds = array<i64: 8, 128>}]} {
    %c0 = arith.constant 0 : index
    %c0_0 = arith.constant 0 : index
    %0 = vector.load %arg1[%c0, %c0_0] : memref<8x32xbf16, #tpu.memory_space<vmem>>, vector<8x32xbf16>
    %c0_1 = arith.constant 0 : index
    %c0_2 = arith.constant 0 : index
    %1 = vector.load %arg2[%c0_1, %c0_2] : memref<32x256xbf16, #tpu.memory_space<vmem>>, vector<32x256xbf16>
    %cst = arith.constant dense<0.000000e+00> : vector<8x256xf32>
    %2 = tpu.matmul %0, %1, %cst {dimension_numbers = #tpu.dot_dimension_numbers<[1], [0], [0], [1], [0, 0, 1, 1], [], []>} : vector<8x32xbf16>, vector<32x256xbf16>, vector<8x256xf32> -> vector<8x256xf32>
    %c0_3 = arith.constant 0 : index
    %c0_4 = arith.constant 0 : index
    %3 = vector.load %arg3[%c0_3, %c0_4] : memref<1x256xf32, #tpu.memory_space<vmem>>, vector<1x256xf32>
    %4 = vector.broadcast %3 : vector<1x256xf32> to vector<8x256xf32>
    %5 = arith.addf %2, %4 : vector<8x256xf32>
    %cst_5 = arith.constant 0.000000e+00 : f32
    %6 = vector.broadcast %cst_5 : f32 to vector<8x256xf32>
    %7 = arith.maximumf %5, %6 : vector<8x256xf32>
    %8 = arith.truncf %7 : vector<8x256xf32> to vector<8x256xbf16>
    %c0_6 = arith.constant 0 : index
    %c0_7 = arith.constant 0 : index
    %9 = vector.load %arg4[%c0_6, %c0_7] : memref<256x512xbf16, #tpu.memory_space<vmem>>, vector<256x512xbf16>
    %cst_8 = arith.constant dense<0.000000e+00> : vector<8x512xf32>
    %10 = tpu.matmul %8, %9, %cst_8 {dimension_numbers = #tpu.dot_dimension_numbers<[1], [0], [0], [1], [0, 0, 1, 1], [], []>} : vector<8x256xbf16>, vector<256x512xbf16>, vector<8x512xf32> -> vector<8x512xf32>
    %c0_9 = arith.constant 0 : index
    %c0_10 = arith.constant 0 : index
    %11 = vector.load %arg5[%c0_9, %c0_10] : memref<1x512xf32, #tpu.memory_space<vmem>>, vector<1x512xf32>
    %12 = vector.broadcast %11 : vector<1x512xf32> to vector<8x512xf32>
    %13 = arith.addf %10, %12 : vector<8x512xf32>
    %cst_11 = arith.constant 0.000000e+00 : f32
    %14 = vector.broadcast %cst_11 : f32 to vector<8x512xf32>
    %15 = arith.maximumf %13, %14 : vector<8x512xf32>
    %16 = arith.truncf %15 : vector<8x512xf32> to vector<8x512xbf16>
    %c0_12 = arith.constant 0 : index
    %c0_13 = arith.constant 0 : index
    %17 = vector.load %arg6[%c0_12, %c0_13] : memref<512x1024xbf16, #tpu.memory_space<vmem>>, vector<512x1024xbf16>
    %cst_14 = arith.constant dense<0.000000e+00> : vector<8x1024xf32>
    %18 = tpu.matmul %16, %17, %cst_14 {dimension_numbers = #tpu.dot_dimension_numbers<[1], [0], [0], [1], [0, 0, 1, 1], [], []>} : vector<8x512xbf16>, vector<512x1024xbf16>, vector<8x1024xf32> -> vector<8x1024xf32>
    %c0_15 = arith.constant 0 : index
    %c0_16 = arith.constant 0 : index
    %19 = vector.load %arg7[%c0_15, %c0_16] : memref<1x1024xf32, #tpu.memory_space<vmem>>, vector<1x1024xf32>
    %20 = vector.broadcast %19 : vector<1x1024xf32> to vector<8x1024xf32>
    %21 = arith.addf %18, %20 : vector<8x1024xf32>
    %cst_17 = arith.constant 0.000000e+00 : f32
    %22 = vector.broadcast %cst_17 : f32 to vector<8x1024xf32>
    %23 = arith.maximumf %21, %22 : vector<8x1024xf32>
    %24 = arith.truncf %23 : vector<8x1024xf32> to vector<8x1024xbf16>
    %c0_18 = arith.constant 0 : index
    %c0_19 = arith.constant 0 : index
    %25 = vector.load %arg8[%c0_18, %c0_19] : memref<1024x512xbf16, #tpu.memory_space<vmem>>, vector<1024x512xbf16>
    %cst_20 = arith.constant dense<0.000000e+00> : vector<8x512xf32>
    %26 = tpu.matmul %24, %25, %cst_20 {dimension_numbers = #tpu.dot_dimension_numbers<[1], [0], [0], [1], [0, 0, 1, 1], [], []>} : vector<8x1024xbf16>, vector<1024x512xbf16>, vector<8x512xf32> -> vector<8x512xf32>
    %c0_21 = arith.constant 0 : index
    %c0_22 = arith.constant 0 : index
    %27 = vector.load %arg9[%c0_21, %c0_22] : memref<1x512xf32, #tpu.memory_space<vmem>>, vector<1x512xf32>
    %28 = vector.broadcast %27 : vector<1x512xf32> to vector<8x512xf32>
    %29 = arith.addf %26, %28 : vector<8x512xf32>
    %cst_23 = arith.constant 0.000000e+00 : f32
    %30 = vector.broadcast %cst_23 : f32 to vector<8x512xf32>
    %31 = arith.maximumf %29, %30 : vector<8x512xf32>
    %32 = arith.truncf %31 : vector<8x512xf32> to vector<8x512xbf16>
    %c0_24 = arith.constant 0 : index
    %c0_25 = arith.constant 0 : index
    %33 = vector.load %arg10[%c0_24, %c0_25] : memref<512x256xbf16, #tpu.memory_space<vmem>>, vector<512x256xbf16>
    %cst_26 = arith.constant dense<0.000000e+00> : vector<8x256xf32>
    %34 = tpu.matmul %32, %33, %cst_26 {dimension_numbers = #tpu.dot_dimension_numbers<[1], [0], [0], [1], [0, 0, 1, 1], [], []>} : vector<8x512xbf16>, vector<512x256xbf16>, vector<8x256xf32> -> vector<8x256xf32>
    %c0_27 = arith.constant 0 : index
    %c0_28 = arith.constant 0 : index
    %35 = vector.load %arg11[%c0_27, %c0_28] : memref<1x256xf32, #tpu.memory_space<vmem>>, vector<1x256xf32>
    %36 = vector.broadcast %35 : vector<1x256xf32> to vector<8x256xf32>
    %37 = arith.addf %34, %36 : vector<8x256xf32>
    %cst_29 = arith.constant 0.000000e+00 : f32
    %38 = vector.broadcast %cst_29 : f32 to vector<8x256xf32>
    %39 = arith.maximumf %37, %38 : vector<8x256xf32>
    %40 = arith.truncf %39 : vector<8x256xf32> to vector<8x256xbf16>
    %c0_30 = arith.constant 0 : index
    %c0_31 = arith.constant 0 : index
    %41 = vector.load %arg12[%c0_30, %c0_31] : memref<256x128xbf16, #tpu.memory_space<vmem>>, vector<256x128xbf16>
    %cst_32 = arith.constant dense<0.000000e+00> : vector<8x128xf32>
    %42 = tpu.matmul %40, %41, %cst_32 {dimension_numbers = #tpu.dot_dimension_numbers<[1], [0], [0], [1], [0, 0, 1, 1], [], []>} : vector<8x256xbf16>, vector<256x128xbf16>, vector<8x128xf32> -> vector<8x128xf32>
    %c0_33 = arith.constant 0 : index
    %c0_34 = arith.constant 0 : index
    %43 = vector.load %arg13[%c0_33, %c0_34] : memref<1x128xf32, #tpu.memory_space<vmem>>, vector<1x128xf32>
    %44 = vector.broadcast %43 : vector<1x128xf32> to vector<8x128xf32>
    %45 = arith.addf %42, %44 : vector<8x128xf32>
    %c0_35 = arith.constant 0 : index
    %c0_36 = arith.constant 0 : index
    %46 = vector.load %arg14[%c0_35, %c0_36] : memref<8x128xf32, #tpu.memory_space<vmem>>, vector<8x128xf32>
    tpu.vector_store %arg14[%c0_35, %c0_36], %45 {strides = array<i32>} : memref<8x128xf32, #tpu.memory_space<vmem>>, vector<8x128xf32>,
    return
  }
  func.func @transform_0(%arg0: i32) -> (i32, i32) {
    %c0_i32 = arith.constant 0 : i32
    %c0_i32_0 = arith.constant 0 : i32
    return %arg0, %c0_i32 : i32, i32
  }
  func.func @transform_1(%arg0: i32) -> (i32, i32) {
    %c0_i32 = arith.constant 0 : i32
    %c0_i32_0 = arith.constant 0 : i32
    %c0_i32_1 = arith.constant 0 : i32
    return %c0_i32, %c0_i32_0 : i32, i32
  }
  func.func @transform_2(%arg0: i32) -> (i32, i32) {
    %c0_i32 = arith.constant 0 : i32
    %c0_i32_0 = arith.constant 0 : i32
    %c0_i32_1 = arith.constant 0 : i32
    return %c0_i32, %c0_i32_0 : i32, i32
  }
  func.func @transform_3(%arg0: i32) -> (i32, i32) {
    %c0_i32 = arith.constant 0 : i32
    %c0_i32_0 = arith.constant 0 : i32
    %c0_i32_1 = arith.constant 0 : i32
    return %c0_i32, %c0_i32_0 : i32, i32
  }
  func.func @transform_4(%arg0: i32) -> (i32, i32) {
    %c0_i32 = arith.constant 0 : i32
    %c0_i32_0 = arith.constant 0 : i32
    %c0_i32_1 = arith.constant 0 : i32
    return %c0_i32, %c0_i32_0 : i32, i32
  }
  func.func @transform_5(%arg0: i32) -> (i32, i32) {
    %c0_i32 = arith.constant 0 : i32
    %c0_i32_0 = arith.constant 0 : i32
    %c0_i32_1 = arith.constant 0 : i32
    return %c0_i32, %c0_i32_0 : i32, i32
  }
  func.func @transform_6(%arg0: i32) -> (i32, i32) {
    %c0_i32 = arith.constant 0 : i32
    %c0_i32_0 = arith.constant 0 : i32
    %c0_i32_1 = arith.constant 0 : i32
    return %c0_i32, %c0_i32_0 : i32, i32
  }
  func.func @transform_7(%arg0: i32) -> (i32, i32) {
    %c0_i32 = arith.constant 0 : i32
    %c0_i32_0 = arith.constant 0 : i32
    %c0_i32_1 = arith.constant 0 : i32
    return %c0_i32, %c0_i32_0 : i32, i32
  }
  func.func @transform_8(%arg0: i32) -> (i32, i32) {
    %c0_i32 = arith.constant 0 : i32
    %c0_i32_0 = arith.constant 0 : i32
    %c0_i32_1 = arith.constant 0 : i32
    return %c0_i32, %c0_i32_0 : i32, i32
  }
  func.func @transform_9(%arg0: i32) -> (i32, i32) {
    %c0_i32 = arith.constant 0 : i32
    %c0_i32_0 = arith.constant 0 : i32
    %c0_i32_1 = arith.constant 0 : i32
    return %c0_i32, %c0_i32_0 : i32, i32
  }
  func.func @transform_10(%arg0: i32) -> (i32, i32) {
    %c0_i32 = arith.constant 0 : i32
    %c0_i32_0 = arith.constant 0 : i32
    %c0_i32_1 = arith.constant 0 : i32
    return %c0_i32, %c0_i32_0 : i32, i32
  }
  func.func @transform_11(%arg0: i32) -> (i32, i32) {
    %c0_i32 = arith.constant 0 : i32
    %c0_i32_0 = arith.constant 0 : i32
    %c0_i32_1 = arith.constant 0 : i32
    return %c0_i32, %c0_i32_0 : i32, i32
  }
  func.func @transform_12(%arg0: i32) -> (i32, i32) {
    %c0_i32 = arith.constant 0 : i32
    %c0_i32_0 = arith.constant 0 : i32
    %c0_i32_1 = arith.constant 0 : i32
    return %c0_i32, %c0_i32_0 : i32, i32
  }
  func.func @transform_13(%arg0: i32) -> (i32, i32) {
    %c0_i32 = arith.constant 0 : i32
    %c0_i32_0 = arith.constant 0 : i32
    return %arg0, %c0_i32 : i32, i32
  }
}

</mosaic_0001>

<bundles_post_ra>
// kernel: _forward_impl.1
= control target key start
LH: loop header
LB: loop body
LE: loop exit
PB: predicated region body
PF: predicated region fallthrough
CT: control target
= control target key end

     0   :  { %v6446_v1 = vmov 0   ;;  %vm82_vm0 = vcmask 261120   ;;  %s8636_s1 = inlined_call_operand.vmem [shape: bf16[32,256], index: 1, kind: input, shape index: {}]   ;;  %s8637_s3 = inlined_call_operand.vmem [shape: bf16[256,512], index: 3, kind: input, shape index: {}]   ;;  %s8638_s0 = inlined_call_operand.vmem [shape: bf16[8,32], index: 0, kind: input, shape index: {}]   ;;  %s8639_s5 = inlined_call_operand.vmem [shape: bf16[512,1024], index: 5, kind: input, shape index: {}]   ;;  %s8640_s2 = inlined_call_operand.vmem [shape: f32[1,256], index: 2, kind: input, shape index: {}]   ;;  %s8641_s4 = inlined_call_operand.vmem [shape: f32[1,512], index: 4, kind: input, shape index: {}]   ;;  %s8642_s7 = inlined_call_operand.vmem [shape: bf16[1024,512], index: 7, kind: input, shape index: {}]   ;;  %s8643_s6 = inlined_call_operand.vmem [shape: f32[1,1024], index: 6, kind: input, shape index: {}]   ;;  %s8644_s9 = inlined_call_operand.vmem [shape: bf16[512,256], index: 9, kind: input, shape index: {}]   ;;  %s8645_s11 = inlined_call_operand.vmem [shape: bf16[256,128], index: 11, kind: input, shape index: {}]   ;;  %s8646_s8 = inlined_call_operand.vmem [shape: f32[1,512], index: 8, kind: input, shape index: {}]   ;;  %s8647_s10 = inlined_call_operand.vmem [shape: f32[1,256], index: 10, kind: input, shape index: {}]   ;;  %s8648_s12 = inlined_call_operand.vmem [shape: f32[1,128], index: 12, kind: input, shape index: {}]   ;;  %s8649_s13 = inlined_call_operand.vmem [shape: f32[8,128], index: 13, kind: output, shape index: {}]  }
   0x1   :  { %v5848_v0 = vld [vmem:[%s8636_s1 + $0x4] ss:$8 sps:$4 sm:$0xff]   ;;  %118 = vmatprep.mubr.bf16.mxu1 %v6446_v1  ;;  %v5850_v2 = vld [vmem:[%s8636_s1] ss:$8 sps:$4 sm:$0xff]   ;;  %v5851_v3 = vld [vmem:[%s8636_s1 + $0x14] ss:$8 sps:$4 sm:$0xff]  }
   0x2   :  { %86 = vmatprep.subr.bf16.mxu1 %v5848_v0  ;;  %v5853_v4 = vld [vmem:[%s8636_s1 + $0x10] ss:$8 sps:$4 sm:$0xff]   ;;  %v5854_v5 = vld [vmem:[%s8637_s3 + $0x4] ss:$16 sps:$4 sm:$0xff]   ;;  %v45_v8 = vld [vmem:[%s8638_s0] sm:$0xf] }
   0x3   :  { %87 = vmatpush1.bf16.msra.mxu1 %v5850_v2  ;;  %v5856_v6 = vld [vmem:[%s8637_s3] ss:$16 sps:$4 sm:$0xff]   ;;  %537 = vmatprep.subr.bf16.mxu0 %v5854_v5  ;;  %v5857_v7 = vld [vmem:[%s8637_s3 + $0x24] ss:$16 sps:$4 sm:$0xff]   ;;  %v5904_v38 = vld [vmem:[%s8637_s3 + $0xc] ss:$16 sps:$4 sm:$0xff]  }
   0x4   :  { %88 = vmatprep.subr.bf16.mxu1 %v5851_v3  ;;  %538 = vmatpush1.bf16.msra.mxu0 %v5856_v6  ;;  %v5859_v9 = vld [vmem:[%s8637_s3 + $0x20] ss:$16 sps:$4 sm:$0xff]   ;;  %v5860_v10 = vld [vmem:[%s8637_s3 + $0x44] ss:$16 sps:$4 sm:$0xff]  }
   0x5   :  { %539 = vmatprep.subr.bf16.mxu0 %v5857_v7  ;;  %v5862_v11 = vld [vmem:[%s8637_s3 + $0x40] ss:$16 sps:$4 sm:$0xff]   ;;  %v5863_v12 = vld [vmem:[%s8637_s3 + $0x64] ss:$16 sps:$4 sm:$0xff]  }
   0x6   :  { %v5865_v13 = vld [vmem:[%s8637_s3 + $0x60] ss:$16 sps:$4 sm:$0xff]   ;;  %v5866_v14 = vld [vmem:[%s8637_s3 + $0x84] ss:$16 sps:$4 sm:$0xff]  }
   0x7   :  { %89 = vmatpush1.bf16.msra.mxu1 %v5853_v4  ;;  %v5868_v15 = vld [vmem:[%s8637_s3 + $0x80] ss:$16 sps:$4 sm:$0xff]   ;;  %v5869_v16 = vld [vmem:[%s8637_s3 + $0xa4] ss:$16 sps:$4 sm:$0xff]  }
   0x8   :  { %540 = vmatpush1.bf16.msra.mxu0 %v5859_v9  ;;  %v5871_v17 = vld [vmem:[%s8637_s3 + $0xa0] ss:$16 sps:$4 sm:$0xff]   ;;  %v5872_v18 = vld [vmem:[%s8637_s3 + $0xc4] ss:$16 sps:$4 sm:$0xff]  }
   0x9   :  { %541 = vmatprep.subr.bf16.mxu0 %v5860_v10  ;;  %v5874_v19 = vld [vmem:[%s8637_s3 + $0xc0] ss:$16 sps:$4 sm:$0xff]   ;;  %v5875_v20 = vld [vmem:[%s8637_s3 + $0xe4] ss:$16 sps:$4 sm:$0xff]  }
   0xa   :  { %5109 = vmatmul.mubr.msk.bf16.vlgmr.msra.gmra.mrb[0].mxu1 %vm82_vm0, %v45_v8  ;;  %v5877_v21 = vld [vmem:[%s8637_s3 + $0xe0] ss:$16 sps:$4 sm:$0xff]   ;;  %v5878_v22 = vld [vmem:[%s8637_s3 + $0x104] ss:$16 sps:$4 sm:$0xff]  }
   0xb   :  { %v5880_v23 = vld [vmem:[%s8637_s3 + $0x100] ss:$16 sps:$4 sm:$0xff]   ;;  %v5881_v24 = vld [vmem:[%s8637_s3 + $0x124] ss:$16 sps:$4 sm:$0xff]  }
   0xc   :  { %542 = vmatpush1.bf16.msra.mxu0 %v5862_v11  ;;  %v5883_v25 = vld [vmem:[%s8637_s3 + $0x120] ss:$16 sps:$4 sm:$0xff]   ;;  %v5884_v26 = vld [vmem:[%s8637_s3 + $0x144] ss:$16 sps:$4 sm:$0xff]  }
   0xd   :  { %543 = vmatprep.subr.bf16.mxu0 %v5863_v12  ;;  %v5886_v27 = vld [vmem:[%s8637_s3 + $0x140] ss:$16 sps:$4 sm:$0xff]   ;;  %v5887_v28 = vld [vmem:[%s8637_s3 + $0x164] ss:$16 sps:$4 sm:$0xff]  }
   0xe   :  { %v5889_v29 = vld [vmem:[%s8637_s3 + $0x160] ss:$16 sps:$4 sm:$0xff]   ;;  %v5890_v30 = vld [vmem:[%s8637_s3 + $0x184] ss:$16 sps:$4 sm:$0xff]  }
   0xf   :  { %v5892_v31 = vld [vmem:[%s8637_s3 + $0x180] ss:$16 sps:$4 sm:$0xff]   ;;  %v5893_v32 = vld [vmem:[%s8637_s3 + $0x1a4] ss:$16 sps:$4 sm:$0xff]  }
  0x10   :  { %544 = vmatpush1.bf16.msra.mxu0 %v5865_v13  ;;  %v5895_v33 = vld [vmem:[%s8637_s3 + $0x1a0] ss:$16 sps:$4 sm:$0xff]   ;;  %v5896_v34 = vld [vmem:[%s8637_s3 + $0x1c4] ss:$16 sps:$4 sm:$0xff]  }
  0x11   :  { %545 = vmatprep.subr.bf16.mxu0 %v5866_v14  ;;  %v5898_v35 = vld [vmem:[%s8637_s3 + $0x1c0] ss:$16 sps:$4 sm:$0xff]   ;;  %v5899_v36 = vld [vmem:[%s8637_s3 + $0x1e4] ss:$16 sps:$4 sm:$0xff]  }
  0x12   :  { %v5901_v37 = vld [vmem:[%s8637_s3 + $0x1e0] ss:$16 sps:$4 sm:$0xff]  }
  0x13   :  { %v627_v39 = vld [vmem:[%s8639_s5] sm:$0xff] }
  0x14   :  { %546 = vmatpush1.bf16.msra.mxu0 %v5868_v15  ;;  %v631_v40 = vld [vmem:[%s8639_s5 + $0x20] sm:$0xff] }
  0x15   :  { %547 = vmatprep.subr.bf16.mxu0 %v5869_v16  ;;  %v5174_v41 = vcombine.low %v627_v39, %v631_v40  ;;  %v5175_v42 = vcombine.high %v627_v39, %v631_v40  ;;  %v635_v43 = vld [vmem:[%s8639_s5 + $0x40] sm:$0xff] }
  0x16   :  { %v639_v44 = vld [vmem:[%s8639_s5 + $0x60] sm:$0xff] }
  0x17   :  { %v5183_v45 = vcombine.high %v635_v43, %v639_v44  ;;  %2205 = vmatprep.subr.bf16.mxu1 %v5175_v42  ;;  %v5182_v46 = vcombine.low %v635_v43, %v639_v44  ;;  %v643_v47 = vld [vmem:[%s8639_s5 + $0x80] sm:$0xff] }
  0x18   :  { %548 = vmatpush1.bf16.msra.mxu0 %v5871_v17  ;;  %2206 = vmatpush1.bf16.msra.mxu1 %v5174_v41  ;;  %v647_v48 = vld [vmem:[%s8639_s5 + $0xa0] sm:$0xff] }
  0x19   :  { %549 = vmatprep.subr.bf16.mxu0 %v5872_v18  ;;  %2207 = vmatprep.subr.bf16.mxu1 %v5183_v45  ;;  %v5191_v49 = vcombine.high %v643_v47, %v647_v48  ;;  %v5190_v50 = vcombine.low %v643_v47, %v647_v48  ;;  %v651_v51 = vld [vmem:[%s8639_s5 + $0xc0] sm:$0xff]  ;;  %v52_v18 = vlaneseq  ;;  %v5902_v47 = vld [vmem:[%s8637_s3 + $0x8] ss:$16 sps:$4 sm:$0xff]  }
  0x1a   :  { %v655_v52 = vld [vmem:[%s8639_s5 + $0xe0] sm:$0xff] }
  0x1b   :  { %v5199_v53 = vcombine.high %v651_v51, %v655_v52  ;;  %v5198_v54 = vcombine.low %v651_v51, %v655_v52  ;;  %v659_v55 = vld [vmem:[%s8639_s5 + $0x100] sm:$0xff]  ;;  %v5910_v51 = vld [vmem:[%s8637_s3 + $0x4c] ss:$16 sps:$4 sm:$0xff]   ;;  %v5908_v52 = vld [vmem:[%s8637_s3 + $0x48] ss:$16 sps:$4 sm:$0xff]  }
  0x1c   :  { %550 = vmatpush1.bf16.msra.mxu0 %v5874_v19  ;;  %2208 = vmatpush1.bf16.msra.mxu1 %v5182_v46  ;;  %v663_v56 = vld [vmem:[%s8639_s5 + $0x120] sm:$0xff] }
  0x1d   :  { %551 = vmatprep.subr.bf16.mxu0 %v5875_v20  ;;  %2209 = vmatprep.subr.bf16.mxu1 %v5191_v49  ;;  %v5207_v57 = vcombine.high %v659_v55, %v663_v56  ;;  %v5206_v58 = vcombine.low %v659_v55, %v663_v56  ;;  %v667_v59 = vld [vmem:[%s8639_s5 + $0x140] sm:$0xff]  ;;  %v5907_v49 = vld [vmem:[%s8637_s3 + $0x2c] ss:$16 sps:$4 sm:$0xff]   ;;  %v5914_v56 = vld [vmem:[%s8637_s3 + $0x88] ss:$16 sps:$4 sm:$0xff]  }
  0x1e   :  { %v671_v60 = vld [vmem:[%s8639_s5 + $0x160] sm:$0xff]  ;;  %v5916_v55 = vld [vmem:[%s8637_s3 + $0x8c] ss:$16 sps:$4 sm:$0xff]  }
  0x1f   :  { %v5215_v61 = vcombine.high %v667_v59, %v671_v60  ;;  %v5214_v62 = vcombine.low %v667_v59, %v671_v60  ;;  %v675_v63 = vld [vmem:[%s8639_s5 + $0x180] sm:$0xff]  ;;  %v5922_v59 = vld [vmem:[%s8637_s3 + $0xcc] ss:$16 sps:$4 sm:$0xff]   ;;  %v5920_v60 = vld [vmem:[%s8637_s3 + $0xc8] ss:$16 sps:$4 sm:$0xff]  }
  0x20   :  { %552 = vmatpush1.bf16.msra.mxu0 %v5877_v21  ;;  %2210 = vmatpush1.bf16.msra.mxu1 %v5190_v50  ;;  %v679_v0 = vld [vmem:[%s8639_s5 + $0x1a0] sm:$0xff]  ;;  %v5905_v50 = vld [vmem:[%s8637_s3 + $0x28] ss:$16 sps:$4 sm:$0xff]  }
  0x21   :  { %553 = vmatprep.subr.bf16.mxu0 %v5878_v22  ;;  %2211 = vmatprep.subr.bf16.mxu1 %v5199_v53  ;;  %v5223_v1 = vcombine.high %v675_v63, %v679_v0  ;;  %v5222_v2 = vcombine.low %v675_v63, %v679_v0  ;;  %v683_v3 = vld [vmem:[%s8639_s5 + $0x1c0] sm:$0xff]  ;;  %v5913_v53 = vld [vmem:[%s8637_s3 + $0x6c] ss:$16 sps:$4 sm:$0xff]   ;;  %v5926_v0 = vld [vmem:[%s8637_s3 + $0x108] ss:$16 sps:$4 sm:$0xff]  }
  0x22   :  { %v687_v4 = vld [vmem:[%s8639_s5 + $0x1e0] sm:$0xff]  ;;  %v5928_v63 = vld [vmem:[%s8637_s3 + $0x10c] ss:$16 sps:$4 sm:$0xff]  }
  0x23   :  { %v5231_v5 = vcombine.high %v683_v3, %v687_v4  ;;  %v5230_v6 = vcombine.low %v683_v3, %v687_v4  ;;  %v691_v7 = vld [vmem:[%s8639_s5 + $0x200] sm:$0xff]  ;;  %v5934_v3 = vld [vmem:[%s8637_s3 + $0x14c] ss:$16 sps:$4 sm:$0xff]   ;;  %v5932_v4 = vld [vmem:[%s8637_s3 + $0x148] ss:$16 sps:$4 sm:$0xff]  }
  0x24   :  { %554 = vmatpush1.bf16.msra.mxu0 %v5880_v23  ;;  %2212 = vmatpush1.bf16.msra.mxu1 %v5198_v54  ;;  %v695_v8 = vld [vmem:[%s8639_s5 + $0x220] sm:$0xff]  ;;  %v6703_v23 = vshrl.u32 %v52_v18, 7  ;;  %v5911_v54 = vld [vmem:[%s8637_s3 + $0x68] ss:$16 sps:$4 sm:$0xff]  }
  0x25   :  { %555 = vmatprep.subr.bf16.mxu0 %v5881_v24  ;;  %2213 = vmatprep.subr.bf16.mxu1 %v5207_v57  ;;  %v5239_v9 = vcombine.high %v691_v7, %v695_v8  ;;  %v5238_v10 = vcombine.low %v691_v7, %v695_v8  ;;  %v699_v11 = vld [vmem:[%s8639_s5 + $0x240] sm:$0xff]  ;;  %v5919_v57 = vld [vmem:[%s8637_s3 + $0xac] ss:$16 sps:$4 sm:$0xff]   ;;  %v5938_v8 = vld [vmem:[%s8637_s3 + $0x188] ss:$16 sps:$4 sm:$0xff]  }
  0x26   :  { %v703_v12 = vld [vmem:[%s8639_s5 + $0x260] sm:$0xff]  ;;  %v5940_v7 = vld [vmem:[%s8637_s3 + $0x18c] ss:$16 sps:$4 sm:$0xff]  }
  0x27   :  { %v5247_v13 = vcombine.high %v699_v11, %v703_v12  ;;  %v5246_v14 = vcombine.low %v699_v11, %v703_v12  ;;  %v707_v15 = vld [vmem:[%s8639_s5 + $0x280] sm:$0xff]  ;;  %v5946_v11 = vld [vmem:[%s8637_s3 + $0x1cc] ss:$16 sps:$4 sm:$0xff]   ;;  %v5944_v12 = vld [vmem:[%s8637_s3 + $0x1c8] ss:$16 sps:$4 sm:$0xff]  }
  0x28   :  { %556 = vmatpush1.bf16.msra.mxu0 %v5883_v25  ;;  %2214 = vmatpush1.bf16.msra.mxu1 %v5206_v58  ;;  %v711_v16 = vld [vmem:[%s8639_s5 + $0x2a0] sm:$0xff]  ;;  %v5917_v58 = vld [vmem:[%s8637_s3 + $0xa8] ss:$16 sps:$4 sm:$0xff]  }
  0x29   :  { %557 = vmatprep.subr.bf16.mxu0 %v5884_v26  ;;  %2215 = vmatprep.subr.bf16.mxu1 %v5215_v61  ;;  %v5255_v17 = vcombine.high %v707_v15, %v711_v16  ;;  %v5254_v19 = vcombine.low %v707_v15, %v711_v16  ;;  %v715_v20 = vld [vmem:[%s8639_s5 + $0x2c0] sm:$0xff]  ;;  %v5925_v61 = vld [vmem:[%s8637_s3 + $0xec] ss:$16 sps:$4 sm:$0xff]   ;;  %v5947_v16 = vld [vmem:[%s8637_s3 + $0x1e8] ss:$16 sps:$4 sm:$0xff]  }
  0x2a   :  { %v719_v21 = vld [vmem:[%s8639_s5 + $0x2e0] sm:$0xff]  ;;  %v632_v15 = vld [vmem:[%s8639_s5 + $0x28] sm:$0xff] }
  0x2b   :  { %v5263_v22 = vcombine.high %v715_v20, %v719_v21  ;;  %v5262_v24 = vcombine.low %v715_v20, %v719_v21  ;;  %v723_v25 = vld [vmem:[%s8639_s5 + $0x300] sm:$0xff]  ;;  %v636_v18 = vld [vmem:[%s8639_s5 + $0x48] sm:$0xff] }
  0x2c   :  { %558 = vmatpush1.bf16.msra.mxu0 %v5886_v27  ;;  %2216 = vmatpush1.bf16.msra.mxu1 %v5214_v62  ;;  %v727_v26 = vld [vmem:[%s8639_s5 + $0x320] sm:$0xff]  ;;  %v5923_v62 = vld [vmem:[%s8637_s3 + $0xe8] ss:$16 sps:$4 sm:$0xff]  }
  0x2d   :  { %559 = vmatprep.subr.bf16.mxu0 %v5887_v28  ;;  %2217 = vmatprep.subr.bf16.mxu1 %v5223_v1  ;;  %v5271_v27 = vcombine.high %v723_v25, %v727_v26  ;;  %v6712_v28 = vsub.s32 0, %v6703_v23  ;;  %v5931_v1 = vld [vmem:[%s8637_s3 + $0x12c] ss:$16 sps:$4 sm:$0xff]  }
  0x30   :  { %560 = vmatpush1.bf16.msra.mxu0 %v5889_v29  ;;  %2218 = vmatpush1.bf16.msra.mxu1 %v5222_v2  ;;  %v50_v29 = vld [vmem:[%s8640_s2] sm:$0x3]  ;;  %v5929_v2 = vld [vmem:[%s8637_s3 + $0x128] ss:$16 sps:$4 sm:$0xff]  }
  0x31   :  { %561 = vmatprep.subr.bf16.mxu0 %v5890_v30  ;;  %2219 = vmatprep.subr.bf16.mxu1 %v5231_v5  ;;  %v6718_v30 = vsub.s32 1, %v6703_v23  ;;  %v5937_v5 = vld [vmem:[%s8637_s3 + $0x16c] ss:$16 sps:$4 sm:$0xff]  }
  0x34   :  { %562 = vmatpush1.bf16.msra.mxu0 %v5892_v31  ;;  %2220 = vmatpush1.bf16.msra.mxu1 %v5230_v6  ;;  %v5270_v31 = vcombine.low %v723_v25, %v727_v26  ;;  %v5935_v6 = vld [vmem:[%s8637_s3 + $0x168] ss:$16 sps:$4 sm:$0xff]  }
  0x35   :  { %563 = vmatprep.subr.bf16.mxu0 %v5893_v32  ;;  %2221 = vmatprep.subr.bf16.mxu1 %v5239_v9  ;;  %v731_v32 = vld [vmem:[%s8639_s5 + $0x340] sm:$0xff]  ;;  %v5943_v9 = vld [vmem:[%s8637_s3 + $0x1ac] ss:$16 sps:$4 sm:$0xff]  }
  0x38   :  { %564 = vmatpush1.bf16.msra.mxu0 %v5895_v33  ;;  %2222 = vmatpush1.bf16.msra.mxu1 %v5238_v10  ;;  %v735_v33 = vld [vmem:[%s8639_s5 + $0x360] sm:$0xff]  ;;  %v5941_v10 = vld [vmem:[%s8637_s3 + $0x1a8] ss:$16 sps:$4 sm:$0xff]  }
  0x39   :  { %565 = vmatprep.subr.bf16.mxu0 %v5896_v34  ;;  %2223 = vmatprep.subr.bf16.mxu1 %v5247_v13  ;;  %v5279_v34 = vcombine.high %v731_v32, %v735_v33  ;;  %v5949_v13 = vld [vmem:[%s8637_s3 + $0x1ec] ss:$16 sps:$4 sm:$0xff]  }
  0x3c   :  { %566 = vmatpush1.bf16.msra.mxu0 %v5898_v35  ;;  %2224 = vmatpush1.bf16.msra.mxu1 %v5246_v14  ;;  %v55_v35 = vrot.slane %v50_v29, %v6712_v28  ;;  %v628_v14 = vld [vmem:[%s8639_s5 + $0x8] sm:$0xff] }
  0x3d   :  { %567 = vmatprep.subr.bf16.mxu0 %v5899_v36  ;;  %2225 = vmatprep.subr.bf16.mxu1 %v5255_v17  ;;  %v59_v36 = vrot.slane %v50_v29, %v6718_v30  ;;  %v5177_v17 = vcombine.high %v628_v14, %v632_v15  ;;  %v5176_v20 = vcombine.low %v628_v14, %v632_v15  ;;  %v656_v29 = vld [vmem:[%s8639_s5 + $0xe8] sm:$0xff] }
  0x40   :  { %568 = vmatpush1.bf16.msra.mxu0 %v5901_v37  ;;  %2226 = vmatpush1.bf16.msra.mxu1 %v5254_v19  ;;  %v5278_v37 = vcombine.low %v731_v32, %v735_v33  ;;  %v640_v19 = vld [vmem:[%s8639_s5 + $0x68] sm:$0xff] }
  0x41   :  { %578 = vmatprep.subr.bf16.mxu0 %v5904_v38  ;;  %2227 = vmatprep.subr.bf16.mxu1 %v5263_v22  ;;  %v5185_v21 = vcombine.high %v636_v18, %v640_v19  ;;  %v644_v22 = vld [vmem:[%s8639_s5 + $0x88] sm:$0xff]  ;;  %v5184_v25 = vcombine.low %v636_v18, %v640_v19 }
  0x42   :  { %v660_v33 = vld [vmem:[%s8639_s5 + $0x108] sm:$0xff] }
  0x44   :  { %2228 = vmatpush1.bf16.msra.mxu1 %v5262_v24  ;;  %v648_v24 = vld [vmem:[%s8639_s5 + $0xa8] sm:$0xff] }
  0x45   :  { %2229 = vmatprep.subr.bf16.mxu1 %v5271_v27  ;;  %v5193_v26 = vcombine.high %v644_v22, %v648_v24  ;;  %v652_v27 = vld [vmem:[%s8639_s5 + $0xc8] sm:$0xff] }
  0x46   :  { %v5201_v32 = vcombine.high %v652_v27, %v656_v29 }
  0x48   :  { %2230 = vmatpush1.bf16.msra.mxu1 %v5270_v31  ;;  %v5192_v31 = vcombine.low %v644_v22, %v648_v24 }
  0x49   :  { %2231 = vmatprep.subr.bf16.mxu1 %v5279_v34  ;;  %v664_v34 = vld [vmem:[%s8639_s5 + $0x128] sm:$0xff] }
  0x4c   :  { %2232 = vmatpush1.bf16.msra.mxu1 %v5278_v37  ;;  %v668_v37 = vld [vmem:[%s8639_s5 + $0x148] sm:$0xff] }
  0xdd   :  { %v120_v38 = vpop.f32.mrb[0].mxu1 }
  0xde   :  { %v121_v39 = vadd.f32 %v120_v38, %v55_v35  ;;  %v122_v40 = vpop.f32.mrb[1].mxu1  ;;  %v5200_v35 = vcombine.low %v652_v27, %v656_v29  ;;  %v672_v38 = vld [vmem:[%s8639_s5 + $0x168] sm:$0xff] }
  0xdf   :  { %v123_v41 = vadd.f32 %v122_v40, %v59_v36  ;;  %v124_v42 = vpop.f32.mrb[2].mxu1  ;;  %v5209_v36 = vcombine.high %v660_v33, %v664_v34  ;;  %v5217_v40 = vcombine.high %v668_v37, %v672_v38 }
  0xe0   :  { %v127_v43 = vmax.f32 %v121_v39, 0.0  ;;  %v125_v44 = vpop.f32.mrb[3].mxu1  ;;  %v5208_v39 = vcombine.low %v660_v33, %v664_v34  ;;  %v680_v42 = vld [vmem:[%s8639_s5 + $0x1a8] sm:$0xff] }
  0xe1   :  { %v128_v45 = vmax.f32 %v123_v41, 0.0  ;;  %v676_v41 = vld [vmem:[%s8639_s5 + $0x188] sm:$0xff]  ;;  %v739_v44 = vld [vmem:[%s8639_s5 + $0x380] sm:$0xff] }
  0xe2   :  { %v6731_v48 = vpack.c.bf16 %v127_v43, %v127_v43  ;;  %v5216_v43 = vcombine.low %v668_v37, %v672_v38  ;;  %v6964_v37 = vld [vmem:[%s8641_s4] sm:$0xf] }
  0xe3   :  { %v130_v46 = vpack.c.bf16 %v128_v45, %v128_v45  ;;  %v743_v45 = vld [vmem:[%s8639_s5 + $0x3a0] sm:$0xff]  ;;  %v200_v38 = vrot.slane %v6964_v37, %v6712_v28 }
  0xe5   :  { %569 = vmatprep.mubr.bf16.mxu0 %v130_v46 }
  0xe6   :  { %570 = vmatmul.mubr.bf16.vlgmr.msra.gmra.mrb[0].mxu0 %v6731_v48 }
  0xe7   :  { %579 = vmatpush1.bf16.msra.mxu0 %v5902_v47  ;;  %610 = vmatprep.mubr.bf16.mxu0 %v130_v46  ;;  %v5225_v46 = vcombine.high %v676_v41, %v680_v42  ;;  %v5287_v47 = vcombine.high %v739_v44, %v743_v45 }
  0xe8   :  { %580 = vmatprep.subr.bf16.mxu0 %v5907_v49  ;;  %v688_v49 = vld [vmem:[%s8639_s5 + $0x1e8] sm:$0xff] }
  0xe9   :  { %2233 = vmatprep.subr.bf16.mxu1 %v5287_v47  ;;  %v763_v47 = vld [vmem:[%s8639_s5 + $0x440] sm:$0xff] }
  0xeb   :  { %581 = vmatpush1.bf16.msra.mxu0 %v5905_v50  ;;  %v5286_v50 = vcombine.low %v739_v44, %v743_v45 }
  0xec   :  { %582 = vmatprep.subr.bf16.mxu0 %v5910_v51  ;;  %v5224_v51 = vcombine.low %v676_v41, %v680_v42 }
  0xed   :  { %2234 = vmatpush1.bf16.msra.mxu1 %v5286_v50  ;;  %v764_v50 = vld [vmem:[%s8639_s5 + $0x448] sm:$0xff] }
  0xef   :  { %583 = vmatpush1.bf16.msra.mxu0 %v5908_v52  ;;  %v747_v52 = vld [vmem:[%s8639_s5 + $0x3c0] sm:$0xff] }
  0xf0   :  { %584 = vmatprep.subr.bf16.mxu0 %v5913_v53  ;;  %v751_v53 = vld [vmem:[%s8639_s5 + $0x3e0] sm:$0xff] }
  0xf3   :  { %585 = vmatpush1.bf16.msra.mxu0 %v5911_v54 }
  0xf4   :  { %586 = vmatprep.subr.bf16.mxu0 %v5916_v55  ;;  %v5295_v55 = vcombine.high %v747_v52, %v751_v53 }
  0xf6   :  { %2235 = vmatprep.subr.bf16.mxu1 %v5295_v55 }
  0xf7   :  { %587 = vmatpush1.bf16.msra.mxu0 %v5914_v56  ;;  %v692_v56 = vld [vmem:[%s8639_s5 + $0x208] sm:$0xff] }
  0xf8   :  { %588 = vmatprep.subr.bf16.mxu0 %v5919_v57  ;;  %v696_v57 = vld [vmem:[%s8639_s5 + $0x228] sm:$0xff] }
  0xfb   :  { %589 = vmatpush1.bf16.msra.mxu0 %v5917_v58  ;;  %v5294_v58 = vcombine.low %v747_v52, %v751_v53 }
  0xfc   :  { %590 = vmatprep.subr.bf16.mxu0 %v5922_v59 }
  0xfd   :  { %2236 = vmatpush1.bf16.msra.mxu1 %v5294_v58  ;;  %v772_v58 = vld [vmem:[%s8639_s5 + $0x488] sm:$0xff] }
  0xff   :  { %591 = vmatpush1.bf16.msra.mxu0 %v5920_v60  ;;  %v6894_v60 = vld [vmem:[%s8639_s5 + $0x400] sm:$0xff] }
 0x100   :  { %592 = vmatprep.subr.bf16.mxu0 %v5925_v61  ;;  %v6899_v61 = vld [vmem:[%s8639_s5 + $0x420] sm:$0xff] }
 0x103   :  { %593 = vmatpush1.bf16.msra.mxu0 %v5923_v62  ;;  %v6904_v62 = vld [vmem:[%s8639_s5 + $0x408] sm:$0xff] }
 0x104   :  { %594 = vmatprep.subr.bf16.mxu0 %v5928_v63  ;;  %v5241_v63 = vcombine.high %v692_v56, %v696_v57 }
 0x107   :  { %595 = vmatpush1.bf16.msra.mxu0 %v5926_v0  ;;  %v5303_v0 = vcombine.high %v6894_v60, %v6899_v61 }
 0x108   :  { %596 = vmatprep.subr.bf16.mxu0 %v5931_v1  ;;  %v6911_v1 = vld [vmem:[%s8639_s5 + $0x428] sm:$0xff] }
 0x109   :  { %2246 = vmatprep.subr.bf16.mxu1 %v5303_v0 }
 0x10b   :  { %597 = vmatpush1.bf16.msra.mxu0 %v5929_v2  ;;  %v700_v2 = vld [vmem:[%s8639_s5 + $0x248] sm:$0xff] }
 0x10c   :  { %598 = vmatprep.subr.bf16.mxu0 %v5934_v3  ;;  %v704_v3 = vld [vmem:[%s8639_s5 + $0x268] sm:$0xff] }
 0x10f   :  { %599 = vmatpush1.bf16.msra.mxu0 %v5932_v4  ;;  %v5302_v4 = vcombine.low %v6894_v60, %v6899_v61  ;;  %v780_v60 = vld [vmem:[%s8639_s5 + $0x4c8] sm:$0xff] }
 0x110   :  { %600 = vmatprep.subr.bf16.mxu0 %v5937_v5  ;;  %v5304_v5 = vcombine.low %v6904_v62, %v6911_v1  ;;  %v784_v61 = vld [vmem:[%s8639_s5 + $0x4e8] sm:$0xff] }
 0x113   :  { %601 = vmatpush1.bf16.msra.mxu0 %v5935_v6  ;;  %v5240_v6 = vcombine.low %v692_v56, %v696_v57  ;;  %v771_v56 = vld [vmem:[%s8639_s5 + $0x480] sm:$0xff] }
 0x114   :  { %602 = vmatprep.subr.bf16.mxu0 %v5940_v7  ;;  %v5249_v7 = vcombine.high %v700_v2, %v704_v3  ;;  %v775_v57 = vld [vmem:[%s8639_s5 + $0x4a0] sm:$0xff] }
 0x117   :  { %603 = vmatpush1.bf16.msra.mxu0 %v5938_v8  ;;  %v708_v8 = vld [vmem:[%s8639_s5 + $0x288] sm:$0xff] }
 0x118   :  { %604 = vmatprep.subr.bf16.mxu0 %v5943_v9  ;;  %v712_v9 = vld [vmem:[%s8639_s5 + $0x2a8] sm:$0xff] }
 0x119   :  { %v5256_v14 = vcombine.low %v708_v8, %v712_v9 }
 0x11b   :  { %605 = vmatpush1.bf16.msra.mxu0 %v5941_v10  ;;  %v5248_v10 = vcombine.low %v700_v2, %v704_v3  ;;  %v5319_v2 = vcombine.high %v771_v56, %v775_v57 }
 0x11c   :  { %606 = vmatprep.subr.bf16.mxu0 %v5946_v11  ;;  %v5257_v11 = vcombine.high %v708_v8, %v712_v9  ;;  %v787_v8 = vld [vmem:[%s8639_s5 + $0x500] sm:$0xff] }
 0x11d   :  { %v791_v9 = vld [vmem:[%s8639_s5 + $0x520] sm:$0xff] }
 0x11f   :  { %607 = vmatpush1.bf16.msra.mxu0 %v5944_v12  ;;  %v716_v12 = vld [vmem:[%s8639_s5 + $0x2c8] sm:$0xff] }
 0x120   :  { %608 = vmatprep.subr.bf16.mxu0 %v5949_v13  ;;  %v720_v13 = vld [vmem:[%s8639_s5 + $0x2e8] sm:$0xff] }
 0x121   :  { %v5265_v15 = vcombine.high %v716_v12, %v720_v13  ;;  %v5264_v18 = vcombine.low %v716_v12, %v720_v13  ;;  %v5328_v13 = vcombine.low %v780_v60, %v784_v61 }
 0x123   :  { %609 = vmatpush1.bf16.msra.mxu0 %v5947_v16  ;;  %v724_v16 = vld [vmem:[%s8639_s5 + $0x308] sm:$0xff] }
 0x124   :  { %2287 = vmatprep.subr.bf16.mxu0 %v5177_v17  ;;  %v728_v17 = vld [vmem:[%s8639_s5 + $0x328] sm:$0xff] }
 0x125   :  { %v5273_v19 = vcombine.high %v724_v16, %v728_v17  ;;  %v5272_v22 = vcombine.low %v724_v16, %v728_v17  ;;  %v795_v16 = vld [vmem:[%s8639_s5 + $0x540] sm:$0xff] }
 0x126   :  { %611 = vmatmul.mubr.bf16.vlgmr.msra.gmra.mrb[4].mxu0 %v6731_v48  ;;  %v684_v48 = vld [vmem:[%s8639_s5 + $0x1c8] sm:$0xff]  ;;  %v799_v17 = vld [vmem:[%s8639_s5 + $0x560] sm:$0xff] }
 0x127   :  { %2288 = vmatpush1.bf16.msra.mxu0 %v5176_v20  ;;  %v5233_v54 = vcombine.high %v684_v48, %v688_v49  ;;  %v5232_v59 = vcombine.low %v684_v48, %v688_v49  ;;  %v732_v20 = vld [vmem:[%s8639_s5 + $0x348] sm:$0xff]  ;;  %v767_v49 = vld [vmem:[%s8639_s5 + $0x460] sm:$0xff] }
 0x128   :  { %2289 = vmatprep.subr.bf16.mxu0 %v5185_v21  ;;  %v736_v21 = vld [vmem:[%s8639_s5 + $0x368] sm:$0xff] }
 0x129   :  { %v5281_v24 = vcombine.high %v732_v20, %v736_v21  ;;  %v5280_v27 = vcombine.low %v732_v20, %v736_v21  ;;  %v5334_v20 = vcombine.low %v787_v8, %v791_v9 }
 0x12b   :  { %2290 = vmatpush1.bf16.msra.mxu0 %v5184_v25  ;;  %v740_v25 = vld [vmem:[%s8639_s5 + $0x388] sm:$0xff] }
 0x12c   :  { %2291 = vmatprep.subr.bf16.mxu0 %v5193_v26  ;;  %v744_v26 = vld [vmem:[%s8639_s5 + $0x3a8] sm:$0xff] }
 0x12d   :  { %v5289_v29 = vcombine.high %v740_v25, %v744_v26  ;;  %v5288_v33 = vcombine.low %v740_v25, %v744_v26  ;;  %v803_v25 = vld [vmem:[%s8639_s5 + $0x580] sm:$0xff] }
 0x12e   :  { %v807_v26 = vld [vmem:[%s8639_s5 + $0x5a0] sm:$0xff] }
 0x12f   :  { %2292 = vmatpush1.bf16.msra.mxu0 %v5192_v31  ;;  %v748_v31 = vld [vmem:[%s8639_s5 + $0x3c8] sm:$0xff] }
 0x130   :  { %2293 = vmatprep.subr.bf16.mxu0 %v5201_v32  ;;  %v752_v32 = vld [vmem:[%s8639_s5 + $0x3e8] sm:$0xff] }
 0x131   :  { %v5297_v34 = vcombine.high %v748_v31, %v752_v32 }
 0x133   :  { %2294 = vmatpush1.bf16.msra.mxu0 %v5200_v35  ;;  %v5296_v35 = vcombine.low %v748_v31, %v752_v32  ;;  %v5342_v31 = vcombine.low %v795_v16, %v799_v17 }
 0x134   :  { %2295 = vmatprep.subr.bf16.mxu0 %v5209_v36  ;;  %v5305_v36 = vcombine.high %v6904_v62, %v6911_v1  ;;  %v5318_v62 = vcombine.low %v771_v56, %v775_v57  ;;  %v828_v56 = vld [vmem:[%s8639_s5 + $0x648] sm:$0xff] }
 0x135   :  { %v832_v57 = vld [vmem:[%s8639_s5 + $0x668] sm:$0xff] }
 0x137   :  { %2296 = vmatpush1.bf16.msra.mxu0 %v5208_v39  ;;  %v204_v39 = vrot.slane %v6964_v37, %v6718_v30 }
 0x138   :  { %2297 = vmatprep.subr.bf16.mxu0 %v5217_v40 }
 0x13b   :  { %2298 = vmatpush1.bf16.msra.mxu0 %v5216_v43 }
 0x13c   :  { %2299 = vmatprep.subr.bf16.mxu0 %v5225_v46 }
 0x13f   :  { %2300 = vmatpush1.bf16.msra.mxu0 %v5224_v51  ;;  %v768_v51 = vld [vmem:[%s8639_s5 + $0x468] sm:$0xff] }
 0x140   :  { %2301 = vmatprep.subr.bf16.mxu0 %v5233_v54  ;;  %v5311_v54 = vcombine.high %v763_v47, %v767_v49  ;;  %v5313_v55 = vcombine.high %v764_v50, %v768_v51  ;;  %v5312_v0 = vcombine.low %v764_v50, %v768_v51 }
 0x143   :  { %2302 = vmatpush1.bf16.msra.mxu0 %v5232_v59  ;;  %v776_v59 = vld [vmem:[%s8639_s5 + $0x4a8] sm:$0xff] }
 0x144   :  { %2303 = vmatprep.subr.bf16.mxu0 %v5241_v63  ;;  %v5310_v63 = vcombine.low %v763_v47, %v767_v49  ;;  %v5321_v3 = vcombine.high %v772_v58, %v776_v59  ;;  %v5320_v1 = vcombine.low %v772_v58, %v776_v59  ;;  %v824_v47 = vld [vmem:[%s8639_s5 + $0x628] sm:$0xff] }
 0x147   :  { %2304 = vmatpush1.bf16.msra.mxu0 %v5240_v6  ;;  %v779_v6 = vld [vmem:[%s8639_s5 + $0x4c0] sm:$0xff] }
 0x148   :  { %2305 = vmatprep.subr.bf16.mxu0 %v5249_v7  ;;  %v783_v7 = vld [vmem:[%s8639_s5 + $0x4e0] sm:$0xff] }
 0x149   :  { %v5326_v12 = vcombine.low %v779_v6, %v783_v7 }
 0x14b   :  { %2306 = vmatpush1.bf16.msra.mxu0 %v5248_v10  ;;  %v788_v10 = vld [vmem:[%s8639_s5 + $0x508] sm:$0xff] }
 0x14c   :  { %2307 = vmatprep.subr.bf16.mxu0 %v5257_v11  ;;  %v792_v11 = vld [vmem:[%s8639_s5 + $0x528] sm:$0xff] }
 0x14d   :  { %v5336_v21 = vcombine.low %v788_v10, %v792_v11 }
 0x14f   :  { %2308 = vmatpush1.bf16.msra.mxu0 %v5256_v14  ;;  %v5335_v14 = vcombine.high %v787_v8, %v791_v9  ;;  %v844_v8 = vld [vmem:[%s8639_s5 + $0x6c8] sm:$0xff] }
 0x150   :  { %2309 = vmatprep.subr.bf16.mxu0 %v5265_v15  ;;  %v5337_v15 = vcombine.high %v788_v10, %v792_v11  ;;  %v848_v9 = vld [vmem:[%s8639_s5 + $0x6e8] sm:$0xff] }
 0x153   :  { %2310 = vmatpush1.bf16.msra.mxu0 %v5264_v18  ;;  %v796_v18 = vld [vmem:[%s8639_s5 + $0x548] sm:$0xff] }
 0x154   :  { %2311 = vmatprep.subr.bf16.mxu0 %v5273_v19  ;;  %v800_v19 = vld [vmem:[%s8639_s5 + $0x568] sm:$0xff] }
 0x155   :  { %v5344_v32 = vcombine.low %v796_v18, %v800_v19 }
 0x157   :  { %2312 = vmatpush1.bf16.msra.mxu0 %v5272_v22  ;;  %v5343_v22 = vcombine.high %v795_v16, %v799_v17  ;;  %v852_v16 = vld [vmem:[%s8639_s5 + $0x708] sm:$0xff] }
 0x158   :  { %2313 = vmatprep.subr.bf16.mxu0 %v5281_v24  ;;  %v5345_v24 = vcombine.high %v796_v18, %v800_v19  ;;  %v856_v17 = vld [vmem:[%s8639_s5 + $0x728] sm:$0xff]  ;;  %v5392_v19 = vcombine.low %v844_v8, %v848_v9 }
 0x15b   :  { %2314 = vmatpush1.bf16.msra.mxu0 %v5280_v27  ;;  %v804_v27 = vld [vmem:[%s8639_s5 + $0x588] sm:$0xff] }
 0x15c   :  { %2315 = vmatprep.subr.bf16.mxu0 %v5289_v29  ;;  %v808_v29 = vld [vmem:[%s8639_s5 + $0x5a8] sm:$0xff] }
 0x15f   :  { %2316 = vmatpush1.bf16.msra.mxu0 %v5288_v33  ;;  %v5351_v33 = vcombine.high %v803_v25, %v807_v26 }
 0x160   :  { %2317 = vmatprep.subr.bf16.mxu0 %v5297_v34  ;;  %v5353_v34 = vcombine.high %v804_v27, %v808_v29 }
 0x163   :  { %2318 = vmatpush1.bf16.msra.mxu0 %v5296_v35  ;;  %v811_v35 = vld [vmem:[%s8639_s5 + $0x5c0] sm:$0xff] }
 0x164   :  { %2328 = vmatprep.subr.bf16.mxu0 %v5305_v36  ;;  %v815_v36 = vld [vmem:[%s8639_s5 + $0x5e0] sm:$0xff] }
 0x1b9   :  { %v571_v40 = vpop.f32.mrb[0].mxu0 }
 0x1ba   :  { %v572_v41 = vadd.f32 %v571_v40, %v200_v38  ;;  %v573_v42 = vpop.f32.mrb[1].mxu0  ;;  %v812_v38 = vld [vmem:[%s8639_s5 + $0x5c8] sm:$0xff]  ;;  %v5350_v40 = vcombine.low %v803_v25, %v807_v26 }
 0x1bb   :  { %v574_v43 = vadd.f32 %v573_v42, %v204_v39  ;;  %v575_v44 = vpop.f32.mrb[2].mxu0  ;;  %v816_v39 = vld [vmem:[%s8639_s5 + $0x5e8] sm:$0xff]  ;;  %v5359_v42 = vcombine.high %v811_v35, %v815_v36 }
 0x1bc   :  { %v619_v45 = vmax.f32 %v572_v41, 0.0  ;;  %v576_v46 = vpop.f32.mrb[3].mxu0  ;;  %v5352_v41 = vcombine.low %v804_v27, %v808_v29  ;;  %v819_v44 = vld [vmem:[%s8639_s5 + $0x600] sm:$0xff]  ;;  %v5360_v49 = vcombine.low %v812_v38, %v816_v39  ;;  %v860_v25 = vld [vmem:[%s8639_s5 + $0x748] sm:$0xff]  ;;  %v5400_v29 = vcombine.low %v852_v16, %v856_v17 }
 0x1bd   :  { %v620_v48 = vmax.f32 %v574_v43, 0.0  ;;  %v5361_v43 = vcombine.high %v812_v38, %v816_v39  ;;  %v820_v46 = vld [vmem:[%s8639_s5 + $0x608] sm:$0xff]  ;;  %v7153_v38 = vsub.s32 2, %v6703_v23 }
 0x1be   :  { %v6984_v53 = vpack.c.bf16 %v619_v45, %v619_v45  ;;  %v823_v45 = vld [vmem:[%s8639_s5 + $0x620] sm:$0xff]  ;;  %v5369_v51 = vcombine.high %v820_v46, %v824_v47  ;;  %v5368_v59 = vcombine.low %v820_v46, %v824_v47  ;;  %v864_v26 = vld [vmem:[%s8639_s5 + $0x768] sm:$0xff] }
 0x1bf   :  { %v6982_v52 = vpack.c.bf16 %v620_v48, %v620_v48  ;;  %v5358_v48 = vcombine.low %v811_v35, %v815_v36  ;;  %v5367_v50 = vcombine.high %v819_v44, %v823_v45  ;;  %v5366_v58 = vcombine.low %v819_v44, %v823_v45  ;;  %v868_v35 = vld [vmem:[%s8639_s5 + $0x788] sm:$0xff]  ;;  %v875_v44 = vld [vmem:[%s8639_s5 + $0x7c0] sm:$0xff] }
 0x1c0   :  { %v872_v36 = vld [vmem:[%s8639_s5 + $0x7a8] sm:$0xff]  ;;  %v879_v45 = vld [vmem:[%s8639_s5 + $0x7e0] sm:$0xff] }
 0x1c1   :  { %2237 = vmatprep.mubr.bf16.mxu1 %v6982_v52  ;;  %2319 = vmatprep.mubr.bf16.mxu0 %v6982_v52  ;;  %v876_v46 = vld [vmem:[%s8639_s5 + $0x7c8] sm:$0xff] }
 0x1c2   :  { %2238 = vmatmul.mubr.bf16.vlgmr.msra.gmra.mrb[4].mxu1 %v6984_v53  ;;  %2320 = vmatmul.mubr.bf16.vlgmr.msra.gmra.mrb[8].mxu0 %v6984_v53  ;;  %v880_v47 = vld [vmem:[%s8639_s5 + $0x7e8] sm:$0xff] }
 0x1c3   :  { %2247 = vmatpush1.bf16.msra.mxu1 %v5302_v4  ;;  %2329 = vmatpush1.bf16.msra.mxu0 %v5304_v5  ;;  %v5327_v4 = vcombine.high %v779_v6, %v783_v7  ;;  %v5329_v5 = vcombine.high %v780_v60, %v784_v61  ;;  %v836_v6 = vld [vmem:[%s8639_s5 + $0x688] sm:$0xff]  ;;  %v5376_v61 = vcombine.low %v828_v56, %v832_v57 }
 0x1c4   :  { %2248 = vmatprep.subr.bf16.mxu1 %v5311_v54  ;;  %2330 = vmatprep.subr.bf16.mxu0 %v5313_v55  ;;  %v827_v54 = vld [vmem:[%s8639_s5 + $0x640] sm:$0xff]  ;;  %v840_v7 = vld [vmem:[%s8639_s5 + $0x6a8] sm:$0xff] }
 0x1c5   :  { %v831_v55 = vld [vmem:[%s8639_s5 + $0x660] sm:$0xff]  ;;  %v5384_v11 = vcombine.low %v836_v6, %v840_v7 }
 0x1c6   :  { %v5374_v60 = vcombine.low %v827_v54, %v831_v55 }
 0x1c7   :  { %2249 = vmatpush1.bf16.msra.mxu1 %v5310_v63  ;;  %2331 = vmatpush1.bf16.msra.mxu0 %v5312_v0  ;;  %v5375_v63 = vcombine.high %v827_v54, %v831_v55  ;;  %v5377_v0 = vcombine.high %v828_v56, %v832_v57  ;;  %v5423_v54 = vcombine.high %v875_v44, %v879_v45  ;;  %v629_v56 = vld [vmem:[%s8639_s5 + $0x10] sm:$0xff] }
 0x1c8   :  { %2250 = vmatprep.subr.bf16.mxu1 %v5319_v2  ;;  %2332 = vmatprep.subr.bf16.mxu0 %v5321_v3  ;;  %v835_v2 = vld [vmem:[%s8639_s5 + $0x680] sm:$0xff]  ;;  %v5425_v55 = vcombine.high %v876_v46, %v880_v47 }
 0x1c9   :  { %v839_v3 = vld [vmem:[%s8639_s5 + $0x6a0] sm:$0xff] }
 0x1ca   :  { %v5382_v10 = vcombine.low %v835_v2, %v839_v3 }
 0x1cb   :  { %2251 = vmatpush1.bf16.msra.mxu1 %v5318_v62  ;;  %2333 = vmatpush1.bf16.msra.mxu0 %v5320_v1  ;;  %v5383_v62 = vcombine.high %v835_v2, %v839_v3  ;;  %v5385_v1 = vcombine.high %v836_v6, %v840_v7  ;;  %v5422_v6 = vcombine.low %v875_v44, %v879_v45  ;;  %v669_v45 = vld [vmem:[%s8639_s5 + $0x150] sm:$0xff] }
 0x1cc   :  { %2252 = vmatprep.subr.bf16.mxu1 %v5327_v4  ;;  %2334 = vmatprep.subr.bf16.mxu0 %v5329_v5  ;;  %v843_v4 = vld [vmem:[%s8639_s5 + $0x6c0] sm:$0xff]  ;;  %v5424_v7 = vcombine.low %v876_v46, %v880_v47  ;;  %v673_v47 = vld [vmem:[%s8639_s5 + $0x170] sm:$0xff] }
 0x1cd   :  { %v847_v5 = vld [vmem:[%s8639_s5 + $0x6e0] sm:$0xff] }
 0x1ce   :  { %v5390_v18 = vcombine.low %v843_v4, %v847_v5 }
 0x1cf   :  { %2253 = vmatpush1.bf16.msra.mxu1 %v5326_v12  ;;  %2335 = vmatpush1.bf16.msra.mxu0 %v5328_v13  ;;  %v5391_v12 = vcombine.high %v843_v4, %v847_v5  ;;  %v5393_v13 = vcombine.high %v844_v8, %v848_v9  ;;  %v637_v5 = vld [vmem:[%s8639_s5 + $0x50] sm:$0xff]  ;;  %v638_v9 = vld [vmem:[%s8639_s5 + $0x58] sm:$0xff] }
 0x1d0   :  { %2254 = vmatprep.subr.bf16.mxu1 %v5335_v14  ;;  %2336 = vmatprep.subr.bf16.mxu0 %v5337_v15  ;;  %v851_v14 = vld [vmem:[%s8639_s5 + $0x700] sm:$0xff]  ;;  %v641_v8 = vld [vmem:[%s8639_s5 + $0x70] sm:$0xff] }
 0x1d1   :  { %v855_v15 = vld [vmem:[%s8639_s5 + $0x720] sm:$0xff] }
 0x1d2   :  { %v5398_v27 = vcombine.low %v851_v14, %v855_v15 }
 0x1d3   :  { %2255 = vmatpush1.bf16.msra.mxu1 %v5334_v20  ;;  %2337 = vmatpush1.bf16.msra.mxu0 %v5336_v21  ;;  %v5399_v20 = vcombine.high %v851_v14, %v855_v15  ;;  %v5401_v21 = vcombine.high %v852_v16, %v856_v17  ;;  %v5187_v15 = vcombine.high %v637_v5, %v641_v8  ;;  %v645_v17 = vld [vmem:[%s8639_s5 + $0x90] sm:$0xff] }
 0x1d4   :  { %2256 = vmatprep.subr.bf16.mxu1 %v5343_v22  ;;  %2338 = vmatprep.subr.bf16.mxu0 %v5345_v24  ;;  %v859_v22 = vld [vmem:[%s8639_s5 + $0x740] sm:$0xff] }
 0x1d5   :  { %v863_v24 = vld [vmem:[%s8639_s5 + $0x760] sm:$0xff] }
 0x1d6   :  { %v5406_v39 = vcombine.low %v859_v22, %v863_v24 }
 0x1d7   :  { %2257 = vmatpush1.bf16.msra.mxu1 %v5342_v31  ;;  %2339 = vmatpush1.bf16.msra.mxu0 %v5344_v32  ;;  %v5407_v31 = vcombine.high %v859_v22, %v863_v24  ;;  %v5409_v32 = vcombine.high %v860_v25, %v864_v26 }
 0x1d8   :  { %2258 = vmatprep.subr.bf16.mxu1 %v5351_v33  ;;  %2340 = vmatprep.subr.bf16.mxu0 %v5353_v34  ;;  %v867_v33 = vld [vmem:[%s8639_s5 + $0x780] sm:$0xff] }
 0x1d9   :  { %v871_v34 = vld [vmem:[%s8639_s5 + $0x7a0] sm:$0xff] }
 0x1db   :  { %2259 = vmatpush1.bf16.msra.mxu1 %v5350_v40  ;;  %2341 = vmatpush1.bf16.msra.mxu0 %v5352_v41  ;;  %v5408_v40 = vcombine.low %v860_v25, %v864_v26  ;;  %v7156_v41 = vsub.s32 3, %v6703_v23  ;;  %v653_v25 = vld [vmem:[%s8639_s5 + $0xd0] sm:$0xff] }
 0x1dc   :  { %2260 = vmatprep.subr.bf16.mxu1 %v5359_v42  ;;  %2342 = vmatprep.subr.bf16.mxu0 %v5361_v43  ;;  %v5415_v42 = vcombine.high %v867_v33, %v871_v34  ;;  %v5417_v43 = vcombine.high %v868_v35, %v872_v36 }
 0x1df   :  { %2261 = vmatpush1.bf16.msra.mxu1 %v5358_v48  ;;  %2343 = vmatpush1.bf16.msra.mxu0 %v5360_v49  ;;  %v208_v48 = vrot.slane %v6964_v37, %v7153_v38  ;;  %v212_v49 = vrot.slane %v6964_v37, %v7156_v41  ;;  %v634_v37 = vld [vmem:[%s8639_s5 + $0x38] sm:$0xff] }
 0x1e0   :  { %2262 = vmatprep.subr.bf16.mxu1 %v5367_v50  ;;  %2344 = vmatprep.subr.bf16.mxu0 %v5369_v51  ;;  %v5414_v50 = vcombine.low %v867_v33, %v871_v34  ;;  %v5416_v51 = vcombine.low %v868_v35, %v872_v36  ;;  %v661_v34 = vld [vmem:[%s8639_s5 + $0x110] sm:$0xff] }
 0x1e1   :  { %v665_v36 = vld [vmem:[%s8639_s5 + $0x130] sm:$0xff] }
 0x1e2   :  { %v5211_v44 = vcombine.high %v661_v34, %v665_v36 }
 0x1e3   :  { %2263 = vmatpush1.bf16.msra.mxu1 %v5366_v58  ;;  %2345 = vmatpush1.bf16.msra.mxu0 %v5368_v59  ;;  %v633_v58 = vld [vmem:[%s8639_s5 + $0x30] sm:$0xff]  ;;  %v630_v59 = vld [vmem:[%s8639_s5 + $0x18] sm:$0xff] }
 0x1e4   :  { %2264 = vmatprep.subr.bf16.mxu1 %v5375_v63  ;;  %2346 = vmatprep.subr.bf16.mxu0 %v5377_v0  ;;  %v5180_v14 = vcombine.low %v630_v59, %v634_v37 }
 0x1e7   :  { %2265 = vmatpush1.bf16.msra.mxu1 %v5374_v60  ;;  %2347 = vmatpush1.bf16.msra.mxu0 %v5376_v61 }
 0x1e8   :  { %2266 = vmatprep.subr.bf16.mxu1 %v5383_v62  ;;  %2348 = vmatprep.subr.bf16.mxu0 %v5385_v1  ;;  %v5179_v62 = vcombine.high %v629_v56, %v633_v58  ;;  %v5181_v1 = vcombine.high %v630_v59, %v634_v37  ;;  %v682_v59 = vld [vmem:[%s8639_s5 + $0x1b8] sm:$0xff]  ;;  %v5218_v37 = vcombine.low %v669_v45, %v673_v47 }
 0x1eb   :  { %2267 = vmatpush1.bf16.msra.mxu1 %v5382_v10  ;;  %2349 = vmatpush1.bf16.msra.mxu0 %v5384_v11  ;;  %v642_v10 = vld [vmem:[%s8639_s5 + $0x78] sm:$0xff] }
 0x1ec   :  { %2268 = vmatprep.subr.bf16.mxu1 %v5391_v12  ;;  %2350 = vmatprep.subr.bf16.mxu0 %v5393_v13  ;;  %v5178_v12 = vcombine.low %v629_v56, %v633_v58  ;;  %v5189_v16 = vcombine.high %v638_v9, %v642_v10  ;;  %v5188_v22 = vcombine.low %v638_v9, %v642_v10  ;;  %v681_v56 = vld [vmem:[%s8639_s5 + $0x1b0] sm:$0xff]  ;;  %v698_v10 = vld [vmem:[%s8639_s5 + $0x238] sm:$0xff] }
 0x1ef   :  { %2269 = vmatpush1.bf16.msra.mxu1 %v5390_v18  ;;  %2351 = vmatpush1.bf16.msra.mxu0 %v5392_v19  ;;  %v649_v18 = vld [vmem:[%s8639_s5 + $0xb0] sm:$0xff]  ;;  %v646_v19 = vld [vmem:[%s8639_s5 + $0x98] sm:$0xff] }
 0x1f0   :  { %2270 = vmatprep.subr.bf16.mxu1 %v5399_v20  ;;  %2352 = vmatprep.subr.bf16.mxu0 %v5401_v21  ;;  %v650_v20 = vld [vmem:[%s8639_s5 + $0xb8] sm:$0xff]  ;;  %v5186_v21 = vcombine.low %v637_v5, %v641_v8  ;;  %v5195_v24 = vcombine.high %v645_v17, %v649_v18  ;;  %v697_v5 = vld [vmem:[%s8639_s5 + $0x230] sm:$0xff] }
 0x1f1   :  { %v5197_v26 = vcombine.high %v646_v19, %v650_v20  ;;  %v694_v8 = vld [vmem:[%s8639_s5 + $0x218] sm:$0xff] }
 0x1f3   :  { %2271 = vmatpush1.bf16.msra.mxu1 %v5398_v27  ;;  %2353 = vmatpush1.bf16.msra.mxu0 %v5400_v29  ;;  %v657_v27 = vld [vmem:[%s8639_s5 + $0xf0] sm:$0xff]  ;;  %v654_v29 = vld [vmem:[%s8639_s5 + $0xd8] sm:$0xff] }
 0x1f4   :  { %2272 = vmatprep.subr.bf16.mxu1 %v5407_v31  ;;  %2354 = vmatprep.subr.bf16.mxu0 %v5409_v32  ;;  %v5194_v31 = vcombine.low %v645_v17, %v649_v18  ;;  %v5196_v32 = vcombine.low %v646_v19, %v650_v20  ;;  %v5203_v33 = vcombine.high %v653_v25, %v657_v27  ;;  %v705_v17 = vld [vmem:[%s8639_s5 + $0x270] sm:$0xff]  ;;  %v702_v18 = vld [vmem:[%s8639_s5 + $0x258] sm:$0xff] }
 0x1f5   :  { %v5245_v19 = vcombine.high %v694_v8, %v698_v10  ;;  %v706_v20 = vld [vmem:[%s8639_s5 + $0x278] sm:$0xff] }
 0x1f7   :  { %2273 = vmatpush1.bf16.msra.mxu1 %v5406_v39  ;;  %2355 = vmatpush1.bf16.msra.mxu0 %v5408_v40  ;;  %v662_v39 = vld [vmem:[%s8639_s5 + $0x118] sm:$0xff] }
 0x1f8   :  { %2274 = vmatprep.subr.bf16.mxu1 %v5415_v42  ;;  %2356 = vmatprep.subr.bf16.mxu0 %v5417_v43  ;;  %v666_v40 = vld [vmem:[%s8639_s5 + $0x138] sm:$0xff]  ;;  %v5202_v42 = vcombine.low %v653_v25, %v657_v27  ;;  %v709_v25 = vld [vmem:[%s8639_s5 + $0x290] sm:$0xff] }
 0x1f9   :  { %v612_v57 = vpop.f32.mrb[4].mxu0  ;;  %v5213_v46 = vcombine.high %v662_v39, %v666_v40  ;;  %v710_v27 = vld [vmem:[%s8639_s5 + $0x298] sm:$0xff] }
 0x1fa   :  { %v613_v63 = vadd.f32 %v612_v57, %v208_v48  ;;  %v614_v0 = vpop.f32.mrb[5].mxu0  ;;  %v670_v48 = vld [vmem:[%s8639_s5 + $0x158] sm:$0xff] }
 0x1fb   :  { %v615_v2 = vadd.f32 %v614_v0, %v212_v49  ;;  %v616_v3 = vpop.f32.mrb[6].mxu0  ;;  %2275 = vmatpush1.bf16.msra.mxu1 %v5414_v50  ;;  %2357 = vmatpush1.bf16.msra.mxu0 %v5416_v51  ;;  %v674_v49 = vld [vmem:[%s8639_s5 + $0x178] sm:$0xff]  ;;  %v5210_v50 = vcombine.low %v661_v34, %v665_v36  ;;  %v5212_v51 = vcombine.low %v662_v39, %v666_v40  ;;  %v717_v34 = vld [vmem:[%s8639_s5 + $0x2d0] sm:$0xff] }
 0x1fc   :  { %v621_v60 = vmax.f32 %v613_v63, 0.0  ;;  %v617_v61 = vpop.f32.mrb[7].mxu0  ;;  %2276 = vmatprep.subr.bf16.mxu1 %v5423_v54  ;;  %2358 = vmatprep.subr.bf16.mxu0 %v5425_v55  ;;  %v5219_v54 = vcombine.high %v669_v45, %v673_v47  ;;  %v677_v55 = vld [vmem:[%s8639_s5 + $0x190] sm:$0xff]  ;;  %v678_v57 = vld [vmem:[%s8639_s5 + $0x198] sm:$0xff]  ;;  %v5221_v58 = vcombine.high %v670_v48, %v674_v49  ;;  %v5220_v63 = vcombine.low %v670_v48, %v674_v49 }
 0x1fd   :  { %v622_v4 = vmax.f32 %v615_v2, 0.0  ;;  %v5227_v0 = vcombine.high %v677_v55, %v681_v56  ;;  %v685_v2 = vld [vmem:[%s8639_s5 + $0x1d0] sm:$0xff]  ;;  %v5226_v61 = vcombine.low %v677_v55, %v681_v56  ;;  %v718_v36 = vld [vmem:[%s8639_s5 + $0x2d8] sm:$0xff] }
 0x1fe   :  { %v7200_v13 = vpack.c.bf16 %v621_v60, %v621_v60  ;;  %v689_v3 = vld [vmem:[%s8639_s5 + $0x1f0] sm:$0xff]  ;;  %v690_v60 = vld [vmem:[%s8639_s5 + $0x1f8] sm:$0xff] }
 0x1ff   :  { %v7198_v11 = vpack.c.bf16 %v622_v4, %v622_v4  ;;  %2277 = vmatpush1.bf16.msra.mxu1 %v5422_v6  ;;  %2359 = vmatpush1.bf16.msra.mxu0 %v5424_v7  ;;  %v686_v6 = vld [vmem:[%s8639_s5 + $0x1d8] sm:$0xff]  ;;  %v5229_v7 = vcombine.high %v678_v57, %v682_v59  ;;  %v693_v4 = vld [vmem:[%s8639_s5 + $0x210] sm:$0xff] }
 0x200   :  { %2369 = vmatprep.subr.bf16.mxu1 %v5179_v62  ;;  %2451 = vmatprep.subr.bf16.mxu0 %v5181_v1  ;;  %v5228_v62 = vcombine.low %v678_v57, %v682_v59  ;;  %v5235_v1 = vcombine.high %v685_v2, %v689_v3  ;;  %v5237_v9 = vcombine.high %v686_v6, %v690_v60  ;;  %v722_v40 = vld [vmem:[%s8639_s5 + $0x2f8] sm:$0xff]  ;;  %v725_v45 = vld [vmem:[%s8639_s5 + $0x310] sm:$0xff] }
 0x201   :  { %2278 = vmatprep.mubr.bf16.mxu1 %v7198_v11  ;;  %2360 = vmatprep.mubr.bf16.mxu0 %v7198_v11  ;;  %v726_v47 = vld [vmem:[%s8639_s5 + $0x318] sm:$0xff]  ;;  %v5269_v48 = vcombine.high %v718_v36, %v722_v40  ;;  %v733_v55 = vld [vmem:[%s8639_s5 + $0x350] sm:$0xff] }
 0x202   :  { %2279 = vmatmul.mubr.bf16.vlgmr.msra.gmra.mrb[4].mxu1 %v7200_v13  ;;  %2361 = vmatmul.mubr.bf16.vlgmr.msra.gmra.mrb[8].mxu0 %v7200_v13  ;;  %v730_v49 = vld [vmem:[%s8639_s5 + $0x338] sm:$0xff]  ;;  %v737_v56 = vld [vmem:[%s8639_s5 + $0x370] sm:$0xff] }
 0x203   :  { %2370 = vmatpush1.bf16.msra.mxu1 %v5178_v12  ;;  %2401 = vmatprep.mubr.bf16.mxu1 %v6982_v52  ;;  %v5234_v12 = vcombine.low %v685_v2, %v689_v3  ;;  %v734_v57 = vld [vmem:[%s8639_s5 + $0x358] sm:$0xff]  ;;  %v741_v2 = vld [vmem:[%s8639_s5 + $0x390] sm:$0xff] }
 0x204   :  { %2452 = vmatpush1.bf16.msra.mxu0 %v5180_v14  ;;  %2483 = vmatprep.mubr.bf16.mxu0 %v6982_v52  ;;  %v658_v52 = vld [vmem:[%s8639_s5 + $0xf8] sm:$0xff]  ;;  %v5236_v14 = vcombine.low %v686_v6, %v690_v60  ;;  %v745_v3 = vld [vmem:[%s8639_s5 + $0x3b0] sm:$0xff] }
 0x205   :  { %2371 = vmatprep.subr.bf16.mxu1 %v5187_v15  ;;  %2453 = vmatprep.subr.bf16.mxu0 %v5189_v16  ;;  %v5205_v35 = vcombine.high %v654_v29, %v658_v52  ;;  %v5204_v43 = vcombine.low %v654_v29, %v658_v52  ;;  %v5243_v15 = vcombine.high %v693_v4, %v697_v5  ;;  %v701_v16 = vld [vmem:[%s8639_s5 + $0x250] sm:$0xff]  ;;  %v714_v52 = vld [vmem:[%s8639_s5 + $0x2b8] sm:$0xff] }
 0x206   :  { %v5253_v29 = vcombine.high %v702_v18, %v706_v20  ;;  %v5261_v39 = vcombine.high %v710_v27, %v714_v52  ;;  %v738_v59 = vld [vmem:[%s8639_s5 + $0x378] sm:$0xff] }
 0x207   :  { %2372 = vmatpush1.bf16.msra.mxu1 %v5186_v21  ;;  %v5242_v21 = vcombine.low %v693_v4, %v697_v5  ;;  %v742_v6 = vld [vmem:[%s8639_s5 + $0x398] sm:$0xff]  ;;  %v749_v4 = vld [vmem:[%s8639_s5 + $0x3d0] sm:$0xff] }
 0x208   :  { %2454 = vmatpush1.bf16.msra.mxu0 %v5188_v22  ;;  %2373 = vmatprep.subr.bf16.mxu1 %v5195_v24  ;;  %v5244_v22 = vcombine.low %v694_v8, %v698_v10  ;;  %v5251_v24 = vcombine.high %v701_v16, %v705_v17  ;;  %v746_v60 = vld [vmem:[%s8639_s5 + $0x3b8] sm:$0xff]  ;;  %v753_v5 = vld [vmem:[%s8639_s5 + $0x3f0] sm:$0xff] }
 0x209   :  { %2455 = vmatprep.subr.bf16.mxu0 %v5197_v26  ;;  %v713_v26 = vld [vmem:[%s8639_s5 + $0x2b0] sm:$0xff]  ;;  %v750_v8 = vld [vmem:[%s8639_s5 + $0x3d8] sm:$0xff] }
 0x20a   :  { %v754_v10 = vld [vmem:[%s8639_s5 + $0x3f8] sm:$0xff] }
 0x20b   :  { %2374 = vmatpush1.bf16.msra.mxu1 %v5194_v31  ;;  %v5250_v31 = vcombine.low %v701_v16, %v705_v17  ;;  %v5292_v16 = vcombine.low %v742_v6, %v746_v60  ;;  %v5299_v17 = vcombine.high %v749_v4, %v753_v5 }
 0x20c   :  { %2456 = vmatpush1.bf16.msra.mxu0 %v5196_v32  ;;  %2375 = vmatprep.subr.bf16.mxu1 %v5203_v33  ;;  %v5252_v32 = vcombine.low %v702_v18, %v706_v20  ;;  %v5259_v33 = vcombine.high %v709_v25, %v713_v26  ;;  %v758_v18 = vld [vmem:[%s8639_s5 + $0x418] sm:$0xff] }
 0x20d   :  { %2457 = vmatprep.subr.bf16.mxu0 %v5205_v35  ;;  %v721_v35 = vld [vmem:[%s8639_s5 + $0x2f0] sm:$0xff]  ;;  %v762_v20 = vld [vmem:[%s8639_s5 + $0x438] sm:$0xff] }
 0x20f   :  { %2376 = vmatpush1.bf16.msra.mxu1 %v5202_v42  ;;  %v5258_v42 = vcombine.low %v709_v25, %v713_v26  ;;  %v765_v25 = vld [vmem:[%s8639_s5 + $0x450] sm:$0xff] }
 0x210   :  { %2458 = vmatpush1.bf16.msra.mxu0 %v5204_v43  ;;  %2377 = vmatprep.subr.bf16.mxu1 %v5211_v44  ;;  %v5260_v43 = vcombine.low %v710_v27, %v714_v52  ;;  %v5267_v44 = vcombine.high %v717_v34, %v721_v35  ;;  %v769_v26 = vld [vmem:[%s8639_s5 + $0x470] sm:$0xff]  ;;  %v5309_v27 = vcombine.high %v758_v18, %v762_v20  ;;  %v770_v52 = vld [vmem:[%s8639_s5 + $0x478] sm:$0xff] }
 0x211   :  { %2459 = vmatprep.subr.bf16.mxu0 %v5213_v46  ;;  %v729_v46 = vld [vmem:[%s8639_s5 + $0x330] sm:$0xff] }
 0x213   :  { %2378 = vmatpush1.bf16.msra.mxu1 %v5210_v50  ;;  %v5266_v50 = vcombine.low %v717_v34, %v721_v35  ;;  %v5308_v34 = vcombine.low %v758_v18, %v762_v20  ;;  %v774_v35 = vld [vmem:[%s8639_s5 + $0x498] sm:$0xff] }
 0x214   :  { %2460 = vmatpush1.bf16.msra.mxu0 %v5212_v51  ;;  %2379 = vmatprep.subr.bf16.mxu1 %v5219_v54  ;;  %v5268_v51 = vcombine.low %v718_v36, %v722_v40  ;;  %v5275_v54 = vcombine.high %v725_v45, %v729_v46  ;;  %v778_v36 = vld [vmem:[%s8639_s5 + $0x4b8] sm:$0xff] }
 0x215   :  { %2461 = vmatprep.subr.bf16.mxu0 %v5221_v58  ;;  %v5277_v58 = vcombine.high %v726_v47, %v730_v49  ;;  %v818_v18 = vld [vmem:[%s8639_s5 + $0x5f8] sm:$0xff] }
 0x217   :  { %2380 = vmatpush1.bf16.msra.mxu1 %v5218_v37  ;;  %v5274_v37 = vcombine.low %v725_v45, %v729_v46 }
 0x218   :  { %2462 = vmatpush1.bf16.msra.mxu0 %v5220_v63  ;;  %2381 = vmatprep.subr.bf16.mxu1 %v5227_v0  ;;  %v5276_v63 = vcombine.low %v726_v47, %v730_v49  ;;  %v5283_v0 = vcombine.high %v733_v55, %v737_v56  ;;  %v782_v47 = vld [vmem:[%s8639_s5 + $0x4d8] sm:$0xff] }
 0x219   :  { %2463 = vmatprep.subr.bf16.mxu0 %v5229_v7  ;;  %v5285_v7 = vcombine.high %v734_v57, %v738_v59 }
 0x21b   :  { %2382 = vmatpush1.bf16.msra.mxu1 %v5226_v61  ;;  %v5282_v61 = vcombine.low %v733_v55, %v737_v56  ;;  %v794_v56 = vld [vmem:[%s8639_s5 + $0x538] sm:$0xff] }
 0x21c   :  { %2464 = vmatpush1.bf16.msra.mxu0 %v5228_v62  ;;  %2383 = vmatprep.subr.bf16.mxu1 %v5235_v1  ;;  %v5284_v62 = vcombine.low %v734_v57, %v738_v59  ;;  %v5291_v1 = vcombine.high %v741_v2, %v745_v3  ;;  %v797_v59 = vld [vmem:[%s8639_s5 + $0x550] sm:$0xff] }
 0x21d   :  { %2465 = vmatprep.subr.bf16.mxu0 %v5237_v9  ;;  %v5293_v9 = vcombine.high %v742_v6, %v746_v60  ;;  %v805_v60 = vld [vmem:[%s8639_s5 + $0x590] sm:$0xff] }
 0x21f   :  { %2384 = vmatpush1.bf16.msra.mxu1 %v5234_v12  ;;  %v5290_v12 = vcombine.low %v741_v2, %v745_v3  ;;  %v798_v2 = vld [vmem:[%s8639_s5 + $0x558] sm:$0xff] }
 0x220   :  { %2466 = vmatpush1.bf16.msra.mxu0 %v5236_v14  ;;  %2385 = vmatprep.subr.bf16.mxu1 %v5243_v15  ;;  %v757_v14 = vld [vmem:[%s8639_s5 + $0x410] sm:$0xff]  ;;  %v802_v3 = vld [vmem:[%s8639_s5 + $0x578] sm:$0xff] }
 0x221   :  { %2467 = vmatprep.subr.bf16.mxu0 %v5245_v19  ;;  %v761_v15 = vld [vmem:[%s8639_s5 + $0x430] sm:$0xff]  ;;  %v5301_v19 = vcombine.high %v750_v8, %v754_v10 }
 0x223   :  { %2386 = vmatpush1.bf16.msra.mxu1 %v5242_v21  ;;  %v5298_v21 = vcombine.low %v749_v4, %v753_v5  ;;  %v806_v4 = vld [vmem:[%s8639_s5 + $0x598] sm:$0xff] }
 0x224   :  { %2468 = vmatpush1.bf16.msra.mxu0 %v5244_v22  ;;  %2387 = vmatprep.subr.bf16.mxu1 %v5251_v24  ;;  %v5300_v22 = vcombine.low %v750_v8, %v754_v10  ;;  %v5307_v24 = vcombine.high %v757_v14, %v761_v15  ;;  %v810_v5 = vld [vmem:[%s8639_s5 + $0x5b8] sm:$0xff]  ;;  %v5349_v8 = vcombine.high %v798_v2, %v802_v3 }
 0x225   :  { %2469 = vmatprep.subr.bf16.mxu0 %v5253_v29  ;;  %v766_v29 = vld [vmem:[%s8639_s5 + $0x458] sm:$0xff]  ;;  %v5348_v10 = vcombine.low %v798_v2, %v802_v3  ;;  %v5356_v20 = vcombine.low %v806_v4, %v810_v5 }
 0x226   :  { %v5317_v40 = vcombine.high %v766_v29, %v770_v52  ;;  %v5316_v45 = vcombine.low %v766_v29, %v770_v52 }
 0x227   :  { %2388 = vmatpush1.bf16.msra.mxu1 %v5250_v31  ;;  %v5306_v31 = vcombine.low %v757_v14, %v761_v15  ;;  %v5357_v14 = vcombine.high %v806_v4, %v810_v5  ;;  %v813_v15 = vld [vmem:[%s8639_s5 + $0x5d0] sm:$0xff] }
 0x228   :  { %2470 = vmatpush1.bf16.msra.mxu0 %v5252_v32  ;;  %2389 = vmatprep.subr.bf16.mxu1 %v5259_v33  ;;  %v773_v32 = vld [vmem:[%s8639_s5 + $0x490] sm:$0xff] }
 0x229   :  { %2471 = vmatprep.subr.bf16.mxu0 %v5261_v39  ;;  %v777_v33 = vld [vmem:[%s8639_s5 + $0x4b0] sm:$0xff]  ;;  %v5315_v39 = vcombine.high %v765_v25, %v769_v26 }
 0x22a   :  { %v5323_v46 = vcombine.high %v773_v32, %v777_v33  ;;  %v5322_v49 = vcombine.low %v773_v32, %v777_v33  ;;  %v829_v33 = vld [vmem:[%s8639_s5 + $0x650] sm:$0xff] }
 0x22b   :  { %2390 = vmatpush1.bf16.msra.mxu1 %v5258_v42  ;;  %v5314_v42 = vcombine.low %v765_v25, %v769_v26  ;;  %v825_v25 = vld [vmem:[%s8639_s5 + $0x630] sm:$0xff]  ;;  %v822_v26 = vld [vmem:[%s8639_s5 + $0x618] sm:$0xff] }
 0x22c   :  { %2472 = vmatpush1.bf16.msra.mxu0 %v5260_v43  ;;  %2391 = vmatprep.subr.bf16.mxu1 %v5267_v44  ;;  %v781_v43 = vld [vmem:[%s8639_s5 + $0x4d0] sm:$0xff] }
 0x22d   :  { %2473 = vmatprep.subr.bf16.mxu0 %v5269_v48  ;;  %v785_v44 = vld [vmem:[%s8639_s5 + $0x4f0] sm:$0xff]  ;;  %v5325_v48 = vcombine.high %v774_v35, %v778_v36 }
 0x22e   :  { %v5331_v55 = vcombine.high %v781_v43, %v785_v44 }
 0x22f   :  { %2392 = vmatpush1.bf16.msra.mxu1 %v5266_v50  ;;  %v789_v50 = vld [vmem:[%s8639_s5 + $0x510] sm:$0xff] }
 0x230   :  { %2474 = vmatpush1.bf16.msra.mxu0 %v5268_v51  ;;  %2393 = vmatprep.subr.bf16.mxu1 %v5275_v54  ;;  %v793_v51 = vld [vmem:[%s8639_s5 + $0x530] sm:$0xff]  ;;  %v5324_v54 = vcombine.low %v774_v35, %v778_v36  ;;  %v830_v35 = vld [vmem:[%s8639_s5 + $0x658] sm:$0xff] }
 0x231   :  { %2475 = vmatprep.subr.bf16.mxu0 %v5277_v58  ;;  %v5330_v58 = vcombine.low %v781_v43, %v785_v44  ;;  %v834_v36 = vld [vmem:[%s8639_s5 + $0x678] sm:$0xff]  ;;  %v837_v43 = vld [vmem:[%s8639_s5 + $0x690] sm:$0xff] }
 0x232   :  { %v841_v44 = vld [vmem:[%s8639_s5 + $0x6b0] sm:$0xff] }
 0x233   :  { %2394 = vmatpush1.bf16.msra.mxu1 %v5274_v37  ;;  %v801_v37 = vld [vmem:[%s8639_s5 + $0x570] sm:$0xff] }
 0x234   :  { %2476 = vmatpush1.bf16.msra.mxu0 %v5276_v63  ;;  %2395 = vmatprep.subr.bf16.mxu1 %v5283_v0  ;;  %v5339_v0 = vcombine.high %v789_v50, %v793_v51 }
 0x235   :  { %2477 = vmatprep.subr.bf16.mxu0 %v5285_v7  ;;  %v5338_v7 = vcombine.low %v789_v50, %v793_v51  ;;  %v5380_v50 = vcombine.low %v830_v35, %v834_v36  ;;  %v5387_v51 = vcombine.high %v837_v43, %v841_v44 }
 0x237   :  { %2396 = vmatpush1.bf16.msra.mxu1 %v5282_v61  ;;  %v809_v61 = vld [vmem:[%s8639_s5 + $0x5b0] sm:$0xff] }
 0x238   :  { %2478 = vmatpush1.bf16.msra.mxu0 %v5284_v62  ;;  %2397 = vmatprep.subr.bf16.mxu1 %v5291_v1  ;;  %v5347_v1 = vcombine.high %v797_v59, %v801_v37 }
 0x239   :  { %2479 = vmatprep.subr.bf16.mxu0 %v5293_v9  ;;  %v5346_v9 = vcombine.low %v797_v59, %v801_v37 }
 0x23b   :  { %2398 = vmatpush1.bf16.msra.mxu1 %v5290_v12  ;;  %v5355_v12 = vcombine.high %v805_v60, %v809_v61 }
 0x23c   :  { %2480 = vmatpush1.bf16.msra.mxu0 %v5292_v16  ;;  %2399 = vmatprep.subr.bf16.mxu1 %v5299_v17  ;;  %v817_v16 = vld [vmem:[%s8639_s5 + $0x5f0] sm:$0xff]  ;;  %v814_v17 = vld [vmem:[%s8639_s5 + $0x5d8] sm:$0xff] }
 0x23d   :  { %2481 = vmatprep.subr.bf16.mxu0 %v5301_v19  ;;  %v5354_v19 = vcombine.low %v805_v60, %v809_v61  ;;  %v5362_v29 = vcombine.low %v813_v15, %v817_v16  ;;  %v5364_v52 = vcombine.low %v814_v17, %v818_v18 }
 0x23f   :  { %2400 = vmatpush1.bf16.msra.mxu1 %v5298_v21  ;;  %v5363_v21 = vcombine.high %v813_v15, %v817_v16  ;;  %v874_v15 = vld [vmem:[%s8639_s5 + $0x7b8] sm:$0xff] }
 0x240   :  { %2482 = vmatpush1.bf16.msra.mxu0 %v5300_v22  ;;  %2410 = vmatprep.subr.bf16.mxu1 %v5307_v24  ;;  %v5365_v22 = vcombine.high %v814_v17, %v818_v18  ;;  %v821_v24 = vld [vmem:[%s8639_s5 + $0x610] sm:$0xff] }
 0x241   :  { %2492 = vmatprep.subr.bf16.mxu0 %v5309_v27  ;;  %v826_v27 = vld [vmem:[%s8639_s5 + $0x638] sm:$0xff]  ;;  %v877_v18 = vld [vmem:[%s8639_s5 + $0x7d0] sm:$0xff] }
 0x242   :  { %2402 = vmatmul.mubr.bf16.vlgmr.msra.gmra.mrb[8].mxu1 %v6984_v53  ;;  %v5373_v32 = vcombine.high %v822_v26, %v826_v27 }
 0x243   :  { %2484 = vmatmul.mubr.bf16.vlgmr.msra.gmra.mrb[12].mxu0 %v6984_v53  ;;  %2411 = vmatpush1.bf16.msra.mxu1 %v5306_v31  ;;  %v786_v53 = vld [vmem:[%s8639_s5 + $0x4f8] sm:$0xff]  ;;  %v5371_v31 = vcombine.high %v821_v24, %v825_v25 }
 0x244   :  { %2442 = vmatprep.mubr.bf16.mxu1 %v7198_v11  ;;  %2493 = vmatpush1.bf16.msra.mxu0 %v5308_v34  ;;  %v5333_v57 = vcombine.high %v782_v47, %v786_v53  ;;  %v5332_v63 = vcombine.low %v782_v47, %v786_v53  ;;  %v833_v34 = vld [vmem:[%s8639_s5 + $0x670] sm:$0xff]  ;;  %v842_v47 = vld [vmem:[%s8639_s5 + $0x6b8] sm:$0xff] }
 0x245   :  { %2524 = vmatprep.mubr.bf16.mxu0 %v7198_v11  ;;  %2412 = vmatprep.subr.bf16.mxu1 %v5315_v39  ;;  %v790_v11 = vld [vmem:[%s8639_s5 + $0x518] sm:$0xff]  ;;  %v5370_v39 = vcombine.low %v821_v24, %v825_v25  ;;  %v5378_v53 = vcombine.low %v829_v33, %v833_v34 }
 0x246   :  { %2494 = vmatprep.subr.bf16.mxu0 %v5317_v40  ;;  %v5341_v6 = vcombine.high %v790_v11, %v794_v56  ;;  %v5340_v62 = vcombine.low %v790_v11, %v794_v56  ;;  %v5372_v40 = vcombine.low %v822_v26, %v826_v27  ;;  %v5386_v56 = vcombine.low %v837_v43, %v841_v44  ;;  %v882_v24 = vld [vmem:[%s8639_s5 + $0x7f8] sm:$0xff]  ;;  %v5964_v44 = vld [vmem:[%s8642_s7 + $0x44] ss:$16 sps:$4 sm:$0xff]  }
 0x247   :  { %2413 = vmatpush1.bf16.msra.mxu1 %v5314_v42  ;;  %v5379_v42 = vcombine.high %v829_v33, %v833_v34  ;;  %v5952_v33 = vld [vmem:[%s8642_s7 + $0x4] ss:$16 sps:$4 sm:$0xff]   ;;  %v5955_v34 = vld [vmem:[%s8642_s7 + $0xc] ss:$16 sps:$4 sm:$0xff]   ;;  %v5959_v43 = vld [vmem:[%s8642_s7 + $0x28] ss:$16 sps:$4 sm:$0xff]  }
 0x248   :  { %2495 = vmatpush1.bf16.msra.mxu0 %v5316_v45  ;;  %2414 = vmatprep.subr.bf16.mxu1 %v5323_v46  ;;  %v5381_v45 = vcombine.high %v830_v35, %v834_v36  ;;  %v838_v46 = vld [vmem:[%s8639_s5 + $0x698] sm:$0xff]  ;;  %v5950_v35 = vld [vmem:[%s8642_s7] ss:$16 sps:$4 sm:$0xff]  }
 0x249   :  { %2496 = vmatprep.subr.bf16.mxu0 %v5325_v48  ;;  %v845_v48 = vld [vmem:[%s8639_s5 + $0x6d0] sm:$0xff]  ;;  %v5389_v11 = vcombine.high %v838_v46, %v842_v47  ;;  %v5388_v59 = vcombine.low %v838_v46, %v842_v47  ;;  %v5953_v36 = vld [vmem:[%s8642_s7 + $0x8] ss:$16 sps:$4 sm:$0xff]  }
 0x24a   :  { %v5965_v46 = vld [vmem:[%s8642_s7 + $0x48] ss:$16 sps:$4 sm:$0xff]   ;;  %v5970_v47 = vld [vmem:[%s8642_s7 + $0x64] ss:$16 sps:$4 sm:$0xff]  }
 0x24b   :  { %2415 = vmatpush1.bf16.msra.mxu1 %v5322_v49  ;;  %v849_v49 = vld [vmem:[%s8639_s5 + $0x6f0] sm:$0xff] }
 0x24c   :  { %2497 = vmatpush1.bf16.msra.mxu0 %v5324_v54  ;;  %2416 = vmatprep.subr.bf16.mxu1 %v5331_v55  ;;  %v846_v54 = vld [vmem:[%s8639_s5 + $0x6d8] sm:$0xff]  ;;  %v5395_v37 = vcombine.high %v845_v48, %v849_v49  ;;  %v5394_v3 = vcombine.low %v845_v48, %v849_v49  ;;  %v5968_v48 = vld [vmem:[%s8642_s7 + $0x60] ss:$16 sps:$4 sm:$0xff]  }
 0x24d   :  { %2498 = vmatprep.subr.bf16.mxu0 %v5333_v57  ;;  %v850_v55 = vld [vmem:[%s8639_s5 + $0x6f8] sm:$0xff]  ;;  %v853_v57 = vld [vmem:[%s8639_s5 + $0x710] sm:$0xff] }
 0x24e   :  { %v5397_v2 = vcombine.high %v846_v54, %v850_v55  ;;  %v5396_v60 = vcombine.low %v846_v54, %v850_v55  ;;  %v5971_v49 = vld [vmem:[%s8642_s7 + $0x68] ss:$16 sps:$4 sm:$0xff]   ;;  %v5974_v54 = vld [vmem:[%s8642_s7 + $0x80] ss:$16 sps:$4 sm:$0xff]  }
 0x24f   :  { %2417 = vmatpush1.bf16.msra.mxu1 %v5330_v58  ;;  %v857_v58 = vld [vmem:[%s8639_s5 + $0x730] sm:$0xff]  ;;  %v5977_v55 = vld [vmem:[%s8642_s7 + $0x88] ss:$16 sps:$4 sm:$0xff]  }
 0x250   :  { %2499 = vmatpush1.bf16.msra.mxu0 %v5332_v63  ;;  %2418 = vmatprep.subr.bf16.mxu1 %v5339_v0  ;;  %v854_v63 = vld [vmem:[%s8639_s5 + $0x718] sm:$0xff]  ;;  %v5403_v61 = vcombine.high %v853_v57, %v857_v58  ;;  %v5402_v5 = vcombine.low %v853_v57, %v857_v58  ;;  %v5980_v57 = vld [vmem:[%s8642_s7 + $0xa0] ss:$16 sps:$4 sm:$0xff]  }
 0x251   :  { %2500 = vmatprep.subr.bf16.mxu0 %v5341_v6  ;;  %v858_v0 = vld [vmem:[%s8639_s5 + $0x738] sm:$0xff]  ;;  %v861_v6 = vld [vmem:[%s8639_s5 + $0x750] sm:$0xff] }
 0x252   :  { %v5405_v4 = vcombine.high %v854_v63, %v858_v0  ;;  %v5983_v58 = vld [vmem:[%s8642_s7 + $0xa8] ss:$16 sps:$4 sm:$0xff]  }
 0x253   :  { %2419 = vmatpush1.bf16.msra.mxu1 %v5338_v7  ;;  %v865_v7 = vld [vmem:[%s8639_s5 + $0x770] sm:$0xff] }
 0x254   :  { %2501 = vmatpush1.bf16.msra.mxu0 %v5340_v62  ;;  %2420 = vmatprep.subr.bf16.mxu1 %v5347_v1  ;;  %v862_v62 = vld [vmem:[%s8639_s5 + $0x758] sm:$0xff]  ;;  %v5410_v17 = vcombine.low %v861_v6, %v865_v7 }
 0x255   :  { %2502 = vmatprep.subr.bf16.mxu0 %v5349_v8  ;;  %v866_v1 = vld [vmem:[%s8639_s5 + $0x778] sm:$0xff]  ;;  %v869_v8 = vld [vmem:[%s8639_s5 + $0x790] sm:$0xff] }
 0x256   :  { %v5413_v16 = vcombine.high %v862_v62, %v866_v1 }
 0x257   :  { %2421 = vmatpush1.bf16.msra.mxu1 %v5346_v9  ;;  %v873_v9 = vld [vmem:[%s8639_s5 + $0x7b0] sm:$0xff] }
 0x258   :  { %2503 = vmatpush1.bf16.msra.mxu0 %v5348_v10  ;;  %2422 = vmatprep.subr.bf16.mxu1 %v5355_v12  ;;  %v5404_v10 = vcombine.low %v854_v63, %v858_v0  ;;  %v5411_v12 = vcombine.high %v861_v6, %v865_v7  ;;  %v5418_v26 = vcombine.low %v869_v8, %v873_v9  ;;  %v5986_v63 = vld [vmem:[%s8642_s7 + $0xc0] ss:$16 sps:$4 sm:$0xff]   ;;  %v5989_v0 = vld [vmem:[%s8642_s7 + $0xc8] ss:$16 sps:$4 sm:$0xff]  }
 0x259   :  { %2504 = vmatprep.subr.bf16.mxu0 %v5357_v14  ;;  %v870_v14 = vld [vmem:[%s8639_s5 + $0x798] sm:$0xff]  ;;  %v5992_v6 = vld [vmem:[%s8642_s7 + $0xe0] ss:$16 sps:$4 sm:$0xff]  }
 0x25a   :  { %v5421_v25 = vcombine.high %v870_v14, %v874_v15  ;;  %v5420_v27 = vcombine.low %v870_v14, %v874_v15  ;;  %v5995_v7 = vld [vmem:[%s8642_s7 + $0xe8] ss:$16 sps:$4 sm:$0xff]   ;;  %v6010_v14 = vld [vmem:[%s8642_s7 + $0x140] ss:$16 sps:$4 sm:$0xff]  }
 0x25b   :  { %2423 = vmatpush1.bf16.msra.mxu1 %v5354_v19  ;;  %v881_v19 = vld [vmem:[%s8639_s5 + $0x7f0] sm:$0xff]  ;;  %v6013_v15 = vld [vmem:[%s8642_s7 + $0x148] ss:$16 sps:$4 sm:$0xff]  }
 0x25c   :  { %2505 = vmatpush1.bf16.msra.mxu0 %v5356_v20  ;;  %2424 = vmatprep.subr.bf16.mxu1 %v5363_v21  ;;  %v5412_v20 = vcombine.low %v862_v62, %v866_v1  ;;  %v5419_v21 = vcombine.high %v869_v8, %v873_v9  ;;  %v5998_v62 = vld [vmem:[%s8642_s7 + $0x100] ss:$16 sps:$4 sm:$0xff]   ;;  %v6001_v1 = vld [vmem:[%s8642_s7 + $0x108] ss:$16 sps:$4 sm:$0xff]  }
 0x25d   :  { %2506 = vmatprep.subr.bf16.mxu0 %v5365_v22  ;;  %v878_v22 = vld [vmem:[%s8639_s5 + $0x7d8] sm:$0xff]  ;;  %v6004_v8 = vld [vmem:[%s8642_s7 + $0x120] ss:$16 sps:$4 sm:$0xff]  }
 0x25e   :  { %v6007_v9 = vld [vmem:[%s8642_s7 + $0x128] ss:$16 sps:$4 sm:$0xff]  }
 0x25f   :  { %2425 = vmatpush1.bf16.msra.mxu1 %v5362_v29  ;;  %v5427_v29 = vcombine.high %v877_v18, %v881_v19 }
 0x260   :  { %2507 = vmatpush1.bf16.msra.mxu0 %v5364_v52  ;;  %2426 = vmatprep.subr.bf16.mxu1 %v5371_v31  ;;  %v5429_v52 = vcombine.high %v878_v22, %v882_v24  ;;  %v5426_v31 = vcombine.low %v877_v18, %v881_v19  ;;  %v6016_v18 = vld [vmem:[%s8642_s7 + $0x160] ss:$16 sps:$4 sm:$0xff]   ;;  %v6019_v19 = vld [vmem:[%s8642_s7 + $0x168] ss:$16 sps:$4 sm:$0xff]  }
 0x261   :  { %2508 = vmatprep.subr.bf16.mxu0 %v5373_v32  ;;  %v5428_v32 = vcombine.low %v878_v22, %v882_v24  ;;  %v6022_v22 = vld [vmem:[%s8642_s7 + $0x180] ss:$16 sps:$4 sm:$0xff]   ;;  %v6025_v24 = vld [vmem:[%s8642_s7 + $0x188] ss:$16 sps:$4 sm:$0xff]  }
 0x263   :  { %2427 = vmatpush1.bf16.msra.mxu1 %v5370_v39  ;;  %v5958_v39 = vld [vmem:[%s8642_s7 + $0x24] ss:$16 sps:$4 sm:$0xff]  }
 0x264   :  { %2509 = vmatpush1.bf16.msra.mxu0 %v5372_v40  ;;  %2428 = vmatprep.subr.bf16.mxu1 %v5379_v42  ;;  %v5961_v40 = vld [vmem:[%s8642_s7 + $0x2c] ss:$16 sps:$4 sm:$0xff]   ;;  %v5956_v42 = vld [vmem:[%s8642_s7 + $0x20] ss:$16 sps:$4 sm:$0xff]  }
 0x265   :  { %2510 = vmatprep.subr.bf16.mxu0 %v5381_v45  ;;  %v5962_v45 = vld [vmem:[%s8642_s7 + $0x40] ss:$16 sps:$4 sm:$0xff]  }
 0x267   :  { %2429 = vmatpush1.bf16.msra.mxu1 %v5378_v53  ;;  %v5973_v53 = vld [vmem:[%s8642_s7 + $0x6c] ss:$16 sps:$4 sm:$0xff]  }
 0x268   :  { %2511 = vmatpush1.bf16.msra.mxu0 %v5380_v50  ;;  %2430 = vmatprep.subr.bf16.mxu1 %v5387_v51  ;;  %v5976_v50 = vld [vmem:[%s8642_s7 + $0x84] ss:$16 sps:$4 sm:$0xff]   ;;  %v5979_v51 = vld [vmem:[%s8642_s7 + $0x8c] ss:$16 sps:$4 sm:$0xff]  }
 0x269   :  { %2512 = vmatprep.subr.bf16.mxu0 %v5389_v11  ;;  %v5982_v11 = vld [vmem:[%s8642_s7 + $0xa4] ss:$16 sps:$4 sm:$0xff]  }
 0x26b   :  { %2431 = vmatpush1.bf16.msra.mxu1 %v5386_v56  ;;  %v5985_v56 = vld [vmem:[%s8642_s7 + $0xac] ss:$16 sps:$4 sm:$0xff]  }
 0x26c   :  { %2513 = vmatpush1.bf16.msra.mxu0 %v5388_v59  ;;  %2432 = vmatprep.subr.bf16.mxu1 %v5395_v37  ;;  %v5988_v59 = vld [vmem:[%s8642_s7 + $0xc4] ss:$16 sps:$4 sm:$0xff]   ;;  %v5991_v37 = vld [vmem:[%s8642_s7 + $0xcc] ss:$16 sps:$4 sm:$0xff]  }
 0x26d   :  { %2514 = vmatprep.subr.bf16.mxu0 %v5397_v2  ;;  %v5994_v2 = vld [vmem:[%s8642_s7 + $0xe4] ss:$16 sps:$4 sm:$0xff]  }
 0x26f   :  { %2433 = vmatpush1.bf16.msra.mxu1 %v5394_v3  ;;  %v5997_v3 = vld [vmem:[%s8642_s7 + $0xec] ss:$16 sps:$4 sm:$0xff]  }
 0x270   :  { %2515 = vmatpush1.bf16.msra.mxu0 %v5396_v60  ;;  %2434 = vmatprep.subr.bf16.mxu1 %v5403_v61  ;;  %v6000_v60 = vld [vmem:[%s8642_s7 + $0x104] ss:$16 sps:$4 sm:$0xff]   ;;  %v6003_v61 = vld [vmem:[%s8642_s7 + $0x10c] ss:$16 sps:$4 sm:$0xff]  }
 0x271   :  { %2516 = vmatprep.subr.bf16.mxu0 %v5405_v4  ;;  %v6006_v4 = vld [vmem:[%s8642_s7 + $0x124] ss:$16 sps:$4 sm:$0xff]  }
 0x273   :  { %2435 = vmatpush1.bf16.msra.mxu1 %v5402_v5  ;;  %v6009_v5 = vld [vmem:[%s8642_s7 + $0x12c] ss:$16 sps:$4 sm:$0xff]  }
 0x274   :  { %2517 = vmatpush1.bf16.msra.mxu0 %v5404_v10  ;;  %2436 = vmatprep.subr.bf16.mxu1 %v5411_v12  ;;  %v6012_v10 = vld [vmem:[%s8642_s7 + $0x144] ss:$16 sps:$4 sm:$0xff]   ;;  %v6015_v12 = vld [vmem:[%s8642_s7 + $0x14c] ss:$16 sps:$4 sm:$0xff]  }
 0x275   :  { %2518 = vmatprep.subr.bf16.mxu0 %v5413_v16  ;;  %v6018_v16 = vld [vmem:[%s8642_s7 + $0x164] ss:$16 sps:$4 sm:$0xff]  }
 0x277   :  { %2437 = vmatpush1.bf16.msra.mxu1 %v5410_v17  ;;  %v6021_v17 = vld [vmem:[%s8642_s7 + $0x16c] ss:$16 sps:$4 sm:$0xff]  }
 0x278   :  { %2519 = vmatpush1.bf16.msra.mxu0 %v5412_v20  ;;  %2438 = vmatprep.subr.bf16.mxu1 %v5419_v21  ;;  %v6024_v20 = vld [vmem:[%s8642_s7 + $0x184] ss:$16 sps:$4 sm:$0xff]   ;;  %v6027_v21 = vld [vmem:[%s8642_s7 + $0x18c] ss:$16 sps:$4 sm:$0xff]  }
 0x279   :  { %2520 = vmatprep.subr.bf16.mxu0 %v5421_v25  ;;  %v6030_v25 = vld [vmem:[%s8642_s7 + $0x1a4] ss:$16 sps:$4 sm:$0xff]  }
 0x27b   :  { %2439 = vmatpush1.bf16.msra.mxu1 %v5418_v26  ;;  %v6033_v26 = vld [vmem:[%s8642_s7 + $0x1ac] ss:$16 sps:$4 sm:$0xff]  }
 0x27c   :  { %2521 = vmatpush1.bf16.msra.mxu0 %v5420_v27  ;;  %2440 = vmatprep.subr.bf16.mxu1 %v5427_v29  ;;  %v6028_v27 = vld [vmem:[%s8642_s7 + $0x1a0] ss:$16 sps:$4 sm:$0xff]   ;;  %v6031_v29 = vld [vmem:[%s8642_s7 + $0x1a8] ss:$16 sps:$4 sm:$0xff]  }
 0x27d   :  { %2522 = vmatprep.subr.bf16.mxu0 %v5429_v52  ;;  %v6036_v52 = vld [vmem:[%s8642_s7 + $0x1c4] ss:$16 sps:$4 sm:$0xff]  }
 0x27f   :  { %2441 = vmatpush1.bf16.msra.mxu1 %v5426_v31  ;;  %v6039_v31 = vld [vmem:[%s8642_s7 + $0x1cc] ss:$16 sps:$4 sm:$0xff]  }
 0x280   :  { %2523 = vmatpush1.bf16.msra.mxu0 %v5428_v32  ;;  %4107 = vmatprep.subr.bf16.mxu1 %v5952_v33  ;;  %v6034_v32 = vld [vmem:[%s8642_s7 + $0x1c0] ss:$16 sps:$4 sm:$0xff]   ;;  %v6037_v33 = vld [vmem:[%s8642_s7 + $0x1c8] ss:$16 sps:$4 sm:$0xff]  }
 0x281   :  { %4271 = vmatprep.subr.bf16.mxu0 %v5955_v34  ;;  %v6042_v34 = vld [vmem:[%s8642_s7 + $0x1e4] ss:$16 sps:$4 sm:$0xff]  }
 0x282   :  { %2443 = vmatmul.mubr.bf16.vlgmr.msra.gmra.mrb[8].mxu1 %v7200_v13 }
 0x283   :  { %2525 = vmatmul.mubr.bf16.vlgmr.msra.gmra.mrb[12].mxu0 %v7200_v13  ;;  %4108 = vmatpush1.bf16.msra.mxu1 %v5950_v35  ;;  %v5967_v13 = vld [vmem:[%s8642_s7 + $0x4c] ss:$16 sps:$4 sm:$0xff]  }
 0x284   :  { %4272 = vmatpush1.bf16.msra.mxu0 %v5953_v36  ;;  %4109 = vmatprep.subr.bf16.mxu1 %v5958_v39  ;;  %v6045_v35 = vld [vmem:[%s8642_s7 + $0x1ec] ss:$16 sps:$4 sm:$0xff]   ;;  %v6040_v36 = vld [vmem:[%s8642_s7 + $0x1e0] ss:$16 sps:$4 sm:$0xff]   ;;  %v6043_v39 = vld [vmem:[%s8642_s7 + $0x1e8] ss:$16 sps:$4 sm:$0xff]  }
 0x285   :  { %4273 = vmatprep.subr.bf16.mxu0 %v5961_v40  ;;  %v6048_v40 = vld [vmem:[%s8642_s7 + $0x204] ss:$16 sps:$4 sm:$0xff]  }
 0x287   :  { %4110 = vmatpush1.bf16.msra.mxu1 %v5956_v42  ;;  %v6051_v42 = vld [vmem:[%s8642_s7 + $0x20c] ss:$16 sps:$4 sm:$0xff]  }
 0x288   :  { %4274 = vmatpush1.bf16.msra.mxu0 %v5959_v43  ;;  %4111 = vmatprep.subr.bf16.mxu1 %v5964_v44  ;;  %v7775_v43 = vld [vmem:[%s8643_s6] sm:$0xff] }
 0x289   :  { %4275 = vmatprep.subr.bf16.mxu0 %v5967_v13  ;;  %v888_v44 = vrot.slane %v7775_v43, %v6712_v28  ;;  %v892_v13 = vrot.slane %v7775_v43, %v6718_v30 }
 0x28b   :  { %4112 = vmatpush1.bf16.msra.mxu1 %v5962_v45  ;;  %v900_v45 = vrot.slane %v7775_v43, %v7156_v41 }
 0x28c   :  { %4276 = vmatpush1.bf16.msra.mxu0 %v5965_v46  ;;  %4113 = vmatprep.subr.bf16.mxu1 %v5970_v47 }
 0x28d   :  { %4277 = vmatprep.subr.bf16.mxu0 %v5973_v53 }
 0x28f   :  { %4114 = vmatpush1.bf16.msra.mxu1 %v5968_v48 }
 0x290   :  { %4278 = vmatpush1.bf16.msra.mxu0 %v5971_v49  ;;  %4115 = vmatprep.subr.bf16.mxu1 %v5976_v50 }
 0x291   :  { %4279 = vmatprep.subr.bf16.mxu0 %v5979_v51 }
 0x293   :  { %4116 = vmatpush1.bf16.msra.mxu1 %v5974_v54 }
 0x294   :  { %4280 = vmatpush1.bf16.msra.mxu0 %v5977_v55  ;;  %4117 = vmatprep.subr.bf16.mxu1 %v5982_v11 }
 0x295   :  { %4281 = vmatprep.subr.bf16.mxu0 %v5985_v56 }
 0x297   :  { %4118 = vmatpush1.bf16.msra.mxu1 %v5980_v57 }
 0x298   :  { %4282 = vmatpush1.bf16.msra.mxu0 %v5983_v58  ;;  %4119 = vmatprep.subr.bf16.mxu1 %v5988_v59 }
 0x299   :  { %4283 = vmatprep.subr.bf16.mxu0 %v5991_v37 }
 0x29b   :  { %4120 = vmatpush1.bf16.msra.mxu1 %v5986_v63  ;;  %v6046_v63 = vld [vmem:[%s8642_s7 + $0x200] ss:$16 sps:$4 sm:$0xff]  }
 0x29c   :  { %4284 = vmatpush1.bf16.msra.mxu0 %v5989_v0  ;;  %4121 = vmatprep.subr.bf16.mxu1 %v5994_v2  ;;  %v6049_v0 = vld [vmem:[%s8642_s7 + $0x208] ss:$16 sps:$4 sm:$0xff]  }
 0x29d   :  { %4285 = vmatprep.subr.bf16.mxu0 %v5997_v3  ;;  %v6054_v3 = vld [vmem:[%s8642_s7 + $0x224] ss:$16 sps:$4 sm:$0xff]  }
 0x29f   :  { %4122 = vmatpush1.bf16.msra.mxu1 %v5992_v6  ;;  %v6057_v6 = vld [vmem:[%s8642_s7 + $0x22c] ss:$16 sps:$4 sm:$0xff]  }
 0x2a0   :  { %4286 = vmatpush1.bf16.msra.mxu0 %v5995_v7  ;;  %4123 = vmatprep.subr.bf16.mxu1 %v6000_v60  ;;  %v6052_v60 = vld [vmem:[%s8642_s7 + $0x220] ss:$16 sps:$4 sm:$0xff]  }
 0x2a1   :  { %4287 = vmatprep.subr.bf16.mxu0 %v6003_v61  ;;  %v6055_v61 = vld [vmem:[%s8642_s7 + $0x228] ss:$16 sps:$4 sm:$0xff]  }
 0x2a3   :  { %4124 = vmatpush1.bf16.msra.mxu1 %v5998_v62  ;;  %v6060_v62 = vld [vmem:[%s8642_s7 + $0x244] ss:$16 sps:$4 sm:$0xff]  }
 0x2a4   :  { %4288 = vmatpush1.bf16.msra.mxu0 %v6001_v1  ;;  %4125 = vmatprep.subr.bf16.mxu1 %v6006_v4  ;;  %v6063_v1 = vld [vmem:[%s8642_s7 + $0x24c] ss:$16 sps:$4 sm:$0xff]   ;;  %v6058_v4 = vld [vmem:[%s8642_s7 + $0x240] ss:$16 sps:$4 sm:$0xff]  }
 0x2a5   :  { %4289 = vmatprep.subr.bf16.mxu0 %v6009_v5  ;;  %v6061_v5 = vld [vmem:[%s8642_s7 + $0x248] ss:$16 sps:$4 sm:$0xff]  }
 0x2a7   :  { %4126 = vmatpush1.bf16.msra.mxu1 %v6004_v8  ;;  %v6066_v8 = vld [vmem:[%s8642_s7 + $0x264] ss:$16 sps:$4 sm:$0xff]  }
 0x2a8   :  { %4290 = vmatpush1.bf16.msra.mxu0 %v6007_v9  ;;  %4127 = vmatprep.subr.bf16.mxu1 %v6012_v10  ;;  %v6069_v9 = vld [vmem:[%s8642_s7 + $0x26c] ss:$16 sps:$4 sm:$0xff]   ;;  %v6064_v10 = vld [vmem:[%s8642_s7 + $0x260] ss:$16 sps:$4 sm:$0xff]  }
 0x2a9   :  { %4291 = vmatprep.subr.bf16.mxu0 %v6015_v12  ;;  %v6067_v12 = vld [vmem:[%s8642_s7 + $0x268] ss:$16 sps:$4 sm:$0xff]  }
 0x2ab   :  { %4128 = vmatpush1.bf16.msra.mxu1 %v6010_v14  ;;  %v6072_v14 = vld [vmem:[%s8642_s7 + $0x284] ss:$16 sps:$4 sm:$0xff]  }
 0x2ac   :  { %4292 = vmatpush1.bf16.msra.mxu0 %v6013_v15  ;;  %4129 = vmatprep.subr.bf16.mxu1 %v6018_v16  ;;  %v6075_v15 = vld [vmem:[%s8642_s7 + $0x28c] ss:$16 sps:$4 sm:$0xff]   ;;  %v6070_v16 = vld [vmem:[%s8642_s7 + $0x280] ss:$16 sps:$4 sm:$0xff]  }
 0x2ad   :  { %4293 = vmatprep.subr.bf16.mxu0 %v6021_v17  ;;  %v6073_v17 = vld [vmem:[%s8642_s7 + $0x288] ss:$16 sps:$4 sm:$0xff]  }
 0x2af   :  { %4130 = vmatpush1.bf16.msra.mxu1 %v6016_v18  ;;  %v6078_v18 = vld [vmem:[%s8642_s7 + $0x2a4] ss:$16 sps:$4 sm:$0xff]  }
 0x2b0   :  { %4294 = vmatpush1.bf16.msra.mxu0 %v6019_v19  ;;  %4131 = vmatprep.subr.bf16.mxu1 %v6024_v20  ;;  %v6081_v19 = vld [vmem:[%s8642_s7 + $0x2ac] ss:$16 sps:$4 sm:$0xff]   ;;  %v6076_v20 = vld [vmem:[%s8642_s7 + $0x2a0] ss:$16 sps:$4 sm:$0xff]  }
 0x2b1   :  { %4295 = vmatprep.subr.bf16.mxu0 %v6027_v21  ;;  %v6079_v21 = vld [vmem:[%s8642_s7 + $0x2a8] ss:$16 sps:$4 sm:$0xff]  }
 0x2b3   :  { %4132 = vmatpush1.bf16.msra.mxu1 %v6022_v22  ;;  %v6084_v22 = vld [vmem:[%s8642_s7 + $0x2c4] ss:$16 sps:$4 sm:$0xff]  }
 0x2b4   :  { %4296 = vmatpush1.bf16.msra.mxu0 %v6025_v24  ;;  %4133 = vmatprep.subr.bf16.mxu1 %v6030_v25  ;;  %v6087_v24 = vld [vmem:[%s8642_s7 + $0x2cc] ss:$16 sps:$4 sm:$0xff]   ;;  %v6082_v25 = vld [vmem:[%s8642_s7 + $0x2c0] ss:$16 sps:$4 sm:$0xff]  }
 0x2b5   :  { %4297 = vmatprep.subr.bf16.mxu0 %v6033_v26  ;;  %v6085_v26 = vld [vmem:[%s8642_s7 + $0x2c8] ss:$16 sps:$4 sm:$0xff]  }
 0x2b7   :  { %4134 = vmatpush1.bf16.msra.mxu1 %v6028_v27  ;;  %v6090_v27 = vld [vmem:[%s8642_s7 + $0x2e4] ss:$16 sps:$4 sm:$0xff]  }
 0x2b8   :  { %4298 = vmatpush1.bf16.msra.mxu0 %v6031_v29  ;;  %4135 = vmatprep.subr.bf16.mxu1 %v6036_v52  ;;  %v6093_v29 = vld [vmem:[%s8642_s7 + $0x2ec] ss:$16 sps:$4 sm:$0xff]   ;;  %v6088_v52 = vld [vmem:[%s8642_s7 + $0x2e0] ss:$16 sps:$4 sm:$0xff]  }
 0x2b9   :  { %4299 = vmatprep.subr.bf16.mxu0 %v6039_v31  ;;  %v6091_v31 = vld [vmem:[%s8642_s7 + $0x2e8] ss:$16 sps:$4 sm:$0xff]  }
 0x2bb   :  { %4136 = vmatpush1.bf16.msra.mxu1 %v6034_v32  ;;  %v6096_v32 = vld [vmem:[%s8642_s7 + $0x304] ss:$16 sps:$4 sm:$0xff]  }
 0x2bc   :  { %4300 = vmatpush1.bf16.msra.mxu0 %v6037_v33  ;;  %4137 = vmatprep.subr.bf16.mxu1 %v6042_v34  ;;  %v6099_v33 = vld [vmem:[%s8642_s7 + $0x30c] ss:$16 sps:$4 sm:$0xff]   ;;  %v6094_v34 = vld [vmem:[%s8642_s7 + $0x300] ss:$16 sps:$4 sm:$0xff]  }
 0x2bd   :  { %4301 = vmatprep.subr.bf16.mxu0 %v6045_v35  ;;  %v6097_v35 = vld [vmem:[%s8642_s7 + $0x308] ss:$16 sps:$4 sm:$0xff]  }
 0x2bf   :  { %4138 = vmatpush1.bf16.msra.mxu1 %v6040_v36  ;;  %v6102_v36 = vld [vmem:[%s8642_s7 + $0x324] ss:$16 sps:$4 sm:$0xff]  }
 0x2c0   :  { %4302 = vmatpush1.bf16.msra.mxu0 %v6043_v39  ;;  %4148 = vmatprep.subr.bf16.mxu1 %v6048_v40  ;;  %v6105_v39 = vld [vmem:[%s8642_s7 + $0x32c] ss:$16 sps:$4 sm:$0xff]   ;;  %v6100_v40 = vld [vmem:[%s8642_s7 + $0x320] ss:$16 sps:$4 sm:$0xff]  }
 0x2c1   :  { %4312 = vmatprep.subr.bf16.mxu0 %v6051_v42  ;;  %v6103_v42 = vld [vmem:[%s8642_s7 + $0x328] ss:$16 sps:$4 sm:$0xff]  }
 0x2d5   :  { %v2280_v46 = vpop.f32.mrb[4].mxu1  ;;  %v7783_v47 = vpop.f32.mrb[8].mxu0 }
 0x2d6   :  { %v5789_v53 = vadd.f32 %v2280_v46, %v888_v44  ;;  %v2282_v48 = vpop.f32.mrb[5].mxu1  ;;  %v2364_v49 = vpop.f32.mrb[9].mxu0  ;;  %v6108_v44 = vld [vmem:[%s8642_s7 + $0x344] ss:$16 sps:$4 sm:$0xff]   ;;  %v6109_v46 = vld [vmem:[%s8642_s7 + $0x348] ss:$16 sps:$4 sm:$0xff]  }
 0x2d7   :  { %v5790_v50 = vadd.f32 %v2282_v48, %v892_v13  ;;  %v5792_v51 = vadd.f32 %v2364_v49, %v900_v45  ;;  %v2284_v54 = vpop.f32.mrb[6].mxu1  ;;  %v2366_v55 = vpop.f32.mrb[10].mxu0  ;;  %v6111_v13 = vld [vmem:[%s8642_s7 + $0x34c] ss:$16 sps:$4 sm:$0xff]   ;;  %v6106_v45 = vld [vmem:[%s8642_s7 + $0x340] ss:$16 sps:$4 sm:$0xff]  }
 0x2d8   :  { %v2533_v11 = vmax.f32 %v5789_v53, 0.0  ;;  %v2285_v56 = vpop.f32.mrb[7].mxu1  ;;  %v2367_v57 = vpop.f32.mrb[11].mxu0  ;;  %v6114_v53 = vld [vmem:[%s8642_s7 + $0x364] ss:$16 sps:$4 sm:$0xff]  }
 0x2d9   :  { %v2534_v58 = vmax.f32 %v5790_v50, 0.0  ;;  %v2536_v59 = vmax.f32 %v5792_v51, 0.0  ;;  %v6117_v48 = vld [vmem:[%s8642_s7 + $0x36c] ss:$16 sps:$4 sm:$0xff]   ;;  %v6112_v49 = vld [vmem:[%s8642_s7 + $0x360] ss:$16 sps:$4 sm:$0xff]  }
 0x2da   :  { %v2541_v2 = vpack.c.bf16 %v2533_v11, %v2533_v11  ;;  %v6115_v50 = vld [vmem:[%s8642_s7 + $0x368] ss:$16 sps:$4 sm:$0xff]   ;;  %v6120_v51 = vld [vmem:[%s8642_s7 + $0x384] ss:$16 sps:$4 sm:$0xff]   ;;  %v6123_v54 = vld [vmem:[%s8642_s7 + $0x38c] ss:$16 sps:$4 sm:$0xff]  }
 0x2db   :  { %v2542_v37 = vpack.c.bf16 %v2534_v58, %v2534_v58  ;;  %v2544_v7 = vpack.c.bf16 %v2536_v59, %v2536_v59  ;;  %v6118_v55 = vld [vmem:[%s8642_s7 + $0x380] ss:$16 sps:$4 sm:$0xff]   ;;  %v6121_v11 = vld [vmem:[%s8642_s7 + $0x388] ss:$16 sps:$4 sm:$0xff]   ;;  %v6126_v56 = vld [vmem:[%s8642_s7 + $0x3a4] ss:$16 sps:$4 sm:$0xff]  }
 0x2dc   :  { %v6129_v57 = vld [vmem:[%s8642_s7 + $0x3ac] ss:$16 sps:$4 sm:$0xff]   ;;  %v6124_v58 = vld [vmem:[%s8642_s7 + $0x3a0] ss:$16 sps:$4 sm:$0xff]   ;;  %v6127_v59 = vld [vmem:[%s8642_s7 + $0x3a8] ss:$16 sps:$4 sm:$0xff]  }
 0x2dd   :  { %4139 = vmatprep.mubr.bf16.mxu1 %v2542_v37  ;;  %4303 = vmatprep.mubr.bf16.mxu0 %v2542_v37  ;;  %v896_v37 = vrot.slane %v7775_v43, %v7153_v38 }
 0x2de   :  { %4140 = vmatmul.mubr.bf16.vlgmr.msra.gmra.mrb[12].mxu1 %v2541_v2  ;;  %4304 = vmatmul.mubr.bf16.vlgmr.msra.gmra.mrb[16].mxu0 %v2541_v2  ;;  %v6130_v2 = vld [vmem:[%s8642_s7 + $0x3c0] ss:$16 sps:$4 sm:$0xff]  }
 0x2df   :  { %4149 = vmatpush1.bf16.msra.mxu1 %v6046_v63  ;;  %4313 = vmatpush1.bf16.msra.mxu0 %v6049_v0  ;;  %v6132_v63 = vld [vmem:[%s8642_s7 + $0x3c4] ss:$16 sps:$4 sm:$0xff]   ;;  %v6135_v0 = vld [vmem:[%s8642_s7 + $0x3cc] ss:$16 sps:$4 sm:$0xff]  }
 0x2e0   :  { %4180 = vmatprep.mubr.bf16.mxu1 %v2544_v7  ;;  %4344 = vmatprep.mubr.bf16.mxu0 %v2544_v7  ;;  %v6138_v7 = vld [vmem:[%s8642_s7 + $0x3e4] ss:$16 sps:$4 sm:$0xff]  }
 0x2e1   :  { %4150 = vmatprep.subr.bf16.mxu1 %v6054_v3  ;;  %4314 = vmatprep.subr.bf16.mxu0 %v6057_v6  ;;  %v6133_v3 = vld [vmem:[%s8642_s7 + $0x3c8] ss:$16 sps:$4 sm:$0xff]   ;;  %v5791_v6 = vadd.f32 %v7783_v47, %v896_v37  ;;  %v6208_v37 = vld [vmem:[%s8642_s7 + $0x560] ss:$16 sps:$4 sm:$0xff]  }
 0x2e2   :  { %v6139_v47 = vld [vmem:[%s8642_s7 + $0x3e8] ss:$16 sps:$4 sm:$0xff]  }
 0x2e3   :  { %4151 = vmatpush1.bf16.msra.mxu1 %v6052_v60  ;;  %4315 = vmatpush1.bf16.msra.mxu0 %v6055_v61  ;;  %v6141_v60 = vld [vmem:[%s8642_s7 + $0x3ec] ss:$16 sps:$4 sm:$0xff]   ;;  %v6136_v61 = vld [vmem:[%s8642_s7 + $0x3e0] ss:$16 sps:$4 sm:$0xff]  }
 0x2e4   :  { %4152 = vmatprep.subr.bf16.mxu1 %v6060_v62  ;;  %4316 = vmatprep.subr.bf16.mxu0 %v6063_v1  ;;  %v2535_v62 = vmax.f32 %v5791_v6, 0.0  ;;  %v6144_v1 = vld [vmem:[%s8642_s7 + $0x404] ss:$16 sps:$4 sm:$0xff]   ;;  %v6217_v6 = vld [vmem:[%s8642_s7 + $0x588] ss:$16 sps:$4 sm:$0xff]  }
 0x2e7   :  { %4153 = vmatpush1.bf16.msra.mxu1 %v6058_v4  ;;  %4317 = vmatpush1.bf16.msra.mxu0 %v6061_v5  ;;  %v6147_v4 = vld [vmem:[%s8642_s7 + $0x40c] ss:$16 sps:$4 sm:$0xff]   ;;  %v6142_v5 = vld [vmem:[%s8642_s7 + $0x400] ss:$16 sps:$4 sm:$0xff]  }
 0x2e8   :  { %4154 = vmatprep.subr.bf16.mxu1 %v6066_v8  ;;  %4318 = vmatprep.subr.bf16.mxu0 %v6069_v9  ;;  %v6145_v8 = vld [vmem:[%s8642_s7 + $0x408] ss:$16 sps:$4 sm:$0xff]   ;;  %v2543_v9 = vpack.c.bf16 %v2535_v62, %v2535_v62 }
 0x2e9   :  { %v6223_v62 = vld [vmem:[%s8642_s7 + $0x5a8] ss:$16 sps:$4 sm:$0xff]  }
 0x2eb   :  { %4155 = vmatpush1.bf16.msra.mxu1 %v6064_v10  ;;  %4319 = vmatpush1.bf16.msra.mxu0 %v6067_v12  ;;  %v6150_v10 = vld [vmem:[%s8642_s7 + $0x424] ss:$16 sps:$4 sm:$0xff]   ;;  %v6153_v12 = vld [vmem:[%s8642_s7 + $0x42c] ss:$16 sps:$4 sm:$0xff]  }
 0x2ec   :  { %4156 = vmatprep.subr.bf16.mxu1 %v6072_v14  ;;  %4320 = vmatprep.subr.bf16.mxu0 %v6075_v15  ;;  %v6148_v14 = vld [vmem:[%s8642_s7 + $0x420] ss:$16 sps:$4 sm:$0xff]   ;;  %v6151_v15 = vld [vmem:[%s8642_s7 + $0x428] ss:$16 sps:$4 sm:$0xff]  }
 0x2ef   :  { %4157 = vmatpush1.bf16.msra.mxu1 %v6070_v16  ;;  %4321 = vmatpush1.bf16.msra.mxu0 %v6073_v17  ;;  %v6156_v16 = vld [vmem:[%s8642_s7 + $0x444] ss:$16 sps:$4 sm:$0xff]   ;;  %v6159_v17 = vld [vmem:[%s8642_s7 + $0x44c] ss:$16 sps:$4 sm:$0xff]  }
 0x2f0   :  { %4158 = vmatprep.subr.bf16.mxu1 %v6078_v18  ;;  %4322 = vmatprep.subr.bf16.mxu0 %v6081_v19  ;;  %v6154_v18 = vld [vmem:[%s8642_s7 + $0x440] ss:$16 sps:$4 sm:$0xff]   ;;  %v6157_v19 = vld [vmem:[%s8642_s7 + $0x448] ss:$16 sps:$4 sm:$0xff]  }
 0x2f3   :  { %4159 = vmatpush1.bf16.msra.mxu1 %v6076_v20  ;;  %4323 = vmatpush1.bf16.msra.mxu0 %v6079_v21  ;;  %v6162_v20 = vld [vmem:[%s8642_s7 + $0x464] ss:$16 sps:$4 sm:$0xff]   ;;  %v6165_v21 = vld [vmem:[%s8642_s7 + $0x46c] ss:$16 sps:$4 sm:$0xff]  }
 0x2f4   :  { %4160 = vmatprep.subr.bf16.mxu1 %v6084_v22  ;;  %4324 = vmatprep.subr.bf16.mxu0 %v6087_v24  ;;  %v6160_v22 = vld [vmem:[%s8642_s7 + $0x460] ss:$16 sps:$4 sm:$0xff]   ;;  %v6163_v24 = vld [vmem:[%s8642_s7 + $0x468] ss:$16 sps:$4 sm:$0xff]  }
 0x2f7   :  { %4161 = vmatpush1.bf16.msra.mxu1 %v6082_v25  ;;  %4325 = vmatpush1.bf16.msra.mxu0 %v6085_v26  ;;  %v6168_v25 = vld [vmem:[%s8642_s7 + $0x484] ss:$16 sps:$4 sm:$0xff]   ;;  %v6171_v26 = vld [vmem:[%s8642_s7 + $0x48c] ss:$16 sps:$4 sm:$0xff]  }
 0x2f8   :  { %4162 = vmatprep.subr.bf16.mxu1 %v6090_v27  ;;  %4326 = vmatprep.subr.bf16.mxu0 %v6093_v29  ;;  %v6166_v27 = vld [vmem:[%s8642_s7 + $0x480] ss:$16 sps:$4 sm:$0xff]   ;;  %v6169_v29 = vld [vmem:[%s8642_s7 + $0x488] ss:$16 sps:$4 sm:$0xff]  }
 0x2fb   :  { %4163 = vmatpush1.bf16.msra.mxu1 %v6088_v52  ;;  %4327 = vmatpush1.bf16.msra.mxu0 %v6091_v31  ;;  %v6174_v52 = vld [vmem:[%s8642_s7 + $0x4a4] ss:$16 sps:$4 sm:$0xff]   ;;  %v6177_v31 = vld [vmem:[%s8642_s7 + $0x4ac] ss:$16 sps:$4 sm:$0xff]  }
 0x2fc   :  { %4164 = vmatprep.subr.bf16.mxu1 %v6096_v32  ;;  %4328 = vmatprep.subr.bf16.mxu0 %v6099_v33  ;;  %v6172_v32 = vld [vmem:[%s8642_s7 + $0x4a0] ss:$16 sps:$4 sm:$0xff]   ;;  %v6175_v33 = vld [vmem:[%s8642_s7 + $0x4a8] ss:$16 sps:$4 sm:$0xff]  }
 0x2ff   :  { %4165 = vmatpush1.bf16.msra.mxu1 %v6094_v34  ;;  %4329 = vmatpush1.bf16.msra.mxu0 %v6097_v35  ;;  %v6180_v34 = vld [vmem:[%s8642_s7 + $0x4c4] ss:$16 sps:$4 sm:$0xff]   ;;  %v6183_v35 = vld [vmem:[%s8642_s7 + $0x4cc] ss:$16 sps:$4 sm:$0xff]  }
 0x300   :  { %4166 = vmatprep.subr.bf16.mxu1 %v6102_v36  ;;  %4330 = vmatprep.subr.bf16.mxu0 %v6105_v39  ;;  %v6178_v36 = vld [vmem:[%s8642_s7 + $0x4c0] ss:$16 sps:$4 sm:$0xff]   ;;  %v6181_v39 = vld [vmem:[%s8642_s7 + $0x4c8] ss:$16 sps:$4 sm:$0xff]  }
 0x303   :  { %4167 = vmatpush1.bf16.msra.mxu1 %v6100_v40  ;;  %4331 = vmatpush1.bf16.msra.mxu0 %v6103_v42  ;;  %v6186_v40 = vld [vmem:[%s8642_s7 + $0x4e4] ss:$16 sps:$4 sm:$0xff]   ;;  %v6189_v42 = vld [vmem:[%s8642_s7 + $0x4ec] ss:$16 sps:$4 sm:$0xff]  }
 0x304   :  { %4168 = vmatprep.subr.bf16.mxu1 %v6108_v44  ;;  %4332 = vmatprep.subr.bf16.mxu0 %v6111_v13  ;;  %v6184_v44 = vld [vmem:[%s8642_s7 + $0x4e0] ss:$16 sps:$4 sm:$0xff]   ;;  %v6187_v13 = vld [vmem:[%s8642_s7 + $0x4e8] ss:$16 sps:$4 sm:$0xff]  }
 0x307   :  { %4169 = vmatpush1.bf16.msra.mxu1 %v6106_v45  ;;  %4333 = vmatpush1.bf16.msra.mxu0 %v6109_v46  ;;  %v6192_v45 = vld [vmem:[%s8642_s7 + $0x504] ss:$16 sps:$4 sm:$0xff]   ;;  %v6195_v46 = vld [vmem:[%s8642_s7 + $0x50c] ss:$16 sps:$4 sm:$0xff]  }
 0x308   :  { %4170 = vmatprep.subr.bf16.mxu1 %v6114_v53  ;;  %4334 = vmatprep.subr.bf16.mxu0 %v6117_v48  ;;  %v6190_v53 = vld [vmem:[%s8642_s7 + $0x500] ss:$16 sps:$4 sm:$0xff]   ;;  %v6193_v48 = vld [vmem:[%s8642_s7 + $0x508] ss:$16 sps:$4 sm:$0xff]  }
 0x30b   :  { %4171 = vmatpush1.bf16.msra.mxu1 %v6112_v49  ;;  %4335 = vmatpush1.bf16.msra.mxu0 %v6115_v50  ;;  %v6198_v49 = vld [vmem:[%s8642_s7 + $0x524] ss:$16 sps:$4 sm:$0xff]   ;;  %v6201_v50 = vld [vmem:[%s8642_s7 + $0x52c] ss:$16 sps:$4 sm:$0xff]  }
 0x30c   :  { %4172 = vmatprep.subr.bf16.mxu1 %v6120_v51  ;;  %4336 = vmatprep.subr.bf16.mxu0 %v6123_v54  ;;  %v6196_v51 = vld [vmem:[%s8642_s7 + $0x520] ss:$16 sps:$4 sm:$0xff]   ;;  %v6199_v54 = vld [vmem:[%s8642_s7 + $0x528] ss:$16 sps:$4 sm:$0xff]  }
 0x30f   :  { %4173 = vmatpush1.bf16.msra.mxu1 %v6118_v55  ;;  %4337 = vmatpush1.bf16.msra.mxu0 %v6121_v11  ;;  %v6204_v55 = vld [vmem:[%s8642_s7 + $0x544] ss:$16 sps:$4 sm:$0xff]   ;;  %v6207_v11 = vld [vmem:[%s8642_s7 + $0x54c] ss:$16 sps:$4 sm:$0xff]  }
 0x310   :  { %4174 = vmatprep.subr.bf16.mxu1 %v6126_v56  ;;  %4338 = vmatprep.subr.bf16.mxu0 %v6129_v57  ;;  %v6202_v56 = vld [vmem:[%s8642_s7 + $0x540] ss:$16 sps:$4 sm:$0xff]   ;;  %v6205_v57 = vld [vmem:[%s8642_s7 + $0x548] ss:$16 sps:$4 sm:$0xff]  }
 0x313   :  { %4175 = vmatpush1.bf16.msra.mxu1 %v6124_v58  ;;  %4339 = vmatpush1.bf16.msra.mxu0 %v6127_v59  ;;  %v6210_v58 = vld [vmem:[%s8642_s7 + $0x564] ss:$16 sps:$4 sm:$0xff]   ;;  %v6213_v59 = vld [vmem:[%s8642_s7 + $0x56c] ss:$16 sps:$4 sm:$0xff]  }
 0x314   :  { %4176 = vmatprep.subr.bf16.mxu1 %v6132_v63  ;;  %4340 = vmatprep.subr.bf16.mxu0 %v6135_v0  ;;  %v6211_v63 = vld [vmem:[%s8642_s7 + $0x568] ss:$16 sps:$4 sm:$0xff]   ;;  %v6216_v0 = vld [vmem:[%s8642_s7 + $0x584] ss:$16 sps:$4 sm:$0xff]  }
 0x317   :  { %4177 = vmatpush1.bf16.msra.mxu1 %v6130_v2  ;;  %4341 = vmatpush1.bf16.msra.mxu0 %v6133_v3  ;;  %v6219_v2 = vld [vmem:[%s8642_s7 + $0x58c] ss:$16 sps:$4 sm:$0xff]   ;;  %v6214_v3 = vld [vmem:[%s8642_s7 + $0x580] ss:$16 sps:$4 sm:$0xff]  }
 0x318   :  { %4178 = vmatprep.subr.bf16.mxu1 %v6138_v7  ;;  %4342 = vmatprep.subr.bf16.mxu0 %v6141_v60  ;;  %v6222_v7 = vld [vmem:[%s8642_s7 + $0x5a4] ss:$16 sps:$4 sm:$0xff]   ;;  %v6225_v60 = vld [vmem:[%s8642_s7 + $0x5ac] ss:$16 sps:$4 sm:$0xff]  }
 0x31b   :  { %4179 = vmatpush1.bf16.msra.mxu1 %v6136_v61  ;;  %4343 = vmatpush1.bf16.msra.mxu0 %v6139_v47  ;;  %v903_v61 = vsub.s32 4, %v6703_v23  ;;  %v6220_v47 = vld [vmem:[%s8642_s7 + $0x5a0] ss:$16 sps:$4 sm:$0xff]  }
 0x31c   :  { %4189 = vmatprep.subr.bf16.mxu1 %v6144_v1  ;;  %4353 = vmatprep.subr.bf16.mxu0 %v6147_v4  ;;  %v907_v1 = vsub.s32 5, %v6703_v23  ;;  %v6228_v4 = vld [vmem:[%s8642_s7 + $0x5c4] ss:$16 sps:$4 sm:$0xff]  }
 0x31e   :  { %4181 = vmatmul.mubr.bf16.vlgmr.msra.gmra.mrb[12].mxu1 %v2543_v9  ;;  %4345 = vmatmul.mubr.bf16.vlgmr.msra.gmra.mrb[16].mxu0 %v2543_v9  ;;  %v904_v9 = vrot.slane %v7775_v43, %v903_v61  ;;  %v6279_v61 = vld [vmem:[%s8642_s7 + $0x6cc] ss:$16 sps:$4 sm:$0xff]  }
 0x31f   :  { %4190 = vmatpush1.bf16.msra.mxu1 %v6142_v5  ;;  %4354 = vmatpush1.bf16.msra.mxu0 %v6145_v8  ;;  %v6231_v5 = vld [vmem:[%s8642_s7 + $0x5cc] ss:$16 sps:$4 sm:$0xff]   ;;  %v915_v8 = vsub.s32 7, %v6703_v23 }
 0x320   :  { %4191 = vmatprep.subr.bf16.mxu1 %v6150_v10  ;;  %4355 = vmatprep.subr.bf16.mxu0 %v6153_v12  ;;  %v6226_v10 = vld [vmem:[%s8642_s7 + $0x5c0] ss:$16 sps:$4 sm:$0xff]   ;;  %v6229_v12 = vld [vmem:[%s8642_s7 + $0x5c8] ss:$16 sps:$4 sm:$0xff]  }
 0x323   :  { %4192 = vmatpush1.bf16.msra.mxu1 %v6148_v14  ;;  %4356 = vmatpush1.bf16.msra.mxu0 %v6151_v15  ;;  %v908_v14 = vrot.slane %v7775_v43, %v907_v1  ;;  %v916_v15 = vrot.slane %v7775_v43, %v915_v8  ;;  %v6282_v1 = vld [vmem:[%s8642_s7 + $0x6e4] ss:$16 sps:$4 sm:$0xff]   ;;  %v6283_v8 = vld [vmem:[%s8642_s7 + $0x6e8] ss:$16 sps:$4 sm:$0xff]  }
 0x324   :  { %4193 = vmatprep.subr.bf16.mxu1 %v6156_v16  ;;  %4357 = vmatprep.subr.bf16.mxu0 %v6159_v17  ;;  %v6234_v16 = vld [vmem:[%s8642_s7 + $0x5e4] ss:$16 sps:$4 sm:$0xff]   ;;  %v6237_v17 = vld [vmem:[%s8642_s7 + $0x5ec] ss:$16 sps:$4 sm:$0xff]  }
 0x327   :  { %4194 = vmatpush1.bf16.msra.mxu1 %v6154_v18  ;;  %4358 = vmatpush1.bf16.msra.mxu0 %v6157_v19 }
 0x328   :  { %4195 = vmatprep.subr.bf16.mxu1 %v6162_v20  ;;  %4359 = vmatprep.subr.bf16.mxu0 %v6165_v21 }
 0x32b   :  { %4196 = vmatpush1.bf16.msra.mxu1 %v6160_v22  ;;  %4360 = vmatpush1.bf16.msra.mxu0 %v6163_v24  ;;  %v6232_v22 = vld [vmem:[%s8642_s7 + $0x5e0] ss:$16 sps:$4 sm:$0xff]  }
 0x32c   :  { %4197 = vmatprep.subr.bf16.mxu1 %v6168_v25  ;;  %4361 = vmatprep.subr.bf16.mxu0 %v6171_v26 }
 0x32f   :  { %4198 = vmatpush1.bf16.msra.mxu1 %v6166_v27  ;;  %4362 = vmatpush1.bf16.msra.mxu0 %v6169_v29  ;;  %v6235_v27 = vld [vmem:[%s8642_s7 + $0x5e8] ss:$16 sps:$4 sm:$0xff]   ;;  %v6240_v29 = vld [vmem:[%s8642_s7 + $0x604] ss:$16 sps:$4 sm:$0xff]  }
 0x330   :  { %4199 = vmatprep.subr.bf16.mxu1 %v6174_v52  ;;  %4363 = vmatprep.subr.bf16.mxu0 %v6177_v31 }
 0x333   :  { %4200 = vmatpush1.bf16.msra.mxu1 %v6172_v32  ;;  %4364 = vmatpush1.bf16.msra.mxu0 %v6175_v33 }
 0x334   :  { %4201 = vmatprep.subr.bf16.mxu1 %v6180_v34  ;;  %4365 = vmatprep.subr.bf16.mxu0 %v6183_v35  ;;  %v6243_v34 = vld [vmem:[%s8642_s7 + $0x60c] ss:$16 sps:$4 sm:$0xff]  }
 0x337   :  { %4202 = vmatpush1.bf16.msra.mxu1 %v6178_v36  ;;  %4366 = vmatpush1.bf16.msra.mxu0 %v6181_v39 }
 0x338   :  { %4203 = vmatprep.subr.bf16.mxu1 %v6186_v40  ;;  %4367 = vmatprep.subr.bf16.mxu0 %v6189_v42  ;;  %v6238_v42 = vld [vmem:[%s8642_s7 + $0x600] ss:$16 sps:$4 sm:$0xff]  }
 0x33b   :  { %4204 = vmatpush1.bf16.msra.mxu1 %v6184_v44  ;;  %4368 = vmatpush1.bf16.msra.mxu0 %v6187_v13  ;;  %v6241_v44 = vld [vmem:[%s8642_s7 + $0x608] ss:$16 sps:$4 sm:$0xff]  }
 0x33c   :  { %4205 = vmatprep.subr.bf16.mxu1 %v6192_v45  ;;  %4369 = vmatprep.subr.bf16.mxu0 %v6195_v46  ;;  %v6246_v45 = vld [vmem:[%s8642_s7 + $0x624] ss:$16 sps:$4 sm:$0xff]   ;;  %v6249_v46 = vld [vmem:[%s8642_s7 + $0x62c] ss:$16 sps:$4 sm:$0xff]  }
 0x33f   :  { %4206 = vmatpush1.bf16.msra.mxu1 %v6190_v53  ;;  %4370 = vmatpush1.bf16.msra.mxu0 %v6193_v48  ;;  %v6244_v48 = vld [vmem:[%s8642_s7 + $0x620] ss:$16 sps:$4 sm:$0xff]  }
 0x340   :  { %4207 = vmatprep.subr.bf16.mxu1 %v6198_v49  ;;  %4371 = vmatprep.subr.bf16.mxu0 %v6201_v50  ;;  %v6247_v49 = vld [vmem:[%s8642_s7 + $0x628] ss:$16 sps:$4 sm:$0xff]   ;;  %v6252_v50 = vld [vmem:[%s8642_s7 + $0x644] ss:$16 sps:$4 sm:$0xff]  }
 0x343   :  { %4208 = vmatpush1.bf16.msra.mxu1 %v6196_v51  ;;  %4372 = vmatpush1.bf16.msra.mxu0 %v6199_v54  ;;  %v6255_v51 = vld [vmem:[%s8642_s7 + $0x64c] ss:$16 sps:$4 sm:$0xff]   ;;  %v6250_v54 = vld [vmem:[%s8642_s7 + $0x640] ss:$16 sps:$4 sm:$0xff]  }
 0x344   :  { %4209 = vmatprep.subr.bf16.mxu1 %v6204_v55  ;;  %4373 = vmatprep.subr.bf16.mxu0 %v6207_v11  ;;  %v6253_v55 = vld [vmem:[%s8642_s7 + $0x648] ss:$16 sps:$4 sm:$0xff]   ;;  %v6258_v11 = vld [vmem:[%s8642_s7 + $0x664] ss:$16 sps:$4 sm:$0xff]  }
 0x347   :  { %4210 = vmatpush1.bf16.msra.mxu1 %v6202_v56  ;;  %4374 = vmatpush1.bf16.msra.mxu0 %v6205_v57  ;;  %v6261_v56 = vld [vmem:[%s8642_s7 + $0x66c] ss:$16 sps:$4 sm:$0xff]   ;;  %v6256_v57 = vld [vmem:[%s8642_s7 + $0x660] ss:$16 sps:$4 sm:$0xff]  }
 0x348   :  { %4211 = vmatprep.subr.bf16.mxu1 %v6210_v58  ;;  %4375 = vmatprep.subr.bf16.mxu0 %v6213_v59  ;;  %v6259_v58 = vld [vmem:[%s8642_s7 + $0x668] ss:$16 sps:$4 sm:$0xff]   ;;  %v6264_v59 = vld [vmem:[%s8642_s7 + $0x684] ss:$16 sps:$4 sm:$0xff]  }
 0x34b   :  { %4212 = vmatpush1.bf16.msra.mxu1 %v6208_v37  ;;  %4376 = vmatpush1.bf16.msra.mxu0 %v6211_v63  ;;  %v6267_v37 = vld [vmem:[%s8642_s7 + $0x68c] ss:$16 sps:$4 sm:$0xff]   ;;  %v6262_v63 = vld [vmem:[%s8642_s7 + $0x680] ss:$16 sps:$4 sm:$0xff]  }
 0x34c   :  { %4213 = vmatprep.subr.bf16.mxu1 %v6216_v0  ;;  %4377 = vmatprep.subr.bf16.mxu0 %v6219_v2  ;;  %v6265_v0 = vld [vmem:[%s8642_s7 + $0x688] ss:$16 sps:$4 sm:$0xff]   ;;  %v6270_v2 = vld [vmem:[%s8642_s7 + $0x6a4] ss:$16 sps:$4 sm:$0xff]  }
 0x34f   :  { %4214 = vmatpush1.bf16.msra.mxu1 %v6214_v3  ;;  %4378 = vmatpush1.bf16.msra.mxu0 %v6217_v6  ;;  %v6273_v3 = vld [vmem:[%s8642_s7 + $0x6ac] ss:$16 sps:$4 sm:$0xff]   ;;  %v6268_v6 = vld [vmem:[%s8642_s7 + $0x6a0] ss:$16 sps:$4 sm:$0xff]  }
 0x350   :  { %4215 = vmatprep.subr.bf16.mxu1 %v6222_v7  ;;  %4379 = vmatprep.subr.bf16.mxu0 %v6225_v60  ;;  %v6271_v7 = vld [vmem:[%s8642_s7 + $0x6a8] ss:$16 sps:$4 sm:$0xff]   ;;  %v6276_v60 = vld [vmem:[%s8642_s7 + $0x6c4] ss:$16 sps:$4 sm:$0xff]  }
 0x353   :  { %4216 = vmatpush1.bf16.msra.mxu1 %v6220_v47  ;;  %4380 = vmatpush1.bf16.msra.mxu0 %v6223_v62  ;;  %v6274_v47 = vld [vmem:[%s8642_s7 + $0x6c0] ss:$16 sps:$4 sm:$0xff]   ;;  %v6277_v62 = vld [vmem:[%s8642_s7 + $0x6c8] ss:$16 sps:$4 sm:$0xff]  }
 0x354   :  { %4217 = vmatprep.subr.bf16.mxu1 %v6228_v4  ;;  %4381 = vmatprep.subr.bf16.mxu0 %v6231_v5  ;;  %v6285_v4 = vld [vmem:[%s8642_s7 + $0x6ec] ss:$16 sps:$4 sm:$0xff]   ;;  %v6280_v5 = vld [vmem:[%s8642_s7 + $0x6e0] ss:$16 sps:$4 sm:$0xff]  }
 0x355   :  { %v2444_v18 = vpop.f32.mrb[8].mxu1 }
 0x356   :  { %v5793_v19 = vadd.f32 %v2444_v18, %v904_v9  ;;  %v8166_v20 = vpop.f32.mrb[12].mxu0  ;;  %v2446_v21 = vpop.f32.mrb[9].mxu1  ;;  %v6288_v9 = vld [vmem:[%s8642_s7 + $0x704] ss:$16 sps:$4 sm:$0xff]   ;;  %v6295_v18 = vld [vmem:[%s8642_s7 + $0x728] ss:$16 sps:$4 sm:$0xff]  }
 0x357   :  { %v5794_v24 = vadd.f32 %v2446_v21, %v908_v14  ;;  %v2528_v25 = vpop.f32.mrb[13].mxu0  ;;  %4218 = vmatpush1.bf16.msra.mxu1 %v6226_v10  ;;  %4382 = vmatpush1.bf16.msra.mxu0 %v6229_v12  ;;  %v2448_v26 = vpop.f32.mrb[10].mxu1  ;;  %v6291_v10 = vld [vmem:[%s8642_s7 + $0x70c] ss:$16 sps:$4 sm:$0xff]   ;;  %v6286_v12 = vld [vmem:[%s8642_s7 + $0x700] ss:$16 sps:$4 sm:$0xff]  }
 0x358   :  { %v2537_v52 = vmax.f32 %v5793_v19, 0.0  ;;  %v5796_v31 = vadd.f32 %v2528_v25, %v916_v15  ;;  %v2530_v32 = vpop.f32.mrb[14].mxu0  ;;  %v2449_v33 = vpop.f32.mrb[11].mxu1  ;;  %4219 = vmatprep.subr.bf16.mxu1 %v6234_v16  ;;  %4383 = vmatprep.subr.bf16.mxu0 %v6237_v17  ;;  %v6289_v14 = vld [vmem:[%s8642_s7 + $0x708] ss:$16 sps:$4 sm:$0xff]  }
 0x359   :  { %v2538_v35 = vmax.f32 %v5794_v24, 0.0  ;;  %v2531_v36 = vpop.f32.mrb[15].mxu0  ;;  %v6294_v15 = vld [vmem:[%s8642_s7 + $0x724] ss:$16 sps:$4 sm:$0xff]   ;;  %v6297_v16 = vld [vmem:[%s8642_s7 + $0x72c] ss:$16 sps:$4 sm:$0xff]  }
 0x35a   :  { %v2540_v39 = vmax.f32 %v5796_v31, 0.0  ;;  %v2545_v13 = vpack.c.bf16 %v2537_v52, %v2537_v52  ;;  %v6292_v17 = vld [vmem:[%s8642_s7 + $0x720] ss:$16 sps:$4 sm:$0xff]   ;;  %v6300_v19 = vld [vmem:[%s8642_s7 + $0x744] ss:$16 sps:$4 sm:$0xff]  }
 0x35b   :  { %v2546_v40 = vpack.c.bf16 %v2538_v35, %v2538_v35  ;;  %4220 = vmatpush1.bf16.msra.mxu1 %v6232_v22  ;;  %4384 = vmatpush1.bf16.msra.mxu0 %v6235_v27  ;;  %v6303_v21 = vld [vmem:[%s8642_s7 + $0x74c] ss:$16 sps:$4 sm:$0xff]   ;;  %v6298_v22 = vld [vmem:[%s8642_s7 + $0x740] ss:$16 sps:$4 sm:$0xff]   ;;  %v6301_v24 = vld [vmem:[%s8642_s7 + $0x748] ss:$16 sps:$4 sm:$0xff]  }
 0x35c   :  { %4230 = vmatprep.subr.bf16.mxu1 %v6240_v29  ;;  %4394 = vmatprep.subr.bf16.mxu0 %v6243_v34  ;;  %v2548_v53 = vpack.c.bf16 %v2540_v39, %v2540_v39  ;;  %v6306_v25 = vld [vmem:[%s8642_s7 + $0x764] ss:$16 sps:$4 sm:$0xff]   ;;  %v6309_v26 = vld [vmem:[%s8642_s7 + $0x76c] ss:$16 sps:$4 sm:$0xff]   ;;  %v6304_v27 = vld [vmem:[%s8642_s7 + $0x760] ss:$16 sps:$4 sm:$0xff]  }
 0x35d   :  { %4221 = vmatprep.mubr.bf16.mxu1 %v2546_v40  ;;  %4385 = vmatprep.mubr.bf16.mxu0 %v2546_v40  ;;  %v6307_v29 = vld [vmem:[%s8642_s7 + $0x768] ss:$16 sps:$4 sm:$0xff]   ;;  %v6312_v52 = vld [vmem:[%s8642_s7 + $0x784] ss:$16 sps:$4 sm:$0xff]   ;;  %v6315_v31 = vld [vmem:[%s8642_s7 + $0x78c] ss:$16 sps:$4 sm:$0xff]  }
 0x35e   :  { %4222 = vmatmul.mubr.bf16.vlgmr.msra.gmra.mrb[12].mxu1 %v2545_v13  ;;  %4386 = vmatmul.mubr.bf16.vlgmr.msra.gmra.mrb[16].mxu0 %v2545_v13  ;;  %v6310_v32 = vld [vmem:[%s8642_s7 + $0x780] ss:$16 sps:$4 sm:$0xff]   ;;  %v6313_v33 = vld [vmem:[%s8642_s7 + $0x788] ss:$16 sps:$4 sm:$0xff]   ;;  %v911_v34 = vsub.s32 6, %v6703_v23 }
 0x35f   :  { %4231 = vmatpush1.bf16.msra.mxu1 %v6238_v42  ;;  %4395 = vmatpush1.bf16.msra.mxu0 %v6241_v44  ;;  %v6318_v35 = vld [vmem:[%s8642_s7 + $0x7a4] ss:$16 sps:$4 sm:$0xff]   ;;  %v6321_v36 = vld [vmem:[%s8642_s7 + $0x7ac] ss:$16 sps:$4 sm:$0xff]   ;;  %v6316_v39 = vld [vmem:[%s8642_s7 + $0x7a0] ss:$16 sps:$4 sm:$0xff]  }
 0x360   :  { %4262 = vmatprep.mubr.bf16.mxu1 %v2548_v53  ;;  %4426 = vmatprep.mubr.bf16.mxu0 %v2548_v53  ;;  %v6319_v23 = vld [vmem:[%s8642_s7 + $0x7a8] ss:$16 sps:$4 sm:$0xff]   ;;  %v912_v40 = vrot.slane %v7775_v43, %v911_v34  ;;  %v6324_v42 = vld [vmem:[%s8642_s7 + $0x7c4] ss:$16 sps:$4 sm:$0xff]   ;;  %v6327_v44 = vld [vmem:[%s8642_s7 + $0x7cc] ss:$16 sps:$4 sm:$0xff]  }
 0x361   :  { %4232 = vmatprep.subr.bf16.mxu1 %v6246_v45  ;;  %4396 = vmatprep.subr.bf16.mxu0 %v6249_v46  ;;  %v6322_v13 = vld [vmem:[%s8642_s7 + $0x7c0] ss:$16 sps:$4 sm:$0xff]   ;;  %v6325_v43 = vld [vmem:[%s8642_s7 + $0x7c8] ss:$16 sps:$4 sm:$0xff]   ;;  %v6330_v46 = vld [vmem:[%s8642_s7 + $0x7e4] ss:$16 sps:$4 sm:$0xff]  }
 0x362   :  { %v5795_v45 = vadd.f32 %v8166_v20, %v912_v40  ;;  %v6333_v53 = vld [vmem:[%s8642_s7 + $0x7ec] ss:$16 sps:$4 sm:$0xff]   ;;  %v6331_v20 = vld [vmem:[%s8642_s7 + $0x7e8] ss:$16 sps:$4 sm:$0xff]  }
 0x363   :  { %4233 = vmatpush1.bf16.msra.mxu1 %v6244_v48  ;;  %4397 = vmatpush1.bf16.msra.mxu0 %v6247_v49  ;;  %v6328_v48 = vld [vmem:[%s8642_s7 + $0x7e0] ss:$16 sps:$4 sm:$0xff]   ;;  %v6440_v34 = vld [vmem:[%s8645_s11 + $0x68] sm:$0xff]  }
 0x364   :  { %4234 = vmatprep.subr.bf16.mxu1 %v6252_v50  ;;  %4398 = vmatprep.subr.bf16.mxu0 %v6255_v51  ;;  %v2539_v49 = vmax.f32 %v5795_v45, 0.0  ;;  %v6336_v50 = vld [vmem:[%s8644_s9 + $0x4] ss:$8 sps:$4 sm:$0xff]   ;;  %v6334_v51 = vld [vmem:[%s8644_s9] ss:$8 sps:$4 sm:$0xff]  }
 0x367   :  { %4235 = vmatpush1.bf16.msra.mxu1 %v6250_v54  ;;  %4399 = vmatpush1.bf16.msra.mxu0 %v6253_v55  ;;  %v2547_v54 = vpack.c.bf16 %v2539_v49, %v2539_v49  ;;  %v6339_v55 = vld [vmem:[%s8644_s9 + $0x14] ss:$8 sps:$4 sm:$0xff]  }
 0x368   :  { %4236 = vmatprep.subr.bf16.mxu1 %v6258_v11  ;;  %4400 = vmatprep.subr.bf16.mxu0 %v6261_v56  ;;  %v6337_v11 = vld [vmem:[%s8644_s9 + $0x10] ss:$8 sps:$4 sm:$0xff]   ;;  %v6342_v56 = vld [vmem:[%s8644_s9 + $0x24] ss:$8 sps:$4 sm:$0xff]  }
 0x36b   :  { %4237 = vmatpush1.bf16.msra.mxu1 %v6256_v57  ;;  %4401 = vmatpush1.bf16.msra.mxu0 %v6259_v58  ;;  %v6340_v57 = vld [vmem:[%s8644_s9 + $0x20] ss:$8 sps:$4 sm:$0xff]   ;;  %v6345_v58 = vld [vmem:[%s8644_s9 + $0x34] ss:$8 sps:$4 sm:$0xff]  }
 0x36c   :  { %4238 = vmatprep.subr.bf16.mxu1 %v6264_v59  ;;  %4402 = vmatprep.subr.bf16.mxu0 %v6267_v37  ;;  %v6343_v59 = vld [vmem:[%s8644_s9 + $0x30] ss:$8 sps:$4 sm:$0xff]   ;;  %v6348_v37 = vld [vmem:[%s8644_s9 + $0x44] ss:$8 sps:$4 sm:$0xff]  }
 0x36f   :  { %4239 = vmatpush1.bf16.msra.mxu1 %v6262_v63  ;;  %4403 = vmatpush1.bf16.msra.mxu0 %v6265_v0  ;;  %v6346_v63 = vld [vmem:[%s8644_s9 + $0x40] ss:$8 sps:$4 sm:$0xff]   ;;  %v6351_v0 = vld [vmem:[%s8644_s9 + $0x54] ss:$8 sps:$4 sm:$0xff]  }
 0x370   :  { %4240 = vmatprep.subr.bf16.mxu1 %v6270_v2  ;;  %4404 = vmatprep.subr.bf16.mxu0 %v6273_v3  ;;  %v6349_v2 = vld [vmem:[%s8644_s9 + $0x50] ss:$8 sps:$4 sm:$0xff]   ;;  %v6354_v3 = vld [vmem:[%s8644_s9 + $0x64] ss:$8 sps:$4 sm:$0xff]  }
 0x373   :  { %4241 = vmatpush1.bf16.msra.mxu1 %v6268_v6  ;;  %4405 = vmatpush1.bf16.msra.mxu0 %v6271_v7  ;;  %v6352_v6 = vld [vmem:[%s8644_s9 + $0x60] ss:$8 sps:$4 sm:$0xff]   ;;  %v6357_v7 = vld [vmem:[%s8644_s9 + $0x74] ss:$8 sps:$4 sm:$0xff]  }
 0x374   :  { %4242 = vmatprep.subr.bf16.mxu1 %v6276_v60  ;;  %4406 = vmatprep.subr.bf16.mxu0 %v6279_v61  ;;  %v6355_v60 = vld [vmem:[%s8644_s9 + $0x70] ss:$8 sps:$4 sm:$0xff]   ;;  %v6360_v61 = vld [vmem:[%s8644_s9 + $0x84] ss:$8 sps:$4 sm:$0xff]  }
 0x377   :  { %4243 = vmatpush1.bf16.msra.mxu1 %v6274_v47  ;;  %4407 = vmatpush1.bf16.msra.mxu0 %v6277_v62  ;;  %v6358_v47 = vld [vmem:[%s8644_s9 + $0x80] ss:$8 sps:$4 sm:$0xff]   ;;  %v6363_v62 = vld [vmem:[%s8644_s9 + $0x94] ss:$8 sps:$4 sm:$0xff]  }
 0x378   :  { %4244 = vmatprep.subr.bf16.mxu1 %v6282_v1  ;;  %4408 = vmatprep.subr.bf16.mxu0 %v6285_v4  ;;  %v6361_v1 = vld [vmem:[%s8644_s9 + $0x90] ss:$8 sps:$4 sm:$0xff]   ;;  %v6366_v4 = vld [vmem:[%s8644_s9 + $0xa4] ss:$8 sps:$4 sm:$0xff]  }
 0x37b   :  { %4245 = vmatpush1.bf16.msra.mxu1 %v6280_v5  ;;  %4409 = vmatpush1.bf16.msra.mxu0 %v6283_v8  ;;  %v6364_v5 = vld [vmem:[%s8644_s9 + $0xa0] ss:$8 sps:$4 sm:$0xff]   ;;  %v6369_v8 = vld [vmem:[%s8644_s9 + $0xb4] ss:$8 sps:$4 sm:$0xff]  }
 0x37c   :  { %4246 = vmatprep.subr.bf16.mxu1 %v6288_v9  ;;  %4410 = vmatprep.subr.bf16.mxu0 %v6291_v10  ;;  %v6367_v9 = vld [vmem:[%s8644_s9 + $0xb0] ss:$8 sps:$4 sm:$0xff]   ;;  %v6372_v10 = vld [vmem:[%s8644_s9 + $0xc4] ss:$8 sps:$4 sm:$0xff]  }
 0x37f   :  { %4247 = vmatpush1.bf16.msra.mxu1 %v6286_v12  ;;  %4411 = vmatpush1.bf16.msra.mxu0 %v6289_v14  ;;  %v6370_v12 = vld [vmem:[%s8644_s9 + $0xc0] ss:$8 sps:$4 sm:$0xff]   ;;  %v6375_v14 = vld [vmem:[%s8644_s9 + $0xd4] ss:$8 sps:$4 sm:$0xff]  }
 0x380   :  { %4248 = vmatprep.subr.bf16.mxu1 %v6294_v15  ;;  %4412 = vmatprep.subr.bf16.mxu0 %v6297_v16  ;;  %v6373_v15 = vld [vmem:[%s8644_s9 + $0xd0] ss:$8 sps:$4 sm:$0xff]   ;;  %v6378_v16 = vld [vmem:[%s8644_s9 + $0xe4] ss:$8 sps:$4 sm:$0xff]  }
 0x383   :  { %4249 = vmatpush1.bf16.msra.mxu1 %v6292_v17  ;;  %4413 = vmatpush1.bf16.msra.mxu0 %v6295_v18  ;;  %v6376_v17 = vld [vmem:[%s8644_s9 + $0xe0] ss:$8 sps:$4 sm:$0xff]   ;;  %v6381_v18 = vld [vmem:[%s8644_s9 + $0xf4] ss:$8 sps:$4 sm:$0xff]  }
 0x384   :  { %4250 = vmatprep.subr.bf16.mxu1 %v6300_v19  ;;  %4414 = vmatprep.subr.bf16.mxu0 %v6303_v21  ;;  %v6379_v19 = vld [vmem:[%s8644_s9 + $0xf0] ss:$8 sps:$4 sm:$0xff]   ;;  %v6384_v21 = vld [vmem:[%s8644_s9 + $0x104] ss:$8 sps:$4 sm:$0xff]  }
 0x387   :  { %4251 = vmatpush1.bf16.msra.mxu1 %v6298_v22  ;;  %4415 = vmatpush1.bf16.msra.mxu0 %v6301_v24  ;;  %v6430_v22 = vld [vmem:[%s8645_s11 + $0x40] sm:$0xff]  }
 0x388   :  { %4252 = vmatprep.subr.bf16.mxu1 %v6306_v25  ;;  %4416 = vmatprep.subr.bf16.mxu0 %v6309_v26  ;;  %v6431_v24 = vld [vmem:[%s8645_s11] sm:$0xff]   ;;  %v6432_v25 = vld [vmem:[%s8645_s11 + $0x48] sm:$0xff]  }
 0x389   :  { %v6433_v26 = vld [vmem:[%s8645_s11 + $0x8] sm:$0xff]  }
 0x38b   :  { %4253 = vmatpush1.bf16.msra.mxu1 %v6304_v27  ;;  %4417 = vmatpush1.bf16.msra.mxu0 %v6307_v29  ;;  %v6434_v27 = vld [vmem:[%s8645_s11 + $0x50] sm:$0xff]  }
 0x38c   :  { %4254 = vmatprep.subr.bf16.mxu1 %v6312_v52  ;;  %4418 = vmatprep.subr.bf16.mxu0 %v6315_v31  ;;  %v6435_v29 = vld [vmem:[%s8645_s11 + $0x10] sm:$0xff]   ;;  %v6436_v52 = vld [vmem:[%s8645_s11 + $0x58] sm:$0xff]  }
 0x38d   :  { %v6437_v31 = vld [vmem:[%s8645_s11 + $0x18] sm:$0xff]  }
 0x38f   :  { %4255 = vmatpush1.bf16.msra.mxu1 %v6310_v32  ;;  %4419 = vmatpush1.bf16.msra.mxu0 %v6313_v33  ;;  %v6438_v32 = vld [vmem:[%s8645_s11 + $0x60] sm:$0xff]  }
 0x390   :  { %4256 = vmatprep.subr.bf16.mxu1 %v6318_v35  ;;  %4420 = vmatprep.subr.bf16.mxu0 %v6321_v36  ;;  %v6439_v33 = vld [vmem:[%s8645_s11 + $0x20] sm:$0xff]   ;;  %v6441_v35 = vld [vmem:[%s8645_s11 + $0x28] sm:$0xff]  }
 0x391   :  { %v8507_v36 = vld [vmem:[%s8646_s8] sm:$0xf] }
 0x392   :  { %v2822_v40 = vrot.slane %v8507_v36, %v7156_v41  ;;  %v6382_v41 = vld [vmem:[%s8644_s9 + $0x100] ss:$8 sps:$4 sm:$0xff]  }
 0x393   :  { %4257 = vmatpush1.bf16.msra.mxu1 %v6316_v39  ;;  %4421 = vmatpush1.bf16.msra.mxu0 %v6319_v23  ;;  %v2810_v39 = vrot.slane %v8507_v36, %v6712_v28  ;;  %v2814_v23 = vrot.slane %v8507_v36, %v6718_v30 }
 0x394   :  { %4258 = vmatprep.subr.bf16.mxu1 %v6324_v42  ;;  %4422 = vmatprep.subr.bf16.mxu0 %v6327_v44 }
 0x397   :  { %4259 = vmatpush1.bf16.msra.mxu1 %v6322_v13  ;;  %4423 = vmatpush1.bf16.msra.mxu0 %v6325_v43 }
 0x398   :  { %4260 = vmatprep.subr.bf16.mxu1 %v6330_v46  ;;  %4424 = vmatprep.subr.bf16.mxu0 %v6333_v53 }
 0x39b   :  { %4261 = vmatpush1.bf16.msra.mxu1 %v6328_v48  ;;  %4425 = vmatpush1.bf16.msra.mxu0 %v6331_v20 }
 0x39c   :  { %4839 = vmatprep.subr.bf16.mxu1 %v6336_v50  ;;  %5767 = vmatprep.subr.bf16.mxu0 %v6430_v22  ;;  %v6426_v22 = vld [vmem:[%s8644_s9 + $0x1e4] ss:$8 sps:$4 sm:$0xff]  }
 0x39e   :  { %4263 = vmatmul.mubr.bf16.vlgmr.msra.gmra.mrb[12].mxu1 %v2547_v54  ;;  %4427 = vmatmul.mubr.bf16.vlgmr.msra.gmra.mrb[16].mxu0 %v2547_v54 }
 0x39f   :  { %4840 = vmatpush1.bf16.msra.mxu1 %v6334_v51  ;;  %5768 = vmatpush3.bf16.msra.mxu0 %v6431_v24  ;;  %v6424_v24 = vld [vmem:[%s8644_s9 + $0x1e0] ss:$8 sps:$4 sm:$0xff]  }
 0x3a0   :  { %4841 = vmatprep.subr.bf16.mxu1 %v6339_v55  ;;  %5769 = vmatprep.subr.bf16.mxu0 %v6432_v25 }
 0x3a3   :  { %4842 = vmatpush1.bf16.msra.mxu1 %v6337_v11  ;;  %5770 = vmatpush3.bf16.msra.mxu0 %v6433_v26  ;;  %v6429_v26 = vld [vmem:[%s8644_s9 + $0x1f4] ss:$8 sps:$4 sm:$0xff]  }
 0x3a4   :  { %4843 = vmatprep.subr.bf16.mxu1 %v6342_v56  ;;  %5771 = vmatprep.subr.bf16.mxu0 %v6434_v27 }
 0x3a7   :  { %4844 = vmatpush1.bf16.msra.mxu1 %v6340_v57  ;;  %5772 = vmatpush3.bf16.msra.mxu0 %v6435_v29  ;;  %v6387_v57 = vld [vmem:[%s8644_s9 + $0x114] ss:$8 sps:$4 sm:$0xff]  }
 0x3a8   :  { %4845 = vmatprep.subr.bf16.mxu1 %v6345_v58  ;;  %5773 = vmatprep.subr.bf16.mxu0 %v6436_v52  ;;  %v6442_v52 = vld [vmem:[%s8645_s11 + $0x70] sm:$0xff]  }
 0x3ab   :  { %4846 = vmatpush1.bf16.msra.mxu1 %v6343_v59  ;;  %5774 = vmatpush3.bf16.msra.mxu0 %v6437_v31  ;;  %v6385_v59 = vld [vmem:[%s8644_s9 + $0x110] ss:$8 sps:$4 sm:$0xff]  }
 0x3ac   :  { %4847 = vmatprep.subr.bf16.mxu1 %v6348_v37  ;;  %5775 = vmatprep.subr.bf16.mxu0 %v6438_v32  ;;  %v6390_v37 = vld [vmem:[%s8644_s9 + $0x124] ss:$8 sps:$4 sm:$0xff]   ;;  %v6443_v31 = vld [vmem:[%s8645_s11 + $0x30] sm:$0xff]   ;;  %v6444_v32 = vld [vmem:[%s8645_s11 + $0x78] sm:$0xff]  }
 0x3af   :  { %4848 = vmatpush1.bf16.msra.mxu1 %v6346_v63  ;;  %5776 = vmatpush3.bf16.msra.mxu0 %v6439_v33  ;;  %v6388_v63 = vld [vmem:[%s8644_s9 + $0x120] ss:$8 sps:$4 sm:$0xff]   ;;  %v6445_v33 = vld [vmem:[%s8645_s11 + $0x38] sm:$0xff]  }
 0x3b0   :  { %4849 = vmatprep.subr.bf16.mxu1 %v6351_v0  ;;  %5777 = vmatprep.subr.bf16.mxu0 %v6440_v34  ;;  %v6393_v0 = vld [vmem:[%s8644_s9 + $0x134] ss:$8 sps:$4 sm:$0xff]   ;;  %v4507_v34 = vld [vmem:[%s8647_s10] sm:$0x3] }
 0x3b3   :  { %4850 = vmatpush1.bf16.msra.mxu1 %v6349_v2  ;;  %5778 = vmatpush3.bf16.msra.mxu0 %v6441_v35  ;;  %v6391_v2 = vld [vmem:[%s8644_s9 + $0x130] ss:$8 sps:$4 sm:$0xff]   ;;  %v4512_v35 = vrot.slane %v4507_v34, %v6712_v28 }
 0x3b4   :  { %4851 = vmatprep.subr.bf16.mxu1 %v6354_v3  ;;  %v6396_v3 = vld [vmem:[%s8644_s9 + $0x144] ss:$8 sps:$4 sm:$0xff]   ;;  %5779 = vmatprep.subr.bf16.mxu0 %v6442_v52 }
 0x3b7   :  { %4852 = vmatpush1.bf16.msra.mxu1 %v6352_v6  ;;  %v6394_v6 = vld [vmem:[%s8644_s9 + $0x140] ss:$8 sps:$4 sm:$0xff]   ;;  %5780 = vmatpush3.bf16.msra.mxu0 %v6443_v31 }
 0x3b8   :  { %4853 = vmatprep.subr.bf16.mxu1 %v6357_v7  ;;  %v6399_v7 = vld [vmem:[%s8644_s9 + $0x154] ss:$8 sps:$4 sm:$0xff]   ;;  %5781 = vmatprep.subr.bf16.mxu0 %v6444_v32 }
 0x3bb   :  { %4854 = vmatpush1.bf16.msra.mxu1 %v6355_v60  ;;  %v6397_v60 = vld [vmem:[%s8644_s9 + $0x150] ss:$8 sps:$4 sm:$0xff]   ;;  %5782 = vmatpush3.bf16.msra.mxu0 %v6445_v33 }
 0x3bc   :  { %4855 = vmatprep.subr.bf16.mxu1 %v6360_v61  ;;  %v6402_v61 = vld [vmem:[%s8644_s9 + $0x164] ss:$8 sps:$4 sm:$0xff]  }
 0x3bf   :  { %4856 = vmatpush1.bf16.msra.mxu1 %v6358_v47  ;;  %v6400_v47 = vld [vmem:[%s8644_s9 + $0x160] ss:$8 sps:$4 sm:$0xff]  }
 0x3c0   :  { %4857 = vmatprep.subr.bf16.mxu1 %v6363_v62  ;;  %v6405_v62 = vld [vmem:[%s8644_s9 + $0x174] ss:$8 sps:$4 sm:$0xff]  }
 0x3c3   :  { %4858 = vmatpush1.bf16.msra.mxu1 %v6361_v1  ;;  %v6403_v1 = vld [vmem:[%s8644_s9 + $0x170] ss:$8 sps:$4 sm:$0xff]  }
 0x3c4   :  { %4859 = vmatprep.subr.bf16.mxu1 %v6366_v4  ;;  %v6408_v4 = vld [vmem:[%s8644_s9 + $0x184] ss:$8 sps:$4 sm:$0xff]  }
 0x3c7   :  { %4860 = vmatpush1.bf16.msra.mxu1 %v6364_v5  ;;  %v6406_v5 = vld [vmem:[%s8644_s9 + $0x180] ss:$8 sps:$4 sm:$0xff]  }
 0x3c8   :  { %4861 = vmatprep.subr.bf16.mxu1 %v6369_v8  ;;  %v6411_v8 = vld [vmem:[%s8644_s9 + $0x194] ss:$8 sps:$4 sm:$0xff]  }
 0x3cb   :  { %4862 = vmatpush1.bf16.msra.mxu1 %v6367_v9  ;;  %v6409_v9 = vld [vmem:[%s8644_s9 + $0x190] ss:$8 sps:$4 sm:$0xff]  }
 0x3cc   :  { %4863 = vmatprep.subr.bf16.mxu1 %v6372_v10  ;;  %v6414_v10 = vld [vmem:[%s8644_s9 + $0x1a4] ss:$8 sps:$4 sm:$0xff]  }
 0x3cf   :  { %4864 = vmatpush1.bf16.msra.mxu1 %v6370_v12  ;;  %v6412_v12 = vld [vmem:[%s8644_s9 + $0x1a0] ss:$8 sps:$4 sm:$0xff]  }
 0x3d0   :  { %4865 = vmatprep.subr.bf16.mxu1 %v6375_v14  ;;  %v6417_v14 = vld [vmem:[%s8644_s9 + $0x1b4] ss:$8 sps:$4 sm:$0xff]  }
 0x3d3   :  { %4866 = vmatpush1.bf16.msra.mxu1 %v6373_v15  ;;  %v6415_v15 = vld [vmem:[%s8644_s9 + $0x1b0] ss:$8 sps:$4 sm:$0xff]  }
 0x3d4   :  { %4867 = vmatprep.subr.bf16.mxu1 %v6378_v16  ;;  %v6420_v16 = vld [vmem:[%s8644_s9 + $0x1c4] ss:$8 sps:$4 sm:$0xff]  }
 0x3d7   :  { %4868 = vmatpush1.bf16.msra.mxu1 %v6376_v17  ;;  %v6418_v17 = vld [vmem:[%s8644_s9 + $0x1c0] ss:$8 sps:$4 sm:$0xff]  }
 0x3d8   :  { %4869 = vmatprep.subr.bf16.mxu1 %v6381_v18  ;;  %v6423_v18 = vld [vmem:[%s8644_s9 + $0x1d4] ss:$8 sps:$4 sm:$0xff]  }
 0x3db   :  { %4870 = vmatpush1.bf16.msra.mxu1 %v6379_v19  ;;  %v6421_v19 = vld [vmem:[%s8644_s9 + $0x1d0] ss:$8 sps:$4 sm:$0xff]  }
 0x3dc   :  { %4880 = vmatprep.subr.bf16.mxu1 %v6384_v21  ;;  %v2818_v21 = vrot.slane %v8507_v36, %v7153_v38  ;;  %v6427_v38 = vld [vmem:[%s8644_s9 + $0x1f0] ss:$8 sps:$4 sm:$0xff]   ;;  %v4516_v36 = vrot.slane %v4507_v34, %v6718_v30 }
 0x471   :  { %v4264_v42 = vpop.f32.mrb[12].mxu1  ;;  %v8515_v44 = vpop.f32.mrb[16].mxu0 }
 0x472   :  { %v5797_v13 = vadd.f32 %v4264_v42, %v2810_v39  ;;  %v4266_v43 = vpop.f32.mrb[13].mxu1  ;;  %v4430_v45 = vpop.f32.mrb[17].mxu0  ;;  %v5799_v25 = vadd.f32 %v8515_v44, %v2818_v21 }
 0x473   :  { %v5798_v46 = vadd.f32 %v4266_v43, %v2814_v23  ;;  %v5800_v53 = vadd.f32 %v4430_v45, %v2822_v40  ;;  %v4268_v48 = vpop.f32.mrb[14].mxu1  ;;  %v4432_v20 = vpop.f32.mrb[18].mxu0 }
 0x474   :  { %v4435_v49 = vmax.f32 %v5797_v13, 0.0  ;;  %v4269_v50 = vpop.f32.mrb[15].mxu1  ;;  %v4433_v51 = vpop.f32.mrb[19].mxu0  ;;  %v4437_v27 = vmax.f32 %v5799_v25, 0.0  ;;  %v5750_v20 = vld [vmem:[%s8648_s12] ss:$0 sm:$0xff] }
 0x475   :  { %v4436_v54 = vmax.f32 %v5798_v46, 0.0  ;;  %v4438_v55 = vmax.f32 %v5800_v53, 0.0 }
 0x476   :  { %v4439_v56 = vpack.c.bf16 %v4435_v49, %v4435_v49  ;;  %v4441_v29 = vpack.c.bf16 %v4437_v27, %v4437_v27 }
 0x477   :  { %v4440_v11 = vpack.c.bf16 %v4436_v54, %v4436_v54  ;;  %v4442_v58 = vpack.c.bf16 %v4438_v55, %v4438_v55 }
 0x479   :  { %4871 = vmatprep.mubr.bf16.mxu1 %v4440_v11 }
 0x47a   :  { %4872 = vmatmul.mubr.bf16.vlgmr.msra.gmra.mrb[16].mxu1 %v4439_v56 }
 0x47b   :  { %4881 = vmatpush1.bf16.msra.mxu1 %v6382_v41  ;;  %4912 = vmatprep.mubr.bf16.mxu1 %v4442_v58 }
 0x47c   :  { %4882 = vmatprep.subr.bf16.mxu1 %v6387_v57 }
 0x47f   :  { %4883 = vmatpush1.bf16.msra.mxu1 %v6385_v59 }
 0x480   :  { %4884 = vmatprep.subr.bf16.mxu1 %v6390_v37 }
 0x483   :  { %4885 = vmatpush1.bf16.msra.mxu1 %v6388_v63 }
 0x484   :  { %4886 = vmatprep.subr.bf16.mxu1 %v6393_v0 }
 0x487   :  { %4887 = vmatpush1.bf16.msra.mxu1 %v6391_v2 }
 0x488   :  { %4888 = vmatprep.subr.bf16.mxu1 %v6396_v3 }
 0x48b   :  { %4889 = vmatpush1.bf16.msra.mxu1 %v6394_v6 }
 0x48c   :  { %4890 = vmatprep.subr.bf16.mxu1 %v6399_v7 }
 0x48f   :  { %4891 = vmatpush1.bf16.msra.mxu1 %v6397_v60 }
 0x490   :  { %4892 = vmatprep.subr.bf16.mxu1 %v6402_v61 }
 0x493   :  { %4893 = vmatpush1.bf16.msra.mxu1 %v6400_v47 }
 0x494   :  { %4894 = vmatprep.subr.bf16.mxu1 %v6405_v62 }
 0x497   :  { %4895 = vmatpush1.bf16.msra.mxu1 %v6403_v1 }
 0x498   :  { %4896 = vmatprep.subr.bf16.mxu1 %v6408_v4 }
 0x49b   :  { %4897 = vmatpush1.bf16.msra.mxu1 %v6406_v5 }
 0x49c   :  { %4898 = vmatprep.subr.bf16.mxu1 %v6411_v8 }
 0x49f   :  { %4899 = vmatpush1.bf16.msra.mxu1 %v6409_v9 }
 0x4a0   :  { %4900 = vmatprep.subr.bf16.mxu1 %v6414_v10 }
 0x4a3   :  { %4901 = vmatpush1.bf16.msra.mxu1 %v6412_v12 }
 0x4a4   :  { %4902 = vmatprep.subr.bf16.mxu1 %v6417_v14 }
 0x4a7   :  { %4903 = vmatpush1.bf16.msra.mxu1 %v6415_v15 }
 0x4a8   :  { %4904 = vmatprep.subr.bf16.mxu1 %v6420_v16 }
 0x4ab   :  { %4905 = vmatpush1.bf16.msra.mxu1 %v6418_v17 }
 0x4ac   :  { %4906 = vmatprep.subr.bf16.mxu1 %v6423_v18 }
 0x4af   :  { %4907 = vmatpush1.bf16.msra.mxu1 %v6421_v19 }
 0x4b0   :  { %4908 = vmatprep.subr.bf16.mxu1 %v6426_v22 }
 0x4b3   :  { %4909 = vmatpush1.bf16.msra.mxu1 %v6424_v24 }
 0x4b4   :  { %4910 = vmatprep.subr.bf16.mxu1 %v6429_v26 }
 0x4b7   :  { %4911 = vmatpush1.bf16.msra.mxu1 %v6427_v38 }
 0x4ba   :  { %4913 = vmatmul.mubr.bf16.vlgmr.msra.gmra.mrb[16].mxu1 %v4441_v29 }
 0x58d   :  { %v4914_v39 = vpop.f32.mrb[16].mxu1 }
 0x58e   :  { %v5801_v23 = vadd.f32 %v4914_v39, %v4512_v35  ;;  %v4916_v40 = vpop.f32.mrb[17].mxu1 }
 0x58f   :  { %v5802_v42 = vadd.f32 %v4916_v40, %v4516_v36  ;;  %v4918_v44 = vpop.f32.mrb[18].mxu1 }
 0x590   :  { %v4921_v13 = vmax.f32 %v5801_v23, 0.0  ;;  %v4919_v43 = vpop.f32.mrb[19].mxu1 }
 0x591   :  { %v4922_v45 = vmax.f32 %v5802_v42, 0.0 }
 0x592   :  { %v4923_v53 = vpack.c.bf16 %v4921_v13, %v4921_v13 }
 0x593   :  { %v4924_v46 = vpack.c.bf16 %v4922_v45, %v4922_v45 }
 0x595   :  { %5092 = vmatprep.mubr.bf16.mxu0 %v4924_v46 }
 0x596   :  { %5093 = vmatmul.mubr.bf16.vlgmr.msra.gmra.mrb[20].mxu0 %v4923_v53 }
 0x669   :  { %v5783_v48 = vpop.f32.mrb[20].mxu0 }
 0x66a   :  { %v5784_v28 = vpop.f32.mrb[21].mxu0 }
 0x66b   :  { %v5785_v49 = vadd.f32 %v5784_v28, %v5783_v48  ;;  %v5786_v30 = vpop.f32.mrb[22].mxu0 }
 0x66c   :  { %v5787_v50 = vpop.f32.mrb[23].mxu0 }
 0x66d   :  { %v5095_v51 = vadd.f32 %v5785_v49, %v5750_v20 }
 0x66f   :  { %5100 = vst [vmem:[%s8649_s13] sm:$0xff] %v5095_v51 }

// kernel: _forward_impl.1
= control target key start
LH: loop header
LB: loop body
LE: loop exit
PB: predicated region body
PF: predicated region fallthrough
CT: control target
= control target key end

     0   :  { %v6446_v1 = vmov 0   ;;  %vm82_vm0 = vcmask 261120   ;;  %s8636_s1 = inlined_call_operand.vmem [shape: bf16[32,256], index: 1, kind: input, shape index: {}]   ;;  %s8637_s3 = inlined_call_operand.vmem [shape: bf16[256,512], index: 3, kind: input, shape index: {}]   ;;  %s8638_s0 = inlined_call_operand.vmem [shape: bf16[8,32], index: 0, kind: input, shape index: {}]   ;;  %s8639_s5 = inlined_call_operand.vmem [shape: bf16[512,1024], index: 5, kind: input, shape index: {}]   ;;  %s8640_s2 = inlined_call_operand.vmem [shape: f32[1,256], index: 2, kind: input, shape index: {}]   ;;  %s8641_s4 = inlined_call_operand.vmem [shape: f32[1,512], index: 4, kind: input, shape index: {}]   ;;  %s8642_s7 = inlined_call_operand.vmem [shape: bf16[1024,512], index: 7, kind: input, shape index: {}]   ;;  %s8643_s6 = inlined_call_operand.vmem [shape: f32[1,1024], index: 6, kind: input, shape index: {}]   ;;  %s8644_s9 = inlined_call_operand.vmem [shape: bf16[512,256], index: 9, kind: input, shape index: {}]   ;;  %s8645_s11 = inlined_call_operand.vmem [shape: bf16[256,128], index: 11, kind: input, shape index: {}]   ;;  %s8646_s8 = inlined_call_operand.vmem [shape: f32[1,512], index: 8, kind: input, shape index: {}]   ;;  %s8647_s10 = inlined_call_operand.vmem [shape: f32[1,256], index: 10, kind: input, shape index: {}]   ;;  %s8648_s12 = inlined_call_operand.vmem [shape: f32[1,128], index: 12, kind: input, shape index: {}]   ;;  %s8649_s13 = inlined_call_operand.vmem [shape: f32[8,128], index: 13, kind: output, shape index: {}]  }
   0x1   :  { %v5848_v0 = vld [vmem:[%s8636_s1 + $0x4] ss:$8 sps:$4 sm:$0xff]   ;;  %118 = vmatprep.mubr.bf16.mxu1 %v6446_v1  ;;  %v5850_v2 = vld [vmem:[%s8636_s1] ss:$8 sps:$4 sm:$0xff]   ;;  %v5851_v3 = vld [vmem:[%s8636_s1 + $0x14] ss:$8 sps:$4 sm:$0xff]  }
   0x2   :  { %86 = vmatprep.subr.bf16.mxu1 %v5848_v0  ;;  %v5853_v4 = vld [vmem:[%s8636_s1 + $0x10] ss:$8 sps:$4 sm:$0xff]   ;;  %v5854_v5 = vld [vmem:[%s8637_s3 + $0x4] ss:$16 sps:$4 sm:$0xff]   ;;  %v45_v8 = vld [vmem:[%s8638_s0] sm:$0xf] }
   0x3   :  { %87 = vmatpush1.bf16.msra.mxu1 %v5850_v2  ;;  %v5856_v6 = vld [vmem:[%s8637_s3] ss:$16 sps:$4 sm:$0xff]   ;;  %537 = vmatprep.subr.bf16.mxu0 %v5854_v5  ;;  %v5857_v7 = vld [vmem:[%s8637_s3 + $0x24] ss:$16 sps:$4 sm:$0xff]   ;;  %v5904_v38 = vld [vmem:[%s8637_s3 + $0xc] ss:$16 sps:$4 sm:$0xff]  }
   0x4   :  { %88 = vmatprep.subr.bf16.mxu1 %v5851_v3  ;;  %538 = vmatpush1.bf16.msra.mxu0 %v5856_v6  ;;  %v5859_v9 = vld [vmem:[%s8637_s3 + $0x20] ss:$16 sps:$4 sm:$0xff]   ;;  %v5860_v10 = vld [vmem:[%s8637_s3 + $0x44] ss:$16 sps:$4 sm:$0xff]  }
   0x5   :  { %539 = vmatprep.subr.bf16.mxu0 %v5857_v7  ;;  %v5862_v11 = vld [vmem:[%s8637_s3 + $0x40] ss:$16 sps:$4 sm:$0xff]   ;;  %v5863_v12 = vld [vmem:[%s8637_s3 + $0x64] ss:$16 sps:$4 sm:$0xff]  }
   0x6   :  { %v5865_v13 = vld [vmem:[%s8637_s3 + $0x60] ss:$16 sps:$4 sm:$0xff]   ;;  %v5866_v14 = vld [vmem:[%s8637_s3 + $0x84] ss:$16 sps:$4 sm:$0xff]  }
   0x7   :  { %89 = vmatpush1.bf16.msra.mxu1 %v5853_v4  ;;  %v5868_v15 = vld [vmem:[%s8637_s3 + $0x80] ss:$16 sps:$4 sm:$0xff]   ;;  %v5869_v16 = vld [vmem:[%s8637_s3 + $0xa4] ss:$16 sps:$4 sm:$0xff]  }
   0x8   :  { %540 = vmatpush1.bf16.msra.mxu0 %v5859_v9  ;;  %v5871_v17 = vld [vmem:[%s8637_s3 + $0xa0] ss:$16 sps:$4 sm:$0xff]   ;;  %v5872_v18 = vld [vmem:[%s8637_s3 + $0xc4] ss:$16 sps:$4 sm:$0xff]  }
   0x9   :  { %541 = vmatprep.subr.bf16.mxu0 %v5860_v10  ;;  %v5874_v19 = vld [vmem:[%s8637_s3 + $0xc0] ss:$16 sps:$4 sm:$0xff]   ;;  %v5875_v20 = vld [vmem:[%s8637_s3 + $0xe4] ss:$16 sps:$4 sm:$0xff]  }
   0xa   :  { %5109 = vmatmul.mubr.msk.bf16.vlgmr.msra.gmra.mrb[0].mxu1 %vm82_vm0, %v45_v8  ;;  %v5877_v21 = vld [vmem:[%s8637_s3 + $0xe0] ss:$16 sps:$4 sm:$0xff]   ;;  %v5878_v22 = vld [vmem:[%s8637_s3 + $0x104] ss:$16 sps:$4 sm:$0xff]  }
   0xb   :  { %v5880_v23 = vld [vmem:[%s8637_s3 + $0x100] ss:$16 sps:$4 sm:$0xff]   ;;  %v5881_v24 = vld [vmem:[%s8637_s3 + $0x124] ss:$16 sps:$4 sm:$0xff]  }
   0xc   :  { %542 = vmatpush1.bf16.msra.mxu0 %v5862_v11  ;;  %v5883_v25 = vld [vmem:[%s8637_s3 + $0x120] ss:$16 sps:$4 sm:$0xff]   ;;  %v5884_v26 = vld [vmem:[%s8637_s3 + $0x144] ss:$16 sps:$4 sm:$0xff]  }
   0xd   :  { %543 = vmatprep.subr.bf16.mxu0 %v5863_v12  ;;  %v5886_v27 = vld [vmem:[%s8637_s3 + $0x140] ss:$16 sps:$4 sm:$0xff]   ;;  %v5887_v28 = vld [vmem:[%s8637_s3 + $0x164] ss:$16 sps:$4 sm:$0xff]  }
   0xe   :  { %v5889_v29 = vld [vmem:[%s8637_s3 + $0x160] ss:$16 sps:$4 sm:$0xff]   ;;  %v5890_v30 = vld [vmem:[%s8637_s3 + $0x184] ss:$16 sps:$4 sm:$0xff]  }
   0xf   :  { %v5892_v31 = vld [vmem:[%s8637_s3 + $0x180] ss:$16 sps:$4 sm:$0xff]   ;;  %v5893_v32 = vld [vmem:[%s8637_s3 + $0x1a4] ss:$16 sps:$4 sm:$0xff]  }
  0x10   :  { %544 = vmatpush1.bf16.msra.mxu0 %v5865_v13  ;;  %v5895_v33 = vld [vmem:[%s8637_s3 + $0x1a0] ss:$16 sps:$4 sm:$0xff]   ;;  %v5896_v34 = vld [vmem:[%s8637_s3 + $0x1c4] ss:$16 sps:$4 sm:$0xff]  }
  0x11   :  { %545 = vmatprep.subr.bf16.mxu0 %v5866_v14  ;;  %v5898_v35 = vld [vmem:[%s8637_s3 + $0x1c0] ss:$16 sps:$4 sm:$0xff]   ;;  %v5899_v36 = vld [vmem:[%s8637_s3 + $0x1e4] ss:$16 sps:$4 sm:$0xff]  }
  0x12   :  { %v5901_v37 = vld [vmem:[%s8637_s3 + $0x1e0] ss:$16 sps:$4 sm:$0xff]  }
  0x13   :  { %v627_v39 = vld [vmem:[%s8639_s5] sm:$0xff] }
  0x14   :  { %546 = vmatpush1.bf16.msra.mxu0 %v5868_v15  ;;  %v631_v40 = vld [vmem:[%s8639_s5 + $0x20] sm:$0xff] }
  0x15   :  { %547 = vmatprep.subr.bf16.mxu0 %v5869_v16  ;;  %v5174_v41 = vcombine.low %v627_v39, %v631_v40  ;;  %v5175_v42 = vcombine.high %v627_v39, %v631_v40  ;;  %v635_v43 = vld [vmem:[%s8639_s5 + $0x40] sm:$0xff] }
  0x16   :  { %v639_v44 = vld [vmem:[%s8639_s5 + $0x60] sm:$0xff] }
  0x17   :  { %v5183_v45 = vcombine.high %v635_v43, %v639_v44  ;;  %2205 = vmatprep.subr.bf16.mxu1 %v5175_v42  ;;  %v5182_v46 = vcombine.low %v635_v43, %v639_v44  ;;  %v643_v47 = vld [vmem:[%s8639_s5 + $0x80] sm:$0xff] }
  0x18   :  { %548 = vmatpush1.bf16.msra.mxu0 %v5871_v17  ;;  %2206 = vmatpush1.bf16.msra.mxu1 %v5174_v41  ;;  %v647_v48 = vld [vmem:[%s8639_s5 + $0xa0] sm:$0xff] }
  0x19   :  { %549 = vmatprep.subr.bf16.mxu0 %v5872_v18  ;;  %2207 = vmatprep.subr.bf16.mxu1 %v5183_v45  ;;  %v5191_v49 = vcombine.high %v643_v47, %v647_v48  ;;  %v5190_v50 = vcombine.low %v643_v47, %v647_v48  ;;  %v651_v51 = vld [vmem:[%s8639_s5 + $0xc0] sm:$0xff]  ;;  %v52_v18 = vlaneseq  ;;  %v5902_v47 = vld [vmem:[%s8637_s3 + $0x8] ss:$16 sps:$4 sm:$0xff]  }
  0x1a   :  { %v655_v52 = vld [vmem:[%s8639_s5 + $0xe0] sm:$0xff] }
  0x1b   :  { %v5199_v53 = vcombine.high %v651_v51, %v655_v52  ;;  %v5198_v54 = vcombine.low %v651_v51, %v655_v52  ;;  %v659_v55 = vld [vmem:[%s8639_s5 + $0x100] sm:$0xff]  ;;  %v5910_v51 = vld [vmem:[%s8637_s3 + $0x4c] ss:$16 sps:$4 sm:$0xff]   ;;  %v5908_v52 = vld [vmem:[%s8637_s3 + $0x48] ss:$16 sps:$4 sm:$0xff]  }
  0x1c   :  { %550 = vmatpush1.bf16.msra.mxu0 %v5874_v19  ;;  %2208 = vmatpush1.bf16.msra.mxu1 %v5182_v46  ;;  %v663_v56 = vld [vmem:[%s8639_s5 + $0x120] sm:$0xff] }
  0x1d   :  { %551 = vmatprep.subr.bf16.mxu0 %v5875_v20  ;;  %2209 = vmatprep.subr.bf16.mxu1 %v5191_v49  ;;  %v5207_v57 = vcombine.high %v659_v55, %v663_v56  ;;  %v5206_v58 = vcombine.low %v659_v55, %v663_v56  ;;  %v667_v59 = vld [vmem:[%s8639_s5 + $0x140] sm:$0xff]  ;;  %v5907_v49 = vld [vmem:[%s8637_s3 + $0x2c] ss:$16 sps:$4 sm:$0xff]   ;;  %v5914_v56 = vld [vmem:[%s8637_s3 + $0x88] ss:$16 sps:$4 sm:$0xff]  }
  0x1e   :  { %v671_v60 = vld [vmem:[%s8639_s5 + $0x160] sm:$0xff]  ;;  %v5916_v55 = vld [vmem:[%s8637_s3 + $0x8c] ss:$16 sps:$4 sm:$0xff]  }
  0x1f   :  { %v5215_v61 = vcombine.high %v667_v59, %v671_v60  ;;  %v5214_v62 = vcombine.low %v667_v59, %v671_v60  ;;  %v675_v63 = vld [vmem:[%s8639_s5 + $0x180] sm:$0xff]  ;;  %v5922_v59 = vld [vmem:[%s8637_s3 + $0xcc] ss:$16 sps:$4 sm:$0xff]   ;;  %v5920_v60 = vld [vmem:[%s8637_s3 + $0xc8] ss:$16 sps:$4 sm:$0xff]  }
  0x20   :  { %552 = vmatpush1.bf16.msra.mxu0 %v5877_v21  ;;  %2210 = vmatpush1.bf16.msra.mxu1 %v5190_v50  ;;  %v679_v0 = vld [vmem:[%s8639_s5 + $0x1a0] sm:$0xff]  ;;  %v5905_v50 = vld [vmem:[%s8637_s3 + $0x28] ss:$16 sps:$4 sm:$0xff]  }
  0x21   :  { %553 = vmatprep.subr.bf16.mxu0 %v5878_v22  ;;  %2211 = vmatprep.subr.bf16.mxu1 %v5199_v53  ;;  %v5223_v1 = vcombine.high %v675_v63, %v679_v0  ;;  %v5222_v2 = vcombine.low %v675_v63, %v679_v0  ;;  %v683_v3 = vld [vmem:[%s8639_s5 + $0x1c0] sm:$0xff]  ;;  %v5913_v53 = vld [vmem:[%s8637_s3 + $0x6c] ss:$16 sps:$4 sm:$0xff]   ;;  %v5926_v0 = vld [vmem:[%s8637_s3 + $0x108] ss:$16 sps:$4 sm:$0xff]  }
  0x22   :  { %v687_v4 = vld [vmem:[%s8639_s5 + $0x1e0] sm:$0xff]  ;;  %v5928_v63 = vld [vmem:[%s8637_s3 + $0x10c] ss:$16 sps:$4 sm:$0xff]  }
  0x23   :  { %v5231_v5 = vcombine.high %v683_v3, %v687_v4  ;;  %v5230_v6 = vcombine.low %v683_v3, %v687_v4  ;;  %v691_v7 = vld [vmem:[%s8639_s5 + $0x200] sm:$0xff]  ;;  %v5934_v3 = vld [vmem:[%s8637_s3 + $0x14c] ss:$16 sps:$4 sm:$0xff]   ;;  %v5932_v4 = vld [vmem:[%s8637_s3 + $0x148] ss:$16 sps:$4 sm:$0xff]  }
  0x24   :  { %554 = vmatpush1.bf16.msra.mxu0 %v5880_v23  ;;  %2212 = vmatpush1.bf16.msra.mxu1 %v5198_v54  ;;  %v695_v8 = vld [vmem:[%s8639_s5 + $0x220] sm:$0xff]  ;;  %v6703_v23 = vshrl.u32 %v52_v18, 7  ;;  %v5911_v54 = vld [vmem:[%s8637_s3 + $0x68] ss:$16 sps:$4 sm:$0xff]  }
  0x25   :  { %555 = vmatprep.subr.bf16.mxu0 %v5881_v24  ;;  %2213 = vmatprep.subr.bf16.mxu1 %v5207_v57  ;;  %v5239_v9 = vcombine.high %v691_v7, %v695_v8  ;;  %v5238_v10 = vcombine.low %v691_v7, %v695_v8  ;;  %v699_v11 = vld [vmem:[%s8639_s5 + $0x240] sm:$0xff]  ;;  %v5919_v57 = vld [vmem:[%s8637_s3 + $0xac] ss:$16 sps:$4 sm:$0xff]   ;;  %v5938_v8 = vld [vmem:[%s8637_s3 + $0x188] ss:$16 sps:$4 sm:$0xff]  }
  0x26   :  { %v703_v12 = vld [vmem:[%s8639_s5 + $0x260] sm:$0xff]  ;;  %v5940_v7 = vld [vmem:[%s8637_s3 + $0x18c] ss:$16 sps:$4 sm:$0xff]  }
  0x27   :  { %v5247_v13 = vcombine.high %v699_v11, %v703_v12  ;;  %v5246_v14 = vcombine.low %v699_v11, %v703_v12  ;;  %v707_v15 = vld [vmem:[%s8639_s5 + $0x280] sm:$0xff]  ;;  %v5946_v11 = vld [vmem:[%s8637_s3 + $0x1cc] ss:$16 sps:$4 sm:$0xff]   ;;  %v5944_v12 = vld [vmem:[%s8637_s3 + $0x1c8] ss:$16 sps:$4 sm:$0xff]  }
  0x28   :  { %556 = vmatpush1.bf16.msra.mxu0 %v5883_v25  ;;  %2214 = vmatpush1.bf16.msra.mxu1 %v5206_v58  ;;  %v711_v16 = vld [vmem:[%s8639_s5 + $0x2a0] sm:$0xff]  ;;  %v5917_v58 = vld [vmem:[%s8637_s3 + $0xa8] ss:$16 sps:$4 sm:$0xff]  }
  0x29   :  { %557 = vmatprep.subr.bf16.mxu0 %v5884_v26  ;;  %2215 = vmatprep.subr.bf16.mxu1 %v5215_v61  ;;  %v5255_v17 = vcombine.high %v707_v15, %v711_v16  ;;  %v5254_v19 = vcombine.low %v707_v15, %v711_v16  ;;  %v715_v20 = vld [vmem:[%s8639_s5 + $0x2c0] sm:$0xff]  ;;  %v5925_v61 = vld [vmem:[%s8637_s3 + $0xec] ss:$16 sps:$4 sm:$0xff]   ;;  %v5947_v16 = vld [vmem:[%s8637_s3 + $0x1e8] ss:$16 sps:$4 sm:$0xff]  }
  0x2a   :  { %v719_v21 = vld [vmem:[%s8639_s5 + $0x2e0] sm:$0xff]  ;;  %v632_v15 = vld [vmem:[%s8639_s5 + $0x28] sm:$0xff] }
  0x2b   :  { %v5263_v22 = vcombine.high %v715_v20, %v719_v21  ;;  %v5262_v24 = vcombine.low %v715_v20, %v719_v21  ;;  %v723_v25 = vld [vmem:[%s8639_s5 + $0x300] sm:$0xff]  ;;  %v636_v18 = vld [vmem:[%s8639_s5 + $0x48] sm:$0xff] }
  0x2c   :  { %558 = vmatpush1.bf16.msra.mxu0 %v5886_v27  ;;  %2216 = vmatpush1.bf16.msra.mxu1 %v5214_v62  ;;  %v727_v26 = vld [vmem:[%s8639_s5 + $0x320] sm:$0xff]  ;;  %v5923_v62 = vld [vmem:[%s8637_s3 + $0xe8] ss:$16 sps:$4 sm:$0xff]  }
  0x2d   :  { %559 = vmatprep.subr.bf16.mxu0 %v5887_v28  ;;  %2217 = vmatprep.subr.bf16.mxu1 %v5223_v1  ;;  %v5271_v27 = vcombine.high %v723_v25, %v727_v26  ;;  %v6712_v28 = vsub.s32 0, %v6703_v23  ;;  %v5931_v1 = vld [vmem:[%s8637_s3 + $0x12c] ss:$16 sps:$4 sm:$0xff]  }
  0x30   :  { %560 = vmatpush1.bf16.msra.mxu0 %v5889_v29  ;;  %2218 = vmatpush1.bf16.msra.mxu1 %v5222_v2  ;;  %v50_v29 = vld [vmem:[%s8640_s2] sm:$0x3]  ;;  %v5929_v2 = vld [vmem:[%s8637_s3 + $0x128] ss:$16 sps:$4 sm:$0xff]  }
  0x31   :  { %561 = vmatprep.subr.bf16.mxu0 %v5890_v30  ;;  %2219 = vmatprep.subr.bf16.mxu1 %v5231_v5  ;;  %v6718_v30 = vsub.s32 1, %v6703_v23  ;;  %v5937_v5 = vld [vmem:[%s8637_s3 + $0x16c] ss:$16 sps:$4 sm:$0xff]  }
  0x34   :  { %562 = vmatpush1.bf16.msra.mxu0 %v5892_v31  ;;  %2220 = vmatpush1.bf16.msra.mxu1 %v5230_v6  ;;  %v5270_v31 = vcombine.low %v723_v25, %v727_v26  ;;  %v5935_v6 = vld [vmem:[%s8637_s3 + $0x168] ss:$16 sps:$4 sm:$0xff]  }
  0x35   :  { %563 = vmatprep.subr.bf16.mxu0 %v5893_v32  ;;  %2221 = vmatprep.subr.bf16.mxu1 %v5239_v9  ;;  %v731_v32 = vld [vmem:[%s8639_s5 + $0x340] sm:$0xff]  ;;  %v5943_v9 = vld [vmem:[%s8637_s3 + $0x1ac] ss:$16 sps:$4 sm:$0xff]  }
  0x38   :  { %564 = vmatpush1.bf16.msra.mxu0 %v5895_v33  ;;  %2222 = vmatpush1.bf16.msra.mxu1 %v5238_v10  ;;  %v735_v33 = vld [vmem:[%s8639_s5 + $0x360] sm:$0xff]  ;;  %v5941_v10 = vld [vmem:[%s8637_s3 + $0x1a8] ss:$16 sps:$4 sm:$0xff]  }
  0x39   :  { %565 = vmatprep.subr.bf16.mxu0 %v5896_v34  ;;  %2223 = vmatprep.subr.bf16.mxu1 %v5247_v13  ;;  %v5279_v34 = vcombine.high %v731_v32, %v735_v33  ;;  %v5949_v13 = vld [vmem:[%s8637_s3 + $0x1ec] ss:$16 sps:$4 sm:$0xff]  }
  0x3c   :  { %566 = vmatpush1.bf16.msra.mxu0 %v5898_v35  ;;  %2224 = vmatpush1.bf16.msra.mxu1 %v5246_v14  ;;  %v55_v35 = vrot.slane %v50_v29, %v6712_v28  ;;  %v628_v14 = vld [vmem:[%s8639_s5 + $0x8] sm:$0xff] }
  0x3d   :  { %567 = vmatprep.subr.bf16.mxu0 %v5899_v36  ;;  %2225 = vmatprep.subr.bf16.mxu1 %v5255_v17  ;;  %v59_v36 = vrot.slane %v50_v29, %v6718_v30  ;;  %v5177_v17 = vcombine.high %v628_v14, %v632_v15  ;;  %v5176_v20 = vcombine.low %v628_v14, %v632_v15  ;;  %v656_v29 = vld [vmem:[%s8639_s5 + $0xe8] sm:$0xff] }
  0x40   :  { %568 = vmatpush1.bf16.msra.mxu0 %v5901_v37  ;;  %2226 = vmatpush1.bf16.msra.mxu1 %v5254_v19  ;;  %v5278_v37 = vcombine.low %v731_v32, %v735_v33  ;;  %v640_v19 = vld [vmem:[%s8639_s5 + $0x68] sm:$0xff] }
  0x41   :  { %578 = vmatprep.subr.bf16.mxu0 %v5904_v38  ;;  %2227 = vmatprep.subr.bf16.mxu1 %v5263_v22  ;;  %v5185_v21 = vcombine.high %v636_v18, %v640_v19  ;;  %v644_v22 = vld [vmem:[%s8639_s5 + $0x88] sm:$0xff]  ;;  %v5184_v25 = vcombine.low %v636_v18, %v640_v19 }
  0x42   :  { %v660_v33 = vld [vmem:[%s8639_s5 + $0x108] sm:$0xff] }
  0x44   :  { %2228 = vmatpush1.bf16.msra.mxu1 %v5262_v24  ;;  %v648_v24 = vld [vmem:[%s8639_s5 + $0xa8] sm:$0xff] }
  0x45   :  { %2229 = vmatprep.subr.bf16.mxu1 %v5271_v27  ;;  %v5193_v26 = vcombine.high %v644_v22, %v648_v24  ;;  %v652_v27 = vld [vmem:[%s8639_s5 + $0xc8] sm:$0xff] }
  0x46   :  { %v5201_v32 = vcombine.high %v652_v27, %v656_v29 }
  0x48   :  { %2230 = vmatpush1.bf16.msra.mxu1 %v5270_v31  ;;  %v5192_v31 = vcombine.low %v644_v22, %v648_v24 }
  0x49   :  { %2231 = vmatprep.subr.bf16.mxu1 %v5279_v34  ;;  %v664_v34 = vld [vmem:[%s8639_s5 + $0x128] sm:$0xff] }
  0x4c   :  { %2232 = vmatpush1.bf16.msra.mxu1 %v5278_v37  ;;  %v668_v37 = vld [vmem:[%s8639_s5 + $0x148] sm:$0xff] }
  0xdd   :  { %v120_v38 = vpop.f32.mrb[0].mxu1 }
  0xde   :  { %v121_v39 = vadd.f32 %v120_v38, %v55_v35  ;;  %v122_v40 = vpop.f32.mrb[1].mxu1  ;;  %v5200_v35 = vcombine.low %v652_v27, %v656_v29  ;;  %v672_v38 = vld [vmem:[%s8639_s5 + $0x168] sm:$0xff] }
  0xdf   :  { %v123_v41 = vadd.f32 %v122_v40, %v59_v36  ;;  %v124_v42 = vpop.f32.mrb[2].mxu1  ;;  %v5209_v36 = vcombine.high %v660_v33, %v664_v34  ;;  %v5217_v40 = vcombine.high %v668_v37, %v672_v38 }
  0xe0   :  { %v127_v43 = vmax.f32 %v121_v39, 0.0  ;;  %v125_v44 = vpop.f32.mrb[3].mxu1  ;;  %v5208_v39 = vcombine.low %v660_v33, %v664_v34  ;;  %v680_v42 = vld [vmem:[%s8639_s5 + $0x1a8] sm:$0xff] }
  0xe1   :  { %v128_v45 = vmax.f32 %v123_v41, 0.0  ;;  %v676_v41 = vld [vmem:[%s8639_s5 + $0x188] sm:$0xff]  ;;  %v739_v44 = vld [vmem:[%s8639_s5 + $0x380] sm:$0xff] }
  0xe2   :  { %v6731_v48 = vpack.c.bf16 %v127_v43, %v127_v43  ;;  %v5216_v43 = vcombine.low %v668_v37, %v672_v38  ;;  %v6964_v37 = vld [vmem:[%s8641_s4] sm:$0xf] }
  0xe3   :  { %v130_v46 = vpack.c.bf16 %v128_v45, %v128_v45  ;;  %v743_v45 = vld [vmem:[%s8639_s5 + $0x3a0] sm:$0xff]  ;;  %v200_v38 = vrot.slane %v6964_v37, %v6712_v28 }
  0xe5   :  { %569 = vmatprep.mubr.bf16.mxu0 %v130_v46 }
  0xe6   :  { %570 = vmatmul.mubr.bf16.vlgmr.msra.gmra.mrb[0].mxu0 %v6731_v48 }
  0xe7   :  { %579 = vmatpush1.bf16.msra.mxu0 %v5902_v47  ;;  %610 = vmatprep.mubr.bf16.mxu0 %v130_v46  ;;  %v5225_v46 = vcombine.high %v676_v41, %v680_v42  ;;  %v5287_v47 = vcombine.high %v739_v44, %v743_v45 }
  0xe8   :  { %580 = vmatprep.subr.bf16.mxu0 %v5907_v49  ;;  %v688_v49 = vld [vmem:[%s8639_s5 + $0x1e8] sm:$0xff] }
  0xe9   :  { %2233 = vmatprep.subr.bf16.mxu1 %v5287_v47  ;;  %v763_v47 = vld [vmem:[%s8639_s5 + $0x440] sm:$0xff] }
  0xeb   :  { %581 = vmatpush1.bf16.msra.mxu0 %v5905_v50  ;;  %v5286_v50 = vcombine.low %v739_v44, %v743_v45 }
  0xec   :  { %582 = vmatprep.subr.bf16.mxu0 %v5910_v51  ;;  %v5224_v51 = vcombine.low %v676_v41, %v680_v42 }
  0xed   :  { %2234 = vmatpush1.bf16.msra.mxu1 %v5286_v50  ;;  %v764_v50 = vld [vmem:[%s8639_s5 + $0x448] sm:$0xff] }
  0xef   :  { %583 = vmatpush1.bf16.msra.mxu0 %v5908_v52  ;;  %v747_v52 = vld [vmem:[%s8639_s5 + $0x3c0] sm:$0xff] }
  0xf0   :  { %584 = vmatprep.subr.bf16.mxu0 %v5913_v53  ;;  %v751_v53 = vld [vmem:[%s8639_s5 + $0x3e0] sm:$0xff] }
  0xf3   :  { %585 = vmatpush1.bf16.msra.mxu0 %v5911_v54 }
  0xf4   :  { %586 = vmatprep.subr.bf16.mxu0 %v5916_v55  ;;  %v5295_v55 = vcombine.high %v747_v52, %v751_v53 }
  0xf6   :  { %2235 = vmatprep.subr.bf16.mxu1 %v5295_v55 }
  0xf7   :  { %587 = vmatpush1.bf16.msra.mxu0 %v5914_v56  ;;  %v692_v56 = vld [vmem:[%s8639_s5 + $0x208] sm:$0xff] }
  0xf8   :  { %588 = vmatprep.subr.bf16.mxu0 %v5919_v57  ;;  %v696_v57 = vld [vmem:[%s8639_s5 + $0x228] sm:$0xff] }
  0xfb   :  { %589 = vmatpush1.bf16.msra.mxu0 %v5917_v58  ;;  %v5294_v58 = vcombine.low %v747_v52, %v751_v53 }
  0xfc   :  { %590 = vmatprep.subr.bf16.mxu0 %v5922_v59 }
  0xfd   :  { %2236 = vmatpush1.bf16.msra.mxu1 %v5294_v58  ;;  %v772_v58 = vld [vmem:[%s8639_s5 + $0x488] sm:$0xff] }
  0xff   :  { %591 = vmatpush1.bf16.msra.mxu0 %v5920_v60  ;;  %v6894_v60 = vld [vmem:[%s8639_s5 + $0x400] sm:$0xff] }
 0x100   :  { %592 = vmatprep.subr.bf16.mxu0 %v5925_v61  ;;  %v6899_v61 = vld [vmem:[%s8639_s5 + $0x420] sm:$0xff] }
 0x103   :  { %593 = vmatpush1.bf16.msra.mxu0 %v5923_v62  ;;  %v6904_v62 = vld [vmem:[%s8639_s5 + $0x408] sm:$0xff] }
 0x104   :  { %594 = vmatprep.subr.bf16.mxu0 %v5928_v63  ;;  %v5241_v63 = vcombine.high %v692_v56, %v696_v57 }
 0x107   :  { %595 = vmatpush1.bf16.msra.mxu0 %v5926_v0  ;;  %v5303_v0 = vcombine.high %v6894_v60, %v6899_v61 }
 0x108   :  { %596 = vmatprep.subr.bf16.mxu0 %v5931_v1  ;;  %v6911_v1 = vld [vmem:[%s8639_s5 + $0x428] sm:$0xff] }
 0x109   :  { %2246 = vmatprep.subr.bf16.mxu1 %v5303_v0 }
 0x10b   :  { %597 = vmatpush1.bf16.msra.mxu0 %v5929_v2  ;;  %v700_v2 = vld [vmem:[%s8639_s5 + $0x248] sm:$0xff] }
 0x10c   :  { %598 = vmatprep.subr.bf16.mxu0 %v5934_v3  ;;  %v704_v3 = vld [vmem:[%s8639_s5 + $0x268] sm:$0xff] }
 0x10f   :  { %599 = vmatpush1.bf16.msra.mxu0 %v5932_v4  ;;  %v5302_v4 = vcombine.low %v6894_v60, %v6899_v61  ;;  %v780_v60 = vld [vmem:[%s8639_s5 + $0x4c8] sm:$0xff] }
 0x110   :  { %600 = vmatprep.subr.bf16.mxu0 %v5937_v5  ;;  %v5304_v5 = vcombine.low %v6904_v62, %v6911_v1  ;;  %v784_v61 = vld [vmem:[%s8639_s5 + $0x4e8] sm:$0xff] }
 0x113   :  { %601 = vmatpush1.bf16.msra.mxu0 %v5935_v6  ;;  %v5240_v6 = vcombine.low %v692_v56, %v696_v57  ;;  %v771_v56 = vld [vmem:[%s8639_s5 + $0x480] sm:$0xff] }
 0x114   :  { %602 = vmatprep.subr.bf16.mxu0 %v5940_v7  ;;  %v5249_v7 = vcombine.high %v700_v2, %v704_v3  ;;  %v775_v57 = vld [vmem:[%s8639_s5 + $0x4a0] sm:$0xff] }
 0x117   :  { %603 = vmatpush1.bf16.msra.mxu0 %v5938_v8  ;;  %v708_v8 = vld [vmem:[%s8639_s5 + $0x288] sm:$0xff] }
 0x118   :  { %604 = vmatprep.subr.bf16.mxu0 %v5943_v9  ;;  %v712_v9 = vld [vmem:[%s8639_s5 + $0x2a8] sm:$0xff] }
 0x119   :  { %v5256_v14 = vcombine.low %v708_v8, %v712_v9 }
 0x11b   :  { %605 = vmatpush1.bf16.msra.mxu0 %v5941_v10  ;;  %v5248_v10 = vcombine.low %v700_v2, %v704_v3  ;;  %v5319_v2 = vcombine.high %v771_v56, %v775_v57 }
 0x11c   :  { %606 = vmatprep.subr.bf16.mxu0 %v5946_v11  ;;  %v5257_v11 = vcombine.high %v708_v8, %v712_v9  ;;  %v787_v8 = vld [vmem:[%s8639_s5 + $0x500] sm:$0xff] }
 0x11d   :  { %v791_v9 = vld [vmem:[%s8639_s5 + $0x520] sm:$0xff] }
 0x11f   :  { %607 = vmatpush1.bf16.msra.mxu0 %v5944_v12  ;;  %v716_v12 = vld [vmem:[%s8639_s5 + $0x2c8] sm:$0xff] }
 0x120   :  { %608 = vmatprep.subr.bf16.mxu0 %v5949_v13  ;;  %v720_v13 = vld [vmem:[%s8639_s5 + $0x2e8] sm:$0xff] }
 0x121   :  { %v5265_v15 = vcombine.high %v716_v12, %v720_v13  ;;  %v5264_v18 = vcombine.low %v716_v12, %v720_v13  ;;  %v5328_v13 = vcombine.low %v780_v60, %v784_v61 }
 0x123   :  { %609 = vmatpush1.bf16.msra.mxu0 %v5947_v16  ;;  %v724_v16 = vld [vmem:[%s8639_s5 + $0x308] sm:$0xff] }
 0x124   :  { %2287 = vmatprep.subr.bf16.mxu0 %v5177_v17  ;;  %v728_v17 = vld [vmem:[%s8639_s5 + $0x328] sm:$0xff] }
 0x125   :  { %v5273_v19 = vcombine.high %v724_v16, %v728_v17  ;;  %v5272_v22 = vcombine.low %v724_v16, %v728_v17  ;;  %v795_v16 = vld [vmem:[%s8639_s5 + $0x540] sm:$0xff] }
 0x126   :  { %611 = vmatmul.mubr.bf16.vlgmr.msra.gmra.mrb[4].mxu0 %v6731_v48  ;;  %v684_v48 = vld [vmem:[%s8639_s5 + $0x1c8] sm:$0xff]  ;;  %v799_v17 = vld [vmem:[%s8639_s5 + $0x560] sm:$0xff] }
 0x127   :  { %2288 = vmatpush1.bf16.msra.mxu0 %v5176_v20  ;;  %v5233_v54 = vcombine.high %v684_v48, %v688_v49  ;;  %v5232_v59 = vcombine.low %v684_v48, %v688_v49  ;;  %v732_v20 = vld [vmem:[%s8639_s5 + $0x348] sm:$0xff]  ;;  %v767_v49 = vld [vmem:[%s8639_s5 + $0x460] sm:$0xff] }
 0x128   :  { %2289 = vmatprep.subr.bf16.mxu0 %v5185_v21  ;;  %v736_v21 = vld [vmem:[%s8639_s5 + $0x368] sm:$0xff] }
 0x129   :  { %v5281_v24 = vcombine.high %v732_v20, %v736_v21  ;;  %v5280_v27 = vcombine.low %v732_v20, %v736_v21  ;;  %v5334_v20 = vcombine.low %v787_v8, %v791_v9 }
 0x12b   :  { %2290 = vmatpush1.bf16.msra.mxu0 %v5184_v25  ;;  %v740_v25 = vld [vmem:[%s8639_s5 + $0x388] sm:$0xff] }
 0x12c   :  { %2291 = vmatprep.subr.bf16.mxu0 %v5193_v26  ;;  %v744_v26 = vld [vmem:[%s8639_s5 + $0x3a8] sm:$0xff] }
 0x12d   :  { %v5289_v29 = vcombine.high %v740_v25, %v744_v26  ;;  %v5288_v33 = vcombine.low %v740_v25, %v744_v26  ;;  %v803_v25 = vld [vmem:[%s8639_s5 + $0x580] sm:$0xff] }
 0x12e   :  { %v807_v26 = vld [vmem:[%s8639_s5 + $0x5a0] sm:$0xff] }
 0x12f   :  { %2292 = vmatpush1.bf16.msra.mxu0 %v5192_v31  ;;  %v748_v31 = vld [vmem:[%s8639_s5 + $0x3c8] sm:$0xff] }
 0x130   :  { %2293 = vmatprep.subr.bf16.mxu0 %v5201_v32  ;;  %v752_v32 = vld [vmem:[%s8639_s5 + $0x3e8] sm:$0xff] }
 0x131   :  { %v5297_v34 = vcombine.high %v748_v31, %v752_v32 }
 0x133   :  { %2294 = vmatpush1.bf16.msra.mxu0 %v5200_v35  ;;  %v5296_v35 = vcombine.low %v748_v31, %v752_v32  ;;  %v5342_v31 = vcombine.low %v795_v16, %v799_v17 }
 0x134   :  { %2295 = vmatprep.subr.bf16.mxu0 %v5209_v36  ;;  %v5305_v36 = vcombine.high %v6904_v62, %v6911_v1  ;;  %v5318_v62 = vcombine.low %v771_v56, %v775_v57  ;;  %v828_v56 = vld [vmem:[%s8639_s5 + $0x648] sm:$0xff] }
 0x135   :  { %v832_v57 = vld [vmem:[%s8639_s5 + $0x668] sm:$0xff] }
 0x137   :  { %2296 = vmatpush1.bf16.msra.mxu0 %v5208_v39  ;;  %v204_v39 = vrot.slane %v6964_v37, %v6718_v30 }
 0x138   :  { %2297 = vmatprep.subr.bf16.mxu0 %v5217_v40 }
 0x13b   :  { %2298 = vmatpush1.bf16.msra.mxu0 %v5216_v43 }
 0x13c   :  { %2299 = vmatprep.subr.bf16.mxu0 %v5225_v46 }
 0x13f   :  { %2300 = vmatpush1.bf16.msra.mxu0 %v5224_v51  ;;  %v768_v51 = vld [vmem:[%s8639_s5 + $0x468] sm:$0xff] }
 0x140   :  { %2301 = vmatprep.subr.bf16.mxu0 %v5233_v54  ;;  %v5311_v54 = vcombine.high %v763_v47, %v767_v49  ;;  %v5313_v55 = vcombine.high %v764_v50, %v768_v51  ;;  %v5312_v0 = vcombine.low %v764_v50, %v768_v51 }
 0x143   :  { %2302 = vmatpush1.bf16.msra.mxu0 %v5232_v59  ;;  %v776_v59 = vld [vmem:[%s8639_s5 + $0x4a8] sm:$0xff] }
 0x144   :  { %2303 = vmatprep.subr.bf16.mxu0 %v5241_v63  ;;  %v5310_v63 = vcombine.low %v763_v47, %v767_v49  ;;  %v5321_v3 = vcombine.high %v772_v58, %v776_v59  ;;  %v5320_v1 = vcombine.low %v772_v58, %v776_v59  ;;  %v824_v47 = vld [vmem:[%s8639_s5 + $0x628] sm:$0xff] }
 0x147   :  { %2304 = vmatpush1.bf16.msra.mxu0 %v5240_v6  ;;  %v779_v6 = vld [vmem:[%s8639_s5 + $0x4c0] sm:$0xff] }
 0x148   :  { %2305 = vmatprep.subr.bf16.mxu0 %v5249_v7  ;;  %v783_v7 = vld [vmem:[%s8639_s5 + $0x4e0] sm:$0xff] }
 0x149   :  { %v5326_v12 = vcombine.low %v779_v6, %v783_v7 }
 0x14b   :  { %2306 = vmatpush1.bf16.msra.mxu0 %v5248_v10  ;;  %v788_v10 = vld [vmem:[%s8639_s5 + $0x508] sm:$0xff] }
 0x14c   :  { %2307 = vmatprep.subr.bf16.mxu0 %v5257_v11  ;;  %v792_v11 = vld [vmem:[%s8639_s5 + $0x528] sm:$0xff] }
 0x14d   :  { %v5336_v21 = vcombine.low %v788_v10, %v792_v11 }
 0x14f   :  { %2308 = vmatpush1.bf16.msra.mxu0 %v5256_v14  ;;  %v5335_v14 = vcombine.high %v787_v8, %v791_v9  ;;  %v844_v8 = vld [vmem:[%s8639_s5 + $0x6c8] sm:$0xff] }
 0x150   :  { %2309 = vmatprep.subr.bf16.mxu0 %v5265_v15  ;;  %v5337_v15 = vcombine.high %v788_v10, %v792_v11  ;;  %v848_v9 = vld [vmem:[%s8639_s5 + $0x6e8] sm:$0xff] }
 0x153   :  { %2310 = vmatpush1.bf16.msra.mxu0 %v5264_v18  ;;  %v796_v18 = vld [vmem:[%s8639_s5 + $0x548] sm:$0xff] }
 0x154   :  { %2311 = vmatprep.subr.bf16.mxu0 %v5273_v19  ;;  %v800_v19 = vld [vmem:[%s8639_s5 + $0x568] sm:$0xff] }
 0x155   :  { %v5344_v32 = vcombine.low %v796_v18, %v800_v19 }
 0x157   :  { %2312 = vmatpush1.bf16.msra.mxu0 %v5272_v22  ;;  %v5343_v22 = vcombine.high %v795_v16, %v799_v17  ;;  %v852_v16 = vld [vmem:[%s8639_s5 + $0x708] sm:$0xff] }
 0x158   :  { %2313 = vmatprep.subr.bf16.mxu0 %v5281_v24  ;;  %v5345_v24 = vcombine.high %v796_v18, %v800_v19  ;;  %v856_v17 = vld [vmem:[%s8639_s5 + $0x728] sm:$0xff]  ;;  %v5392_v19 = vcombine.low %v844_v8, %v848_v9 }
 0x15b   :  { %2314 = vmatpush1.bf16.msra.mxu0 %v5280_v27  ;;  %v804_v27 = vld [vmem:[%s8639_s5 + $0x588] sm:$0xff] }
 0x15c   :  { %2315 = vmatprep.subr.bf16.mxu0 %v5289_v29  ;;  %v808_v29 = vld [vmem:[%s8639_s5 + $0x5a8] sm:$0xff] }
 0x15f   :  { %2316 = vmatpush1.bf16.msra.mxu0 %v5288_v33  ;;  %v5351_v33 = vcombine.high %v803_v25, %v807_v26 }
 0x160   :  { %2317 = vmatprep.subr.bf16.mxu0 %v5297_v34  ;;  %v5353_v34 = vcombine.high %v804_v27, %v808_v29 }
 0x163   :  { %2318 = vmatpush1.bf16.msra.mxu0 %v5296_v35  ;;  %v811_v35 = vld [vmem:[%s8639_s5 + $0x5c0] sm:$0xff] }
 0x164   :  { %2328 = vmatprep.subr.bf16.mxu0 %v5305_v36  ;;  %v815_v36 = vld [vmem:[%s8639_s5 + $0x5e0] sm:$0xff] }
 0x1b9   :  { %v571_v40 = vpop.f32.mrb[0].mxu0 }
 0x1ba   :  { %v572_v41 = vadd.f32 %v571_v40, %v200_v38  ;;  %v573_v42 = vpop.f32.mrb[1].mxu0  ;;  %v812_v38 = vld [vmem:[%s8639_s5 + $0x5c8] sm:$0xff]  ;;  %v5350_v40 = vcombine.low %v803_v25, %v807_v26 }
 0x1bb   :  { %v574_v43 = vadd.f32 %v573_v42, %v204_v39  ;;  %v575_v44 = vpop.f32.mrb[2].mxu0  ;;  %v816_v39 = vld [vmem:[%s8639_s5 + $0x5e8] sm:$0xff]  ;;  %v5359_v42 = vcombine.high %v811_v35, %v815_v36 }
 0x1bc   :  { %v619_v45 = vmax.f32 %v572_v41, 0.0  ;;  %v576_v46 = vpop.f32.mrb[3].mxu0  ;;  %v5352_v41 = vcombine.low %v804_v27, %v808_v29  ;;  %v819_v44 = vld [vmem:[%s8639_s5 + $0x600] sm:$0xff]  ;;  %v5360_v49 = vcombine.low %v812_v38, %v816_v39  ;;  %v860_v25 = vld [vmem:[%s8639_s5 + $0x748] sm:$0xff]  ;;  %v5400_v29 = vcombine.low %v852_v16, %v856_v17 }
 0x1bd   :  { %v620_v48 = vmax.f32 %v574_v43, 0.0  ;;  %v5361_v43 = vcombine.high %v812_v38, %v816_v39  ;;  %v820_v46 = vld [vmem:[%s8639_s5 + $0x608] sm:$0xff]  ;;  %v7153_v38 = vsub.s32 2, %v6703_v23 }
 0x1be   :  { %v6984_v53 = vpack.c.bf16 %v619_v45, %v619_v45  ;;  %v823_v45 = vld [vmem:[%s8639_s5 + $0x620] sm:$0xff]  ;;  %v5369_v51 = vcombine.high %v820_v46, %v824_v47  ;;  %v5368_v59 = vcombine.low %v820_v46, %v824_v47  ;;  %v864_v26 = vld [vmem:[%s8639_s5 + $0x768] sm:$0xff] }
 0x1bf   :  { %v6982_v52 = vpack.c.bf16 %v620_v48, %v620_v48  ;;  %v5358_v48 = vcombine.low %v811_v35, %v815_v36  ;;  %v5367_v50 = vcombine.high %v819_v44, %v823_v45  ;;  %v5366_v58 = vcombine.low %v819_v44, %v823_v45  ;;  %v868_v35 = vld [vmem:[%s8639_s5 + $0x788] sm:$0xff]  ;;  %v875_v44 = vld [vmem:[%s8639_s5 + $0x7c0] sm:$0xff] }
 0x1c0   :  { %v872_v36 = vld [vmem:[%s8639_s5 + $0x7a8] sm:$0xff]  ;;  %v879_v45 = vld [vmem:[%s8639_s5 + $0x7e0] sm:$0xff] }
 0x1c1   :  { %2237 = vmatprep.mubr.bf16.mxu1 %v6982_v52  ;;  %2319 = vmatprep.mubr.bf16.mxu0 %v6982_v52  ;;  %v876_v46 = vld [vmem:[%s8639_s5 + $0x7c8] sm:$0xff] }
 0x1c2   :  { %2238 = vmatmul.mubr.bf16.vlgmr.msra.gmra.mrb[4].mxu1 %v6984_v53  ;;  %2320 = vmatmul.mubr.bf16.vlgmr.msra.gmra.mrb[8].mxu0 %v6984_v53  ;;  %v880_v47 = vld [vmem:[%s8639_s5 + $0x7e8] sm:$0xff] }
 0x1c3   :  { %2247 = vmatpush1.bf16.msra.mxu1 %v5302_v4  ;;  %2329 = vmatpush1.bf16.msra.mxu0 %v5304_v5  ;;  %v5327_v4 = vcombine.high %v779_v6, %v783_v7  ;;  %v5329_v5 = vcombine.high %v780_v60, %v784_v61  ;;  %v836_v6 = vld [vmem:[%s8639_s5 + $0x688] sm:$0xff]  ;;  %v5376_v61 = vcombine.low %v828_v56, %v832_v57 }
 0x1c4   :  { %2248 = vmatprep.subr.bf16.mxu1 %v5311_v54  ;;  %2330 = vmatprep.subr.bf16.mxu0 %v5313_v55  ;;  %v827_v54 = vld [vmem:[%s8639_s5 + $0x640] sm:$0xff]  ;;  %v840_v7 = vld [vmem:[%s8639_s5 + $0x6a8] sm:$0xff] }
 0x1c5   :  { %v831_v55 = vld [vmem:[%s8639_s5 + $0x660] sm:$0xff]  ;;  %v5384_v11 = vcombine.low %v836_v6, %v840_v7 }
 0x1c6   :  { %v5374_v60 = vcombine.low %v827_v54, %v831_v55 }
 0x1c7   :  { %2249 = vmatpush1.bf16.msra.mxu1 %v5310_v63  ;;  %2331 = vmatpush1.bf16.msra.mxu0 %v5312_v0  ;;  %v5375_v63 = vcombine.high %v827_v54, %v831_v55  ;;  %v5377_v0 = vcombine.high %v828_v56, %v832_v57  ;;  %v5423_v54 = vcombine.high %v875_v44, %v879_v45  ;;  %v629_v56 = vld [vmem:[%s8639_s5 + $0x10] sm:$0xff] }
 0x1c8   :  { %2250 = vmatprep.subr.bf16.mxu1 %v5319_v2  ;;  %2332 = vmatprep.subr.bf16.mxu0 %v5321_v3  ;;  %v835_v2 = vld [vmem:[%s8639_s5 + $0x680] sm:$0xff]  ;;  %v5425_v55 = vcombine.high %v876_v46, %v880_v47 }
 0x1c9   :  { %v839_v3 = vld [vmem:[%s8639_s5 + $0x6a0] sm:$0xff] }
 0x1ca   :  { %v5382_v10 = vcombine.low %v835_v2, %v839_v3 }
 0x1cb   :  { %2251 = vmatpush1.bf16.msra.mxu1 %v5318_v62  ;;  %2333 = vmatpush1.bf16.msra.mxu0 %v5320_v1  ;;  %v5383_v62 = vcombine.high %v835_v2, %v839_v3  ;;  %v5385_v1 = vcombine.high %v836_v6, %v840_v7  ;;  %v5422_v6 = vcombine.low %v875_v44, %v879_v45  ;;  %v669_v45 = vld [vmem:[%s8639_s5 + $0x150] sm:$0xff] }
 0x1cc   :  { %2252 = vmatprep.subr.bf16.mxu1 %v5327_v4  ;;  %2334 = vmatprep.subr.bf16.mxu0 %v5329_v5  ;;  %v843_v4 = vld [vmem:[%s8639_s5 + $0x6c0] sm:$0xff]  ;;  %v5424_v7 = vcombine.low %v876_v46, %v880_v47  ;;  %v673_v47 = vld [vmem:[%s8639_s5 + $0x170] sm:$0xff] }
 0x1cd   :  { %v847_v5 = vld [vmem:[%s8639_s5 + $0x6e0] sm:$0xff] }
 0x1ce   :  { %v5390_v18 = vcombine.low %v843_v4, %v847_v5 }
 0x1cf   :  { %2253 = vmatpush1.bf16.msra.mxu1 %v5326_v12  ;;  %2335 = vmatpush1.bf16.msra.mxu0 %v5328_v13  ;;  %v5391_v12 = vcombine.high %v843_v4, %v847_v5  ;;  %v5393_v13 = vcombine.high %v844_v8, %v848_v9  ;;  %v637_v5 = vld [vmem:[%s8639_s5 + $0x50] sm:$0xff]  ;;  %v638_v9 = vld [vmem:[%s8639_s5 + $0x58] sm:$0xff] }
 0x1d0   :  { %2254 = vmatprep.subr.bf16.mxu1 %v5335_v14  ;;  %2336 = vmatprep.subr.bf16.mxu0 %v5337_v15  ;;  %v851_v14 = vld [vmem:[%s8639_s5 + $0x700] sm:$0xff]  ;;  %v641_v8 = vld [vmem:[%s8639_s5 + $0x70] sm:$0xff] }
 0x1d1   :  { %v855_v15 = vld [vmem:[%s8639_s5 + $0x720] sm:$0xff] }
 0x1d2   :  { %v5398_v27 = vcombine.low %v851_v14, %v855_v15 }
 0x1d3   :  { %2255 = vmatpush1.bf16.msra.mxu1 %v5334_v20  ;;  %2337 = vmatpush1.bf16.msra.mxu0 %v5336_v21  ;;  %v5399_v20 = vcombine.high %v851_v14, %v855_v15  ;;  %v5401_v21 = vcombine.high %v852_v16, %v856_v17  ;;  %v5187_v15 = vcombine.high %v637_v5, %v641_v8  ;;  %v645_v17 = vld [vmem:[%s8639_s5 + $0x90] sm:$0xff] }
 0x1d4   :  { %2256 = vmatprep.subr.bf16.mxu1 %v5343_v22  ;;  %2338 = vmatprep.subr.bf16.mxu0 %v5345_v24  ;;  %v859_v22 = vld [vmem:[%s8639_s5 + $0x740] sm:$0xff] }
 0x1d5   :  { %v863_v24 = vld [vmem:[%s8639_s5 + $0x760] sm:$0xff] }
 0x1d6   :  { %v5406_v39 = vcombine.low %v859_v22, %v863_v24 }
 0x1d7   :  { %2257 = vmatpush1.bf16.msra.mxu1 %v5342_v31  ;;  %2339 = vmatpush1.bf16.msra.mxu0 %v5344_v32  ;;  %v5407_v31 = vcombine.high %v859_v22, %v863_v24  ;;  %v5409_v32 = vcombine.high %v860_v25, %v864_v26 }
 0x1d8   :  { %2258 = vmatprep.subr.bf16.mxu1 %v5351_v33  ;;  %2340 = vmatprep.subr.bf16.mxu0 %v5353_v34  ;;  %v867_v33 = vld [vmem:[%s8639_s5 + $0x780] sm:$0xff] }
 0x1d9   :  { %v871_v34 = vld [vmem:[%s8639_s5 + $0x7a0] sm:$0xff] }
 0x1db   :  { %2259 = vmatpush1.bf16.msra.mxu1 %v5350_v40  ;;  %2341 = vmatpush1.bf16.msra.mxu0 %v5352_v41  ;;  %v5408_v40 = vcombine.low %v860_v25, %v864_v26  ;;  %v7156_v41 = vsub.s32 3, %v6703_v23  ;;  %v653_v25 = vld [vmem:[%s8639_s5 + $0xd0] sm:$0xff] }
 0x1dc   :  { %2260 = vmatprep.subr.bf16.mxu1 %v5359_v42  ;;  %2342 = vmatprep.subr.bf16.mxu0 %v5361_v43  ;;  %v5415_v42 = vcombine.high %v867_v33, %v871_v34  ;;  %v5417_v43 = vcombine.high %v868_v35, %v872_v36 }
 0x1df   :  { %2261 = vmatpush1.bf16.msra.mxu1 %v5358_v48  ;;  %2343 = vmatpush1.bf16.msra.mxu0 %v5360_v49  ;;  %v208_v48 = vrot.slane %v6964_v37, %v7153_v38  ;;  %v212_v49 = vrot.slane %v6964_v37, %v7156_v41  ;;  %v634_v37 = vld [vmem:[%s8639_s5 + $0x38] sm:$0xff] }
 0x1e0   :  { %2262 = vmatprep.subr.bf16.mxu1 %v5367_v50  ;;  %2344 = vmatprep.subr.bf16.mxu0 %v5369_v51  ;;  %v5414_v50 = vcombine.low %v867_v33, %v871_v34  ;;  %v5416_v51 = vcombine.low %v868_v35, %v872_v36  ;;  %v661_v34 = vld [vmem:[%s8639_s5 + $0x110] sm:$0xff] }
 0x1e1   :  { %v665_v36 = vld [vmem:[%s8639_s5 + $0x130] sm:$0xff] }
 0x1e2   :  { %v5211_v44 = vcombine.high %v661_v34, %v665_v36 }
 0x1e3   :  { %2263 = vmatpush1.bf16.msra.mxu1 %v5366_v58  ;;  %2345 = vmatpush1.bf16.msra.mxu0 %v5368_v59  ;;  %v633_v58 = vld [vmem:[%s8639_s5 + $0x30] sm:$0xff]  ;;  %v630_v59 = vld [vmem:[%s8639_s5 + $0x18] sm:$0xff] }
 0x1e4   :  { %2264 = vmatprep.subr.bf16.mxu1 %v5375_v63  ;;  %2346 = vmatprep.subr.bf16.mxu0 %v5377_v0  ;;  %v5180_v14 = vcombine.low %v630_v59, %v634_v37 }
 0x1e7   :  { %2265 = vmatpush1.bf16.msra.mxu1 %v5374_v60  ;;  %2347 = vmatpush1.bf16.msra.mxu0 %v5376_v61 }
 0x1e8   :  { %2266 = vmatprep.subr.bf16.mxu1 %v5383_v62  ;;  %2348 = vmatprep.subr.bf16.mxu0 %v5385_v1  ;;  %v5179_v62 = vcombine.high %v629_v56, %v633_v58  ;;  %v5181_v1 = vcombine.high %v630_v59, %v634_v37  ;;  %v682_v59 = vld [vmem:[%s8639_s5 + $0x1b8] sm:$0xff]  ;;  %v5218_v37 = vcombine.low %v669_v45, %v673_v47 }
 0x1eb   :  { %2267 = vmatpush1.bf16.msra.mxu1 %v5382_v10  ;;  %2349 = vmatpush1.bf16.msra.mxu0 %v5384_v11  ;;  %v642_v10 = vld [vmem:[%s8639_s5 + $0x78] sm:$0xff] }
 0x1ec   :  { %2268 = vmatprep.subr.bf16.mxu1 %v5391_v12  ;;  %2350 = vmatprep.subr.bf16.mxu0 %v5393_v13  ;;  %v5178_v12 = vcombine.low %v629_v56, %v633_v58  ;;  %v5189_v16 = vcombine.high %v638_v9, %v642_v10  ;;  %v5188_v22 = vcombine.low %v638_v9, %v642_v10  ;;  %v681_v56 = vld [vmem:[%s8639_s5 + $0x1b0] sm:$0xff]  ;;  %v698_v10 = vld [vmem:[%s8639_s5 + $0x238] sm:$0xff] }
 0x1ef   :  { %2269 = vmatpush1.bf16.msra.mxu1 %v5390_v18  ;;  %2351 = vmatpush1.bf16.msra.mxu0 %v5392_v19  ;;  %v649_v18 = vld [vmem:[%s8639_s5 + $0xb0] sm:$0xff]  ;;  %v646_v19 = vld [vmem:[%s8639_s5 + $0x98] sm:$0xff] }
 0x1f0   :  { %2270 = vmatprep.subr.bf16.mxu1 %v5399_v20  ;;  %2352 = vmatprep.subr.bf16.mxu0 %v5401_v21  ;;  %v650_v20 = vld [vmem:[%s8639_s5 + $0xb8] sm:$0xff]  ;;  %v5186_v21 = vcombine.low %v637_v5, %v641_v8  ;;  %v5195_v24 = vcombine.high %v645_v17, %v649_v18  ;;  %v697_v5 = vld [vmem:[%s8639_s5 + $0x230] sm:$0xff] }
 0x1f1   :  { %v5197_v26 = vcombine.high %v646_v19, %v650_v20  ;;  %v694_v8 = vld [vmem:[%s8639_s5 + $0x218] sm:$0xff] }
 0x1f3   :  { %2271 = vmatpush1.bf16.msra.mxu1 %v5398_v27  ;;  %2353 = vmatpush1.bf16.msra.mxu0 %v5400_v29  ;;  %v657_v27 = vld [vmem:[%s8639_s5 + $0xf0] sm:$0xff]  ;;  %v654_v29 = vld [vmem:[%s8639_s5 + $0xd8] sm:$0xff] }
 0x1f4   :  { %2272 = vmatprep.subr.bf16.mxu1 %v5407_v31  ;;  %2354 = vmatprep.subr.bf16.mxu0 %v5409_v32  ;;  %v5194_v31 = vcombine.low %v645_v17, %v649_v18  ;;  %v5196_v32 = vcombine.low %v646_v19, %v650_v20  ;;  %v5203_v33 = vcombine.high %v653_v25, %v657_v27  ;;  %v705_v17 = vld [vmem:[%s8639_s5 + $0x270] sm:$0xff]  ;;  %v702_v18 = vld [vmem:[%s8639_s5 + $0x258] sm:$0xff] }
 0x1f5   :  { %v5245_v19 = vcombine.high %v694_v8, %v698_v10  ;;  %v706_v20 = vld [vmem:[%s8639_s5 + $0x278] sm:$0xff] }
 0x1f7   :  { %2273 = vmatpush1.bf16.msra.mxu1 %v5406_v39  ;;  %2355 = vmatpush1.bf16.msra.mxu0 %v5408_v40  ;;  %v662_v39 = vld [vmem:[%s8639_s5 + $0x118] sm:$0xff] }
 0x1f8   :  { %2274 = vmatprep.subr.bf16.mxu1 %v5415_v42  ;;  %2356 = vmatprep.subr.bf16.mxu0 %v5417_v43  ;;  %v666_v40 = vld [vmem:[%s8639_s5 + $0x138] sm:$0xff]  ;;  %v5202_v42 = vcombine.low %v653_v25, %v657_v27  ;;  %v709_v25 = vld [vmem:[%s8639_s5 + $0x290] sm:$0xff] }
 0x1f9   :  { %v612_v57 = vpop.f32.mrb[4].mxu0  ;;  %v5213_v46 = vcombine.high %v662_v39, %v666_v40  ;;  %v710_v27 = vld [vmem:[%s8639_s5 + $0x298] sm:$0xff] }
 0x1fa   :  { %v613_v63 = vadd.f32 %v612_v57, %v208_v48  ;;  %v614_v0 = vpop.f32.mrb[5].mxu0  ;;  %v670_v48 = vld [vmem:[%s8639_s5 + $0x158] sm:$0xff] }
 0x1fb   :  { %v615_v2 = vadd.f32 %v614_v0, %v212_v49  ;;  %v616_v3 = vpop.f32.mrb[6].mxu0  ;;  %2275 = vmatpush1.bf16.msra.mxu1 %v5414_v50  ;;  %2357 = vmatpush1.bf16.msra.mxu0 %v5416_v51  ;;  %v674_v49 = vld [vmem:[%s8639_s5 + $0x178] sm:$0xff]  ;;  %v5210_v50 = vcombine.low %v661_v34, %v665_v36  ;;  %v5212_v51 = vcombine.low %v662_v39, %v666_v40  ;;  %v717_v34 = vld [vmem:[%s8639_s5 + $0x2d0] sm:$0xff] }
 0x1fc   :  { %v621_v60 = vmax.f32 %v613_v63, 0.0  ;;  %v617_v61 = vpop.f32.mrb[7].mxu0  ;;  %2276 = vmatprep.subr.bf16.mxu1 %v5423_v54  ;;  %2358 = vmatprep.subr.bf16.mxu0 %v5425_v55  ;;  %v5219_v54 = vcombine.high %v669_v45, %v673_v47  ;;  %v677_v55 = vld [vmem:[%s8639_s5 + $0x190] sm:$0xff]  ;;  %v678_v57 = vld [vmem:[%s8639_s5 + $0x198] sm:$0xff]  ;;  %v5221_v58 = vcombine.high %v670_v48, %v674_v49  ;;  %v5220_v63 = vcombine.low %v670_v48, %v674_v49 }
 0x1fd   :  { %v622_v4 = vmax.f32 %v615_v2, 0.0  ;;  %v5227_v0 = vcombine.high %v677_v55, %v681_v56  ;;  %v685_v2 = vld [vmem:[%s8639_s5 + $0x1d0] sm:$0xff]  ;;  %v5226_v61 = vcombine.low %v677_v55, %v681_v56  ;;  %v718_v36 = vld [vmem:[%s8639_s5 + $0x2d8] sm:$0xff] }
 0x1fe   :  { %v7200_v13 = vpack.c.bf16 %v621_v60, %v621_v60  ;;  %v689_v3 = vld [vmem:[%s8639_s5 + $0x1f0] sm:$0xff]  ;;  %v690_v60 = vld [vmem:[%s8639_s5 + $0x1f8] sm:$0xff] }
 0x1ff   :  { %v7198_v11 = vpack.c.bf16 %v622_v4, %v622_v4  ;;  %2277 = vmatpush1.bf16.msra.mxu1 %v5422_v6  ;;  %2359 = vmatpush1.bf16.msra.mxu0 %v5424_v7  ;;  %v686_v6 = vld [vmem:[%s8639_s5 + $0x1d8] sm:$0xff]  ;;  %v5229_v7 = vcombine.high %v678_v57, %v682_v59  ;;  %v693_v4 = vld [vmem:[%s8639_s5 + $0x210] sm:$0xff] }
 0x200   :  { %2369 = vmatprep.subr.bf16.mxu1 %v5179_v62  ;;  %2451 = vmatprep.subr.bf16.mxu0 %v5181_v1  ;;  %v5228_v62 = vcombine.low %v678_v57, %v682_v59  ;;  %v5235_v1 = vcombine.high %v685_v2, %v689_v3  ;;  %v5237_v9 = vcombine.high %v686_v6, %v690_v60  ;;  %v722_v40 = vld [vmem:[%s8639_s5 + $0x2f8] sm:$0xff]  ;;  %v725_v45 = vld [vmem:[%s8639_s5 + $0x310] sm:$0xff] }
 0x201   :  { %2278 = vmatprep.mubr.bf16.mxu1 %v7198_v11  ;;  %2360 = vmatprep.mubr.bf16.mxu0 %v7198_v11  ;;  %v726_v47 = vld [vmem:[%s8639_s5 + $0x318] sm:$0xff]  ;;  %v5269_v48 = vcombine.high %v718_v36, %v722_v40  ;;  %v733_v55 = vld [vmem:[%s8639_s5 + $0x350] sm:$0xff] }
 0x202   :  { %2279 = vmatmul.mubr.bf16.vlgmr.msra.gmra.mrb[4].mxu1 %v7200_v13  ;;  %2361 = vmatmul.mubr.bf16.vlgmr.msra.gmra.mrb[8].mxu0 %v7200_v13  ;;  %v730_v49 = vld [vmem:[%s8639_s5 + $0x338] sm:$0xff]  ;;  %v737_v56 = vld [vmem:[%s8639_s5 + $0x370] sm:$0xff] }
 0x203   :  { %2370 = vmatpush1.bf16.msra.mxu1 %v5178_v12  ;;  %2401 = vmatprep.mubr.bf16.mxu1 %v6982_v52  ;;  %v5234_v12 = vcombine.low %v685_v2, %v689_v3  ;;  %v734_v57 = vld [vmem:[%s8639_s5 + $0x358] sm:$0xff]  ;;  %v741_v2 = vld [vmem:[%s8639_s5 + $0x390] sm:$0xff] }
 0x204   :  { %2452 = vmatpush1.bf16.msra.mxu0 %v5180_v14  ;;  %2483 = vmatprep.mubr.bf16.mxu0 %v6982_v52  ;;  %v658_v52 = vld [vmem:[%s8639_s5 + $0xf8] sm:$0xff]  ;;  %v5236_v14 = vcombine.low %v686_v6, %v690_v60  ;;  %v745_v3 = vld [vmem:[%s8639_s5 + $0x3b0] sm:$0xff] }
 0x205   :  { %2371 = vmatprep.subr.bf16.mxu1 %v5187_v15  ;;  %2453 = vmatprep.subr.bf16.mxu0 %v5189_v16  ;;  %v5205_v35 = vcombine.high %v654_v29, %v658_v52  ;;  %v5204_v43 = vcombine.low %v654_v29, %v658_v52  ;;  %v5243_v15 = vcombine.high %v693_v4, %v697_v5  ;;  %v701_v16 = vld [vmem:[%s8639_s5 + $0x250] sm:$0xff]  ;;  %v714_v52 = vld [vmem:[%s8639_s5 + $0x2b8] sm:$0xff] }
 0x206   :  { %v5253_v29 = vcombine.high %v702_v18, %v706_v20  ;;  %v5261_v39 = vcombine.high %v710_v27, %v714_v52  ;;  %v738_v59 = vld [vmem:[%s8639_s5 + $0x378] sm:$0xff] }
 0x207   :  { %2372 = vmatpush1.bf16.msra.mxu1 %v5186_v21  ;;  %v5242_v21 = vcombine.low %v693_v4, %v697_v5  ;;  %v742_v6 = vld [vmem:[%s8639_s5 + $0x398] sm:$0xff]  ;;  %v749_v4 = vld [vmem:[%s8639_s5 + $0x3d0] sm:$0xff] }
 0x208   :  { %2454 = vmatpush1.bf16.msra.mxu0 %v5188_v22  ;;  %2373 = vmatprep.subr.bf16.mxu1 %v5195_v24  ;;  %v5244_v22 = vcombine.low %v694_v8, %v698_v10  ;;  %v5251_v24 = vcombine.high %v701_v16, %v705_v17  ;;  %v746_v60 = vld [vmem:[%s8639_s5 + $0x3b8] sm:$0xff]  ;;  %v753_v5 = vld [vmem:[%s8639_s5 + $0x3f0] sm:$0xff] }
 0x209   :  { %2455 = vmatprep.subr.bf16.mxu0 %v5197_v26  ;;  %v713_v26 = vld [vmem:[%s8639_s5 + $0x2b0] sm:$0xff]  ;;  %v750_v8 = vld [vmem:[%s8639_s5 + $0x3d8] sm:$0xff] }
 0x20a   :  { %v754_v10 = vld [vmem:[%s8639_s5 + $0x3f8] sm:$0xff] }
 0x20b   :  { %2374 = vmatpush1.bf16.msra.mxu1 %v5194_v31  ;;  %v5250_v31 = vcombine.low %v701_v16, %v705_v17  ;;  %v5292_v16 = vcombine.low %v742_v6, %v746_v60  ;;  %v5299_v17 = vcombine.high %v749_v4, %v753_v5 }
 0x20c   :  { %2456 = vmatpush1.bf16.msra.mxu0 %v5196_v32  ;;  %2375 = vmatprep.subr.bf16.mxu1 %v5203_v33  ;;  %v5252_v32 = vcombine.low %v702_v18, %v706_v20  ;;  %v5259_v33 = vcombine.high %v709_v25, %v713_v26  ;;  %v758_v18 = vld [vmem:[%s8639_s5 + $0x418] sm:$0xff] }
 0x20d   :  { %2457 = vmatprep.subr.bf16.mxu0 %v5205_v35  ;;  %v721_v35 = vld [vmem:[%s8639_s5 + $0x2f0] sm:$0xff]  ;;  %v762_v20 = vld [vmem:[%s8639_s5 + $0x438] sm:$0xff] }
 0x20f   :  { %2376 = vmatpush1.bf16.msra.mxu1 %v5202_v42  ;;  %v5258_v42 = vcombine.low %v709_v25, %v713_v26  ;;  %v765_v25 = vld [vmem:[%s8639_s5 + $0x450] sm:$0xff] }
 0x210   :  { %2458 = vmatpush1.bf16.msra.mxu0 %v5204_v43  ;;  %2377 = vmatprep.subr.bf16.mxu1 %v5211_v44  ;;  %v5260_v43 = vcombine.low %v710_v27, %v714_v52  ;;  %v5267_v44 = vcombine.high %v717_v34, %v721_v35  ;;  %v769_v26 = vld [vmem:[%s8639_s5 + $0x470] sm:$0xff]  ;;  %v5309_v27 = vcombine.high %v758_v18, %v762_v20  ;;  %v770_v52 = vld [vmem:[%s8639_s5 + $0x478] sm:$0xff] }
 0x211   :  { %2459 = vmatprep.subr.bf16.mxu0 %v5213_v46  ;;  %v729_v46 = vld [vmem:[%s8639_s5 + $0x330] sm:$0xff] }
 0x213   :  { %2378 = vmatpush1.bf16.msra.mxu1 %v5210_v50  ;;  %v5266_v50 = vcombine.low %v717_v34, %v721_v35  ;;  %v5308_v34 = vcombine.low %v758_v18, %v762_v20  ;;  %v774_v35 = vld [vmem:[%s8639_s5 + $0x498] sm:$0xff] }
 0x214   :  { %2460 = vmatpush1.bf16.msra.mxu0 %v5212_v51  ;;  %2379 = vmatprep.subr.bf16.mxu1 %v5219_v54  ;;  %v5268_v51 = vcombine.low %v718_v36, %v722_v40  ;;  %v5275_v54 = vcombine.high %v725_v45, %v729_v46  ;;  %v778_v36 = vld [vmem:[%s8639_s5 + $0x4b8] sm:$0xff] }
 0x215   :  { %2461 = vmatprep.subr.bf16.mxu0 %v5221_v58  ;;  %v5277_v58 = vcombine.high %v726_v47, %v730_v49  ;;  %v818_v18 = vld [vmem:[%s8639_s5 + $0x5f8] sm:$0xff] }
 0x217   :  { %2380 = vmatpush1.bf16.msra.mxu1 %v5218_v37  ;;  %v5274_v37 = vcombine.low %v725_v45, %v729_v46 }
 0x218   :  { %2462 = vmatpush1.bf16.msra.mxu0 %v5220_v63  ;;  %2381 = vmatprep.subr.bf16.mxu1 %v5227_v0  ;;  %v5276_v63 = vcombine.low %v726_v47, %v730_v49  ;;  %v5283_v0 = vcombine.high %v733_v55, %v737_v56  ;;  %v782_v47 = vld [vmem:[%s8639_s5 + $0x4d8] sm:$0xff] }
 0x219   :  { %2463 = vmatprep.subr.bf16.mxu0 %v5229_v7  ;;  %v5285_v7 = vcombine.high %v734_v57, %v738_v59 }
 0x21b   :  { %2382 = vmatpush1.bf16.msra.mxu1 %v5226_v61  ;;  %v5282_v61 = vcombine.low %v733_v55, %v737_v56  ;;  %v794_v56 = vld [vmem:[%s8639_s5 + $0x538] sm:$0xff] }
 0x21c   :  { %2464 = vmatpush1.bf16.msra.mxu0 %v5228_v62  ;;  %2383 = vmatprep.subr.bf16.mxu1 %v5235_v1  ;;  %v5284_v62 = vcombine.low %v734_v57, %v738_v59  ;;  %v5291_v1 = vcombine.high %v741_v2, %v745_v3  ;;  %v797_v59 = vld [vmem:[%s8639_s5 + $0x550] sm:$0xff] }
 0x21d   :  { %2465 = vmatprep.subr.bf16.mxu0 %v5237_v9  ;;  %v5293_v9 = vcombine.high %v742_v6, %v746_v60  ;;  %v805_v60 = vld [vmem:[%s8639_s5 + $0x590] sm:$0xff] }
 0x21f   :  { %2384 = vmatpush1.bf16.msra.mxu1 %v5234_v12  ;;  %v5290_v12 = vcombine.low %v741_v2, %v745_v3  ;;  %v798_v2 = vld [vmem:[%s8639_s5 + $0x558] sm:$0xff] }
 0x220   :  { %2466 = vmatpush1.bf16.msra.mxu0 %v5236_v14  ;;  %2385 = vmatprep.subr.bf16.mxu1 %v5243_v15  ;;  %v757_v14 = vld [vmem:[%s8639_s5 + $0x410] sm:$0xff]  ;;  %v802_v3 = vld [vmem:[%s8639_s5 + $0x578] sm:$0xff] }
 0x221   :  { %2467 = vmatprep.subr.bf16.mxu0 %v5245_v19  ;;  %v761_v15 = vld [vmem:[%s8639_s5 + $0x430] sm:$0xff]  ;;  %v5301_v19 = vcombine.high %v750_v8, %v754_v10 }
 0x223   :  { %2386 = vmatpush1.bf16.msra.mxu1 %v5242_v21  ;;  %v5298_v21 = vcombine.low %v749_v4, %v753_v5  ;;  %v806_v4 = vld [vmem:[%s8639_s5 + $0x598] sm:$0xff] }
 0x224   :  { %2468 = vmatpush1.bf16.msra.mxu0 %v5244_v22  ;;  %2387 = vmatprep.subr.bf16.mxu1 %v5251_v24  ;;  %v5300_v22 = vcombine.low %v750_v8, %v754_v10  ;;  %v5307_v24 = vcombine.high %v757_v14, %v761_v15  ;;  %v810_v5 = vld [vmem:[%s8639_s5 + $0x5b8] sm:$0xff]  ;;  %v5349_v8 = vcombine.high %v798_v2, %v802_v3 }
 0x225   :  { %2469 = vmatprep.subr.bf16.mxu0 %v5253_v29  ;;  %v766_v29 = vld [vmem:[%s8639_s5 + $0x458] sm:$0xff]  ;;  %v5348_v10 = vcombine.low %v798_v2, %v802_v3  ;;  %v5356_v20 = vcombine.low %v806_v4, %v810_v5 }
 0x226   :  { %v5317_v40 = vcombine.high %v766_v29, %v770_v52  ;;  %v5316_v45 = vcombine.low %v766_v29, %v770_v52 }
 0x227   :  { %2388 = vmatpush1.bf16.msra.mxu1 %v5250_v31  ;;  %v5306_v31 = vcombine.low %v757_v14, %v761_v15  ;;  %v5357_v14 = vcombine.high %v806_v4, %v810_v5  ;;  %v813_v15 = vld [vmem:[%s8639_s5 + $0x5d0] sm:$0xff] }
 0x228   :  { %2470 = vmatpush1.bf16.msra.mxu0 %v5252_v32  ;;  %2389 = vmatprep.subr.bf16.mxu1 %v5259_v33  ;;  %v773_v32 = vld [vmem:[%s8639_s5 + $0x490] sm:$0xff] }
 0x229   :  { %2471 = vmatprep.subr.bf16.mxu0 %v5261_v39  ;;  %v777_v33 = vld [vmem:[%s8639_s5 + $0x4b0] sm:$0xff]  ;;  %v5315_v39 = vcombine.high %v765_v25, %v769_v26 }
 0x22a   :  { %v5323_v46 = vcombine.high %v773_v32, %v777_v33  ;;  %v5322_v49 = vcombine.low %v773_v32, %v777_v33  ;;  %v829_v33 = vld [vmem:[%s8639_s5 + $0x650] sm:$0xff] }
 0x22b   :  { %2390 = vmatpush1.bf16.msra.mxu1 %v5258_v42  ;;  %v5314_v42 = vcombine.low %v765_v25, %v769_v26  ;;  %v825_v25 = vld [vmem:[%s8639_s5 + $0x630] sm:$0xff]  ;;  %v822_v26 = vld [vmem:[%s8639_s5 + $0x618] sm:$0xff] }
 0x22c   :  { %2472 = vmatpush1.bf16.msra.mxu0 %v5260_v43  ;;  %2391 = vmatprep.subr.bf16.mxu1 %v5267_v44  ;;  %v781_v43 = vld [vmem:[%s8639_s5 + $0x4d0] sm:$0xff] }
 0x22d   :  { %2473 = vmatprep.subr.bf16.mxu0 %v5269_v48  ;;  %v785_v44 = vld [vmem:[%s8639_s5 + $0x4f0] sm:$0xff]  ;;  %v5325_v48 = vcombine.high %v774_v35, %v778_v36 }
 0x22e   :  { %v5331_v55 = vcombine.high %v781_v43, %v785_v44 }
 0x22f   :  { %2392 = vmatpush1.bf16.msra.mxu1 %v5266_v50  ;;  %v789_v50 = vld [vmem:[%s8639_s5 + $0x510] sm:$0xff] }
 0x230   :  { %2474 = vmatpush1.bf16.msra.mxu0 %v5268_v51  ;;  %2393 = vmatprep.subr.bf16.mxu1 %v5275_v54  ;;  %v793_v51 = vld [vmem:[%s8639_s5 + $0x530] sm:$0xff]  ;;  %v5324_v54 = vcombine.low %v774_v35, %v778_v36  ;;  %v830_v35 = vld [vmem:[%s8639_s5 + $0x658] sm:$0xff] }
 0x231   :  { %2475 = vmatprep.subr.bf16.mxu0 %v5277_v58  ;;  %v5330_v58 = vcombine.low %v781_v43, %v785_v44  ;;  %v834_v36 = vld [vmem:[%s8639_s5 + $0x678] sm:$0xff]  ;;  %v837_v43 = vld [vmem:[%s8639_s5 + $0x690] sm:$0xff] }
 0x232   :  { %v841_v44 = vld [vmem:[%s8639_s5 + $0x6b0] sm:$0xff] }
 0x233   :  { %2394 = vmatpush1.bf16.msra.mxu1 %v5274_v37  ;;  %v801_v37 = vld [vmem:[%s8639_s5 + $0x570] sm:$0xff] }
 0x234   :  { %2476 = vmatpush1.bf16.msra.mxu0 %v5276_v63  ;;  %2395 = vmatprep.subr.bf16.mxu1 %v5283_v0  ;;  %v5339_v0 = vcombine.high %v789_v50, %v793_v51 }
 0x235   :  { %2477 = vmatprep.subr.bf16.mxu0 %v5285_v7  ;;  %v5338_v7 = vcombine.low %v789_v50, %v793_v51  ;;  %v5380_v50 = vcombine.low %v830_v35, %v834_v36  ;;  %v5387_v51 = vcombine.high %v837_v43, %v841_v44 }
 0x237   :  { %2396 = vmatpush1.bf16.msra.mxu1 %v5282_v61  ;;  %v809_v61 = vld [vmem:[%s8639_s5 + $0x5b0] sm:$0xff] }
 0x238   :  { %2478 = vmatpush1.bf16.msra.mxu0 %v5284_v62  ;;  %2397 = vmatprep.subr.bf16.mxu1 %v5291_v1  ;;  %v5347_v1 = vcombine.high %v797_v59, %v801_v37 }
 0x239   :  { %2479 = vmatprep.subr.bf16.mxu0 %v5293_v9  ;;  %v5346_v9 = vcombine.low %v797_v59, %v801_v37 }
 0x23b   :  { %2398 = vmatpush1.bf16.msra.mxu1 %v5290_v12  ;;  %v5355_v12 = vcombine.high %v805_v60, %v809_v61 }
 0x23c   :  { %2480 = vmatpush1.bf16.msra.mxu0 %v5292_v16  ;;  %2399 = vmatprep.subr.bf16.mxu1 %v5299_v17  ;;  %v817_v16 = vld [vmem:[%s8639_s5 + $0x5f0] sm:$0xff]  ;;  %v814_v17 = vld [vmem:[%s8639_s5 + $0x5d8] sm:$0xff] }
 0x23d   :  { %2481 = vmatprep.subr.bf16.mxu0 %v5301_v19  ;;  %v5354_v19 = vcombine.low %v805_v60, %v809_v61  ;;  %v5362_v29 = vcombine.low %v813_v15, %v817_v16  ;;  %v5364_v52 = vcombine.low %v814_v17, %v818_v18 }
 0x23f   :  { %2400 = vmatpush1.bf16.msra.mxu1 %v5298_v21  ;;  %v5363_v21 = vcombine.high %v813_v15, %v817_v16  ;;  %v874_v15 = vld [vmem:[%s8639_s5 + $0x7b8] sm:$0xff] }
 0x240   :  { %2482 = vmatpush1.bf16.msra.mxu0 %v5300_v22  ;;  %2410 = vmatprep.subr.bf16.mxu1 %v5307_v24  ;;  %v5365_v22 = vcombine.high %v814_v17, %v818_v18  ;;  %v821_v24 = vld [vmem:[%s8639_s5 + $0x610] sm:$0xff] }
 0x241   :  { %2492 = vmatprep.subr.bf16.mxu0 %v5309_v27  ;;  %v826_v27 = vld [vmem:[%s8639_s5 + $0x638] sm:$0xff]  ;;  %v877_v18 = vld [vmem:[%s8639_s5 + $0x7d0] sm:$0xff] }
 0x242   :  { %2402 = vmatmul.mubr.bf16.vlgmr.msra.gmra.mrb[8].mxu1 %v6984_v53  ;;  %v5373_v32 = vcombine.high %v822_v26, %v826_v27 }
 0x243   :  { %2484 = vmatmul.mubr.bf16.vlgmr.msra.gmra.mrb[12].mxu0 %v6984_v53  ;;  %2411 = vmatpush1.bf16.msra.mxu1 %v5306_v31  ;;  %v786_v53 = vld [vmem:[%s8639_s5 + $0x4f8] sm:$0xff]  ;;  %v5371_v31 = vcombine.high %v821_v24, %v825_v25 }
 0x244   :  { %2442 = vmatprep.mubr.bf16.mxu1 %v7198_v11  ;;  %2493 = vmatpush1.bf16.msra.mxu0 %v5308_v34  ;;  %v5333_v57 = vcombine.high %v782_v47, %v786_v53  ;;  %v5332_v63 = vcombine.low %v782_v47, %v786_v53  ;;  %v833_v34 = vld [vmem:[%s8639_s5 + $0x670] sm:$0xff]  ;;  %v842_v47 = vld [vmem:[%s8639_s5 + $0x6b8] sm:$0xff] }
 0x245   :  { %2524 = vmatprep.mubr.bf16.mxu0 %v7198_v11  ;;  %2412 = vmatprep.subr.bf16.mxu1 %v5315_v39  ;;  %v790_v11 = vld [vmem:[%s8639_s5 + $0x518] sm:$0xff]  ;;  %v5370_v39 = vcombine.low %v821_v24, %v825_v25  ;;  %v5378_v53 = vcombine.low %v829_v33, %v833_v34 }
 0x246   :  { %2494 = vmatprep.subr.bf16.mxu0 %v5317_v40  ;;  %v5341_v6 = vcombine.high %v790_v11, %v794_v56  ;;  %v5340_v62 = vcombine.low %v790_v11, %v794_v56  ;;  %v5372_v40 = vcombine.low %v822_v26, %v826_v27  ;;  %v5386_v56 = vcombine.low %v837_v43, %v841_v44  ;;  %v882_v24 = vld [vmem:[%s8639_s5 + $0x7f8] sm:$0xff]  ;;  %v5964_v44 = vld [vmem:[%s8642_s7 + $0x44] ss:$16 sps:$4 sm:$0xff]  }
 0x247   :  { %2413 = vmatpush1.bf16.msra.mxu1 %v5314_v42  ;;  %v5379_v42 = vcombine.high %v829_v33, %v833_v34  ;;  %v5952_v33 = vld [vmem:[%s8642_s7 + $0x4] ss:$16 sps:$4 sm:$0xff]   ;;  %v5955_v34 = vld [vmem:[%s8642_s7 + $0xc] ss:$16 sps:$4 sm:$0xff]   ;;  %v5959_v43 = vld [vmem:[%s8642_s7 + $0x28] ss:$16 sps:$4 sm:$0xff]  }
 0x248   :  { %2495 = vmatpush1.bf16.msra.mxu0 %v5316_v45  ;;  %2414 = vmatprep.subr.bf16.mxu1 %v5323_v46  ;;  %v5381_v45 = vcombine.high %v830_v35, %v834_v36  ;;  %v838_v46 = vld [vmem:[%s8639_s5 + $0x698] sm:$0xff]  ;;  %v5950_v35 = vld [vmem:[%s8642_s7] ss:$16 sps:$4 sm:$0xff]  }
 0x249   :  { %2496 = vmatprep.subr.bf16.mxu0 %v5325_v48  ;;  %v845_v48 = vld [vmem:[%s8639_s5 + $0x6d0] sm:$0xff]  ;;  %v5389_v11 = vcombine.high %v838_v46, %v842_v47  ;;  %v5388_v59 = vcombine.low %v838_v46, %v842_v47  ;;  %v5953_v36 = vld [vmem:[%s8642_s7 + $0x8] ss:$16 sps:$4 sm:$0xff]  }
 0x24a   :  { %v5965_v46 = vld [vmem:[%s8642_s7 + $0x48] ss:$16 sps:$4 sm:$0xff]   ;;  %v5970_v47 = vld [vmem:[%s8642_s7 + $0x64] ss:$16 sps:$4 sm:$0xff]  }
 0x24b   :  { %2415 = vmatpush1.bf16.msra.mxu1 %v5322_v49  ;;  %v849_v49 = vld [vmem:[%s8639_s5 + $0x6f0] sm:$0xff] }
 0x24c   :  { %2497 = vmatpush1.bf16.msra.mxu0 %v5324_v54  ;;  %2416 = vmatprep.subr.bf16.mxu1 %v5331_v55  ;;  %v846_v54 = vld [vmem:[%s8639_s5 + $0x6d8] sm:$0xff]  ;;  %v5395_v37 = vcombine.high %v845_v48, %v849_v49  ;;  %v5394_v3 = vcombine.low %v845_v48, %v849_v49  ;;  %v5968_v48 = vld [vmem:[%s8642_s7 + $0x60] ss:$16 sps:$4 sm:$0xff]  }
 0x24d   :  { %2498 = vmatprep.subr.bf16.mxu0 %v5333_v57  ;;  %v850_v55 = vld [vmem:[%s8639_s5 + $0x6f8] sm:$0xff]  ;;  %v853_v57 = vld [vmem:[%s8639_s5 + $0x710] sm:$0xff] }
 0x24e   :  { %v5397_v2 = vcombine.high %v846_v54, %v850_v55  ;;  %v5396_v60 = vcombine.low %v846_v54, %v850_v55  ;;  %v5971_v49 = vld [vmem:[%s8642_s7 + $0x68] ss:$16 sps:$4 sm:$0xff]   ;;  %v5974_v54 = vld [vmem:[%s8642_s7 + $0x80] ss:$16 sps:$4 sm:$0xff]  }
 0x24f   :  { %2417 = vmatpush1.bf16.msra.mxu1 %v5330_v58  ;;  %v857_v58 = vld [vmem:[%s8639_s5 + $0x730] sm:$0xff]  ;;  %v5977_v55 = vld [vmem:[%s8642_s7 + $0x88] ss:$16 sps:$4 sm:$0xff]  }
 0x250   :  { %2499 = vmatpush1.bf16.msra.mxu0 %v5332_v63  ;;  %2418 = vmatprep.subr.bf16.mxu1 %v5339_v0  ;;  %v854_v63 = vld [vmem:[%s8639_s5 + $0x718] sm:$0xff]  ;;  %v5403_v61 = vcombine.high %v853_v57, %v857_v58  ;;  %v5402_v5 = vcombine.low %v853_v57, %v857_v58  ;;  %v5980_v57 = vld [vmem:[%s8642_s7 + $0xa0] ss:$16 sps:$4 sm:$0xff]  }
 0x251   :  { %2500 = vmatprep.subr.bf16.mxu0 %v5341_v6  ;;  %v858_v0 = vld [vmem:[%s8639_s5 + $0x738] sm:$0xff]  ;;  %v861_v6 = vld [vmem:[%s8639_s5 + $0x750] sm:$0xff] }
 0x252   :  { %v5405_v4 = vcombine.high %v854_v63, %v858_v0  ;;  %v5983_v58 = vld [vmem:[%s8642_s7 + $0xa8] ss:$16 sps:$4 sm:$0xff]  }
 0x253   :  { %2419 = vmatpush1.bf16.msra.mxu1 %v5338_v7  ;;  %v865_v7 = vld [vmem:[%s8639_s5 + $0x770] sm:$0xff] }
 0x254   :  { %2501 = vmatpush1.bf16.msra.mxu0 %v5340_v62  ;;  %2420 = vmatprep.subr.bf16.mxu1 %v5347_v1  ;;  %v862_v62 = vld [vmem:[%s8639_s5 + $0x758] sm:$0xff]  ;;  %v5410_v17 = vcombine.low %v861_v6, %v865_v7 }
 0x255   :  { %2502 = vmatprep.subr.bf16.mxu0 %v5349_v8  ;;  %v866_v1 = vld [vmem:[%s8639_s5 + $0x778] sm:$0xff]  ;;  %v869_v8 = vld [vmem:[%s8639_s5 + $0x790] sm:$0xff] }
 0x256   :  { %v5413_v16 = vcombine.high %v862_v62, %v866_v1 }
 0x257   :  { %2421 = vmatpush1.bf16.msra.mxu1 %v5346_v9  ;;  %v873_v9 = vld [vmem:[%s8639_s5 + $0x7b0] sm:$0xff] }
 0x258   :  { %2503 = vmatpush1.bf16.msra.mxu0 %v5348_v10  ;;  %2422 = vmatprep.subr.bf16.mxu1 %v5355_v12  ;;  %v5404_v10 = vcombine.low %v854_v63, %v858_v0  ;;  %v5411_v12 = vcombine.high %v861_v6, %v865_v7  ;;  %v5418_v26 = vcombine.low %v869_v8, %v873_v9  ;;  %v5986_v63 = vld [vmem:[%s8642_s7 + $0xc0] ss:$16 sps:$4 sm:$0xff]   ;;  %v5989_v0 = vld [vmem:[%s8642_s7 + $0xc8] ss:$16 sps:$4 sm:$0xff]  }
 0x259   :  { %2504 = vmatprep.subr.bf16.mxu0 %v5357_v14  ;;  %v870_v14 = vld [vmem:[%s8639_s5 + $0x798] sm:$0xff]  ;;  %v5992_v6 = vld [vmem:[%s8642_s7 + $0xe0] ss:$16 sps:$4 sm:$0xff]  }
 0x25a   :  { %v5421_v25 = vcombine.high %v870_v14, %v874_v15  ;;  %v5420_v27 = vcombine.low %v870_v14, %v874_v15  ;;  %v5995_v7 = vld [vmem:[%s8642_s7 + $0xe8] ss:$16 sps:$4 sm:$0xff]   ;;  %v6010_v14 = vld [vmem:[%s8642_s7 + $0x140] ss:$16 sps:$4 sm:$0xff]  }
 0x25b   :  { %2423 = vmatpush1.bf16.msra.mxu1 %v5354_v19  ;;  %v881_v19 = vld [vmem:[%s8639_s5 + $0x7f0] sm:$0xff]  ;;  %v6013_v15 = vld [vmem:[%s8642_s7 + $0x148] ss:$16 sps:$4 sm:$0xff]  }
 0x25c   :  { %2505 = vmatpush1.bf16.msra.mxu0 %v5356_v20  ;;  %2424 = vmatprep.subr.bf16.mxu1 %v5363_v21  ;;  %v5412_v20 = vcombine.low %v862_v62, %v866_v1  ;;  %v5419_v21 = vcombine.high %v869_v8, %v873_v9  ;;  %v5998_v62 = vld [vmem:[%s8642_s7 + $0x100] ss:$16 sps:$4 sm:$0xff]   ;;  %v6001_v1 = vld [vmem:[%s8642_s7 + $0x108] ss:$16 sps:$4 sm:$0xff]  }
 0x25d   :  { %2506 = vmatprep.subr.bf16.mxu0 %v5365_v22  ;;  %v878_v22 = vld [vmem:[%s8639_s5 + $0x7d8] sm:$0xff]  ;;  %v6004_v8 = vld [vmem:[%s8642_s7 + $0x120] ss:$16 sps:$4 sm:$0xff]  }
 0x25e   :  { %v6007_v9 = vld [vmem:[%s8642_s7 + $0x128] ss:$16 sps:$4 sm:$0xff]  }
 0x25f   :  { %2425 = vmatpush1.bf16.msra.mxu1 %v5362_v29  ;;  %v5427_v29 = vcombine.high %v877_v18, %v881_v19 }
 0x260   :  { %2507 = vmatpush1.bf16.msra.mxu0 %v5364_v52  ;;  %2426 = vmatprep.subr.bf16.mxu1 %v5371_v31  ;;  %v5429_v52 = vcombine.high %v878_v22, %v882_v24  ;;  %v5426_v31 = vcombine.low %v877_v18, %v881_v19  ;;  %v6016_v18 = vld [vmem:[%s8642_s7 + $0x160] ss:$16 sps:$4 sm:$0xff]   ;;  %v6019_v19 = vld [vmem:[%s8642_s7 + $0x168] ss:$16 sps:$4 sm:$0xff]  }
 0x261   :  { %2508 = vmatprep.subr.bf16.mxu0 %v5373_v32  ;;  %v5428_v32 = vcombine.low %v878_v22, %v882_v24  ;;  %v6022_v22 = vld [vmem:[%s8642_s7 + $0x180] ss:$16 sps:$4 sm:$0xff]   ;;  %v6025_v24 = vld [vmem:[%s8642_s7 + $0x188] ss:$16 sps:$4 sm:$0xff]  }
 0x263   :  { %2427 = vmatpush1.bf16.msra.mxu1 %v5370_v39  ;;  %v5958_v39 = vld [vmem:[%s8642_s7 + $0x24] ss:$16 sps:$4 sm:$0xff]  }
 0x264   :  { %2509 = vmatpush1.bf16.msra.mxu0 %v5372_v40  ;;  %2428 = vmatprep.subr.bf16.mxu1 %v5379_v42  ;;  %v5961_v40 = vld [vmem:[%s8642_s7 + $0x2c] ss:$16 sps:$4 sm:$0xff]   ;;  %v5956_v42 = vld [vmem:[%s8642_s7 + $0x20] ss:$16 sps:$4 sm:$0xff]  }
 0x265   :  { %2510 = vmatprep.subr.bf16.mxu0 %v5381_v45  ;;  %v5962_v45 = vld [vmem:[%s8642_s7 + $0x40] ss:$16 sps:$4 sm:$0xff]  }
 0x267   :  { %2429 = vmatpush1.bf16.msra.mxu1 %v5378_v53  ;;  %v5973_v53 = vld [vmem:[%s8642_s7 + $0x6c] ss:$16 sps:$4 sm:$0xff]  }
 0x268   :  { %2511 = vmatpush1.bf16.msra.mxu0 %v5380_v50  ;;  %2430 = vmatprep.subr.bf16.mxu1 %v5387_v51  ;;  %v5976_v50 = vld [vmem:[%s8642_s7 + $0x84] ss:$16 sps:$4 sm:$0xff]   ;;  %v5979_v51 = vld [vmem:[%s8642_s7 + $0x8c] ss:$16 sps:$4 sm:$0xff]  }
 0x269   :  { %2512 = vmatprep.subr.bf16.mxu0 %v5389_v11  ;;  %v5982_v11 = vld [vmem:[%s8642_s7 + $0xa4] ss:$16 sps:$4 sm:$0xff]  }
 0x26b   :  { %2431 = vmatpush1.bf16.msra.mxu1 %v5386_v56  ;;  %v5985_v56 = vld [vmem:[%s8642_s7 + $0xac] ss:$16 sps:$4 sm:$0xff]  }
 0x26c   :  { %2513 = vmatpush1.bf16.msra.mxu0 %v5388_v59  ;;  %2432 = vmatprep.subr.bf16.mxu1 %v5395_v37  ;;  %v5988_v59 = vld [vmem:[%s8642_s7 + $0xc4] ss:$16 sps:$4 sm:$0xff]   ;;  %v5991_v37 = vld [vmem:[%s8642_s7 + $0xcc] ss:$16 sps:$4 sm:$0xff]  }
 0x26d   :  { %2514 = vmatprep.subr.bf16.mxu0 %v5397_v2  ;;  %v5994_v2 = vld [vmem:[%s8642_s7 + $0xe4] ss:$16 sps:$4 sm:$0xff]  }
 0x26f   :  { %2433 = vmatpush1.bf16.msra.mxu1 %v5394_v3  ;;  %v5997_v3 = vld [vmem:[%s8642_s7 + $0xec] ss:$16 sps:$4 sm:$0xff]  }
 0x270   :  { %2515 = vmatpush1.bf16.msra.mxu0 %v5396_v60  ;;  %2434 = vmatprep.subr.bf16.mxu1 %v5403_v61  ;;  %v6000_v60 = vld [vmem:[%s8642_s7 + $0x104] ss:$16 sps:$4 sm:$0xff]   ;;  %v6003_v61 = vld [vmem:[%s8642_s7 + $0x10c] ss:$16 sps:$4 sm:$0xff]  }
 0x271   :  { %2516 = vmatprep.subr.bf16.mxu0 %v5405_v4  ;;  %v6006_v4 = vld [vmem:[%s8642_s7 + $0x124] ss:$16 sps:$4 sm:$0xff]  }
 0x273   :  { %2435 = vmatpush1.bf16.msra.mxu1 %v5402_v5  ;;  %v6009_v5 = vld [vmem:[%s8642_s7 + $0x12c] ss:$16 sps:$4 sm:$0xff]  }
 0x274   :  { %2517 = vmatpush1.bf16.msra.mxu0 %v5404_v10  ;;  %2436 = vmatprep.subr.bf16.mxu1 %v5411_v12  ;;  %v6012_v10 = vld [vmem:[%s8642_s7 + $0x144] ss:$16 sps:$4 sm:$0xff]   ;;  %v6015_v12 = vld [vmem:[%s8642_s7 + $0x14c] ss:$16 sps:$4 sm:$0xff]  }
 0x275   :  { %2518 = vmatprep.subr.bf16.mxu0 %v5413_v16  ;;  %v6018_v16 = vld [vmem:[%s8642_s7 + $0x164] ss:$16 sps:$4 sm:$0xff]  }
 0x277   :  { %2437 = vmatpush1.bf16.msra.mxu1 %v5410_v17  ;;  %v6021_v17 = vld [vmem:[%s8642_s7 + $0x16c] ss:$16 sps:$4 sm:$0xff]  }
 0x278   :  { %2519 = vmatpush1.bf16.msra.mxu0 %v5412_v20  ;;  %2438 = vmatprep.subr.bf16.mxu1 %v5419_v21  ;;  %v6024_v20 = vld [vmem:[%s8642_s7 + $0x184] ss:$16 sps:$4 sm:$0xff]   ;;  %v6027_v21 = vld [vmem:[%s8642_s7 + $0x18c] ss:$16 sps:$4 sm:$0xff]  }
 0x279   :  { %2520 = vmatprep.subr.bf16.mxu0 %v5421_v25  ;;  %v6030_v25 = vld [vmem:[%s8642_s7 + $0x1a4] ss:$16 sps:$4 sm:$0xff]  }
 0x27b   :  { %2439 = vmatpush1.bf16.msra.mxu1 %v5418_v26  ;;  %v6033_v26 = vld [vmem:[%s8642_s7 + $0x1ac] ss:$16 sps:$4 sm:$0xff]  }
 0x27c   :  { %2521 = vmatpush1.bf16.msra.mxu0 %v5420_v27  ;;  %2440 = vmatprep.subr.bf16.mxu1 %v5427_v29  ;;  %v6028_v27 = vld [vmem:[%s8642_s7 + $0x1a0] ss:$16 sps:$4 sm:$0xff]   ;;  %v6031_v29 = vld [vmem:[%s8642_s7 + $0x1a8] ss:$16 sps:$4 sm:$0xff]  }
 0x27d   :  { %2522 = vmatprep.subr.bf16.mxu0 %v5429_v52  ;;  %v6036_v52 = vld [vmem:[%s8642_s7 + $0x1c4] ss:$16 sps:$4 sm:$0xff]  }
 0x27f   :  { %2441 = vmatpush1.bf16.msra.mxu1 %v5426_v31  ;;  %v6039_v31 = vld [vmem:[%s8642_s7 + $0x1cc] ss:$16 sps:$4 sm:$0xff]  }
 0x280   :  { %2523 = vmatpush1.bf16.msra.mxu0 %v5428_v32  ;;  %4107 = vmatprep.subr.bf16.mxu1 %v5952_v33  ;;  %v6034_v32 = vld [vmem:[%s8642_s7 + $0x1c0] ss:$16 sps:$4 sm:$0xff]   ;;  %v6037_v33 = vld [vmem:[%s8642_s7 + $0x1c8] ss:$16 sps:$4 sm:$0xff]  }
 0x281   :  { %4271 = vmatprep.subr.bf16.mxu0 %v5955_v34  ;;  %v6042_v34 = vld [vmem:[%s8642_s7 + $0x1e4] ss:$16 sps:$4 sm:$0xff]  }
 0x282   :  { %2443 = vmatmul.mubr.bf16.vlgmr.msra.gmra.mrb[8].mxu1 %v7200_v13 }
 0x283   :  { %2525 = vmatmul.mubr.bf16.vlgmr.msra.gmra.mrb[12].mxu0 %v7200_v13  ;;  %4108 = vmatpush1.bf16.msra.mxu1 %v5950_v35  ;;  %v5967_v13 = vld [vmem:[%s8642_s7 + $0x4c] ss:$16 sps:$4 sm:$0xff]  }
 0x284   :  { %4272 = vmatpush1.bf16.msra.mxu0 %v5953_v36  ;;  %4109 = vmatprep.subr.bf16.mxu1 %v5958_v39  ;;  %v6045_v35 = vld [vmem:[%s8642_s7 + $0x1ec] ss:$16 sps:$4 sm:$0xff]   ;;  %v6040_v36 = vld [vmem:[%s8642_s7 + $0x1e0] ss:$16 sps:$4 sm:$0xff]   ;;  %v6043_v39 = vld [vmem:[%s8642_s7 + $0x1e8] ss:$16 sps:$4 sm:$0xff]  }
 0x285   :  { %4273 = vmatprep.subr.bf16.mxu0 %v5961_v40  ;;  %v6048_v40 = vld [vmem:[%s8642_s7 + $0x204] ss:$16 sps:$4 sm:$0xff]  }
 0x287   :  { %4110 = vmatpush1.bf16.msra.mxu1 %v5956_v42  ;;  %v6051_v42 = vld [vmem:[%s8642_s7 + $0x20c] ss:$16 sps:$4 sm:$0xff]  }
 0x288   :  { %4274 = vmatpush1.bf16.msra.mxu0 %v5959_v43  ;;  %4111 = vmatprep.subr.bf16.mxu1 %v5964_v44  ;;  %v7775_v43 = vld [vmem:[%s8643_s6] sm:$0xff] }
 0x289   :  { %4275 = vmatprep.subr.bf16.mxu0 %v5967_v13  ;;  %v888_v44 = vrot.slane %v7775_v43, %v6712_v28  ;;  %v892_v13 = vrot.slane %v7775_v43, %v6718_v30 }
 0x28b   :  { %4112 = vmatpush1.bf16.msra.mxu1 %v5962_v45  ;;  %v900_v45 = vrot.slane %v7775_v43, %v7156_v41 }
 0x28c   :  { %4276 = vmatpush1.bf16.msra.mxu0 %v5965_v46  ;;  %4113 = vmatprep.subr.bf16.mxu1 %v5970_v47 }
 0x28d   :  { %4277 = vmatprep.subr.bf16.mxu0 %v5973_v53 }
 0x28f   :  { %4114 = vmatpush1.bf16.msra.mxu1 %v5968_v48 }
 0x290   :  { %4278 = vmatpush1.bf16.msra.mxu0 %v5971_v49  ;;  %4115 = vmatprep.subr.bf16.mxu1 %v5976_v50 }
 0x291   :  { %4279 = vmatprep.subr.bf16.mxu0 %v5979_v51 }
 0x293   :  { %4116 = vmatpush1.bf16.msra.mxu1 %v5974_v54 }
 0x294   :  { %4280 = vmatpush1.bf16.msra.mxu0 %v5977_v55  ;;  %4117 = vmatprep.subr.bf16.mxu1 %v5982_v11 }
 0x295   :  { %4281 = vmatprep.subr.bf16.mxu0 %v5985_v56 }
 0x297   :  { %4118 = vmatpush1.bf16.msra.mxu1 %v5980_v57 }
 0x298   :  { %4282 = vmatpush1.bf16.msra.mxu0 %v5983_v58  ;;  %4119 = vmatprep.subr.bf16.mxu1 %v5988_v59 }
 0x299   :  { %4283 = vmatprep.subr.bf16.mxu0 %v5991_v37 }
 0x29b   :  { %4120 = vmatpush1.bf16.msra.mxu1 %v5986_v63  ;;  %v6046_v63 = vld [vmem:[%s8642_s7 + $0x200] ss:$16 sps:$4 sm:$0xff]  }
 0x29c   :  { %4284 = vmatpush1.bf16.msra.mxu0 %v5989_v0  ;;  %4121 = vmatprep.subr.bf16.mxu1 %v5994_v2  ;;  %v6049_v0 = vld [vmem:[%s8642_s7 + $0x208] ss:$16 sps:$4 sm:$0xff]  }
 0x29d   :  { %4285 = vmatprep.subr.bf16.mxu0 %v5997_v3  ;;  %v6054_v3 = vld [vmem:[%s8642_s7 + $0x224] ss:$16 sps:$4 sm:$0xff]  }
 0x29f   :  { %4122 = vmatpush1.bf16.msra.mxu1 %v5992_v6  ;;  %v6057_v6 = vld [vmem:[%s8642_s7 + $0x22c] ss:$16 sps:$4 sm:$0xff]  }
 0x2a0   :  { %4286 = vmatpush1.bf16.msra.mxu0 %v5995_v7  ;;  %4123 = vmatprep.subr.bf16.mxu1 %v6000_v60  ;;  %v6052_v60 = vld [vmem:[%s8642_s7 + $0x220] ss:$16 sps:$4 sm:$0xff]  }
 0x2a1   :  { %4287 = vmatprep.subr.bf16.mxu0 %v6003_v61  ;;  %v6055_v61 = vld [vmem:[%s8642_s7 + $0x228] ss:$16 sps:$4 sm:$0xff]  }
 0x2a3   :  { %4124 = vmatpush1.bf16.msra.mxu1 %v5998_v62  ;;  %v6060_v62 = vld [vmem:[%s8642_s7 + $0x244] ss:$16 sps:$4 sm:$0xff]  }
 0x2a4   :  { %4288 = vmatpush1.bf16.msra.mxu0 %v6001_v1  ;;  %4125 = vmatprep.subr.bf16.mxu1 %v6006_v4  ;;  %v6063_v1 = vld [vmem:[%s8642_s7 + $0x24c] ss:$16 sps:$4 sm:$0xff]   ;;  %v6058_v4 = vld [vmem:[%s8642_s7 + $0x240] ss:$16 sps:$4 sm:$0xff]  }
 0x2a5   :  { %4289 = vmatprep.subr.bf16.mxu0 %v6009_v5  ;;  %v6061_v5 = vld [vmem:[%s8642_s7 + $0x248] ss:$16 sps:$4 sm:$0xff]  }
 0x2a7   :  { %4126 = vmatpush1.bf16.msra.mxu1 %v6004_v8  ;;  %v6066_v8 = vld [vmem:[%s8642_s7 + $0x264] ss:$16 sps:$4 sm:$0xff]  }
 0x2a8   :  { %4290 = vmatpush1.bf16.msra.mxu0 %v6007_v9  ;;  %4127 = vmatprep.subr.bf16.mxu1 %v6012_v10  ;;  %v6069_v9 = vld [vmem:[%s8642_s7 + $0x26c] ss:$16 sps:$4 sm:$0xff]   ;;  %v6064_v10 = vld [vmem:[%s8642_s7 + $0x260] ss:$16 sps:$4 sm:$0xff]  }
 0x2a9   :  { %4291 = vmatprep.subr.bf16.mxu0 %v6015_v12  ;;  %v6067_v12 = vld [vmem:[%s8642_s7 + $0x268] ss:$16 sps:$4 sm:$0xff]  }
 0x2ab   :  { %4128 = vmatpush1.bf16.msra.mxu1 %v6010_v14  ;;  %v6072_v14 = vld [vmem:[%s8642_s7 + $0x284] ss:$16 sps:$4 sm:$0xff]  }
 0x2ac   :  { %4292 = vmatpush1.bf16.msra.mxu0 %v6013_v15  ;;  %4129 = vmatprep.subr.bf16.mxu1 %v6018_v16  ;;  %v6075_v15 = vld [vmem:[%s8642_s7 + $0x28c] ss:$16 sps:$4 sm:$0xff]   ;;  %v6070_v16 = vld [vmem:[%s8642_s7 + $0x280] ss:$16 sps:$4 sm:$0xff]  }
 0x2ad   :  { %4293 = vmatprep.subr.bf16.mxu0 %v6021_v17  ;;  %v6073_v17 = vld [vmem:[%s8642_s7 + $0x288] ss:$16 sps:$4 sm:$0xff]  }
 0x2af   :  { %4130 = vmatpush1.bf16.msra.mxu1 %v6016_v18  ;;  %v6078_v18 = vld [vmem:[%s8642_s7 + $0x2a4] ss:$16 sps:$4 sm:$0xff]  }
 0x2b0   :  { %4294 = vmatpush1.bf16.msra.mxu0 %v6019_v19  ;;  %4131 = vmatprep.subr.bf16.mxu1 %v6024_v20  ;;  %v6081_v19 = vld [vmem:[%s8642_s7 + $0x2ac] ss:$16 sps:$4 sm:$0xff]   ;;  %v6076_v20 = vld [vmem:[%s8642_s7 + $0x2a0] ss:$16 sps:$4 sm:$0xff]  }
 0x2b1   :  { %4295 = vmatprep.subr.bf16.mxu0 %v6027_v21  ;;  %v6079_v21 = vld [vmem:[%s8642_s7 + $0x2a8] ss:$16 sps:$4 sm:$0xff]  }
 0x2b3   :  { %4132 = vmatpush1.bf16.msra.mxu1 %v6022_v22  ;;  %v6084_v22 = vld [vmem:[%s8642_s7 + $0x2c4] ss:$16 sps:$4 sm:$0xff]  }
 0x2b4   :  { %4296 = vmatpush1.bf16.msra.mxu0 %v6025_v24  ;;  %4133 = vmatprep.subr.bf16.mxu1 %v6030_v25  ;;  %v6087_v24 = vld [vmem:[%s8642_s7 + $0x2cc] ss:$16 sps:$4 sm:$0xff]   ;;  %v6082_v25 = vld [vmem:[%s8642_s7 + $0x2c0] ss:$16 sps:$4 sm:$0xff]  }
 0x2b5   :  { %4297 = vmatprep.subr.bf16.mxu0 %v6033_v26  ;;  %v6085_v26 = vld [vmem:[%s8642_s7 + $0x2c8] ss:$16 sps:$4 sm:$0xff]  }
 0x2b7   :  { %4134 = vmatpush1.bf16.msra.mxu1 %v6028_v27  ;;  %v6090_v27 = vld [vmem:[%s8642_s7 + $0x2e4] ss:$16 sps:$4 sm:$0xff]  }
 0x2b8   :  { %4298 = vmatpush1.bf16.msra.mxu0 %v6031_v29  ;;  %4135 = vmatprep.subr.bf16.mxu1 %v6036_v52  ;;  %v6093_v29 = vld [vmem:[%s8642_s7 + $0x2ec] ss:$16 sps:$4 sm:$0xff]   ;;  %v6088_v52 = vld [vmem:[%s8642_s7 + $0x2e0] ss:$16 sps:$4 sm:$0xff]  }
 0x2b9   :  { %4299 = vmatprep.subr.bf16.mxu0 %v6039_v31  ;;  %v6091_v31 = vld [vmem:[%s8642_s7 + $0x2e8] ss:$16 sps:$4 sm:$0xff]  }
 0x2bb   :  { %4136 = vmatpush1.bf16.msra.mxu1 %v6034_v32  ;;  %v6096_v32 = vld [vmem:[%s8642_s7 + $0x304] ss:$16 sps:$4 sm:$0xff]  }
 0x2bc   :  { %4300 = vmatpush1.bf16.msra.mxu0 %v6037_v33  ;;  %4137 = vmatprep.subr.bf16.mxu1 %v6042_v34  ;;  %v6099_v33 = vld [vmem:[%s8642_s7 + $0x30c] ss:$16 sps:$4 sm:$0xff]   ;;  %v6094_v34 = vld [vmem:[%s8642_s7 + $0x300] ss:$16 sps:$4 sm:$0xff]  }
 0x2bd   :  { %4301 = vmatprep.subr.bf16.mxu0 %v6045_v35  ;;  %v6097_v35 = vld [vmem:[%s8642_s7 + $0x308] ss:$16 sps:$4 sm:$0xff]  }
 0x2bf   :  { %4138 = vmatpush1.bf16.msra.mxu1 %v6040_v36  ;;  %v6102_v36 = vld [vmem:[%s8642_s7 + $0x324] ss:$16 sps:$4 sm:$0xff]  }
 0x2c0   :  { %4302 = vmatpush1.bf16.msra.mxu0 %v6043_v39  ;;  %4148 = vmatprep.subr.bf16.mxu1 %v6048_v40  ;;  %v6105_v39 = vld [vmem:[%s8642_s7 + $0x32c] ss:$16 sps:$4 sm:$0xff]   ;;  %v6100_v40 = vld [vmem:[%s8642_s7 + $0x320] ss:$16 sps:$4 sm:$0xff]  }
 0x2c1   :  { %4312 = vmatprep.subr.bf16.mxu0 %v6051_v42  ;;  %v6103_v42 = vld [vmem:[%s8642_s7 + $0x328] ss:$16 sps:$4 sm:$0xff]  }
 0x2d5   :  { %v2280_v46 = vpop.f32.mrb[4].mxu1  ;;  %v7783_v47 = vpop.f32.mrb[8].mxu0 }
 0x2d6   :  { %v5789_v53 = vadd.f32 %v2280_v46, %v888_v44  ;;  %v2282_v48 = vpop.f32.mrb[5].mxu1  ;;  %v2364_v49 = vpop.f32.mrb[9].mxu0  ;;  %v6108_v44 = vld [vmem:[%s8642_s7 + $0x344] ss:$16 sps:$4 sm:$0xff]   ;;  %v6109_v46 = vld [vmem:[%s8642_s7 + $0x348] ss:$16 sps:$4 sm:$0xff]  }
 0x2d7   :  { %v5790_v50 = vadd.f32 %v2282_v48, %v892_v13  ;;  %v5792_v51 = vadd.f32 %v2364_v49, %v900_v45  ;;  %v2284_v54 = vpop.f32.mrb[6].mxu1  ;;  %v2366_v55 = vpop.f32.mrb[10].mxu0  ;;  %v6111_v13 = vld [vmem:[%s8642_s7 + $0x34c] ss:$16 sps:$4 sm:$0xff]   ;;  %v6106_v45 = vld [vmem:[%s8642_s7 + $0x340] ss:$16 sps:$4 sm:$0xff]  }
 0x2d8   :  { %v2533_v11 = vmax.f32 %v5789_v53, 0.0  ;;  %v2285_v56 = vpop.f32.mrb[7].mxu1  ;;  %v2367_v57 = vpop.f32.mrb[11].mxu0  ;;  %v6114_v53 = vld [vmem:[%s8642_s7 + $0x364] ss:$16 sps:$4 sm:$0xff]  }
 0x2d9   :  { %v2534_v58 = vmax.f32 %v5790_v50, 0.0  ;;  %v2536_v59 = vmax.f32 %v5792_v51, 0.0  ;;  %v6117_v48 = vld [vmem:[%s8642_s7 + $0x36c] ss:$16 sps:$4 sm:$0xff]   ;;  %v6112_v49 = vld [vmem:[%s8642_s7 + $0x360] ss:$16 sps:$4 sm:$0xff]  }
 0x2da   :  { %v2541_v2 = vpack.c.bf16 %v2533_v11, %v2533_v11  ;;  %v6115_v50 = vld [vmem:[%s8642_s7 + $0x368] ss:$16 sps:$4 sm:$0xff]   ;;  %v6120_v51 = vld [vmem:[%s8642_s7 + $0x384] ss:$16 sps:$4 sm:$0xff]   ;;  %v6123_v54 = vld [vmem:[%s8642_s7 + $0x38c] ss:$16 sps:$4 sm:$0xff]  }
 0x2db   :  { %v2542_v37 = vpack.c.bf16 %v2534_v58, %v2534_v58  ;;  %v2544_v7 = vpack.c.bf16 %v2536_v59, %v2536_v59  ;;  %v6118_v55 = vld [vmem:[%s8642_s7 + $0x380] ss:$16 sps:$4 sm:$0xff]   ;;  %v6121_v11 = vld [vmem:[%s8642_s7 + $0x388] ss:$16 sps:$4 sm:$0xff]   ;;  %v6126_v56 = vld [vmem:[%s8642_s7 + $0x3a4] ss:$16 sps:$4 sm:$0xff]  }
 0x2dc   :  { %v6129_v57 = vld [vmem:[%s8642_s7 + $0x3ac] ss:$16 sps:$4 sm:$0xff]   ;;  %v6124_v58 = vld [vmem:[%s8642_s7 + $0x3a0] ss:$16 sps:$4 sm:$0xff]   ;;  %v6127_v59 = vld [vmem:[%s8642_s7 + $0x3a8] ss:$16 sps:$4 sm:$0xff]  }
 0x2dd   :  { %4139 = vmatprep.mubr.bf16.mxu1 %v2542_v37  ;;  %4303 = vmatprep.mubr.bf16.mxu0 %v2542_v37  ;;  %v896_v37 = vrot.slane %v7775_v43, %v7153_v38 }
 0x2de   :  { %4140 = vmatmul.mubr.bf16.vlgmr.msra.gmra.mrb[12].mxu1 %v2541_v2  ;;  %4304 = vmatmul.mubr.bf16.vlgmr.msra.gmra.mrb[16].mxu0 %v2541_v2  ;;  %v6130_v2 = vld [vmem:[%s8642_s7 + $0x3c0] ss:$16 sps:$4 sm:$0xff]  }
 0x2df   :  { %4149 = vmatpush1.bf16.msra.mxu1 %v6046_v63  ;;  %4313 = vmatpush1.bf16.msra.mxu0 %v6049_v0  ;;  %v6132_v63 = vld [vmem:[%s8642_s7 + $0x3c4] ss:$16 sps:$4 sm:$0xff]   ;;  %v6135_v0 = vld [vmem:[%s8642_s7 + $0x3cc] ss:$16 sps:$4 sm:$0xff]  }
 0x2e0   :  { %4180 = vmatprep.mubr.bf16.mxu1 %v2544_v7  ;;  %4344 = vmatprep.mubr.bf16.mxu0 %v2544_v7  ;;  %v6138_v7 = vld [vmem:[%s8642_s7 + $0x3e4] ss:$16 sps:$4 sm:$0xff]  }
 0x2e1   :  { %4150 = vmatprep.subr.bf16.mxu1 %v6054_v3  ;;  %4314 = vmatprep.subr.bf16.mxu0 %v6057_v6  ;;  %v6133_v3 = vld [vmem:[%s8642_s7 + $0x3c8] ss:$16 sps:$4 sm:$0xff]   ;;  %v5791_v6 = vadd.f32 %v7783_v47, %v896_v37  ;;  %v6208_v37 = vld [vmem:[%s8642_s7 + $0x560] ss:$16 sps:$4 sm:$0xff]  }
 0x2e2   :  { %v6139_v47 = vld [vmem:[%s8642_s7 + $0x3e8] ss:$16 sps:$4 sm:$0xff]  }
 0x2e3   :  { %4151 = vmatpush1.bf16.msra.mxu1 %v6052_v60  ;;  %4315 = vmatpush1.bf16.msra.mxu0 %v6055_v61  ;;  %v6141_v60 = vld [vmem:[%s8642_s7 + $0x3ec] ss:$16 sps:$4 sm:$0xff]   ;;  %v6136_v61 = vld [vmem:[%s8642_s7 + $0x3e0] ss:$16 sps:$4 sm:$0xff]  }
 0x2e4   :  { %4152 = vmatprep.subr.bf16.mxu1 %v6060_v62  ;;  %4316 = vmatprep.subr.bf16.mxu0 %v6063_v1  ;;  %v2535_v62 = vmax.f32 %v5791_v6, 0.0  ;;  %v6144_v1 = vld [vmem:[%s8642_s7 + $0x404] ss:$16 sps:$4 sm:$0xff]   ;;  %v6217_v6 = vld [vmem:[%s8642_s7 + $0x588] ss:$16 sps:$4 sm:$0xff]  }
 0x2e7   :  { %4153 = vmatpush1.bf16.msra.mxu1 %v6058_v4  ;;  %4317 = vmatpush1.bf16.msra.mxu0 %v6061_v5  ;;  %v6147_v4 = vld [vmem:[%s8642_s7 + $0x40c] ss:$16 sps:$4 sm:$0xff]   ;;  %v6142_v5 = vld [vmem:[%s8642_s7 + $0x400] ss:$16 sps:$4 sm:$0xff]  }
 0x2e8   :  { %4154 = vmatprep.subr.bf16.mxu1 %v6066_v8  ;;  %4318 = vmatprep.subr.bf16.mxu0 %v6069_v9  ;;  %v6145_v8 = vld [vmem:[%s8642_s7 + $0x408] ss:$16 sps:$4 sm:$0xff]   ;;  %v2543_v9 = vpack.c.bf16 %v2535_v62, %v2535_v62 }
 0x2e9   :  { %v6223_v62 = vld [vmem:[%s8642_s7 + $0x5a8] ss:$16 sps:$4 sm:$0xff]  }
 0x2eb   :  { %4155 = vmatpush1.bf16.msra.mxu1 %v6064_v10  ;;  %4319 = vmatpush1.bf16.msra.mxu0 %v6067_v12  ;;  %v6150_v10 = vld [vmem:[%s8642_s7 + $0x424] ss:$16 sps:$4 sm:$0xff]   ;;  %v6153_v12 = vld [vmem:[%s8642_s7 + $0x42c] ss:$16 sps:$4 sm:$0xff]  }
 0x2ec   :  { %4156 = vmatprep.subr.bf16.mxu1 %v6072_v14  ;;  %4320 = vmatprep.subr.bf16.mxu0 %v6075_v15  ;;  %v6148_v14 = vld [vmem:[%s8642_s7 + $0x420] ss:$16 sps:$4 sm:$0xff]   ;;  %v6151_v15 = vld [vmem:[%s8642_s7 + $0x428] ss:$16 sps:$4 sm:$0xff]  }
 0x2ef   :  { %4157 = vmatpush1.bf16.msra.mxu1 %v6070_v16  ;;  %4321 = vmatpush1.bf16.msra.mxu0 %v6073_v17  ;;  %v6156_v16 = vld [vmem:[%s8642_s7 + $0x444] ss:$16 sps:$4 sm:$0xff]   ;;  %v6159_v17 = vld [vmem:[%s8642_s7 + $0x44c] ss:$16 sps:$4 sm:$0xff]  }
 0x2f0   :  { %4158 = vmatprep.subr.bf16.mxu1 %v6078_v18  ;;  %4322 = vmatprep.subr.bf16.mxu0 %v6081_v19  ;;  %v6154_v18 = vld [vmem:[%s8642_s7 + $0x440] ss:$16 sps:$4 sm:$0xff]   ;;  %v6157_v19 = vld [vmem:[%s8642_s7 + $0x448] ss:$16 sps:$4 sm:$0xff]  }
 0x2f3   :  { %4159 = vmatpush1.bf16.msra.mxu1 %v6076_v20  ;;  %4323 = vmatpush1.bf16.msra.mxu0 %v6079_v21  ;;  %v6162_v20 = vld [vmem:[%s8642_s7 + $0x464] ss:$16 sps:$4 sm:$0xff]   ;;  %v6165_v21 = vld [vmem:[%s8642_s7 + $0x46c] ss:$16 sps:$4 sm:$0xff]  }
 0x2f4   :  { %4160 = vmatprep.subr.bf16.mxu1 %v6084_v22  ;;  %4324 = vmatprep.subr.bf16.mxu0 %v6087_v24  ;;  %v6160_v22 = vld [vmem:[%s8642_s7 + $0x460] ss:$16 sps:$4 sm:$0xff]   ;;  %v6163_v24 = vld [vmem:[%s8642_s7 + $0x468] ss:$16 sps:$4 sm:$0xff]  }
 0x2f7   :  { %4161 = vmatpush1.bf16.msra.mxu1 %v6082_v25  ;;  %4325 = vmatpush1.bf16.msra.mxu0 %v6085_v26  ;;  %v6168_v25 = vld [vmem:[%s8642_s7 + $0x484] ss:$16 sps:$4 sm:$0xff]   ;;  %v6171_v26 = vld [vmem:[%s8642_s7 + $0x48c] ss:$16 sps:$4 sm:$0xff]  }
 0x2f8   :  { %4162 = vmatprep.subr.bf16.mxu1 %v6090_v27  ;;  %4326 = vmatprep.subr.bf16.mxu0 %v6093_v29  ;;  %v6166_v27 = vld [vmem:[%s8642_s7 + $0x480] ss:$16 sps:$4 sm:$0xff]   ;;  %v6169_v29 = vld [vmem:[%s8642_s7 + $0x488] ss:$16 sps:$4 sm:$0xff]  }
 0x2fb   :  { %4163 = vmatpush1.bf16.msra.mxu1 %v6088_v52  ;;  %4327 = vmatpush1.bf16.msra.mxu0 %v6091_v31  ;;  %v6174_v52 = vld [vmem:[%s8642_s7 + $0x4a4] ss:$16 sps:$4 sm:$0xff]   ;;  %v6177_v31 = vld [vmem:[%s8642_s7 + $0x4ac] ss:$16 sps:$4 sm:$0xff]  }
 0x2fc   :  { %4164 = vmatprep.subr.bf16.mxu1 %v6096_v32  ;;  %4328 = vmatprep.subr.bf16.mxu0 %v6099_v33  ;;  %v6172_v32 = vld [vmem:[%s8642_s7 + $0x4a0] ss:$16 sps:$4 sm:$0xff]   ;;  %v6175_v33 = vld [vmem:[%s8642_s7 + $0x4a8] ss:$16 sps:$4 sm:$0xff]  }
 0x2ff   :  { %4165 = vmatpush1.bf16.msra.mxu1 %v6094_v34  ;;  %4329 = vmatpush1.bf16.msra.mxu0 %v6097_v35  ;;  %v6180_v34 = vld [vmem:[%s8642_s7 + $0x4c4] ss:$16 sps:$4 sm:$0xff]   ;;  %v6183_v35 = vld [vmem:[%s8642_s7 + $0x4cc] ss:$16 sps:$4 sm:$0xff]  }
 0x300   :  { %4166 = vmatprep.subr.bf16.mxu1 %v6102_v36  ;;  %4330 = vmatprep.subr.bf16.mxu0 %v6105_v39  ;;  %v6178_v36 = vld [vmem:[%s8642_s7 + $0x4c0] ss:$16 sps:$4 sm:$0xff]   ;;  %v6181_v39 = vld [vmem:[%s8642_s7 + $0x4c8] ss:$16 sps:$4 sm:$0xff]  }
 0x303   :  { %4167 = vmatpush1.bf16.msra.mxu1 %v6100_v40  ;;  %4331 = vmatpush1.bf16.msra.mxu0 %v6103_v42  ;;  %v6186_v40 = vld [vmem:[%s8642_s7 + $0x4e4] ss:$16 sps:$4 sm:$0xff]   ;;  %v6189_v42 = vld [vmem:[%s8642_s7 + $0x4ec] ss:$16 sps:$4 sm:$0xff]  }
 0x304   :  { %4168 = vmatprep.subr.bf16.mxu1 %v6108_v44  ;;  %4332 = vmatprep.subr.bf16.mxu0 %v6111_v13  ;;  %v6184_v44 = vld [vmem:[%s8642_s7 + $0x4e0] ss:$16 sps:$4 sm:$0xff]   ;;  %v6187_v13 = vld [vmem:[%s8642_s7 + $0x4e8] ss:$16 sps:$4 sm:$0xff]  }
 0x307   :  { %4169 = vmatpush1.bf16.msra.mxu1 %v6106_v45  ;;  %4333 = vmatpush1.bf16.msra.mxu0 %v6109_v46  ;;  %v6192_v45 = vld [vmem:[%s8642_s7 + $0x504] ss:$16 sps:$4 sm:$0xff]   ;;  %v6195_v46 = vld [vmem:[%s8642_s7 + $0x50c] ss:$16 sps:$4 sm:$0xff]  }
 0x308   :  { %4170 = vmatprep.subr.bf16.mxu1 %v6114_v53  ;;  %4334 = vmatprep.subr.bf16.mxu0 %v6117_v48  ;;  %v6190_v53 = vld [vmem:[%s8642_s7 + $0x500] ss:$16 sps:$4 sm:$0xff]   ;;  %v6193_v48 = vld [vmem:[%s8642_s7 + $0x508] ss:$16 sps:$4 sm:$0xff]  }
 0x30b   :  { %4171 = vmatpush1.bf16.msra.mxu1 %v6112_v49  ;;  %4335 = vmatpush1.bf16.msra.mxu0 %v6115_v50  ;;  %v6198_v49 = vld [vmem:[%s8642_s7 + $0x524] ss:$16 sps:$4 sm:$0xff]   ;;  %v6201_v50 = vld [vmem:[%s8642_s7 + $0x52c] ss:$16 sps:$4 sm:$0xff]  }
 0x30c   :  { %4172 = vmatprep.subr.bf16.mxu1 %v6120_v51  ;;  %4336 = vmatprep.subr.bf16.mxu0 %v6123_v54  ;;  %v6196_v51 = vld [vmem:[%s8642_s7 + $0x520] ss:$16 sps:$4 sm:$0xff]   ;;  %v6199_v54 = vld [vmem:[%s8642_s7 + $0x528] ss:$16 sps:$4 sm:$0xff]  }
 0x30f   :  { %4173 = vmatpush1.bf16.msra.mxu1 %v6118_v55  ;;  %4337 = vmatpush1.bf16.msra.mxu0 %v6121_v11  ;;  %v6204_v55 = vld [vmem:[%s8642_s7 + $0x544] ss:$16 sps:$4 sm:$0xff]   ;;  %v6207_v11 = vld [vmem:[%s8642_s7 + $0x54c] ss:$16 sps:$4 sm:$0xff]  }
 0x310   :  { %4174 = vmatprep.subr.bf16.mxu1 %v6126_v56  ;;  %4338 = vmatprep.subr.bf16.mxu0 %v6129_v57  ;;  %v6202_v56 = vld [vmem:[%s8642_s7 + $0x540] ss:$16 sps:$4 sm:$0xff]   ;;  %v6205_v57 = vld [vmem:[%s8642_s7 + $0x548] ss:$16 sps:$4 sm:$0xff]  }
 0x313   :  { %4175 = vmatpush1.bf16.msra.mxu1 %v6124_v58  ;;  %4339 = vmatpush1.bf16.msra.mxu0 %v6127_v59  ;;  %v6210_v58 = vld [vmem:[%s8642_s7 + $0x564] ss:$16 sps:$4 sm:$0xff]   ;;  %v6213_v59 = vld [vmem:[%s8642_s7 + $0x56c] ss:$16 sps:$4 sm:$0xff]  }
 0x314   :  { %4176 = vmatprep.subr.bf16.mxu1 %v6132_v63  ;;  %4340 = vmatprep.subr.bf16.mxu0 %v6135_v0  ;;  %v6211_v63 = vld [vmem:[%s8642_s7 + $0x568] ss:$16 sps:$4 sm:$0xff]   ;;  %v6216_v0 = vld [vmem:[%s8642_s7 + $0x584] ss:$16 sps:$4 sm:$0xff]  }
 0x317   :  { %4177 = vmatpush1.bf16.msra.mxu1 %v6130_v2  ;;  %4341 = vmatpush1.bf16.msra.mxu0 %v6133_v3  ;;  %v6219_v2 = vld [vmem:[%s8642_s7 + $0x58c] ss:$16 sps:$4 sm:$0xff]   ;;  %v6214_v3 = vld [vmem:[%s8642_s7 + $0x580] ss:$16 sps:$4 sm:$0xff]  }
 0x318   :  { %4178 = vmatprep.subr.bf16.mxu1 %v6138_v7  ;;  %4342 = vmatprep.subr.bf16.mxu0 %v6141_v60  ;;  %v6222_v7 = vld [vmem:[%s8642_s7 + $0x5a4] ss:$16 sps:$4 sm:$0xff]   ;;  %v6225_v60 = vld [vmem:[%s8642_s7 + $0x5ac] ss:$16 sps:$4 sm:$0xff]  }
 0x31b   :  { %4179 = vmatpush1.bf16.msra.mxu1 %v6136_v61  ;;  %4343 = vmatpush1.bf16.msra.mxu0 %v6139_v47  ;;  %v903_v61 = vsub.s32 4, %v6703_v23  ;;  %v6220_v47 = vld [vmem:[%s8642_s7 + $0x5a0] ss:$16 sps:$4 sm:$0xff]  }
 0x31c   :  { %4189 = vmatprep.subr.bf16.mxu1 %v6144_v1  ;;  %4353 = vmatprep.subr.bf16.mxu0 %v6147_v4  ;;  %v907_v1 = vsub.s32 5, %v6703_v23  ;;  %v6228_v4 = vld [vmem:[%s8642_s7 + $0x5c4] ss:$16 sps:$4 sm:$0xff]  }
 0x31e   :  { %4181 = vmatmul.mubr.bf16.vlgmr.msra.gmra.mrb[12].mxu1 %v2543_v9  ;;  %4345 = vmatmul.mubr.bf16.vlgmr.msra.gmra.mrb[16].mxu0 %v2543_v9  ;;  %v904_v9 = vrot.slane %v7775_v43, %v903_v61  ;;  %v6279_v61 = vld [vmem:[%s8642_s7 + $0x6cc] ss:$16 sps:$4 sm:$0xff]  }
 0x31f   :  { %4190 = vmatpush1.bf16.msra.mxu1 %v6142_v5  ;;  %4354 = vmatpush1.bf16.msra.mxu0 %v6145_v8  ;;  %v6231_v5 = vld [vmem:[%s8642_s7 + $0x5cc] ss:$16 sps:$4 sm:$0xff]   ;;  %v915_v8 = vsub.s32 7, %v6703_v23 }
 0x320   :  { %4191 = vmatprep.subr.bf16.mxu1 %v6150_v10  ;;  %4355 = vmatprep.subr.bf16.mxu0 %v6153_v12  ;;  %v6226_v10 = vld [vmem:[%s8642_s7 + $0x5c0] ss:$16 sps:$4 sm:$0xff]   ;;  %v6229_v12 = vld [vmem:[%s8642_s7 + $0x5c8] ss:$16 sps:$4 sm:$0xff]  }
 0x323   :  { %4192 = vmatpush1.bf16.msra.mxu1 %v6148_v14  ;;  %4356 = vmatpush1.bf16.msra.mxu0 %v6151_v15  ;;  %v908_v14 = vrot.slane %v7775_v43, %v907_v1  ;;  %v916_v15 = vrot.slane %v7775_v43, %v915_v8  ;;  %v6282_v1 = vld [vmem:[%s8642_s7 + $0x6e4] ss:$16 sps:$4 sm:$0xff]   ;;  %v6283_v8 = vld [vmem:[%s8642_s7 + $0x6e8] ss:$16 sps:$4 sm:$0xff]  }
 0x324   :  { %4193 = vmatprep.subr.bf16.mxu1 %v6156_v16  ;;  %4357 = vmatprep.subr.bf16.mxu0 %v6159_v17  ;;  %v6234_v16 = vld [vmem:[%s8642_s7 + $0x5e4] ss:$16 sps:$4 sm:$0xff]   ;;  %v6237_v17 = vld [vmem:[%s8642_s7 + $0x5ec] ss:$16 sps:$4 sm:$0xff]  }
 0x327   :  { %4194 = vmatpush1.bf16.msra.mxu1 %v6154_v18  ;;  %4358 = vmatpush1.bf16.msra.mxu0 %v6157_v19 }
 0x328   :  { %4195 = vmatprep.subr.bf16.mxu1 %v6162_v20  ;;  %4359 = vmatprep.subr.bf16.mxu0 %v6165_v21 }
 0x32b   :  { %4196 = vmatpush1.bf16.msra.mxu1 %v6160_v22  ;;  %4360 = vmatpush1.bf16.msra.mxu0 %v6163_v24  ;;  %v6232_v22 = vld [vmem:[%s8642_s7 + $0x5e0] ss:$16 sps:$4 sm:$0xff]  }
 0x32c   :  { %4197 = vmatprep.subr.bf16.mxu1 %v6168_v25  ;;  %4361 = vmatprep.subr.bf16.mxu0 %v6171_v26 }
 0x32f   :  { %4198 = vmatpush1.bf16.msra.mxu1 %v6166_v27  ;;  %4362 = vmatpush1.bf16.msra.mxu0 %v6169_v29  ;;  %v6235_v27 = vld [vmem:[%s8642_s7 + $0x5e8] ss:$16 sps:$4 sm:$0xff]   ;;  %v6240_v29 = vld [vmem:[%s8642_s7 + $0x604] ss:$16 sps:$4 sm:$0xff]  }
 0x330   :  { %4199 = vmatprep.subr.bf16.mxu1 %v6174_v52  ;;  %4363 = vmatprep.subr.bf16.mxu0 %v6177_v31 }
 0x333   :  { %4200 = vmatpush1.bf16.msra.mxu1 %v6172_v32  ;;  %4364 = vmatpush1.bf16.msra.mxu0 %v6175_v33 }
 0x334   :  { %4201 = vmatprep.subr.bf16.mxu1 %v6180_v34  ;;  %4365 = vmatprep.subr.bf16.mxu0 %v6183_v35  ;;  %v6243_v34 = vld [vmem:[%s8642_s7 + $0x60c] ss:$16 sps:$4 sm:$0xff]  }
 0x337   :  { %4202 = vmatpush1.bf16.msra.mxu1 %v6178_v36  ;;  %4366 = vmatpush1.bf16.msra.mxu0 %v6181_v39 }
 0x338   :  { %4203 = vmatprep.subr.bf16.mxu1 %v6186_v40  ;;  %4367 = vmatprep.subr.bf16.mxu0 %v6189_v42  ;;  %v6238_v42 = vld [vmem:[%s8642_s7 + $0x600] ss:$16 sps:$4 sm:$0xff]  }
 0x33b   :  { %4204 = vmatpush1.bf16.msra.mxu1 %v6184_v44  ;;  %4368 = vmatpush1.bf16.msra.mxu0 %v6187_v13  ;;  %v6241_v44 = vld [vmem:[%s8642_s7 + $0x608] ss:$16 sps:$4 sm:$0xff]  }
 0x33c   :  { %4205 = vmatprep.subr.bf16.mxu1 %v6192_v45  ;;  %4369 = vmatprep.subr.bf16.mxu0 %v6195_v46  ;;  %v6246_v45 = vld [vmem:[%s8642_s7 + $0x624] ss:$16 sps:$4 sm:$0xff]   ;;  %v6249_v46 = vld [vmem:[%s8642_s7 + $0x62c] ss:$16 sps:$4 sm:$0xff]  }
 0x33f   :  { %4206 = vmatpush1.bf16.msra.mxu1 %v6190_v53  ;;  %4370 = vmatpush1.bf16.msra.mxu0 %v6193_v48  ;;  %v6244_v48 = vld [vmem:[%s8642_s7 + $0x620] ss:$16 sps:$4 sm:$0xff]  }
 0x340   :  { %4207 = vmatprep.subr.bf16.mxu1 %v6198_v49  ;;  %4371 = vmatprep.subr.bf16.mxu0 %v6201_v50  ;;  %v6247_v49 = vld [vmem:[%s8642_s7 + $0x628] ss:$16 sps:$4 sm:$0xff]   ;;  %v6252_v50 = vld [vmem:[%s8642_s7 + $0x644] ss:$16 sps:$4 sm:$0xff]  }
 0x343   :  { %4208 = vmatpush1.bf16.msra.mxu1 %v6196_v51  ;;  %4372 = vmatpush1.bf16.msra.mxu0 %v6199_v54  ;;  %v6255_v51 = vld [vmem:[%s8642_s7 + $0x64c] ss:$16 sps:$4 sm:$0xff]   ;;  %v6250_v54 = vld [vmem:[%s8642_s7 + $0x640] ss:$16 sps:$4 sm:$0xff]  }
 0x344   :  { %4209 = vmatprep.subr.bf16.mxu1 %v6204_v55  ;;  %4373 = vmatprep.subr.bf16.mxu0 %v6207_v11  ;;  %v6253_v55 = vld [vmem:[%s8642_s7 + $0x648] ss:$16 sps:$4 sm:$0xff]   ;;  %v6258_v11 = vld [vmem:[%s8642_s7 + $0x664] ss:$16 sps:$4 sm:$0xff]  }
 0x347   :  { %4210 = vmatpush1.bf16.msra.mxu1 %v6202_v56  ;;  %4374 = vmatpush1.bf16.msra.mxu0 %v6205_v57  ;;  %v6261_v56 = vld [vmem:[%s8642_s7 + $0x66c] ss:$16 sps:$4 sm:$0xff]   ;;  %v6256_v57 = vld [vmem:[%s8642_s7 + $0x660] ss:$16 sps:$4 sm:$0xff]  }
 0x348   :  { %4211 = vmatprep.subr.bf16.mxu1 %v6210_v58  ;;  %4375 = vmatprep.subr.bf16.mxu0 %v6213_v59  ;;  %v6259_v58 = vld [vmem:[%s8642_s7 + $0x668] ss:$16 sps:$4 sm:$0xff]   ;;  %v6264_v59 = vld [vmem:[%s8642_s7 + $0x684] ss:$16 sps:$4 sm:$0xff]  }
 0x34b   :  { %4212 = vmatpush1.bf16.msra.mxu1 %v6208_v37  ;;  %4376 = vmatpush1.bf16.msra.mxu0 %v6211_v63  ;;  %v6267_v37 = vld [vmem:[%s8642_s7 + $0x68c] ss:$16 sps:$4 sm:$0xff]   ;;  %v6262_v63 = vld [vmem:[%s8642_s7 + $0x680] ss:$16 sps:$4 sm:$0xff]  }
 0x34c   :  { %4213 = vmatprep.subr.bf16.mxu1 %v6216_v0  ;;  %4377 = vmatprep.subr.bf16.mxu0 %v6219_v2  ;;  %v6265_v0 = vld [vmem:[%s8642_s7 + $0x688] ss:$16 sps:$4 sm:$0xff]   ;;  %v6270_v2 = vld [vmem:[%s8642_s7 + $0x6a4] ss:$16 sps:$4 sm:$0xff]  }
 0x34f   :  { %4214 = vmatpush1.bf16.msra.mxu1 %v6214_v3  ;;  %4378 = vmatpush1.bf16.msra.mxu0 %v6217_v6  ;;  %v6273_v3 = vld [vmem:[%s8642_s7 + $0x6ac] ss:$16 sps:$4 sm:$0xff]   ;;  %v6268_v6 = vld [vmem:[%s8642_s7 + $0x6a0] ss:$16 sps:$4 sm:$0xff]  }
 0x350   :  { %4215 = vmatprep.subr.bf16.mxu1 %v6222_v7  ;;  %4379 = vmatprep.subr.bf16.mxu0 %v6225_v60  ;;  %v6271_v7 = vld [vmem:[%s8642_s7 + $0x6a8] ss:$16 sps:$4 sm:$0xff]   ;;  %v6276_v60 = vld [vmem:[%s8642_s7 + $0x6c4] ss:$16 sps:$4 sm:$0xff]  }
 0x353   :  { %4216 = vmatpush1.bf16.msra.mxu1 %v6220_v47  ;;  %4380 = vmatpush1.bf16.msra.mxu0 %v6223_v62  ;;  %v6274_v47 = vld [vmem:[%s8642_s7 + $0x6c0] ss:$16 sps:$4 sm:$0xff]   ;;  %v6277_v62 = vld [vmem:[%s8642_s7 + $0x6c8] ss:$16 sps:$4 sm:$0xff]  }
 0x354   :  { %4217 = vmatprep.subr.bf16.mxu1 %v6228_v4  ;;  %4381 = vmatprep.subr.bf16.mxu0 %v6231_v5  ;;  %v6285_v4 = vld [vmem:[%s8642_s7 + $0x6ec] ss:$16 sps:$4 sm:$0xff]   ;;  %v6280_v5 = vld [vmem:[%s8642_s7 + $0x6e0] ss:$16 sps:$4 sm:$0xff]  }
 0x355   :  { %v2444_v18 = vpop.f32.mrb[8].mxu1 }
 0x356   :  { %v5793_v19 = vadd.f32 %v2444_v18, %v904_v9  ;;  %v8166_v20 = vpop.f32.mrb[12].mxu0  ;;  %v2446_v21 = vpop.f32.mrb[9].mxu1  ;;  %v6288_v9 = vld [vmem:[%s8642_s7 + $0x704] ss:$16 sps:$4 sm:$0xff]   ;;  %v6295_v18 = vld [vmem:[%s8642_s7 + $0x728] ss:$16 sps:$4 sm:$0xff]  }
 0x357   :  { %v5794_v24 = vadd.f32 %v2446_v21, %v908_v14  ;;  %v2528_v25 = vpop.f32.mrb[13].mxu0  ;;  %4218 = vmatpush1.bf16.msra.mxu1 %v6226_v10  ;;  %4382 = vmatpush1.bf16.msra.mxu0 %v6229_v12  ;;  %v2448_v26 = vpop.f32.mrb[10].mxu1  ;;  %v6291_v10 = vld [vmem:[%s8642_s7 + $0x70c] ss:$16 sps:$4 sm:$0xff]   ;;  %v6286_v12 = vld [vmem:[%s8642_s7 + $0x700] ss:$16 sps:$4 sm:$0xff]  }
 0x358   :  { %v2537_v52 = vmax.f32 %v5793_v19, 0.0  ;;  %v5796_v31 = vadd.f32 %v2528_v25, %v916_v15  ;;  %v2530_v32 = vpop.f32.mrb[14].mxu0  ;;  %v2449_v33 = vpop.f32.mrb[11].mxu1  ;;  %4219 = vmatprep.subr.bf16.mxu1 %v6234_v16  ;;  %4383 = vmatprep.subr.bf16.mxu0 %v6237_v17  ;;  %v6289_v14 = vld [vmem:[%s8642_s7 + $0x708] ss:$16 sps:$4 sm:$0xff]  }
 0x359   :  { %v2538_v35 = vmax.f32 %v5794_v24, 0.0  ;;  %v2531_v36 = vpop.f32.mrb[15].mxu0  ;;  %v6294_v15 = vld [vmem:[%s8642_s7 + $0x724] ss:$16 sps:$4 sm:$0xff]   ;;  %v6297_v16 = vld [vmem:[%s8642_s7 + $0x72c] ss:$16 sps:$4 sm:$0xff]  }
 0x35a   :  { %v2540_v39 = vmax.f32 %v5796_v31, 0.0  ;;  %v2545_v13 = vpack.c.bf16 %v2537_v52, %v2537_v52  ;;  %v6292_v17 = vld [vmem:[%s8642_s7 + $0x720] ss:$16 sps:$4 sm:$0xff]   ;;  %v6300_v19 = vld [vmem:[%s8642_s7 + $0x744] ss:$16 sps:$4 sm:$0xff]  }
 0x35b   :  { %v2546_v40 = vpack.c.bf16 %v2538_v35, %v2538_v35  ;;  %4220 = vmatpush1.bf16.msra.mxu1 %v6232_v22  ;;  %4384 = vmatpush1.bf16.msra.mxu0 %v6235_v27  ;;  %v6303_v21 = vld [vmem:[%s8642_s7 + $0x74c] ss:$16 sps:$4 sm:$0xff]   ;;  %v6298_v22 = vld [vmem:[%s8642_s7 + $0x740] ss:$16 sps:$4 sm:$0xff]   ;;  %v6301_v24 = vld [vmem:[%s8642_s7 + $0x748] ss:$16 sps:$4 sm:$0xff]  }
 0x35c   :  { %4230 = vmatprep.subr.bf16.mxu1 %v6240_v29  ;;  %4394 = vmatprep.subr.bf16.mxu0 %v6243_v34  ;;  %v2548_v53 = vpack.c.bf16 %v2540_v39, %v2540_v39  ;;  %v6306_v25 = vld [vmem:[%s8642_s7 + $0x764] ss:$16 sps:$4 sm:$0xff]   ;;  %v6309_v26 = vld [vmem:[%s8642_s7 + $0x76c] ss:$16 sps:$4 sm:$0xff]   ;;  %v6304_v27 = vld [vmem:[%s8642_s7 + $0x760] ss:$16 sps:$4 sm:$0xff]  }
 0x35d   :  { %4221 = vmatprep.mubr.bf16.mxu1 %v2546_v40  ;;  %4385 = vmatprep.mubr.bf16.mxu0 %v2546_v40  ;;  %v6307_v29 = vld [vmem:[%s8642_s7 + $0x768] ss:$16 sps:$4 sm:$0xff]   ;;  %v6312_v52 = vld [vmem:[%s8642_s7 + $0x784] ss:$16 sps:$4 sm:$0xff]   ;;  %v6315_v31 = vld [vmem:[%s8642_s7 + $0x78c] ss:$16 sps:$4 sm:$0xff]  }
 0x35e   :  { %4222 = vmatmul.mubr.bf16.vlgmr.msra.gmra.mrb[12].mxu1 %v2545_v13  ;;  %4386 = vmatmul.mubr.bf16.vlgmr.msra.gmra.mrb[16].mxu0 %v2545_v13  ;;  %v6310_v32 = vld [vmem:[%s8642_s7 + $0x780] ss:$16 sps:$4 sm:$0xff]   ;;  %v6313_v33 = vld [vmem:[%s8642_s7 + $0x788] ss:$16 sps:$4 sm:$0xff]   ;;  %v911_v34 = vsub.s32 6, %v6703_v23 }
 0x35f   :  { %4231 = vmatpush1.bf16.msra.mxu1 %v6238_v42  ;;  %4395 = vmatpush1.bf16.msra.mxu0 %v6241_v44  ;;  %v6318_v35 = vld [vmem:[%s8642_s7 + $0x7a4] ss:$16 sps:$4 sm:$0xff]   ;;  %v6321_v36 = vld [vmem:[%s8642_s7 + $0x7ac] ss:$16 sps:$4 sm:$0xff]   ;;  %v6316_v39 = vld [vmem:[%s8642_s7 + $0x7a0] ss:$16 sps:$4 sm:$0xff]  }
 0x360   :  { %4262 = vmatprep.mubr.bf16.mxu1 %v2548_v53  ;;  %4426 = vmatprep.mubr.bf16.mxu0 %v2548_v53  ;;  %v6319_v23 = vld [vmem:[%s8642_s7 + $0x7a8] ss:$16 sps:$4 sm:$0xff]   ;;  %v912_v40 = vrot.slane %v7775_v43, %v911_v34  ;;  %v6324_v42 = vld [vmem:[%s8642_s7 + $0x7c4] ss:$16 sps:$4 sm:$0xff]   ;;  %v6327_v44 = vld [vmem:[%s8642_s7 + $0x7cc] ss:$16 sps:$4 sm:$0xff]  }
 0x361   :  { %4232 = vmatprep.subr.bf16.mxu1 %v6246_v45  ;;  %4396 = vmatprep.subr.bf16.mxu0 %v6249_v46  ;;  %v6322_v13 = vld [vmem:[%s8642_s7 + $0x7c0] ss:$16 sps:$4 sm:$0xff]   ;;  %v6325_v43 = vld [vmem:[%s8642_s7 + $0x7c8] ss:$16 sps:$4 sm:$0xff]   ;;  %v6330_v46 = vld [vmem:[%s8642_s7 + $0x7e4] ss:$16 sps:$4 sm:$0xff]  }
 0x362   :  { %v5795_v45 = vadd.f32 %v8166_v20, %v912_v40  ;;  %v6333_v53 = vld [vmem:[%s8642_s7 + $0x7ec] ss:$16 sps:$4 sm:$0xff]   ;;  %v6331_v20 = vld [vmem:[%s8642_s7 + $0x7e8] ss:$16 sps:$4 sm:$0xff]  }
 0x363   :  { %4233 = vmatpush1.bf16.msra.mxu1 %v6244_v48  ;;  %4397 = vmatpush1.bf16.msra.mxu0 %v6247_v49  ;;  %v6328_v48 = vld [vmem:[%s8642_s7 + $0x7e0] ss:$16 sps:$4 sm:$0xff]   ;;  %v6440_v34 = vld [vmem:[%s8645_s11 + $0x68] sm:$0xff]  }
 0x364   :  { %4234 = vmatprep.subr.bf16.mxu1 %v6252_v50  ;;  %4398 = vmatprep.subr.bf16.mxu0 %v6255_v51  ;;  %v2539_v49 = vmax.f32 %v5795_v45, 0.0  ;;  %v6336_v50 = vld [vmem:[%s8644_s9 + $0x4] ss:$8 sps:$4 sm:$0xff]   ;;  %v6334_v51 = vld [vmem:[%s8644_s9] ss:$8 sps:$4 sm:$0xff]  }
 0x367   :  { %4235 = vmatpush1.bf16.msra.mxu1 %v6250_v54  ;;  %4399 = vmatpush1.bf16.msra.mxu0 %v6253_v55  ;;  %v2547_v54 = vpack.c.bf16 %v2539_v49, %v2539_v49  ;;  %v6339_v55 = vld [vmem:[%s8644_s9 + $0x14] ss:$8 sps:$4 sm:$0xff]  }
 0x368   :  { %4236 = vmatprep.subr.bf16.mxu1 %v6258_v11  ;;  %4400 = vmatprep.subr.bf16.mxu0 %v6261_v56  ;;  %v6337_v11 = vld [vmem:[%s8644_s9 + $0x10] ss:$8 sps:$4 sm:$0xff]   ;;  %v6342_v56 = vld [vmem:[%s8644_s9 + $0x24] ss:$8 sps:$4 sm:$0xff]  }
 0x36b   :  { %4237 = vmatpush1.bf16.msra.mxu1 %v6256_v57  ;;  %4401 = vmatpush1.bf16.msra.mxu0 %v6259_v58  ;;  %v6340_v57 = vld [vmem:[%s8644_s9 + $0x20] ss:$8 sps:$4 sm:$0xff]   ;;  %v6345_v58 = vld [vmem:[%s8644_s9 + $0x34] ss:$8 sps:$4 sm:$0xff]  }
 0x36c   :  { %4238 = vmatprep.subr.bf16.mxu1 %v6264_v59  ;;  %4402 = vmatprep.subr.bf16.mxu0 %v6267_v37  ;;  %v6343_v59 = vld [vmem:[%s8644_s9 + $0x30] ss:$8 sps:$4 sm:$0xff]   ;;  %v6348_v37 = vld [vmem:[%s8644_s9 + $0x44] ss:$8 sps:$4 sm:$0xff]  }
 0x36f   :  { %4239 = vmatpush1.bf16.msra.mxu1 %v6262_v63  ;;  %4403 = vmatpush1.bf16.msra.mxu0 %v6265_v0  ;;  %v6346_v63 = vld [vmem:[%s8644_s9 + $0x40] ss:$8 sps:$4 sm:$0xff]   ;;  %v6351_v0 = vld [vmem:[%s8644_s9 + $0x54] ss:$8 sps:$4 sm:$0xff]  }
 0x370   :  { %4240 = vmatprep.subr.bf16.mxu1 %v6270_v2  ;;  %4404 = vmatprep.subr.bf16.mxu0 %v6273_v3  ;;  %v6349_v2 = vld [vmem:[%s8644_s9 + $0x50] ss:$8 sps:$4 sm:$0xff]   ;;  %v6354_v3 = vld [vmem:[%s8644_s9 + $0x64] ss:$8 sps:$4 sm:$0xff]  }
 0x373   :  { %4241 = vmatpush1.bf16.msra.mxu1 %v6268_v6  ;;  %4405 = vmatpush1.bf16.msra.mxu0 %v6271_v7  ;;  %v6352_v6 = vld [vmem:[%s8644_s9 + $0x60] ss:$8 sps:$4 sm:$0xff]   ;;  %v6357_v7 = vld [vmem:[%s8644_s9 + $0x74] ss:$8 sps:$4 sm:$0xff]  }
 0x374   :  { %4242 = vmatprep.subr.bf16.mxu1 %v6276_v60  ;;  %4406 = vmatprep.subr.bf16.mxu0 %v6279_v61  ;;  %v6355_v60 = vld [vmem:[%s8644_s9 + $0x70] ss:$8 sps:$4 sm:$0xff]   ;;  %v6360_v61 = vld [vmem:[%s8644_s9 + $0x84] ss:$8 sps:$4 sm:$0xff]  }
 0x377   :  { %4243 = vmatpush1.bf16.msra.mxu1 %v6274_v47  ;;  %4407 = vmatpush1.bf16.msra.mxu0 %v6277_v62  ;;  %v6358_v47 = vld [vmem:[%s8644_s9 + $0x80] ss:$8 sps:$4 sm:$0xff]   ;;  %v6363_v62 = vld [vmem:[%s8644_s9 + $0x94] ss:$8 sps:$4 sm:$0xff]  }
 0x378   :  { %4244 = vmatprep.subr.bf16.mxu1 %v6282_v1  ;;  %4408 = vmatprep.subr.bf16.mxu0 %v6285_v4  ;;  %v6361_v1 = vld [vmem:[%s8644_s9 + $0x90] ss:$8 sps:$4 sm:$0xff]   ;;  %v6366_v4 = vld [vmem:[%s8644_s9 + $0xa4] ss:$8 sps:$4 sm:$0xff]  }
 0x37b   :  { %4245 = vmatpush1.bf16.msra.mxu1 %v6280_v5  ;;  %4409 = vmatpush1.bf16.msra.mxu0 %v6283_v8  ;;  %v6364_v5 = vld [vmem:[%s8644_s9 + $0xa0] ss:$8 sps:$4 sm:$0xff]   ;;  %v6369_v8 = vld [vmem:[%s8644_s9 + $0xb4] ss:$8 sps:$4 sm:$0xff]  }
 0x37c   :  { %4246 = vmatprep.subr.bf16.mxu1 %v6288_v9  ;;  %4410 = vmatprep.subr.bf16.mxu0 %v6291_v10  ;;  %v6367_v9 = vld [vmem:[%s8644_s9 + $0xb0] ss:$8 sps:$4 sm:$0xff]   ;;  %v6372_v10 = vld [vmem:[%s8644_s9 + $0xc4] ss:$8 sps:$4 sm:$0xff]  }
 0x37f   :  { %4247 = vmatpush1.bf16.msra.mxu1 %v6286_v12  ;;  %4411 = vmatpush1.bf16.msra.mxu0 %v6289_v14  ;;  %v6370_v12 = vld [vmem:[%s8644_s9 + $0xc0] ss:$8 sps:$4 sm:$0xff]   ;;  %v6375_v14 = vld [vmem:[%s8644_s9 + $0xd4] ss:$8 sps:$4 sm:$0xff]  }
 0x380   :  { %4248 = vmatprep.subr.bf16.mxu1 %v6294_v15  ;;  %4412 = vmatprep.subr.bf16.mxu0 %v6297_v16  ;;  %v6373_v15 = vld [vmem:[%s8644_s9 + $0xd0] ss:$8 sps:$4 sm:$0xff]   ;;  %v6378_v16 = vld [vmem:[%s8644_s9 + $0xe4] ss:$8 sps:$4 sm:$0xff]  }
 0x383   :  { %4249 = vmatpush1.bf16.msra.mxu1 %v6292_v17  ;;  %4413 = vmatpush1.bf16.msra.mxu0 %v6295_v18  ;;  %v6376_v17 = vld [vmem:[%s8644_s9 + $0xe0] ss:$8 sps:$4 sm:$0xff]   ;;  %v6381_v18 = vld [vmem:[%s8644_s9 + $0xf4] ss:$8 sps:$4 sm:$0xff]  }
 0x384   :  { %4250 = vmatprep.subr.bf16.mxu1 %v6300_v19  ;;  %4414 = vmatprep.subr.bf16.mxu0 %v6303_v21  ;;  %v6379_v19 = vld [vmem:[%s8644_s9 + $0xf0] ss:$8 sps:$4 sm:$0xff]   ;;  %v6384_v21 = vld [vmem:[%s8644_s9 + $0x104] ss:$8 sps:$4 sm:$0xff]  }
 0x387   :  { %4251 = vmatpush1.bf16.msra.mxu1 %v6298_v22  ;;  %4415 = vmatpush1.bf16.msra.mxu0 %v6301_v24  ;;  %v6430_v22 = vld [vmem:[%s8645_s11 + $0x40] sm:$0xff]  }
 0x388   :  { %4252 = vmatprep.subr.bf16.mxu1 %v6306_v25  ;;  %4416 = vmatprep.subr.bf16.mxu0 %v6309_v26  ;;  %v6431_v24 = vld [vmem:[%s8645_s11] sm:$0xff]   ;;  %v6432_v25 = vld [vmem:[%s8645_s11 + $0x48] sm:$0xff]  }
 0x389   :  { %v6433_v26 = vld [vmem:[%s8645_s11 + $0x8] sm:$0xff]  }
 0x38b   :  { %4253 = vmatpush1.bf16.msra.mxu1 %v6304_v27  ;;  %4417 = vmatpush1.bf16.msra.mxu0 %v6307_v29  ;;  %v6434_v27 = vld [vmem:[%s8645_s11 + $0x50] sm:$0xff]  }
 0x38c   :  { %4254 = vmatprep.subr.bf16.mxu1 %v6312_v52  ;;  %4418 = vmatprep.subr.bf16.mxu0 %v6315_v31  ;;  %v6435_v29 = vld [vmem:[%s8645_s11 + $0x10] sm:$0xff]   ;;  %v6436_v52 = vld [vmem:[%s8645_s11 + $0x58] sm:$0xff]  }
 0x38d   :  { %v6437_v31 = vld [vmem:[%s8645_s11 + $0x18] sm:$0xff]  }
 0x38f   :  { %4255 = vmatpush1.bf16.msra.mxu1 %v6310_v32  ;;  %4419 = vmatpush1.bf16.msra.mxu0 %v6313_v33  ;;  %v6438_v32 = vld [vmem:[%s8645_s11 + $0x60] sm:$0xff]  }
 0x390   :  { %4256 = vmatprep.subr.bf16.mxu1 %v6318_v35  ;;  %4420 = vmatprep.subr.bf16.mxu0 %v6321_v36  ;;  %v6439_v33 = vld [vmem:[%s8645_s11 + $0x20] sm:$0xff]   ;;  %v6441_v35 = vld [vmem:[%s8645_s11 + $0x28] sm:$0xff]  }
 0x391   :  { %v8507_v36 = vld [vmem:[%s8646_s8] sm:$0xf] }
 0x392   :  { %v2822_v40 = vrot.slane %v8507_v36, %v7156_v41  ;;  %v6382_v41 = vld [vmem:[%s8644_s9 + $0x100] ss:$8 sps:$4 sm:$0xff]  }
 0x393   :  { %4257 = vmatpush1.bf16.msra.mxu1 %v6316_v39  ;;  %4421 = vmatpush1.bf16.msra.mxu0 %v6319_v23  ;;  %v2810_v39 = vrot.slane %v8507_v36, %v6712_v28  ;;  %v2814_v23 = vrot.slane %v8507_v36, %v6718_v30 }
 0x394   :  { %4258 = vmatprep.subr.bf16.mxu1 %v6324_v42  ;;  %4422 = vmatprep.subr.bf16.mxu0 %v6327_v44 }
 0x397   :  { %4259 = vmatpush1.bf16.msra.mxu1 %v6322_v13  ;;  %4423 = vmatpush1.bf16.msra.mxu0 %v6325_v43 }
 0x398   :  { %4260 = vmatprep.subr.bf16.mxu1 %v6330_v46  ;;  %4424 = vmatprep.subr.bf16.mxu0 %v6333_v53 }
 0x39b   :  { %4261 = vmatpush1.bf16.msra.mxu1 %v6328_v48  ;;  %4425 = vmatpush1.bf16.msra.mxu0 %v6331_v20 }
 0x39c   :  { %4839 = vmatprep.subr.bf16.mxu1 %v6336_v50  ;;  %5767 = vmatprep.subr.bf16.mxu0 %v6430_v22  ;;  %v6426_v22 = vld [vmem:[%s8644_s9 + $0x1e4] ss:$8 sps:$4 sm:$0xff]  }
 0x39e   :  { %4263 = vmatmul.mubr.bf16.vlgmr.msra.gmra.mrb[12].mxu1 %v2547_v54  ;;  %4427 = vmatmul.mubr.bf16.vlgmr.msra.gmra.mrb[16].mxu0 %v2547_v54 }
 0x39f   :  { %4840 = vmatpush1.bf16.msra.mxu1 %v6334_v51  ;;  %5768 = vmatpush3.bf16.msra.mxu0 %v6431_v24  ;;  %v6424_v24 = vld [vmem:[%s8644_s9 + $0x1e0] ss:$8 sps:$4 sm:$0xff]  }
 0x3a0   :  { %4841 = vmatprep.subr.bf16.mxu1 %v6339_v55  ;;  %5769 = vmatprep.subr.bf16.mxu0 %v6432_v25 }
 0x3a3   :  { %4842 = vmatpush1.bf16.msra.mxu1 %v6337_v11  ;;  %5770 = vmatpush3.bf16.msra.mxu0 %v6433_v26  ;;  %v6429_v26 = vld [vmem:[%s8644_s9 + $0x1f4] ss:$8 sps:$4 sm:$0xff]  }
 0x3a4   :  { %4843 = vmatprep.subr.bf16.mxu1 %v6342_v56  ;;  %5771 = vmatprep.subr.bf16.mxu0 %v6434_v27 }
 0x3a7   :  { %4844 = vmatpush1.bf16.msra.mxu1 %v6340_v57  ;;  %5772 = vmatpush3.bf16.msra.mxu0 %v6435_v29  ;;  %v6387_v57 = vld [vmem:[%s8644_s9 + $0x114] ss:$8 sps:$4 sm:$0xff]  }
 0x3a8   :  { %4845 = vmatprep.subr.bf16.mxu1 %v6345_v58  ;;  %5773 = vmatprep.subr.bf16.mxu0 %v6436_v52  ;;  %v6442_v52 = vld [vmem:[%s8645_s11 + $0x70] sm:$0xff]  }
 0x3ab   :  { %4846 = vmatpush1.bf16.msra.mxu1 %v6343_v59  ;;  %5774 = vmatpush3.bf16.msra.mxu0 %v6437_v31  ;;  %v6385_v59 = vld [vmem:[%s8644_s9 + $0x110] ss:$8 sps:$4 sm:$0xff]  }
 0x3ac   :  { %4847 = vmatprep.subr.bf16.mxu1 %v6348_v37  ;;  %5775 = vmatprep.subr.bf16.mxu0 %v6438_v32  ;;  %v6390_v37 = vld [vmem:[%s8644_s9 + $0x124] ss:$8 sps:$4 sm:$0xff]   ;;  %v6443_v31 = vld [vmem:[%s8645_s11 + $0x30] sm:$0xff]   ;;  %v6444_v32 = vld [vmem:[%s8645_s11 + $0x78] sm:$0xff]  }
 0x3af   :  { %4848 = vmatpush1.bf16.msra.mxu1 %v6346_v63  ;;  %5776 = vmatpush3.bf16.msra.mxu0 %v6439_v33  ;;  %v6388_v63 = vld [vmem:[%s8644_s9 + $0x120] ss:$8 sps:$4 sm:$0xff]   ;;  %v6445_v33 = vld [vmem:[%s8645_s11 + $0x38] sm:$0xff]  }
 0x3b0   :  { %4849 = vmatprep.subr.bf16.mxu1 %v6351_v0  ;;  %5777 = vmatprep.subr.bf16.mxu0 %v6440_v34  ;;  %v6393_v0 = vld [vmem:[%s8644_s9 + $0x134] ss:$8 sps:$4 sm:$0xff]   ;;  %v4507_v34 = vld [vmem:[%s8647_s10] sm:$0x3] }
 0x3b3   :  { %4850 = vmatpush1.bf16.msra.mxu1 %v6349_v2  ;;  %5778 = vmatpush3.bf16.msra.mxu0 %v6441_v35  ;;  %v6391_v2 = vld [vmem:[%s8644_s9 + $0x130] ss:$8 sps:$4 sm:$0xff]   ;;  %v4512_v35 = vrot.slane %v4507_v34, %v6712_v28 }
 0x3b4   :  { %4851 = vmatprep.subr.bf16.mxu1 %v6354_v3  ;;  %v6396_v3 = vld [vmem:[%s8644_s9 + $0x144] ss:$8 sps:$4 sm:$0xff]   ;;  %5779 = vmatprep.subr.bf16.mxu0 %v6442_v52 }
 0x3b7   :  { %4852 = vmatpush1.bf16.msra.mxu1 %v6352_v6  ;;  %v6394_v6 = vld [vmem:[%s8644_s9 + $0x140] ss:$8 sps:$4 sm:$0xff]   ;;  %5780 = vmatpush3.bf16.msra.mxu0 %v6443_v31 }
 0x3b8   :  { %4853 = vmatprep.subr.bf16.mxu1 %v6357_v7  ;;  %v6399_v7 = vld [vmem:[%s8644_s9 + $0x154] ss:$8 sps:$4 sm:$0xff]   ;;  %5781 = vmatprep.subr.bf16.mxu0 %v6444_v32 }
 0x3bb   :  { %4854 = vmatpush1.bf16.msra.mxu1 %v6355_v60  ;;  %v6397_v60 = vld [vmem:[%s8644_s9 + $0x150] ss:$8 sps:$4 sm:$0xff]   ;;  %5782 = vmatpush3.bf16.msra.mxu0 %v6445_v33 }
 0x3bc   :  { %4855 = vmatprep.subr.bf16.mxu1 %v6360_v61  ;;  %v6402_v61 = vld [vmem:[%s8644_s9 + $0x164] ss:$8 sps:$4 sm:$0xff]  }
 0x3bf   :  { %4856 = vmatpush1.bf16.msra.mxu1 %v6358_v47  ;;  %v6400_v47 = vld [vmem:[%s8644_s9 + $0x160] ss:$8 sps:$4 sm:$0xff]  }
 0x3c0   :  { %4857 = vmatprep.subr.bf16.mxu1 %v6363_v62  ;;  %v6405_v62 = vld [vmem:[%s8644_s9 + $0x174] ss:$8 sps:$4 sm:$0xff]  }
 0x3c3   :  { %4858 = vmatpush1.bf16.msra.mxu1 %v6361_v1  ;;  %v6403_v1 = vld [vmem:[%s8644_s9 + $0x170] ss:$8 sps:$4 sm:$0xff]  }
 0x3c4   :  { %4859 = vmatprep.subr.bf16.mxu1 %v6366_v4  ;;  %v6408_v4 = vld [vmem:[%s8644_s9 + $0x184] ss:$8 sps:$4 sm:$0xff]  }
 0x3c7   :  { %4860 = vmatpush1.bf16.msra.mxu1 %v6364_v5  ;;  %v6406_v5 = vld [vmem:[%s8644_s9 + $0x180] ss:$8 sps:$4 sm:$0xff]  }
 0x3c8   :  { %4861 = vmatprep.subr.bf16.mxu1 %v6369_v8  ;;  %v6411_v8 = vld [vmem:[%s8644_s9 + $0x194] ss:$8 sps:$4 sm:$0xff]  }
 0x3cb   :  { %4862 = vmatpush1.bf16.msra.mxu1 %v6367_v9  ;;  %v6409_v9 = vld [vmem:[%s8644_s9 + $0x190] ss:$8 sps:$4 sm:$0xff]  }
 0x3cc   :  { %4863 = vmatprep.subr.bf16.mxu1 %v6372_v10  ;;  %v6414_v10 = vld [vmem:[%s8644_s9 + $0x1a4] ss:$8 sps:$4 sm:$0xff]  }
 0x3cf   :  { %4864 = vmatpush1.bf16.msra.mxu1 %v6370_v12  ;;  %v6412_v12 = vld [vmem:[%s8644_s9 + $0x1a0] ss:$8 sps:$4 sm:$0xff]  }
 0x3d0   :  { %4865 = vmatprep.subr.bf16.mxu1 %v6375_v14  ;;  %v6417_v14 = vld [vmem:[%s8644_s9 + $0x1b4] ss:$8 sps:$4 sm:$0xff]  }
 0x3d3   :  { %4866 = vmatpush1.bf16.msra.mxu1 %v6373_v15  ;;  %v6415_v15 = vld [vmem:[%s8644_s9 + $0x1b0] ss:$8 sps:$4 sm:$0xff]  }
 0x3d4   :  { %4867 = vmatprep.subr.bf16.mxu1 %v6378_v16  ;;  %v6420_v16 = vld [vmem:[%s8644_s9 + $0x1c4] ss:$8 sps:$4 sm:$0xff]  }
 0x3d7   :  { %4868 = vmatpush1.bf16.msra.mxu1 %v6376_v17  ;;  %v6418_v17 = vld [vmem:[%s8644_s9 + $0x1c0] ss:$8 sps:$4 sm:$0xff]  }
 0x3d8   :  { %4869 = vmatprep.subr.bf16.mxu1 %v6381_v18  ;;  %v6423_v18 = vld [vmem:[%s8644_s9 + $0x1d4] ss:$8 sps:$4 sm:$0xff]  }
 0x3db   :  { %4870 = vmatpush1.bf16.msra.mxu1 %v6379_v19  ;;  %v6421_v19 = vld [vmem:[%s8644_s9 + $0x1d0] ss:$8 sps:$4 sm:$0xff]  }
 0x3dc   :  { %4880 = vmatprep.subr.bf16.mxu1 %v6384_v21  ;;  %v2818_v21 = vrot.slane %v8507_v36, %v7153_v38  ;;  %v6427_v38 = vld [vmem:[%s8644_s9 + $0x1f0] ss:$8 sps:$4 sm:$0xff]   ;;  %v4516_v36 = vrot.slane %v4507_v34, %v6718_v30 }
 0x471   :  { %v4264_v42 = vpop.f32.mrb[12].mxu1  ;;  %v8515_v44 = vpop.f32.mrb[16].mxu0 }
 0x472   :  { %v5797_v13 = vadd.f32 %v4264_v42, %v2810_v39  ;;  %v4266_v43 = vpop.f32.mrb[13].mxu1  ;;  %v4430_v45 = vpop.f32.mrb[17].mxu0  ;;  %v5799_v25 = vadd.f32 %v8515_v44, %v2818_v21 }
 0x473   :  { %v5798_v46 = vadd.f32 %v4266_v43, %v2814_v23  ;;  %v5800_v53 = vadd.f32 %v4430_v45, %v2822_v40  ;;  %v4268_v48 = vpop.f32.mrb[14].mxu1  ;;  %v4432_v20 = vpop.f32.mrb[18].mxu0 }
 0x474   :  { %v4435_v49 = vmax.f32 %v5797_v13, 0.0  ;;  %v4269_v50 = vpop.f32.mrb[15].mxu1  ;;  %v4433_v51 = vpop.f32.mrb[19].mxu0  ;;  %v4437_v27 = vmax.f32 %v5799_v25, 0.0  ;;  %v5750_v20 = vld [vmem:[%s8648_s12] ss:$0 sm:$0xff] }
 0x475   :  { %v4436_v54 = vmax.f32 %v5798_v46, 0.0  ;;  %v4438_v55 = vmax.f32 %v5800_v53, 0.0 }
 0x476   :  { %v4439_v56 = vpack.c.bf16 %v4435_v49, %v4435_v49  ;;  %v4441_v29 = vpack.c.bf16 %v4437_v27, %v4437_v27 }
 0x477   :  { %v4440_v11 = vpack.c.bf16 %v4436_v54, %v4436_v54  ;;  %v4442_v58 = vpack.c.bf16 %v4438_v55, %v4438_v55 }
 0x479   :  { %4871 = vmatprep.mubr.bf16.mxu1 %v4440_v11 }
 0x47a   :  { %4872 = vmatmul.mubr.bf16.vlgmr.msra.gmra.mrb[16].mxu1 %v4439_v56 }
 0x47b   :  { %4881 = vmatpush1.bf16.msra.mxu1 %v6382_v41  ;;  %4912 = vmatprep.mubr.bf16.mxu1 %v4442_v58 }
 0x47c   :  { %4882 = vmatprep.subr.bf16.mxu1 %v6387_v57 }
 0x47f   :  { %4883 = vmatpush1.bf16.msra.mxu1 %v6385_v59 }
 0x480   :  { %4884 = vmatprep.subr.bf16.mxu1 %v6390_v37 }
 0x483   :  { %4885 = vmatpush1.bf16.msra.mxu1 %v6388_v63 }
 0x484   :  { %4886 = vmatprep.subr.bf16.mxu1 %v6393_v0 }
 0x487   :  { %4887 = vmatpush1.bf16.msra.mxu1 %v6391_v2 }
 0x488   :  { %4888 = vmatprep.subr.bf16.mxu1 %v6396_v3 }
 0x48b   :  { %4889 = vmatpush1.bf16.msra.mxu1 %v6394_v6 }
 0x48c   :  { %4890 = vmatprep.subr.bf16.mxu1 %v6399_v7 }
 0x48f   :  { %4891 = vmatpush1.bf16.msra.mxu1 %v6397_v60 }
 0x490   :  { %4892 = vmatprep.subr.bf16.mxu1 %v6402_v61 }
 0x493   :  { %4893 = vmatpush1.bf16.msra.mxu1 %v6400_v47 }
 0x494   :  { %4894 = vmatprep.subr.bf16.mxu1 %v6405_v62 }
 0x497   :  { %4895 = vmatpush1.bf16.msra.mxu1 %v6403_v1 }
 0x498   :  { %4896 = vmatprep.subr.bf16.mxu1 %v6408_v4 }
 0x49b   :  { %4897 = vmatpush1.bf16.msra.mxu1 %v6406_v5 }
 0x49c   :  { %4898 = vmatprep.subr.bf16.mxu1 %v6411_v8 }
 0x49f   :  { %4899 = vmatpush1.bf16.msra.mxu1 %v6409_v9 }
 0x4a0   :  { %4900 = vmatprep.subr.bf16.mxu1 %v6414_v10 }
 0x4a3   :  { %4901 = vmatpush1.bf16.msra.mxu1 %v6412_v12 }
 0x4a4   :  { %4902 = vmatprep.subr.bf16.mxu1 %v6417_v14 }
 0x4a7   :  { %4903 = vmatpush1.bf16.msra.mxu1 %v6415_v15 }
 0x4a8   :  { %4904 = vmatprep.subr.bf16.mxu1 %v6420_v16 }
 0x4ab   :  { %4905 = vmatpush1.bf16.msra.mxu1 %v6418_v17 }
 0x4ac   :  { %4906 = vmatprep.subr.bf16.mxu1 %v6423_v18 }
 0x4af   :  { %4907 = vmatpush1.bf16.msra.mxu1 %v6421_v19 }
 0x4b0   :  { %4908 = vmatprep.subr.bf16.mxu1 %v6426_v22 }
 0x4b3   :  { %4909 = vmatpush1.bf16.msra.mxu1 %v6424_v24 }
 0x4b4   :  { %4910 = vmatprep.subr.bf16.mxu1 %v6429_v26 }
 0x4b7   :  { %4911 = vmatpush1.bf16.msra.mxu1 %v6427_v38 }
 0x4ba   :  { %4913 = vmatmul.mubr.bf16.vlgmr.msra.gmra.mrb[16].mxu1 %v4441_v29 }
 0x58d   :  { %v4914_v39 = vpop.f32.mrb[16].mxu1 }
 0x58e   :  { %v5801_v23 = vadd.f32 %v4914_v39, %v4512_v35  ;;  %v4916_v40 = vpop.f32.mrb[17].mxu1 }
 0x58f   :  { %v5802_v42 = vadd.f32 %v4916_v40, %v4516_v36  ;;  %v4918_v44 = vpop.f32.mrb[18].mxu1 }
 0x590   :  { %v4921_v13 = vmax.f32 %v5801_v23, 0.0  ;;  %v4919_v43 = vpop.f32.mrb[19].mxu1 }
 0x591   :  { %v4922_v45 = vmax.f32 %v5802_v42, 0.0 }
 0x592   :  { %v4923_v53 = vpack.c.bf16 %v4921_v13, %v4921_v13 }
 0x593   :  { %v4924_v46 = vpack.c.bf16 %v4922_v45, %v4922_v45 }
 0x595   :  { %5092 = vmatprep.mubr.bf16.mxu0 %v4924_v46 }
 0x596   :  { %5093 = vmatmul.mubr.bf16.vlgmr.msra.gmra.mrb[20].mxu0 %v4923_v53 }
 0x669   :  { %v5783_v48 = vpop.f32.mrb[20].mxu0 }
 0x66a   :  { %v5784_v28 = vpop.f32.mrb[21].mxu0 }
 0x66b   :  { %v5785_v49 = vadd.f32 %v5784_v28, %v5783_v48  ;;  %v5786_v30 = vpop.f32.mrb[22].mxu0 }
 0x66c   :  { %v5787_v50 = vpop.f32.mrb[23].mxu0 }
 0x66d   :  { %v5095_v51 = vadd.f32 %v5785_v49, %v5750_v20 }
 0x66f   :  { %5100 = vst [vmem:[%s8649_s13] sm:$0xff] %v5095_v51 }

</bundles_post_ra>
